<compile_context>
chip_gen: v7x
topology: tpu7x:2x2x1
jax: 0.10.0
libtpu: 0.0.40
codegen_flags: <defaults>
</compile_context>

<pallas_src>
import functools

import jax
import jax.numpy as jnp
from jax.experimental import pallas as pl
from jax.experimental.pallas import tpu as pltpu


# ----------------------------------------------------------------------------
# helpers
# ----------------------------------------------------------------------------
def _round_up(x, m):
    return (x + m - 1) // m * m


def _pick_tile(dim_padded, single_max=1024, div_max=512):
    """dim_padded is a multiple of 128.  Use it whole when small (single tile,
    no re-reads / no extra padding), otherwise the largest 128-multiple
    divisor <= div_max."""
    if dim_padded <= single_max:
        return dim_padded
    for cand in range(div_max, 0, -128):
        if dim_padded % cand == 0:
            return cand
    return 128


# ----------------------------------------------------------------------------
# Pallas GEMM kernel with fused BN scale/shift, optional residual, optional ReLU
# ----------------------------------------------------------------------------
def _gemm_epilogue_kernel(a_ref, b_ref, scale_ref, shift_ref, *rest,
                          apply_relu, has_residual):
    """out = [relu]( (A @ B) * scale + shift [+ residual] ).

    Grid = (M tiles, N tiles, K tiles); K is the innermost (reduction) axis.
    Accumulation is into an f32 VMEM scratch; the (bf16 or f32) output block is
    written once, on the last K step, after an all-f32 epilogue.
    """
    if has_residual:
        res_ref, o_ref, acc_ref = rest
    else:
        o_ref, acc_ref = rest

    k = pl.program_id(2)

    @pl.when(k == 0)
    def _init():
        acc_ref[...] = jnp.zeros_like(acc_ref)

    acc_ref[...] += jnp.dot(a_ref[...], b_ref[...],
                            preferred_element_type=jnp.float32)

    @pl.when(k == pl.num_programs(2) - 1)
    def _finalize():
        y = acc_ref[...] * scale_ref[...] + shift_ref[...]
        if has_residual:
            y = y + res_ref[...].astype(jnp.float32)
        if apply_relu:
            y = jnp.maximum(y, 0.0)
        o_ref[...] = y.astype(o_ref.dtype)


def gemm_bn_act(a, b, scale, shift, residual=None, apply_relu=True,
                out_dtype=jnp.bfloat16):
    """A:(M,K) @ B:(K,N) -> per-column scale/shift (+residual) (+ReLU).

    A/B/residual are fed in bf16; accumulation and epilogue are f32; the output
    is written in `out_dtype` (bf16 for activations, f32 for the final logits).
    """
    M, K = a.shape
    K2, N = b.shape
    assert K == K2, (K, K2)

    TM = min(512, _round_up(M, 8))
    Mp = _round_up(M, TM)
    Np = _round_up(N, 128)
    TN = _pick_tile(Np)
    Kp = _round_up(K, 128)
    TK = _pick_tile(Kp)

    a_p = jnp.pad(a.astype(jnp.bfloat16), ((0, Mp - M), (0, Kp - K)))
    b_p = jnp.pad(b.astype(jnp.bfloat16), ((0, Kp - K), (0, Np - N)))
    sc_p = jnp.pad(scale.astype(jnp.float32).reshape(1, -1),
                   ((0, 0), (0, Np - N)))
    sh_p = jnp.pad(shift.astype(jnp.float32).reshape(1, -1),
                   ((0, 0), (0, Np - N)))

    inputs = [a_p, b_p, sc_p, sh_p]
    in_specs = [
        pl.BlockSpec((TM, TK), lambda i, j, k: (i, k)),
        pl.BlockSpec((TK, TN), lambda i, j, k: (k, j)),
        pl.BlockSpec((1, TN), lambda i, j, k: (0, j)),
        pl.BlockSpec((1, TN), lambda i, j, k: (0, j)),
    ]

    has_residual = residual is not None
    if has_residual:
        r_p = jnp.pad(residual.astype(jnp.bfloat16),
                      ((0, Mp - M), (0, Np - N)))
        inputs.append(r_p)
        # K-invariant index map: residual tile DMA'd once per (i, j).
        in_specs.append(pl.BlockSpec((TM, TN), lambda i, j, k: (i, j)))

    kernel = functools.partial(_gemm_epilogue_kernel,
                               apply_relu=apply_relu,
                               has_residual=has_residual)
    out = pl.pallas_call(
        kernel,
        out_shape=jax.ShapeDtypeStruct((Mp, Np), out_dtype),
        grid=(Mp // TM, Np // TN, Kp // TK),
        in_specs=in_specs,
        out_specs=pl.BlockSpec((TM, TN), lambda i, j, k: (i, j)),
        scratch_shapes=[pltpu.VMEM((TM, TN), jnp.float32)],
        compiler_params=pltpu.CompilerParams(
            dimension_semantics=("parallel", "parallel", "arbitrary"),
        ),
    )(*inputs)
    return out[:M, :N]


# ----------------------------------------------------------------------------
# Pallas global-average-pool kernel (parallel C tiles, streaming spatial sum)
# ----------------------------------------------------------------------------
def _gap_kernel(x_ref, o_ref, *, inv_count):
    s = pl.program_id(1)

    @pl.when(s == 0)
    def _init():
        o_ref[...] = jnp.zeros_like(o_ref)

    o_ref[...] += jnp.sum(x_ref[...].astype(jnp.float32), axis=1)

    @pl.when(s == pl.num_programs(1) - 1)
    def _finalize():
        o_ref[...] = o_ref[...] * inv_count


def global_avg_pool(x_nhwc):
    """F.avg_pool2d(x, x.shape[2:]) + flatten -> (N, C) float32."""
    Nb, H, W, C = x_nhwc.shape
    S = H * W
    TS = min(2048, _round_up(S, 8))
    Sp = _round_up(S, TS)
    TC = min(512, _round_up(C, 128))
    Cp = _round_up(C, TC)
    x3 = jnp.pad(x_nhwc.reshape(Nb, S, C),
                 ((0, 0), (0, Sp - S), (0, Cp - C)))
    kernel = functools.partial(_gap_kernel, inv_count=1.0 / float(S))
    out = pl.pallas_call(
        kernel,
        out_shape=jax.ShapeDtypeStruct((Nb, Cp), jnp.float32),
        grid=(Cp // TC, Sp // TS),
        in_specs=[pl.BlockSpec((Nb, TS, TC), lambda c, s: (0, s, c))],
        out_specs=pl.BlockSpec((Nb, TC), lambda c, s: (0, c)),
        compiler_params=pltpu.CompilerParams(
            dimension_semantics=("parallel", "arbitrary"),
        ),
    )(x3)
    return out[:, :C]


# ----------------------------------------------------------------------------
# JAX glue: im2col (bf16), conv+bn(+residual)(+relu), fused max-pool
# ----------------------------------------------------------------------------
def _im2col(x, kh, kw, stride, pad):
    """x: NHWC bf16 -> (N*Ho*Wo, kh*kw*C) bf16 patch matrix."""
    N, H, W, C = x.shape
    xp = jnp.pad(x, ((0, 0), (pad, pad), (pad, pad), (0, 0)))
    Ho = (H + 2 * pad - kh) // stride + 1
    Wo = (W + 2 * pad - kw) // stride + 1
    cols = []
    for i in range(kh):
        for j in range(kw):
            cols.append(xp[:, i:i + stride * Ho:stride, j:j + stride * Wo:stride, :])
    patches = jnp.stack(cols, axis=3)                 # (N, Ho, Wo, kh*kw, C)
    return patches.reshape(N * Ho * Wo, kh * kw * C), Ho, Wo


def conv_bn(x, p, stride, pad, relu, residual=None):
    """Conv2d(bias=False) + folded BatchNorm (+residual) (+ReLU), NHWC in/out (bf16)."""
    k = p['k']
    N = x.shape[0]
    if k == 1:
        # 1x1 conv: no im2col needed; stride is a plain spatial subsample.
        xs = x if stride == 1 else x[:, ::stride, ::stride, :]
        Ho, Wo = xs.shape[1], xs.shape[2]
        cols = xs.reshape(N * Ho * Wo, xs.shape[3])
    else:
        cols, Ho, Wo = _im2col(x.astype(jnp.bfloat16), k, k, stride, pad)
    res2d = None
    if residual is not None:
        res2d = residual.reshape(N * Ho * Wo, -1)
    out = gemm_bn_act(cols, p['w'], p['scale'], p['shift'],
                      residual=res2d, apply_relu=relu,
                      out_dtype=jnp.bfloat16)
    return out.reshape(N, Ho, Wo, -1)


def max_pool_3x3_s2_p1(x):
    """nn.MaxPool2d(kernel_size=3, stride=2, padding=1), NHWC.

    Chained jnp.maximum over 9 fused XLA strided-slice taps (no (9,M,C)
    intermediate); the overlapping stride-2 windows are not expressible as a
    Pallas BlockSpec, and this keeps HBM traffic at ~1 read + 1 write.
    """
    N, H, W, C = x.shape
    xp = jnp.pad(x, ((0, 0), (1, 1), (1, 1), (0, 0)),
                 constant_values=-jnp.inf)
    Ho = (H + 2 - 3) // 2 + 1
    Wo = (W + 2 - 3) // 2 + 1
    out = None
    for i in range(3):
        for j in range(3):
            tap = xp[:, i:i + 2 * Ho:2, j:j + 2 * Wo:2, :]
            out = tap if out is None else jnp.maximum(out, tap)
    return out


# ----------------------------------------------------------------------------
# Parameter construction (deterministic) and forward pass
# ----------------------------------------------------------------------------
_BN_EPS = 1e-5


def _conv_bn_params(key, cin, cout, k):
    fan_in = k * k * cin
    w = jax.random.normal(key, (k * k * cin, cout), jnp.float32) * (2.0 / fan_in) ** 0.5
    gamma = jnp.ones((cout,), jnp.float32)
    beta = jnp.zeros((cout,), jnp.float32)
    running_mean = jnp.zeros((cout,), jnp.float32)
    running_var = jnp.ones((cout,), jnp.float32)
    scale = gamma / jnp.sqrt(running_var + _BN_EPS)
    shift = beta - running_mean * scale
    # Weights are pre-cast to bf16 once (MXU-native); BN scale/shift stay f32.
    return {'w': w.astype(jnp.bfloat16), 'scale': scale, 'shift': shift, 'k': k}


def make_resnet_params(key, num_classes, base=16, layers=(1, 1, 1, 1)):
    keys = iter(jax.random.split(key, 4096))
    params = {'conv1': _conv_bn_params(next(keys), 3, base, 7)}
    inplanes = base
    stages = []
    for stage_idx, nblocks in enumerate(layers):
        planes = base * (2 ** stage_idx)
        stage_stride = 1 if stage_idx == 0 else 2
        blocks = []
        for b in range(nblocks):
            s = stage_stride if b == 0 else 1
            blk = {
                'conv1': _conv_bn_params(next(keys), inplanes, planes, 1),
                'conv2': _conv_bn_params(next(keys), planes, planes, 3),
                'conv3': _conv_bn_params(next(keys), planes, planes * 4, 1),
                'stride': s,
            }
            if s != 1 or inplanes != planes * 4:
                blk['downsample'] = _conv_bn_params(next(keys), inplanes, planes * 4, 1)
            inplanes = planes * 4
            blocks.append(blk)
        stages.append(blocks)
    params['stages'] = stages
    params['fc_w'] = (jax.random.normal(next(keys), (inplanes, num_classes), jnp.float32)
                      * (1.0 / inplanes) ** 0.5).astype(jnp.bfloat16)
    params['fc_b'] = jnp.zeros((num_classes,), jnp.float32)
    return params


def bottleneck(x, blk):
    identity = x
    if 'downsample' in blk:
        identity = conv_bn(x, blk['downsample'], stride=blk['stride'], pad=0,
                           relu=False)
    out = conv_bn(x, blk['conv1'], stride=1, pad=0, relu=True)
    out = conv_bn(out, blk['conv2'], stride=blk['stride'], pad=1, relu=True)
    # conv3 + bn3 + residual add + ReLU fused in one GEMM epilogue.
    out = conv_bn(out, blk['conv3'], stride=1, pad=0, relu=True,
                  residual=identity)
    return out


def resnet_forward(params, x_nchw):
    # NCHW (PyTorch) -> NHWC (TPU lanes = channels)
    x = jnp.transpose(x_nchw.astype(jnp.float32), (0, 2, 3, 1))
    x = conv_bn(x, params['conv1'], stride=2, pad=3, relu=True)   # conv1+bn1+relu
    x = max_pool_3x3_s2_p1(x)                                      # maxpool
    for blocks in params['stages']:                                # layer1..layer4
        for blk in blocks:
            x = bottleneck(x, blk)
    feat = global_avg_pool(x)                                      # AvgPool + flatten
    # nn.Dropout -> identity (eval mode).  TODO(synk): no train-mode dropout.
    ones = jnp.ones((params['fc_w'].shape[1],), jnp.float32)
    logits = gemm_bn_act(feat, params['fc_w'], ones, params['fc_b'],
                         residual=None, apply_relu=False,
                         out_dtype=jnp.float32)                    # fc
    return logits


# ----------------------------------------------------------------------------
if __name__ == "__main__":
    NUM_CLASSES = 10
    BASE = 16                 # torchvision resnet101 uses 64
    LAYERS = (1, 1, 1, 1)     # torchvision resnet101 uses (3, 4, 23, 3)

    root = jax.random.PRNGKey(0)
    k_params, k_input = jax.random.split(root)

    params = make_resnet_params(k_params, NUM_CLASSES, base=BASE, layers=LAYERS)
    x = jax.random.normal(k_input, (2, 3, 64, 64), jnp.float32)    # NCHW input

    fwd = jax.jit(lambda inp: resnet_forward(params, inp))
    logits = jax.block_until_ready(fwd(x))

    assert logits.shape == (2, NUM_CLASSES), logits.shape
    assert bool(jnp.all(jnp.isfinite(logits)))
    print("KERNEL_OK")
</pallas_src>

<mosaic_0001>
module attributes {stable_mosaic.version = 11 : i64} {
  func.func @_gemm_epilogue_kernel(%arg0: i32, %arg1: i32, %arg2: i32, %arg3: memref<512x256xbf16, #tpu.memory_space<vmem>>, %arg4: memref<256x128xbf16, #tpu.memory_space<vmem>>, %arg5: memref<1x128xf32, #tpu.memory_space<vmem>>, %arg6: memref<1x128xf32, #tpu.memory_space<vmem>>, %arg7: memref<512x128xbf16, #tpu.memory_space<vmem>>, %arg8: memref<512x128xf32, #tpu.memory_space<vmem>>) attributes {dimension_semantics = [#tpu.dimension_semantics<parallel>, #tpu.dimension_semantics<parallel>, #tpu.dimension_semantics<arbitrary>], iteration_bounds = array<i64: 4, 1, 1>, scalar_prefetch = 0 : i64, scratch_operands = 1 : i64, tpu.core_type = #tpu.core_type<tc>, window_params = [{transform_indices = @transform_0, window_bounds = array<i64: 512, 256>}, {transform_indices = @transform_1, window_bounds = array<i64: 256, 128>}, {transform_indices = @transform_2, window_bounds = array<i64: 1, 128>}, {transform_indices = @transform_3, window_bounds = array<i64: 1, 128>}, {transform_indices = @transform_4, window_bounds = array<i64: 512, 128>}]} {
    %c0_i32 = arith.constant 0 : i32
    %0 = arith.cmpi eq, %arg2, %c0_i32 : i32
    %1 = arith.extui %0 : i1 to i32
    %c0_i32_0 = arith.constant 0 : i32
    %2 = arith.cmpi ne, %1, %c0_i32_0 : i32
    scf.if %2 {
      %cst_10 = arith.constant 0.000000e+00 : f32
      %12 = vector.broadcast %cst_10 : f32 to vector<512x128xf32>
      %c0_11 = arith.constant 0 : index
      %c0_12 = arith.constant 0 : index
      %13 = vector.load %arg8[%c0_11, %c0_12] : memref<512x128xf32, #tpu.memory_space<vmem>>, vector<512x128xf32>
      tpu.vector_store %arg8[%c0_11, %c0_12], %12 {strides = array<i32>} : memref<512x128xf32, #tpu.memory_space<vmem>>, vector<512x128xf32>,
    } else {
    }
    %c0 = arith.constant 0 : index
    %c0_1 = arith.constant 0 : index
    %3 = vector.load %arg8[%c0, %c0_1] : memref<512x128xf32, #tpu.memory_space<vmem>>, vector<512x128xf32>
    %c0_2 = arith.constant 0 : index
    %c0_3 = arith.constant 0 : index
    %4 = vector.load %arg3[%c0_2, %c0_3] : memref<512x256xbf16, #tpu.memory_space<vmem>>, vector<512x256xbf16>
    %c0_4 = arith.constant 0 : index
    %c0_5 = arith.constant 0 : index
    %5 = vector.load %arg4[%c0_4, %c0_5] : memref<256x128xbf16, #tpu.memory_space<vmem>>, vector<256x128xbf16>
    %cst = arith.constant dense<0.000000e+00> : vector<512x128xf32>
    %6 = tpu.matmul %4, %5, %cst {dimension_numbers = #tpu.dot_dimension_numbers<[1], [0], [0], [1], [0, 0, 1, 1], [], []>} : vector<512x256xbf16>, vector<256x128xbf16>, vector<512x128xf32> -> vector<512x128xf32>
    %7 = arith.addf %3, %6 : vector<512x128xf32>
    %c0_6 = arith.constant 0 : index
    %c0_7 = arith.constant 0 : index
    %8 = vector.load %arg8[%c0_6, %c0_7] : memref<512x128xf32, #tpu.memory_space<vmem>>, vector<512x128xf32>
    tpu.vector_store %arg8[%c0_6, %c0_7], %7 {strides = array<i32>} : memref<512x128xf32, #tpu.memory_space<vmem>>, vector<512x128xf32>,
    %c0_i32_8 = arith.constant 0 : i32
    %9 = arith.cmpi eq, %arg2, %c0_i32_8 : i32
    %10 = arith.extui %9 : i1 to i32
    %c0_i32_9 = arith.constant 0 : i32
    %11 = arith.cmpi ne, %10, %c0_i32_9 : i32
    scf.if %11 {
      %c0_10 = arith.constant 0 : index
      %c0_11 = arith.constant 0 : index
      %12 = vector.load %arg8[%c0_10, %c0_11] : memref<512x128xf32, #tpu.memory_space<vmem>>, vector<512x128xf32>
      %c0_12 = arith.constant 0 : index
      %c0_13 = arith.constant 0 : index
      %13 = vector.load %arg5[%c0_12, %c0_13] : memref<1x128xf32, #tpu.memory_space<vmem>>, vector<1x128xf32>
      %14 = vector.broadcast %13 : vector<1x128xf32> to vector<512x128xf32>
      %15 = arith.mulf %12, %14 : vector<512x128xf32>
      %c0_14 = arith.constant 0 : index
      %c0_15 = arith.constant 0 : index
      %16 = vector.load %arg6[%c0_14, %c0_15] : memref<1x128xf32, #tpu.memory_space<vmem>>, vector<1x128xf32>
      %17 = vector.broadcast %16 : vector<1x128xf32> to vector<512x128xf32>
      %18 = arith.addf %15, %17 : vector<512x128xf32>
      %cst_16 = arith.constant 0.000000e+00 : f32
      %19 = vector.broadcast %cst_16 : f32 to vector<512x128xf32>
      %20 = arith.maximumf %18, %19 : vector<512x128xf32>
      %21 = arith.truncf %20 : vector<512x128xf32> to vector<512x128xbf16>
      %c0_17 = arith.constant 0 : index
      %c0_18 = arith.constant 0 : index
      %22 = vector.load %arg7[%c0_17, %c0_18] : memref<512x128xbf16, #tpu.memory_space<vmem>>, vector<512x128xbf16>
      tpu.vector_store %arg7[%c0_17, %c0_18], %21 {strides = array<i32>} : memref<512x128xbf16, #tpu.memory_space<vmem>>, vector<512x128xbf16>,
    } else {
    }
    return
  }
  func.func @transform_0(%arg0: i32, %arg1: i32, %arg2: i32) -> (i32, i32) {
    %c0_i32 = arith.constant 0 : i32
    return %arg0, %arg2 : i32, i32
  }
  func.func @transform_1(%arg0: i32, %arg1: i32, %arg2: i32) -> (i32, i32) {
    %c0_i32 = arith.constant 0 : i32
    return %arg2, %arg1 : i32, i32
  }
  func.func @transform_2(%arg0: i32, %arg1: i32, %arg2: i32) -> (i32, i32) {
    %c0_i32 = arith.constant 0 : i32
    %c0_i32_0 = arith.constant 0 : i32
    return %c0_i32, %arg1 : i32, i32
  }
  func.func @transform_3(%arg0: i32, %arg1: i32, %arg2: i32) -> (i32, i32) {
    %c0_i32 = arith.constant 0 : i32
    %c0_i32_0 = arith.constant 0 : i32
    return %c0_i32, %arg1 : i32, i32
  }
  func.func @transform_4(%arg0: i32, %arg1: i32, %arg2: i32) -> (i32, i32) {
    %c0_i32 = arith.constant 0 : i32
    return %arg0, %arg1 : i32, i32
  }
}

module attributes {stable_mosaic.version = 11 : i64} {
  func.func @_gemm_epilogue_kernel(%arg0: i32, %arg1: i32, %arg2: i32, %arg3: memref<512x128xbf16, #tpu.memory_space<vmem>>, %arg4: memref<128x128xbf16, #tpu.memory_space<vmem>>, %arg5: memref<1x128xf32, #tpu.memory_space<vmem>>, %arg6: memref<1x128xf32, #tpu.memory_space<vmem>>, %arg7: memref<512x128xbf16, #tpu.memory_space<vmem>>, %arg8: memref<512x128xf32, #tpu.memory_space<vmem>>) attributes {dimension_semantics = [#tpu.dimension_semantics<parallel>, #tpu.dimension_semantics<parallel>, #tpu.dimension_semantics<arbitrary>], iteration_bounds = array<i64: 1, 1, 1>, scalar_prefetch = 0 : i64, scratch_operands = 1 : i64, tpu.core_type = #tpu.core_type<tc>, window_params = [{transform_indices = @transform_0, window_bounds = array<i64: 512, 128>}, {transform_indices = @transform_1, window_bounds = array<i64: 128, 128>}, {transform_indices = @transform_2, window_bounds = array<i64: 1, 128>}, {transform_indices = @transform_3, window_bounds = array<i64: 1, 128>}, {transform_indices = @transform_4, window_bounds = array<i64: 512, 128>}]} {
    %c0_i32 = arith.constant 0 : i32
    %0 = arith.cmpi eq, %arg2, %c0_i32 : i32
    %1 = arith.extui %0 : i1 to i32
    %c0_i32_0 = arith.constant 0 : i32
    %2 = arith.cmpi ne, %1, %c0_i32_0 : i32
    scf.if %2 {
      %cst_10 = arith.constant 0.000000e+00 : f32
      %12 = vector.broadcast %cst_10 : f32 to vector<512x128xf32>
      %c0_11 = arith.constant 0 : index
      %c0_12 = arith.constant 0 : index
      %13 = vector.load %arg8[%c0_11, %c0_12] : memref<512x128xf32, #tpu.memory_space<vmem>>, vector<512x128xf32>
      tpu.vector_store %arg8[%c0_11, %c0_12], %12 {strides = array<i32>} : memref<512x128xf32, #tpu.memory_space<vmem>>, vector<512x128xf32>,
    } else {
    }
    %c0 = arith.constant 0 : index
    %c0_1 = arith.constant 0 : index
    %3 = vector.load %arg8[%c0, %c0_1] : memref<512x128xf32, #tpu.memory_space<vmem>>, vector<512x128xf32>
    %c0_2 = arith.constant 0 : index
    %c0_3 = arith.constant 0 : index
    %4 = vector.load %arg3[%c0_2, %c0_3] : memref<512x128xbf16, #tpu.memory_space<vmem>>, vector<512x128xbf16>
    %c0_4 = arith.constant 0 : index
    %c0_5 = arith.constant 0 : index
    %5 = vector.load %arg4[%c0_4, %c0_5] : memref<128x128xbf16, #tpu.memory_space<vmem>>, vector<128x128xbf16>
    %cst = arith.constant dense<0.000000e+00> : vector<512x128xf32>
    %6 = tpu.matmul %4, %5, %cst {dimension_numbers = #tpu.dot_dimension_numbers<[1], [0], [0], [1], [0, 0, 1, 1], [], []>} : vector<512x128xbf16>, vector<128x128xbf16>, vector<512x128xf32> -> vector<512x128xf32>
    %7 = arith.addf %3, %6 : vector<512x128xf32>
    %c0_6 = arith.constant 0 : index
    %c0_7 = arith.constant 0 : index
    %8 = vector.load %arg8[%c0_6, %c0_7] : memref<512x128xf32, #tpu.memory_space<vmem>>, vector<512x128xf32>
    tpu.vector_store %arg8[%c0_6, %c0_7], %7 {strides = array<i32>} : memref<512x128xf32, #tpu.memory_space<vmem>>, vector<512x128xf32>,
    %c0_i32_8 = arith.constant 0 : i32
    %9 = arith.cmpi eq, %arg2, %c0_i32_8 : i32
    %10 = arith.extui %9 : i1 to i32
    %c0_i32_9 = arith.constant 0 : i32
    %11 = arith.cmpi ne, %10, %c0_i32_9 : i32
    scf.if %11 {
      %c0_10 = arith.constant 0 : index
      %c0_11 = arith.constant 0 : index
      %12 = vector.load %arg8[%c0_10, %c0_11] : memref<512x128xf32, #tpu.memory_space<vmem>>, vector<512x128xf32>
      %c0_12 = arith.constant 0 : index
      %c0_13 = arith.constant 0 : index
      %13 = vector.load %arg5[%c0_12, %c0_13] : memref<1x128xf32, #tpu.memory_space<vmem>>, vector<1x128xf32>
      %14 = vector.broadcast %13 : vector<1x128xf32> to vector<512x128xf32>
      %15 = arith.mulf %12, %14 : vector<512x128xf32>
      %c0_14 = arith.constant 0 : index
      %c0_15 = arith.constant 0 : index
      %16 = vector.load %arg6[%c0_14, %c0_15] : memref<1x128xf32, #tpu.memory_space<vmem>>, vector<1x128xf32>
      %17 = vector.broadcast %16 : vector<1x128xf32> to vector<512x128xf32>
      %18 = arith.addf %15, %17 : vector<512x128xf32>
      %cst_16 = arith.constant 0.000000e+00 : f32
      %19 = vector.broadcast %cst_16 : f32 to vector<512x128xf32>
      %20 = arith.maximumf %18, %19 : vector<512x128xf32>
      %21 = arith.truncf %20 : vector<512x128xf32> to vector<512x128xbf16>
      %c0_17 = arith.constant 0 : index
      %c0_18 = arith.constant 0 : index
      %22 = vector.load %arg7[%c0_17, %c0_18] : memref<512x128xbf16, #tpu.memory_space<vmem>>, vector<512x128xbf16>
      tpu.vector_store %arg7[%c0_17, %c0_18], %21 {strides = array<i32>} : memref<512x128xbf16, #tpu.memory_space<vmem>>, vector<512x128xbf16>,
    } else {
    }
    return
  }
  func.func @transform_0(%arg0: i32, %arg1: i32, %arg2: i32) -> (i32, i32) {
    %c0_i32 = arith.constant 0 : i32
    return %arg0, %arg2 : i32, i32
  }
  func.func @transform_1(%arg0: i32, %arg1: i32, %arg2: i32) -> (i32, i32) {
    %c0_i32 = arith.constant 0 : i32
    return %arg2, %arg1 : i32, i32
  }
  func.func @transform_2(%arg0: i32, %arg1: i32, %arg2: i32) -> (i32, i32) {
    %c0_i32 = arith.constant 0 : i32
    %c0_i32_0 = arith.constant 0 : i32
    return %c0_i32, %arg1 : i32, i32
  }
  func.func @transform_3(%arg0: i32, %arg1: i32, %arg2: i32) -> (i32, i32) {
    %c0_i32 = arith.constant 0 : i32
    %c0_i32_0 = arith.constant 0 : i32
    return %c0_i32, %arg1 : i32, i32
  }
  func.func @transform_4(%arg0: i32, %arg1: i32, %arg2: i32) -> (i32, i32) {
    %c0_i32 = arith.constant 0 : i32
    return %arg0, %arg1 : i32, i32
  }
}

module attributes {stable_mosaic.version = 11 : i64} {
  func.func @_gemm_epilogue_kernel(%arg0: i32, %arg1: i32, %arg2: i32, %arg3: memref<512x256xbf16, #tpu.memory_space<vmem>>, %arg4: memref<256x128xbf16, #tpu.memory_space<vmem>>, %arg5: memref<1x128xf32, #tpu.memory_space<vmem>>, %arg6: memref<1x128xf32, #tpu.memory_space<vmem>>, %arg7: memref<512x128xbf16, #tpu.memory_space<vmem>>, %arg8: memref<512x128xf32, #tpu.memory_space<vmem>>) attributes {dimension_semantics = [#tpu.dimension_semantics<parallel>, #tpu.dimension_semantics<parallel>, #tpu.dimension_semantics<arbitrary>], iteration_bounds = array<i64: 1, 1, 1>, scalar_prefetch = 0 : i64, scratch_operands = 1 : i64, tpu.core_type = #tpu.core_type<tc>, window_params = [{transform_indices = @transform_0, window_bounds = array<i64: 512, 256>}, {transform_indices = @transform_1, window_bounds = array<i64: 256, 128>}, {transform_indices = @transform_2, window_bounds = array<i64: 1, 128>}, {transform_indices = @transform_3, window_bounds = array<i64: 1, 128>}, {transform_indices = @transform_4, window_bounds = array<i64: 512, 128>}]} {
    %c0_i32 = arith.constant 0 : i32
    %0 = arith.cmpi eq, %arg2, %c0_i32 : i32
    %1 = arith.extui %0 : i1 to i32
    %c0_i32_0 = arith.constant 0 : i32
    %2 = arith.cmpi ne, %1, %c0_i32_0 : i32
    scf.if %2 {
      %cst_10 = arith.constant 0.000000e+00 : f32
      %12 = vector.broadcast %cst_10 : f32 to vector<512x128xf32>
      %c0_11 = arith.constant 0 : index
      %c0_12 = arith.constant 0 : index
      %13 = vector.load %arg8[%c0_11, %c0_12] : memref<512x128xf32, #tpu.memory_space<vmem>>, vector<512x128xf32>
      tpu.vector_store %arg8[%c0_11, %c0_12], %12 {strides = array<i32>} : memref<512x128xf32, #tpu.memory_space<vmem>>, vector<512x128xf32>,
    } else {
    }
    %c0 = arith.constant 0 : index
    %c0_1 = arith.constant 0 : index
    %3 = vector.load %arg8[%c0, %c0_1] : memref<512x128xf32, #tpu.memory_space<vmem>>, vector<512x128xf32>
    %c0_2 = arith.constant 0 : index
    %c0_3 = arith.constant 0 : index
    %4 = vector.load %arg3[%c0_2, %c0_3] : memref<512x256xbf16, #tpu.memory_space<vmem>>, vector<512x256xbf16>
    %c0_4 = arith.constant 0 : index
    %c0_5 = arith.constant 0 : index
    %5 = vector.load %arg4[%c0_4, %c0_5] : memref<256x128xbf16, #tpu.memory_space<vmem>>, vector<256x128xbf16>
    %cst = arith.constant dense<0.000000e+00> : vector<512x128xf32>
    %6 = tpu.matmul %4, %5, %cst {dimension_numbers = #tpu.dot_dimension_numbers<[1], [0], [0], [1], [0, 0, 1, 1], [], []>} : vector<512x256xbf16>, vector<256x128xbf16>, vector<512x128xf32> -> vector<512x128xf32>
    %7 = arith.addf %3, %6 : vector<512x128xf32>
    %c0_6 = arith.constant 0 : index
    %c0_7 = arith.constant 0 : index
    %8 = vector.load %arg8[%c0_6, %c0_7] : memref<512x128xf32, #tpu.memory_space<vmem>>, vector<512x128xf32>
    tpu.vector_store %arg8[%c0_6, %c0_7], %7 {strides = array<i32>} : memref<512x128xf32, #tpu.memory_space<vmem>>, vector<512x128xf32>,
    %c0_i32_8 = arith.constant 0 : i32
    %9 = arith.cmpi eq, %arg2, %c0_i32_8 : i32
    %10 = arith.extui %9 : i1 to i32
    %c0_i32_9 = arith.constant 0 : i32
    %11 = arith.cmpi ne, %10, %c0_i32_9 : i32
    scf.if %11 {
      %c0_10 = arith.constant 0 : index
      %c0_11 = arith.constant 0 : index
      %12 = vector.load %arg8[%c0_10, %c0_11] : memref<512x128xf32, #tpu.memory_space<vmem>>, vector<512x128xf32>
      %c0_12 = arith.constant 0 : index
      %c0_13 = arith.constant 0 : index
      %13 = vector.load %arg5[%c0_12, %c0_13] : memref<1x128xf32, #tpu.memory_space<vmem>>, vector<1x128xf32>
      %14 = vector.broadcast %13 : vector<1x128xf32> to vector<512x128xf32>
      %15 = arith.mulf %12, %14 : vector<512x128xf32>
      %c0_14 = arith.constant 0 : index
      %c0_15 = arith.constant 0 : index
      %16 = vector.load %arg6[%c0_14, %c0_15] : memref<1x128xf32, #tpu.memory_space<vmem>>, vector<1x128xf32>
      %17 = vector.broadcast %16 : vector<1x128xf32> to vector<512x128xf32>
      %18 = arith.addf %15, %17 : vector<512x128xf32>
      %cst_16 = arith.constant 0.000000e+00 : f32
      %19 = vector.broadcast %cst_16 : f32 to vector<512x128xf32>
      %20 = arith.maximumf %18, %19 : vector<512x128xf32>
      %21 = arith.truncf %20 : vector<512x128xf32> to vector<512x128xbf16>
      %c0_17 = arith.constant 0 : index
      %c0_18 = arith.constant 0 : index
      %22 = vector.load %arg7[%c0_17, %c0_18] : memref<512x128xbf16, #tpu.memory_space<vmem>>, vector<512x128xbf16>
      tpu.vector_store %arg7[%c0_17, %c0_18], %21 {strides = array<i32>} : memref<512x128xbf16, #tpu.memory_space<vmem>>, vector<512x128xbf16>,
    } else {
    }
    return
  }
  func.func @transform_0(%arg0: i32, %arg1: i32, %arg2: i32) -> (i32, i32) {
    %c0_i32 = arith.constant 0 : i32
    return %arg0, %arg2 : i32, i32
  }
  func.func @transform_1(%arg0: i32, %arg1: i32, %arg2: i32) -> (i32, i32) {
    %c0_i32 = arith.constant 0 : i32
    return %arg2, %arg1 : i32, i32
  }
  func.func @transform_2(%arg0: i32, %arg1: i32, %arg2: i32) -> (i32, i32) {
    %c0_i32 = arith.constant 0 : i32
    %c0_i32_0 = arith.constant 0 : i32
    return %c0_i32, %arg1 : i32, i32
  }
  func.func @transform_3(%arg0: i32, %arg1: i32, %arg2: i32) -> (i32, i32) {
    %c0_i32 = arith.constant 0 : i32
    %c0_i32_0 = arith.constant 0 : i32
    return %c0_i32, %arg1 : i32, i32
  }
  func.func @transform_4(%arg0: i32, %arg1: i32, %arg2: i32) -> (i32, i32) {
    %c0_i32 = arith.constant 0 : i32
    return %arg0, %arg1 : i32, i32
  }
}

module attributes {stable_mosaic.version = 11 : i64} {
  func.func @_gemm_epilogue_kernel(%arg0: i32, %arg1: i32, %arg2: i32, %arg3: memref<512x128xbf16, #tpu.memory_space<vmem>>, %arg4: memref<128x128xbf16, #tpu.memory_space<vmem>>, %arg5: memref<1x128xf32, #tpu.memory_space<vmem>>, %arg6: memref<1x128xf32, #tpu.memory_space<vmem>>, %arg7: memref<512x128xbf16, #tpu.memory_space<vmem>>, %arg8: memref<512x128xf32, #tpu.memory_space<vmem>>) attributes {dimension_semantics = [#tpu.dimension_semantics<parallel>, #tpu.dimension_semantics<parallel>, #tpu.dimension_semantics<arbitrary>], iteration_bounds = array<i64: 1, 1, 1>, scalar_prefetch = 0 : i64, scratch_operands = 1 : i64, tpu.core_type = #tpu.core_type<tc>, window_params = [{transform_indices = @transform_0, window_bounds = array<i64: 512, 128>}, {transform_indices = @transform_1, window_bounds = array<i64: 128, 128>}, {transform_indices = @transform_2, window_bounds = array<i64: 1, 128>}, {transform_indices = @transform_3, window_bounds = array<i64: 1, 128>}, {transform_indices = @transform_4, window_bounds = array<i64: 512, 128>}]} {
    %c0_i32 = arith.constant 0 : i32
    %0 = arith.cmpi eq, %arg2, %c0_i32 : i32
    %1 = arith.extui %0 : i1 to i32
    %c0_i32_0 = arith.constant 0 : i32
    %2 = arith.cmpi ne, %1, %c0_i32_0 : i32
    scf.if %2 {
      %cst_10 = arith.constant 0.000000e+00 : f32
      %12 = vector.broadcast %cst_10 : f32 to vector<512x128xf32>
      %c0_11 = arith.constant 0 : index
      %c0_12 = arith.constant 0 : index
      %13 = vector.load %arg8[%c0_11, %c0_12] : memref<512x128xf32, #tpu.memory_space<vmem>>, vector<512x128xf32>
      tpu.vector_store %arg8[%c0_11, %c0_12], %12 {strides = array<i32>} : memref<512x128xf32, #tpu.memory_space<vmem>>, vector<512x128xf32>,
    } else {
    }
    %c0 = arith.constant 0 : index
    %c0_1 = arith.constant 0 : index
    %3 = vector.load %arg8[%c0, %c0_1] : memref<512x128xf32, #tpu.memory_space<vmem>>, vector<512x128xf32>
    %c0_2 = arith.constant 0 : index
    %c0_3 = arith.constant 0 : index
    %4 = vector.load %arg3[%c0_2, %c0_3] : memref<512x128xbf16, #tpu.memory_space<vmem>>, vector<512x128xbf16>
    %c0_4 = arith.constant 0 : index
    %c0_5 = arith.constant 0 : index
    %5 = vector.load %arg4[%c0_4, %c0_5] : memref<128x128xbf16, #tpu.memory_space<vmem>>, vector<128x128xbf16>
    %cst = arith.constant dense<0.000000e+00> : vector<512x128xf32>
    %6 = tpu.matmul %4, %5, %cst {dimension_numbers = #tpu.dot_dimension_numbers<[1], [0], [0], [1], [0, 0, 1, 1], [], []>} : vector<512x128xbf16>, vector<128x128xbf16>, vector<512x128xf32> -> vector<512x128xf32>
    %7 = arith.addf %3, %6 : vector<512x128xf32>
    %c0_6 = arith.constant 0 : index
    %c0_7 = arith.constant 0 : index
    %8 = vector.load %arg8[%c0_6, %c0_7] : memref<512x128xf32, #tpu.memory_space<vmem>>, vector<512x128xf32>
    tpu.vector_store %arg8[%c0_6, %c0_7], %7 {strides = array<i32>} : memref<512x128xf32, #tpu.memory_space<vmem>>, vector<512x128xf32>,
    %c0_i32_8 = arith.constant 0 : i32
    %9 = arith.cmpi eq, %arg2, %c0_i32_8 : i32
    %10 = arith.extui %9 : i1 to i32
    %c0_i32_9 = arith.constant 0 : i32
    %11 = arith.cmpi ne, %10, %c0_i32_9 : i32
    scf.if %11 {
      %c0_10 = arith.constant 0 : index
      %c0_11 = arith.constant 0 : index
      %12 = vector.load %arg8[%c0_10, %c0_11] : memref<512x128xf32, #tpu.memory_space<vmem>>, vector<512x128xf32>
      %c0_12 = arith.constant 0 : index
      %c0_13 = arith.constant 0 : index
      %13 = vector.load %arg5[%c0_12, %c0_13] : memref<1x128xf32, #tpu.memory_space<vmem>>, vector<1x128xf32>
      %14 = vector.broadcast %13 : vector<1x128xf32> to vector<512x128xf32>
      %15 = arith.mulf %12, %14 : vector<512x128xf32>
      %c0_14 = arith.constant 0 : index
      %c0_15 = arith.constant 0 : index
      %16 = vector.load %arg6[%c0_14, %c0_15] : memref<1x128xf32, #tpu.memory_space<vmem>>, vector<1x128xf32>
      %17 = vector.broadcast %16 : vector<1x128xf32> to vector<512x128xf32>
      %18 = arith.addf %15, %17 : vector<512x128xf32>
      %19 = arith.truncf %18 : vector<512x128xf32> to vector<512x128xbf16>
      %c0_16 = arith.constant 0 : index
      %c0_17 = arith.constant 0 : index
      %20 = vector.load %arg7[%c0_16, %c0_17] : memref<512x128xbf16, #tpu.memory_space<vmem>>, vector<512x128xbf16>
      tpu.vector_store %arg7[%c0_16, %c0_17], %19 {strides = array<i32>} : memref<512x128xbf16, #tpu.memory_space<vmem>>, vector<512x128xbf16>,
    } else {
    }
    return
  }
  func.func @transform_0(%arg0: i32, %arg1: i32, %arg2: i32) -> (i32, i32) {
    %c0_i32 = arith.constant 0 : i32
    return %arg0, %arg2 : i32, i32
  }
  func.func @transform_1(%arg0: i32, %arg1: i32, %arg2: i32) -> (i32, i32) {
    %c0_i32 = arith.constant 0 : i32
    return %arg2, %arg1 : i32, i32
  }
  func.func @transform_2(%arg0: i32, %arg1: i32, %arg2: i32) -> (i32, i32) {
    %c0_i32 = arith.constant 0 : i32
    %c0_i32_0 = arith.constant 0 : i32
    return %c0_i32, %arg1 : i32, i32
  }
  func.func @transform_3(%arg0: i32, %arg1: i32, %arg2: i32) -> (i32, i32) {
    %c0_i32 = arith.constant 0 : i32
    %c0_i32_0 = arith.constant 0 : i32
    return %c0_i32, %arg1 : i32, i32
  }
  func.func @transform_4(%arg0: i32, %arg1: i32, %arg2: i32) -> (i32, i32) {
    %c0_i32 = arith.constant 0 : i32
    return %arg0, %arg1 : i32, i32
  }
}

module attributes {stable_mosaic.version = 11 : i64} {
  func.func @_gemm_epilogue_kernel(%arg0: i32, %arg1: i32, %arg2: i32, %arg3: memref<512x128xbf16, #tpu.memory_space<vmem>>, %arg4: memref<128x128xbf16, #tpu.memory_space<vmem>>, %arg5: memref<1x128xf32, #tpu.memory_space<vmem>>, %arg6: memref<1x128xf32, #tpu.memory_space<vmem>>, %arg7: memref<512x128xbf16, #tpu.memory_space<vmem>>, %arg8: memref<512x128xbf16, #tpu.memory_space<vmem>>, %arg9: memref<512x128xf32, #tpu.memory_space<vmem>>) attributes {dimension_semantics = [#tpu.dimension_semantics<parallel>, #tpu.dimension_semantics<parallel>, #tpu.dimension_semantics<arbitrary>], iteration_bounds = array<i64: 1, 1, 1>, scalar_prefetch = 0 : i64, scratch_operands = 1 : i64, tpu.core_type = #tpu.core_type<tc>, window_params = [{transform_indices = @transform_0, window_bounds = array<i64: 512, 128>}, {transform_indices = @transform_1, window_bounds = array<i64: 128, 128>}, {transform_indices = @transform_2, window_bounds = array<i64: 1, 128>}, {transform_indices = @transform_3, window_bounds = array<i64: 1, 128>}, {transform_indices = @transform_4, window_bounds = array<i64: 512, 128>}, {transform_indices = @transform_5, window_bounds = array<i64: 512, 128>}]} {
    %c0_i32 = arith.constant 0 : i32
    %0 = arith.cmpi eq, %arg2, %c0_i32 : i32
    %1 = arith.extui %0 : i1 to i32
    %c0_i32_0 = arith.constant 0 : i32
    %2 = arith.cmpi ne, %1, %c0_i32_0 : i32
    scf.if %2 {
      %cst_10 = arith.constant 0.000000e+00 : f32
      %12 = vector.broadcast %cst_10 : f32 to vector<512x128xf32>
      %c0_11 = arith.constant 0 : index
      %c0_12 = arith.constant 0 : index
      %13 = vector.load %arg9[%c0_11, %c0_12] : memref<512x128xf32, #tpu.memory_space<vmem>>, vector<512x128xf32>
      tpu.vector_store %arg9[%c0_11, %c0_12], %12 {strides = array<i32>} : memref<512x128xf32, #tpu.memory_space<vmem>>, vector<512x128xf32>,
    } else {
    }
    %c0 = arith.constant 0 : index
    %c0_1 = arith.constant 0 : index
    %3 = vector.load %arg9[%c0, %c0_1] : memref<512x128xf32, #tpu.memory_space<vmem>>, vector<512x128xf32>
    %c0_2 = arith.constant 0 : index
    %c0_3 = arith.constant 0 : index
    %4 = vector.load %arg3[%c0_2, %c0_3] : memref<512x128xbf16, #tpu.memory_space<vmem>>, vector<512x128xbf16>
    %c0_4 = arith.constant 0 : index
    %c0_5 = arith.constant 0 : index
    %5 = vector.load %arg4[%c0_4, %c0_5] : memref<128x128xbf16, #tpu.memory_space<vmem>>, vector<128x128xbf16>
    %cst = arith.constant dense<0.000000e+00> : vector<512x128xf32>
    %6 = tpu.matmul %4, %5, %cst {dimension_numbers = #tpu.dot_dimension_numbers<[1], [0], [0], [1], [0, 0, 1, 1], [], []>} : vector<512x128xbf16>, vector<128x128xbf16>, vector<512x128xf32> -> vector<512x128xf32>
    %7 = arith.addf %3, %6 : vector<512x128xf32>
    %c0_6 = arith.constant 0 : index
    %c0_7 = arith.constant 0 : index
    %8 = vector.load %arg9[%c0_6, %c0_7] : memref<512x128xf32, #tpu.memory_space<vmem>>, vector<512x128xf32>
    tpu.vector_store %arg9[%c0_6, %c0_7], %7 {strides = array<i32>} : memref<512x128xf32, #tpu.memory_space<vmem>>, vector<512x128xf32>,
    %c0_i32_8 = arith.constant 0 : i32
    %9 = arith.cmpi eq, %arg2, %c0_i32_8 : i32
    %10 = arith.extui %9 : i1 to i32
    %c0_i32_9 = arith.constant 0 : i32
    %11 = arith.cmpi ne, %10, %c0_i32_9 : i32
    scf.if %11 {
      %c0_10 = arith.constant 0 : index
      %c0_11 = arith.constant 0 : index
      %12 = vector.load %arg9[%c0_10, %c0_11] : memref<512x128xf32, #tpu.memory_space<vmem>>, vector<512x128xf32>
      %c0_12 = arith.constant 0 : index
      %c0_13 = arith.constant 0 : index
      %13 = vector.load %arg5[%c0_12, %c0_13] : memref<1x128xf32, #tpu.memory_space<vmem>>, vector<1x128xf32>
      %14 = vector.broadcast %13 : vector<1x128xf32> to vector<512x128xf32>
      %15 = arith.mulf %12, %14 : vector<512x128xf32>
      %c0_14 = arith.constant 0 : index
      %c0_15 = arith.constant 0 : index
      %16 = vector.load %arg6[%c0_14, %c0_15] : memref<1x128xf32, #tpu.memory_space<vmem>>, vector<1x128xf32>
      %17 = vector.broadcast %16 : vector<1x128xf32> to vector<512x128xf32>
      %18 = arith.addf %15, %17 : vector<512x128xf32>
      %c0_16 = arith.constant 0 : index
      %c0_17 = arith.constant 0 : index
      %19 = vector.load %arg7[%c0_16, %c0_17] : memref<512x128xbf16, #tpu.memory_space<vmem>>, vector<512x128xbf16>
      %20 = arith.extf %19 : vector<512x128xbf16> to vector<512x128xf32>
      %21 = arith.addf %18, %20 : vector<512x128xf32>
      %cst_18 = arith.constant 0.000000e+00 : f32
      %22 = vector.broadcast %cst_18 : f32 to vector<512x128xf32>
      %23 = arith.maximumf %21, %22 : vector<512x128xf32>
      %24 = arith.truncf %23 : vector<512x128xf32> to vector<512x128xbf16>
      %c0_19 = arith.constant 0 : index
      %c0_20 = arith.constant 0 : index
      %25 = vector.load %arg8[%c0_19, %c0_20] : memref<512x128xbf16, #tpu.memory_space<vmem>>, vector<512x128xbf16>
      tpu.vector_store %arg8[%c0_19, %c0_20], %24 {strides = array<i32>} : memref<512x128xbf16, #tpu.memory_space<vmem>>, vector<512x128xbf16>,
    } else {
    }
    return
  }
  func.func @transform_0(%arg0: i32, %arg1: i32, %arg2: i32) -> (i32, i32) {
    %c0_i32 = arith.constant 0 : i32
    return %arg0, %arg2 : i32, i32
  }
  func.func @transform_1(%arg0: i32, %arg1: i32, %arg2: i32) -> (i32, i32) {
    %c0_i32 = arith.constant 0 : i32
    return %arg2, %arg1 : i32, i32
  }
  func.func @transform_2(%arg0: i32, %arg1: i32, %arg2: i32) -> (i32, i32) {
    %c0_i32 = arith.constant 0 : i32
    %c0_i32_0 = arith.constant 0 : i32
    return %c0_i32, %arg1 : i32, i32
  }
  func.func @transform_3(%arg0: i32, %arg1: i32, %arg2: i32) -> (i32, i32) {
    %c0_i32 = arith.constant 0 : i32
    %c0_i32_0 = arith.constant 0 : i32
    return %c0_i32, %arg1 : i32, i32
  }
  func.func @transform_4(%arg0: i32, %arg1: i32, %arg2: i32) -> (i32, i32) {
    %c0_i32 = arith.constant 0 : i32
    return %arg0, %arg1 : i32, i32
  }
  func.func @transform_5(%arg0: i32, %arg1: i32, %arg2: i32) -> (i32, i32) {
    %c0_i32 = arith.constant 0 : i32
    return %arg0, %arg1 : i32, i32
  }
}

module attributes {stable_mosaic.version = 11 : i64} {
  func.func @_gemm_epilogue_kernel(%arg0: i32, %arg1: i32, %arg2: i32, %arg3: memref<128x384xbf16, #tpu.memory_space<vmem>>, %arg4: memref<384x128xbf16, #tpu.memory_space<vmem>>, %arg5: memref<1x128xf32, #tpu.memory_space<vmem>>, %arg6: memref<1x128xf32, #tpu.memory_space<vmem>>, %arg7: memref<128x128xbf16, #tpu.memory_space<vmem>>, %arg8: memref<128x128xf32, #tpu.memory_space<vmem>>) attributes {dimension_semantics = [#tpu.dimension_semantics<parallel>, #tpu.dimension_semantics<parallel>, #tpu.dimension_semantics<arbitrary>], iteration_bounds = array<i64: 1, 1, 1>, scalar_prefetch = 0 : i64, scratch_operands = 1 : i64, tpu.core_type = #tpu.core_type<tc>, window_params = [{transform_indices = @transform_0, window_bounds = array<i64: 128, 384>}, {transform_indices = @transform_1, window_bounds = array<i64: 384, 128>}, {transform_indices = @transform_2, window_bounds = array<i64: 1, 128>}, {transform_indices = @transform_3, window_bounds = array<i64: 1, 128>}, {transform_indices = @transform_4, window_bounds = array<i64: 128, 128>}]} {
    %c0_i32 = arith.constant 0 : i32
    %0 = arith.cmpi eq, %arg2, %c0_i32 : i32
    %1 = arith.extui %0 : i1 to i32
    %c0_i32_0 = arith.constant 0 : i32
    %2 = arith.cmpi ne, %1, %c0_i32_0 : i32
    scf.if %2 {
      %cst_10 = arith.constant 0.000000e+00 : f32
      %12 = vector.broadcast %cst_10 : f32 to vector<128x128xf32>
      %c0_11 = arith.constant 0 : index
      %c0_12 = arith.constant 0 : index
      %13 = vector.load %arg8[%c0_11, %c0_12] : memref<128x128xf32, #tpu.memory_space<vmem>>, vector<128x128xf32>
      tpu.vector_store %arg8[%c0_11, %c0_12], %12 {strides = array<i32>} : memref<128x128xf32, #tpu.memory_space<vmem>>, vector<128x128xf32>,
    } else {
    }
    %c0 = arith.constant 0 : index
    %c0_1 = arith.constant 0 : index
    %3 = vector.load %arg8[%c0, %c0_1] : memref<128x128xf32, #tpu.memory_space<vmem>>, vector<128x128xf32>
    %c0_2 = arith.constant 0 : index
    %c0_3 = arith.constant 0 : index
    %4 = vector.load %arg3[%c0_2, %c0_3] : memref<128x384xbf16, #tpu.memory_space<vmem>>, vector<128x384xbf16>
    %c0_4 = arith.constant 0 : index
    %c0_5 = arith.constant 0 : index
    %5 = vector.load %arg4[%c0_4, %c0_5] : memref<384x128xbf16, #tpu.memory_space<vmem>>, vector<384x128xbf16>
    %cst = arith.constant dense<0.000000e+00> : vector<128x128xf32>
    %6 = tpu.matmul %4, %5, %cst {dimension_numbers = #tpu.dot_dimension_numbers<[1], [0], [0], [1], [0, 0, 1, 1], [], []>} : vector<128x384xbf16>, vector<384x128xbf16>, vector<128x128xf32> -> vector<128x128xf32>
    %7 = arith.addf %3, %6 : vector<128x128xf32>
    %c0_6 = arith.constant 0 : index
    %c0_7 = arith.constant 0 : index
    %8 = vector.load %arg8[%c0_6, %c0_7] : memref<128x128xf32, #tpu.memory_space<vmem>>, vector<128x128xf32>
    tpu.vector_store %arg8[%c0_6, %c0_7], %7 {strides = array<i32>} : memref<128x128xf32, #tpu.memory_space<vmem>>, vector<128x128xf32>,
    %c0_i32_8 = arith.constant 0 : i32
    %9 = arith.cmpi eq, %arg2, %c0_i32_8 : i32
    %10 = arith.extui %9 : i1 to i32
    %c0_i32_9 = arith.constant 0 : i32
    %11 = arith.cmpi ne, %10, %c0_i32_9 : i32
    scf.if %11 {
      %c0_10 = arith.constant 0 : index
      %c0_11 = arith.constant 0 : index
      %12 = vector.load %arg8[%c0_10, %c0_11] : memref<128x128xf32, #tpu.memory_space<vmem>>, vector<128x128xf32>
      %c0_12 = arith.constant 0 : index
      %c0_13 = arith.constant 0 : index
      %13 = vector.load %arg5[%c0_12, %c0_13] : memref<1x128xf32, #tpu.memory_space<vmem>>, vector<1x128xf32>
      %14 = vector.broadcast %13 : vector<1x128xf32> to vector<128x128xf32>
      %15 = arith.mulf %12, %14 : vector<128x128xf32>
      %c0_14 = arith.constant 0 : index
      %c0_15 = arith.constant 0 : index
      %16 = vector.load %arg6[%c0_14, %c0_15] : memref<1x128xf32, #tpu.memory_space<vmem>>, vector<1x128xf32>
      %17 = vector.broadcast %16 : vector<1x128xf32> to vector<128x128xf32>
      %18 = arith.addf %15, %17 : vector<128x128xf32>
      %cst_16 = arith.constant 0.000000e+00 : f32
      %19 = vector.broadcast %cst_16 : f32 to vector<128x128xf32>
      %20 = arith.maximumf %18, %19 : vector<128x128xf32>
      %21 = arith.truncf %20 : vector<128x128xf32> to vector<128x128xbf16>
      %c0_17 = arith.constant 0 : index
      %c0_18 = arith.constant 0 : index
      %22 = vector.load %arg7[%c0_17, %c0_18] : memref<128x128xbf16, #tpu.memory_space<vmem>>, vector<128x128xbf16>
      tpu.vector_store %arg7[%c0_17, %c0_18], %21 {strides = array<i32>} : memref<128x128xbf16, #tpu.memory_space<vmem>>, vector<128x128xbf16>,
    } else {
    }
    return
  }
  func.func @transform_0(%arg0: i32, %arg1: i32, %arg2: i32) -> (i32, i32) {
    %c0_i32 = arith.constant 0 : i32
    return %arg0, %arg2 : i32, i32
  }
  func.func @transform_1(%arg0: i32, %arg1: i32, %arg2: i32) -> (i32, i32) {
    %c0_i32 = arith.constant 0 : i32
    return %arg2, %arg1 : i32, i32
  }
  func.func @transform_2(%arg0: i32, %arg1: i32, %arg2: i32) -> (i32, i32) {
    %c0_i32 = arith.constant 0 : i32
    %c0_i32_0 = arith.constant 0 : i32
    return %c0_i32, %arg1 : i32, i32
  }
  func.func @transform_3(%arg0: i32, %arg1: i32, %arg2: i32) -> (i32, i32) {
    %c0_i32 = arith.constant 0 : i32
    %c0_i32_0 = arith.constant 0 : i32
    return %c0_i32, %arg1 : i32, i32
  }
  func.func @transform_4(%arg0: i32, %arg1: i32, %arg2: i32) -> (i32, i32) {
    %c0_i32 = arith.constant 0 : i32
    return %arg0, %arg1 : i32, i32
  }
}

module attributes {stable_mosaic.version = 11 : i64} {
  func.func @_gemm_epilogue_kernel(%arg0: i32, %arg1: i32, %arg2: i32, %arg3: memref<128x128xbf16, #tpu.memory_space<vmem>>, %arg4: memref<128x128xbf16, #tpu.memory_space<vmem>>, %arg5: memref<1x128xf32, #tpu.memory_space<vmem>>, %arg6: memref<1x128xf32, #tpu.memory_space<vmem>>, %arg7: memref<128x128xbf16, #tpu.memory_space<vmem>>, %arg8: memref<128x128xf32, #tpu.memory_space<vmem>>) attributes {dimension_semantics = [#tpu.dimension_semantics<parallel>, #tpu.dimension_semantics<parallel>, #tpu.dimension_semantics<arbitrary>], iteration_bounds = array<i64: 1, 1, 1>, scalar_prefetch = 0 : i64, scratch_operands = 1 : i64, tpu.core_type = #tpu.core_type<tc>, window_params = [{transform_indices = @transform_0, window_bounds = array<i64: 128, 128>}, {transform_indices = @transform_1, window_bounds = array<i64: 128, 128>}, {transform_indices = @transform_2, window_bounds = array<i64: 1, 128>}, {transform_indices = @transform_3, window_bounds = array<i64: 1, 128>}, {transform_indices = @transform_4, window_bounds = array<i64: 128, 128>}]} {
    %c0_i32 = arith.constant 0 : i32
    %0 = arith.cmpi eq, %arg2, %c0_i32 : i32
    %1 = arith.extui %0 : i1 to i32
    %c0_i32_0 = arith.constant 0 : i32
    %2 = arith.cmpi ne, %1, %c0_i32_0 : i32
    scf.if %2 {
      %cst_10 = arith.constant 0.000000e+00 : f32
      %12 = vector.broadcast %cst_10 : f32 to vector<128x128xf32>
      %c0_11 = arith.constant 0 : index
      %c0_12 = arith.constant 0 : index
      %13 = vector.load %arg8[%c0_11, %c0_12] : memref<128x128xf32, #tpu.memory_space<vmem>>, vector<128x128xf32>
      tpu.vector_store %arg8[%c0_11, %c0_12], %12 {strides = array<i32>} : memref<128x128xf32, #tpu.memory_space<vmem>>, vector<128x128xf32>,
    } else {
    }
    %c0 = arith.constant 0 : index
    %c0_1 = arith.constant 0 : index
    %3 = vector.load %arg8[%c0, %c0_1] : memref<128x128xf32, #tpu.memory_space<vmem>>, vector<128x128xf32>
    %c0_2 = arith.constant 0 : index
    %c0_3 = arith.constant 0 : index
    %4 = vector.load %arg3[%c0_2, %c0_3] : memref<128x128xbf16, #tpu.memory_space<vmem>>, vector<128x128xbf16>
    %c0_4 = arith.constant 0 : index
    %c0_5 = arith.constant 0 : index
    %5 = vector.load %arg4[%c0_4, %c0_5] : memref<128x128xbf16, #tpu.memory_space<vmem>>, vector<128x128xbf16>
    %cst = arith.constant dense<0.000000e+00> : vector<128x128xf32>
    %6 = tpu.matmul %4, %5, %cst {dimension_numbers = #tpu.dot_dimension_numbers<[1], [0], [0], [1], [0, 0, 1, 1], [], []>} : vector<128x128xbf16>, vector<128x128xbf16>, vector<128x128xf32> -> vector<128x128xf32>
    %7 = arith.addf %3, %6 : vector<128x128xf32>
    %c0_6 = arith.constant 0 : index
    %c0_7 = arith.constant 0 : index
    %8 = vector.load %arg8[%c0_6, %c0_7] : memref<128x128xf32, #tpu.memory_space<vmem>>, vector<128x128xf32>
    tpu.vector_store %arg8[%c0_6, %c0_7], %7 {strides = array<i32>} : memref<128x128xf32, #tpu.memory_space<vmem>>, vector<128x128xf32>,
    %c0_i32_8 = arith.constant 0 : i32
    %9 = arith.cmpi eq, %arg2, %c0_i32_8 : i32
    %10 = arith.extui %9 : i1 to i32
    %c0_i32_9 = arith.constant 0 : i32
    %11 = arith.cmpi ne, %10, %c0_i32_9 : i32
    scf.if %11 {
      %c0_10 = arith.constant 0 : index
      %c0_11 = arith.constant 0 : index
      %12 = vector.load %arg8[%c0_10, %c0_11] : memref<128x128xf32, #tpu.memory_space<vmem>>, vector<128x128xf32>
      %c0_12 = arith.constant 0 : index
      %c0_13 = arith.constant 0 : index
      %13 = vector.load %arg5[%c0_12, %c0_13] : memref<1x128xf32, #tpu.memory_space<vmem>>, vector<1x128xf32>
      %14 = vector.broadcast %13 : vector<1x128xf32> to vector<128x128xf32>
      %15 = arith.mulf %12, %14 : vector<128x128xf32>
      %c0_14 = arith.constant 0 : index
      %c0_15 = arith.constant 0 : index
      %16 = vector.load %arg6[%c0_14, %c0_15] : memref<1x128xf32, #tpu.memory_space<vmem>>, vector<1x128xf32>
      %17 = vector.broadcast %16 : vector<1x128xf32> to vector<128x128xf32>
      %18 = arith.addf %15, %17 : vector<128x128xf32>
      %19 = arith.truncf %18 : vector<128x128xf32> to vector<128x128xbf16>
      %c0_16 = arith.constant 0 : index
      %c0_17 = arith.constant 0 : index
      %20 = vector.load %arg7[%c0_16, %c0_17] : memref<128x128xbf16, #tpu.memory_space<vmem>>, vector<128x128xbf16>
      tpu.vector_store %arg7[%c0_16, %c0_17], %19 {strides = array<i32>} : memref<128x128xbf16, #tpu.memory_space<vmem>>, vector<128x128xbf16>,
    } else {
    }
    return
  }
  func.func @transform_0(%arg0: i32, %arg1: i32, %arg2: i32) -> (i32, i32) {
    %c0_i32 = arith.constant 0 : i32
    return %arg0, %arg2 : i32, i32
  }
  func.func @transform_1(%arg0: i32, %arg1: i32, %arg2: i32) -> (i32, i32) {
    %c0_i32 = arith.constant 0 : i32
    return %arg2, %arg1 : i32, i32
  }
  func.func @transform_2(%arg0: i32, %arg1: i32, %arg2: i32) -> (i32, i32) {
    %c0_i32 = arith.constant 0 : i32
    %c0_i32_0 = arith.constant 0 : i32
    return %c0_i32, %arg1 : i32, i32
  }
  func.func @transform_3(%arg0: i32, %arg1: i32, %arg2: i32) -> (i32, i32) {
    %c0_i32 = arith.constant 0 : i32
    %c0_i32_0 = arith.constant 0 : i32
    return %c0_i32, %arg1 : i32, i32
  }
  func.func @transform_4(%arg0: i32, %arg1: i32, %arg2: i32) -> (i32, i32) {
    %c0_i32 = arith.constant 0 : i32
    return %arg0, %arg1 : i32, i32
  }
}

module attributes {stable_mosaic.version = 11 : i64} {
  func.func @_gemm_epilogue_kernel(%arg0: i32, %arg1: i32, %arg2: i32, %arg3: memref<128x128xbf16, #tpu.memory_space<vmem>>, %arg4: memref<128x128xbf16, #tpu.memory_space<vmem>>, %arg5: memref<1x128xf32, #tpu.memory_space<vmem>>, %arg6: memref<1x128xf32, #tpu.memory_space<vmem>>, %arg7: memref<128x128xbf16, #tpu.memory_space<vmem>>, %arg8: memref<128x128xbf16, #tpu.memory_space<vmem>>, %arg9: memref<128x128xf32, #tpu.memory_space<vmem>>) attributes {dimension_semantics = [#tpu.dimension_semantics<parallel>, #tpu.dimension_semantics<parallel>, #tpu.dimension_semantics<arbitrary>], iteration_bounds = array<i64: 1, 1, 1>, scalar_prefetch = 0 : i64, scratch_operands = 1 : i64, tpu.core_type = #tpu.core_type<tc>, window_params = [{transform_indices = @transform_0, window_bounds = array<i64: 128, 128>}, {transform_indices = @transform_1, window_bounds = array<i64: 128, 128>}, {transform_indices = @transform_2, window_bounds = array<i64: 1, 128>}, {transform_indices = @transform_3, window_bounds = array<i64: 1, 128>}, {transform_indices = @transform_4, window_bounds = array<i64: 128, 128>}, {transform_indices = @transform_5, window_bounds = array<i64: 128, 128>}]} {
    %c0_i32 = arith.constant 0 : i32
    %0 = arith.cmpi eq, %arg2, %c0_i32 : i32
    %1 = arith.extui %0 : i1 to i32
    %c0_i32_0 = arith.constant 0 : i32
    %2 = arith.cmpi ne, %1, %c0_i32_0 : i32
    scf.if %2 {
      %cst_10 = arith.constant 0.000000e+00 : f32
      %12 = vector.broadcast %cst_10 : f32 to vector<128x128xf32>
      %c0_11 = arith.constant 0 : index
      %c0_12 = arith.constant 0 : index
      %13 = vector.load %arg9[%c0_11, %c0_12] : memref<128x128xf32, #tpu.memory_space<vmem>>, vector<128x128xf32>
      tpu.vector_store %arg9[%c0_11, %c0_12], %12 {strides = array<i32>} : memref<128x128xf32, #tpu.memory_space<vmem>>, vector<128x128xf32>,
    } else {
    }
    %c0 = arith.constant 0 : index
    %c0_1 = arith.constant 0 : index
    %3 = vector.load %arg9[%c0, %c0_1] : memref<128x128xf32, #tpu.memory_space<vmem>>, vector<128x128xf32>
    %c0_2 = arith.constant 0 : index
    %c0_3 = arith.constant 0 : index
    %4 = vector.load %arg3[%c0_2, %c0_3] : memref<128x128xbf16, #tpu.memory_space<vmem>>, vector<128x128xbf16>
    %c0_4 = arith.constant 0 : index
    %c0_5 = arith.constant 0 : index
    %5 = vector.load %arg4[%c0_4, %c0_5] : memref<128x128xbf16, #tpu.memory_space<vmem>>, vector<128x128xbf16>
    %cst = arith.constant dense<0.000000e+00> : vector<128x128xf32>
    %6 = tpu.matmul %4, %5, %cst {dimension_numbers = #tpu.dot_dimension_numbers<[1], [0], [0], [1], [0, 0, 1, 1], [], []>} : vector<128x128xbf16>, vector<128x128xbf16>, vector<128x128xf32> -> vector<128x128xf32>
    %7 = arith.addf %3, %6 : vector<128x128xf32>
    %c0_6 = arith.constant 0 : index
    %c0_7 = arith.constant 0 : index
    %8 = vector.load %arg9[%c0_6, %c0_7] : memref<128x128xf32, #tpu.memory_space<vmem>>, vector<128x128xf32>
    tpu.vector_store %arg9[%c0_6, %c0_7], %7 {strides = array<i32>} : memref<128x128xf32, #tpu.memory_space<vmem>>, vector<128x128xf32>,
    %c0_i32_8 = arith.constant 0 : i32
    %9 = arith.cmpi eq, %arg2, %c0_i32_8 : i32
    %10 = arith.extui %9 : i1 to i32
    %c0_i32_9 = arith.constant 0 : i32
    %11 = arith.cmpi ne, %10, %c0_i32_9 : i32
    scf.if %11 {
      %c0_10 = arith.constant 0 : index
      %c0_11 = arith.constant 0 : index
      %12 = vector.load %arg9[%c0_10, %c0_11] : memref<128x128xf32, #tpu.memory_space<vmem>>, vector<128x128xf32>
      %c0_12 = arith.constant 0 : index
      %c0_13 = arith.constant 0 : index
      %13 = vector.load %arg5[%c0_12, %c0_13] : memref<1x128xf32, #tpu.memory_space<vmem>>, vector<1x128xf32>
      %14 = vector.broadcast %13 : vector<1x128xf32> to vector<128x128xf32>
      %15 = arith.mulf %12, %14 : vector<128x128xf32>
      %c0_14 = arith.constant 0 : index
      %c0_15 = arith.constant 0 : index
      %16 = vector.load %arg6[%c0_14, %c0_15] : memref<1x128xf32, #tpu.memory_space<vmem>>, vector<1x128xf32>
      %17 = vector.broadcast %16 : vector<1x128xf32> to vector<128x128xf32>
      %18 = arith.addf %15, %17 : vector<128x128xf32>
      %c0_16 = arith.constant 0 : index
      %c0_17 = arith.constant 0 : index
      %19 = vector.load %arg7[%c0_16, %c0_17] : memref<128x128xbf16, #tpu.memory_space<vmem>>, vector<128x128xbf16>
      %20 = arith.extf %19 : vector<128x128xbf16> to vector<128x128xf32>
      %21 = arith.addf %18, %20 : vector<128x128xf32>
      %cst_18 = arith.constant 0.000000e+00 : f32
      %22 = vector.broadcast %cst_18 : f32 to vector<128x128xf32>
      %23 = arith.maximumf %21, %22 : vector<128x128xf32>
      %24 = arith.truncf %23 : vector<128x128xf32> to vector<128x128xbf16>
      %c0_19 = arith.constant 0 : index
      %c0_20 = arith.constant 0 : index
      %25 = vector.load %arg8[%c0_19, %c0_20] : memref<128x128xbf16, #tpu.memory_space<vmem>>, vector<128x128xbf16>
      tpu.vector_store %arg8[%c0_19, %c0_20], %24 {strides = array<i32>} : memref<128x128xbf16, #tpu.memory_space<vmem>>, vector<128x128xbf16>,
    } else {
    }
    return
  }
  func.func @transform_0(%arg0: i32, %arg1: i32, %arg2: i32) -> (i32, i32) {
    %c0_i32 = arith.constant 0 : i32
    return %arg0, %arg2 : i32, i32
  }
  func.func @transform_1(%arg0: i32, %arg1: i32, %arg2: i32) -> (i32, i32) {
    %c0_i32 = arith.constant 0 : i32
    return %arg2, %arg1 : i32, i32
  }
  func.func @transform_2(%arg0: i32, %arg1: i32, %arg2: i32) -> (i32, i32) {
    %c0_i32 = arith.constant 0 : i32
    %c0_i32_0 = arith.constant 0 : i32
    return %c0_i32, %arg1 : i32, i32
  }
  func.func @transform_3(%arg0: i32, %arg1: i32, %arg2: i32) -> (i32, i32) {
    %c0_i32 = arith.constant 0 : i32
    %c0_i32_0 = arith.constant 0 : i32
    return %c0_i32, %arg1 : i32, i32
  }
  func.func @transform_4(%arg0: i32, %arg1: i32, %arg2: i32) -> (i32, i32) {
    %c0_i32 = arith.constant 0 : i32
    return %arg0, %arg1 : i32, i32
  }
  func.func @transform_5(%arg0: i32, %arg1: i32, %arg2: i32) -> (i32, i32) {
    %c0_i32 = arith.constant 0 : i32
    return %arg0, %arg1 : i32, i32
  }
}

module attributes {stable_mosaic.version = 11 : i64} {
  func.func @_gemm_epilogue_kernel(%arg0: i32, %arg1: i32, %arg2: i32, %arg3: memref<128x128xbf16, #tpu.memory_space<vmem>>, %arg4: memref<128x128xbf16, #tpu.memory_space<vmem>>, %arg5: memref<1x128xf32, #tpu.memory_space<vmem>>, %arg6: memref<1x128xf32, #tpu.memory_space<vmem>>, %arg7: memref<128x128xbf16, #tpu.memory_space<vmem>>, %arg8: memref<128x128xf32, #tpu.memory_space<vmem>>) attributes {dimension_semantics = [#tpu.dimension_semantics<parallel>, #tpu.dimension_semantics<parallel>, #tpu.dimension_semantics<arbitrary>], iteration_bounds = array<i64: 1, 1, 1>, scalar_prefetch = 0 : i64, scratch_operands = 1 : i64, tpu.core_type = #tpu.core_type<tc>, window_params = [{transform_indices = @transform_0, window_bounds = array<i64: 128, 128>}, {transform_indices = @transform_1, window_bounds = array<i64: 128, 128>}, {transform_indices = @transform_2, window_bounds = array<i64: 1, 128>}, {transform_indices = @transform_3, window_bounds = array<i64: 1, 128>}, {transform_indices = @transform_4, window_bounds = array<i64: 128, 128>}]} {
    %c0_i32 = arith.constant 0 : i32
    %0 = arith.cmpi eq, %arg2, %c0_i32 : i32
    %1 = arith.extui %0 : i1 to i32
    %c0_i32_0 = arith.constant 0 : i32
    %2 = arith.cmpi ne, %1, %c0_i32_0 : i32
    scf.if %2 {
      %cst_10 = arith.constant 0.000000e+00 : f32
      %12 = vector.broadcast %cst_10 : f32 to vector<128x128xf32>
      %c0_11 = arith.constant 0 : index
      %c0_12 = arith.constant 0 : index
      %13 = vector.load %arg8[%c0_11, %c0_12] : memref<128x128xf32, #tpu.memory_space<vmem>>, vector<128x128xf32>
      tpu.vector_store %arg8[%c0_11, %c0_12], %12 {strides = array<i32>} : memref<128x128xf32, #tpu.memory_space<vmem>>, vector<128x128xf32>,
    } else {
    }
    %c0 = arith.constant 0 : index
    %c0_1 = arith.constant 0 : index
    %3 = vector.load %arg8[%c0, %c0_1] : memref<128x128xf32, #tpu.memory_space<vmem>>, vector<128x128xf32>
    %c0_2 = arith.constant 0 : index
    %c0_3 = arith.constant 0 : index
    %4 = vector.load %arg3[%c0_2, %c0_3] : memref<128x128xbf16, #tpu.memory_space<vmem>>, vector<128x128xbf16>
    %c0_4 = arith.constant 0 : index
    %c0_5 = arith.constant 0 : index
    %5 = vector.load %arg4[%c0_4, %c0_5] : memref<128x128xbf16, #tpu.memory_space<vmem>>, vector<128x128xbf16>
    %cst = arith.constant dense<0.000000e+00> : vector<128x128xf32>
    %6 = tpu.matmul %4, %5, %cst {dimension_numbers = #tpu.dot_dimension_numbers<[1], [0], [0], [1], [0, 0, 1, 1], [], []>} : vector<128x128xbf16>, vector<128x128xbf16>, vector<128x128xf32> -> vector<128x128xf32>
    %7 = arith.addf %3, %6 : vector<128x128xf32>
    %c0_6 = arith.constant 0 : index
    %c0_7 = arith.constant 0 : index
    %8 = vector.load %arg8[%c0_6, %c0_7] : memref<128x128xf32, #tpu.memory_space<vmem>>, vector<128x128xf32>
    tpu.vector_store %arg8[%c0_6, %c0_7], %7 {strides = array<i32>} : memref<128x128xf32, #tpu.memory_space<vmem>>, vector<128x128xf32>,
    %c0_i32_8 = arith.constant 0 : i32
    %9 = arith.cmpi eq, %arg2, %c0_i32_8 : i32
    %10 = arith.extui %9 : i1 to i32
    %c0_i32_9 = arith.constant 0 : i32
    %11 = arith.cmpi ne, %10, %c0_i32_9 : i32
    scf.if %11 {
      %c0_10 = arith.constant 0 : index
      %c0_11 = arith.constant 0 : index
      %12 = vector.load %arg8[%c0_10, %c0_11] : memref<128x128xf32, #tpu.memory_space<vmem>>, vector<128x128xf32>
      %c0_12 = arith.constant 0 : index
      %c0_13 = arith.constant 0 : index
      %13 = vector.load %arg5[%c0_12, %c0_13] : memref<1x128xf32, #tpu.memory_space<vmem>>, vector<1x128xf32>
      %14 = vector.broadcast %13 : vector<1x128xf32> to vector<128x128xf32>
      %15 = arith.mulf %12, %14 : vector<128x128xf32>
      %c0_14 = arith.constant 0 : index
      %c0_15 = arith.constant 0 : index
      %16 = vector.load %arg6[%c0_14, %c0_15] : memref<1x128xf32, #tpu.memory_space<vmem>>, vector<1x128xf32>
      %17 = vector.broadcast %16 : vector<1x128xf32> to vector<128x128xf32>
      %18 = arith.addf %15, %17 : vector<128x128xf32>
      %cst_16 = arith.constant 0.000000e+00 : f32
      %19 = vector.broadcast %cst_16 : f32 to vector<128x128xf32>
      %20 = arith.maximumf %18, %19 : vector<128x128xf32>
      %21 = arith.truncf %20 : vector<128x128xf32> to vector<128x128xbf16>
      %c0_17 = arith.constant 0 : index
      %c0_18 = arith.constant 0 : index
      %22 = vector.load %arg7[%c0_17, %c0_18] : memref<128x128xbf16, #tpu.memory_space<vmem>>, vector<128x128xbf16>
      tpu.vector_store %arg7[%c0_17, %c0_18], %21 {strides = array<i32>} : memref<128x128xbf16, #tpu.memory_space<vmem>>, vector<128x128xbf16>,
    } else {
    }
    return
  }
  func.func @transform_0(%arg0: i32, %arg1: i32, %arg2: i32) -> (i32, i32) {
    %c0_i32 = arith.constant 0 : i32
    return %arg0, %arg2 : i32, i32
  }
  func.func @transform_1(%arg0: i32, %arg1: i32, %arg2: i32) -> (i32, i32) {
    %c0_i32 = arith.constant 0 : i32
    return %arg2, %arg1 : i32, i32
  }
  func.func @transform_2(%arg0: i32, %arg1: i32, %arg2: i32) -> (i32, i32) {
    %c0_i32 = arith.constant 0 : i32
    %c0_i32_0 = arith.constant 0 : i32
    return %c0_i32, %arg1 : i32, i32
  }
  func.func @transform_3(%arg0: i32, %arg1: i32, %arg2: i32) -> (i32, i32) {
    %c0_i32 = arith.constant 0 : i32
    %c0_i32_0 = arith.constant 0 : i32
    return %c0_i32, %arg1 : i32, i32
  }
  func.func @transform_4(%arg0: i32, %arg1: i32, %arg2: i32) -> (i32, i32) {
    %c0_i32 = arith.constant 0 : i32
    return %arg0, %arg1 : i32, i32
  }
}

module attributes {stable_mosaic.version = 11 : i64} {
  func.func @_gemm_epilogue_kernel(%arg0: i32, %arg1: i32, %arg2: i32, %arg3: memref<32x640xbf16, #tpu.memory_space<vmem>>, %arg4: memref<640x128xbf16, #tpu.memory_space<vmem>>, %arg5: memref<1x128xf32, #tpu.memory_space<vmem>>, %arg6: memref<1x128xf32, #tpu.memory_space<vmem>>, %arg7: memref<32x128xbf16, #tpu.memory_space<vmem>>, %arg8: memref<32x128xf32, #tpu.memory_space<vmem>>) attributes {dimension_semantics = [#tpu.dimension_semantics<parallel>, #tpu.dimension_semantics<parallel>, #tpu.dimension_semantics<arbitrary>], iteration_bounds = array<i64: 1, 1, 1>, scalar_prefetch = 0 : i64, scratch_operands = 1 : i64, tpu.core_type = #tpu.core_type<tc>, window_params = [{transform_indices = @transform_0, window_bounds = array<i64: 32, 640>}, {transform_indices = @transform_1, window_bounds = array<i64: 640, 128>}, {transform_indices = @transform_2, window_bounds = array<i64: 1, 128>}, {transform_indices = @transform_3, window_bounds = array<i64: 1, 128>}, {transform_indices = @transform_4, window_bounds = array<i64: 32, 128>}]} {
    %c0_i32 = arith.constant 0 : i32
    %0 = arith.cmpi eq, %arg2, %c0_i32 : i32
    %1 = arith.extui %0 : i1 to i32
    %c0_i32_0 = arith.constant 0 : i32
    %2 = arith.cmpi ne, %1, %c0_i32_0 : i32
    scf.if %2 {
      %cst_10 = arith.constant 0.000000e+00 : f32
      %12 = vector.broadcast %cst_10 : f32 to vector<32x128xf32>
      %c0_11 = arith.constant 0 : index
      %c0_12 = arith.constant 0 : index
      %13 = vector.load %arg8[%c0_11, %c0_12] : memref<32x128xf32, #tpu.memory_space<vmem>>, vector<32x128xf32>
      tpu.vector_store %arg8[%c0_11, %c0_12], %12 {strides = array<i32>} : memref<32x128xf32, #tpu.memory_space<vmem>>, vector<32x128xf32>,
    } else {
    }
    %c0 = arith.constant 0 : index
    %c0_1 = arith.constant 0 : index
    %3 = vector.load %arg8[%c0, %c0_1] : memref<32x128xf32, #tpu.memory_space<vmem>>, vector<32x128xf32>
    %c0_2 = arith.constant 0 : index
    %c0_3 = arith.constant 0 : index
    %4 = vector.load %arg3[%c0_2, %c0_3] : memref<32x640xbf16, #tpu.memory_space<vmem>>, vector<32x640xbf16>
    %c0_4 = arith.constant 0 : index
    %c0_5 = arith.constant 0 : index
    %5 = vector.load %arg4[%c0_4, %c0_5] : memref<640x128xbf16, #tpu.memory_space<vmem>>, vector<640x128xbf16>
    %cst = arith.constant dense<0.000000e+00> : vector<32x128xf32>
    %6 = tpu.matmul %4, %5, %cst {dimension_numbers = #tpu.dot_dimension_numbers<[1], [0], [0], [1], [0, 0, 1, 1], [], []>} : vector<32x640xbf16>, vector<640x128xbf16>, vector<32x128xf32> -> vector<32x128xf32>
    %7 = arith.addf %3, %6 : vector<32x128xf32>
    %c0_6 = arith.constant 0 : index
    %c0_7 = arith.constant 0 : index
    %8 = vector.load %arg8[%c0_6, %c0_7] : memref<32x128xf32, #tpu.memory_space<vmem>>, vector<32x128xf32>
    tpu.vector_store %arg8[%c0_6, %c0_7], %7 {strides = array<i32>} : memref<32x128xf32, #tpu.memory_space<vmem>>, vector<32x128xf32>,
    %c0_i32_8 = arith.constant 0 : i32
    %9 = arith.cmpi eq, %arg2, %c0_i32_8 : i32
    %10 = arith.extui %9 : i1 to i32
    %c0_i32_9 = arith.constant 0 : i32
    %11 = arith.cmpi ne, %10, %c0_i32_9 : i32
    scf.if %11 {
      %c0_10 = arith.constant 0 : index
      %c0_11 = arith.constant 0 : index
      %12 = vector.load %arg8[%c0_10, %c0_11] : memref<32x128xf32, #tpu.memory_space<vmem>>, vector<32x128xf32>
      %c0_12 = arith.constant 0 : index
      %c0_13 = arith.constant 0 : index
      %13 = vector.load %arg5[%c0_12, %c0_13] : memref<1x128xf32, #tpu.memory_space<vmem>>, vector<1x128xf32>
      %14 = vector.broadcast %13 : vector<1x128xf32> to vector<32x128xf32>
      %15 = arith.mulf %12, %14 : vector<32x128xf32>
      %c0_14 = arith.constant 0 : index
      %c0_15 = arith.constant 0 : index
      %16 = vector.load %arg6[%c0_14, %c0_15] : memref<1x128xf32, #tpu.memory_space<vmem>>, vector<1x128xf32>
      %17 = vector.broadcast %16 : vector<1x128xf32> to vector<32x128xf32>
      %18 = arith.addf %15, %17 : vector<32x128xf32>
      %cst_16 = arith.constant 0.000000e+00 : f32
      %19 = vector.broadcast %cst_16 : f32 to vector<32x128xf32>
      %20 = arith.maximumf %18, %19 : vector<32x128xf32>
      %21 = arith.truncf %20 : vector<32x128xf32> to vector<32x128xbf16>
      %c0_17 = arith.constant 0 : index
      %c0_18 = arith.constant 0 : index
      %22 = vector.load %arg7[%c0_17, %c0_18] : memref<32x128xbf16, #tpu.memory_space<vmem>>, vector<32x128xbf16>
      tpu.vector_store %arg7[%c0_17, %c0_18], %21 {strides = array<i32>} : memref<32x128xbf16, #tpu.memory_space<vmem>>, vector<32x128xbf16>,
    } else {
    }
    return
  }
  func.func @transform_0(%arg0: i32, %arg1: i32, %arg2: i32) -> (i32, i32) {
    %c0_i32 = arith.constant 0 : i32
    return %arg0, %arg2 : i32, i32
  }
  func.func @transform_1(%arg0: i32, %arg1: i32, %arg2: i32) -> (i32, i32) {
    %c0_i32 = arith.constant 0 : i32
    return %arg2, %arg1 : i32, i32
  }
  func.func @transform_2(%arg0: i32, %arg1: i32, %arg2: i32) -> (i32, i32) {
    %c0_i32 = arith.constant 0 : i32
    %c0_i32_0 = arith.constant 0 : i32
    return %c0_i32, %arg1 : i32, i32
  }
  func.func @transform_3(%arg0: i32, %arg1: i32, %arg2: i32) -> (i32, i32) {
    %c0_i32 = arith.constant 0 : i32
    %c0_i32_0 = arith.constant 0 : i32
    return %c0_i32, %arg1 : i32, i32
  }
  func.func @transform_4(%arg0: i32, %arg1: i32, %arg2: i32) -> (i32, i32) {
    %c0_i32 = arith.constant 0 : i32
    return %arg0, %arg1 : i32, i32
  }
}

module attributes {stable_mosaic.version = 11 : i64} {
  func.func @_gemm_epilogue_kernel(%arg0: i32, %arg1: i32, %arg2: i32, %arg3: memref<32x128xbf16, #tpu.memory_space<vmem>>, %arg4: memref<128x256xbf16, #tpu.memory_space<vmem>>, %arg5: memref<1x256xf32, #tpu.memory_space<vmem>>, %arg6: memref<1x256xf32, #tpu.memory_space<vmem>>, %arg7: memref<32x256xbf16, #tpu.memory_space<vmem>>, %arg8: memref<32x256xf32, #tpu.memory_space<vmem>>) attributes {dimension_semantics = [#tpu.dimension_semantics<parallel>, #tpu.dimension_semantics<parallel>, #tpu.dimension_semantics<arbitrary>], iteration_bounds = array<i64: 1, 1, 1>, scalar_prefetch = 0 : i64, scratch_operands = 1 : i64, tpu.core_type = #tpu.core_type<tc>, window_params = [{transform_indices = @transform_0, window_bounds = array<i64: 32, 128>}, {transform_indices = @transform_1, window_bounds = array<i64: 128, 256>}, {transform_indices = @transform_2, window_bounds = array<i64: 1, 256>}, {transform_indices = @transform_3, window_bounds = array<i64: 1, 256>}, {transform_indices = @transform_4, window_bounds = array<i64: 32, 256>}]} {
    %c0_i32 = arith.constant 0 : i32
    %0 = arith.cmpi eq, %arg2, %c0_i32 : i32
    %1 = arith.extui %0 : i1 to i32
    %c0_i32_0 = arith.constant 0 : i32
    %2 = arith.cmpi ne, %1, %c0_i32_0 : i32
    scf.if %2 {
      %cst_10 = arith.constant 0.000000e+00 : f32
      %12 = vector.broadcast %cst_10 : f32 to vector<32x256xf32>
      %c0_11 = arith.constant 0 : index
      %c0_12 = arith.constant 0 : index
      %13 = vector.load %arg8[%c0_11, %c0_12] : memref<32x256xf32, #tpu.memory_space<vmem>>, vector<32x256xf32>
      tpu.vector_store %arg8[%c0_11, %c0_12], %12 {strides = array<i32>} : memref<32x256xf32, #tpu.memory_space<vmem>>, vector<32x256xf32>,
    } else {
    }
    %c0 = arith.constant 0 : index
    %c0_1 = arith.constant 0 : index
    %3 = vector.load %arg8[%c0, %c0_1] : memref<32x256xf32, #tpu.memory_space<vmem>>, vector<32x256xf32>
    %c0_2 = arith.constant 0 : index
    %c0_3 = arith.constant 0 : index
    %4 = vector.load %arg3[%c0_2, %c0_3] : memref<32x128xbf16, #tpu.memory_space<vmem>>, vector<32x128xbf16>
    %c0_4 = arith.constant 0 : index
    %c0_5 = arith.constant 0 : index
    %5 = vector.load %arg4[%c0_4, %c0_5] : memref<128x256xbf16, #tpu.memory_space<vmem>>, vector<128x256xbf16>
    %cst = arith.constant dense<0.000000e+00> : vector<32x256xf32>
    %6 = tpu.matmul %4, %5, %cst {dimension_numbers = #tpu.dot_dimension_numbers<[1], [0], [0], [1], [0, 0, 1, 1], [], []>} : vector<32x128xbf16>, vector<128x256xbf16>, vector<32x256xf32> -> vector<32x256xf32>
    %7 = arith.addf %3, %6 : vector<32x256xf32>
    %c0_6 = arith.constant 0 : index
    %c0_7 = arith.constant 0 : index
    %8 = vector.load %arg8[%c0_6, %c0_7] : memref<32x256xf32, #tpu.memory_space<vmem>>, vector<32x256xf32>
    tpu.vector_store %arg8[%c0_6, %c0_7], %7 {strides = array<i32>} : memref<32x256xf32, #tpu.memory_space<vmem>>, vector<32x256xf32>,
    %c0_i32_8 = arith.constant 0 : i32
    %9 = arith.cmpi eq, %arg2, %c0_i32_8 : i32
    %10 = arith.extui %9 : i1 to i32
    %c0_i32_9 = arith.constant 0 : i32
    %11 = arith.cmpi ne, %10, %c0_i32_9 : i32
    scf.if %11 {
      %c0_10 = arith.constant 0 : index
      %c0_11 = arith.constant 0 : index
      %12 = vector.load %arg8[%c0_10, %c0_11] : memref<32x256xf32, #tpu.memory_space<vmem>>, vector<32x256xf32>
      %c0_12 = arith.constant 0 : index
      %c0_13 = arith.constant 0 : index
      %13 = vector.load %arg5[%c0_12, %c0_13] : memref<1x256xf32, #tpu.memory_space<vmem>>, vector<1x256xf32>
      %14 = vector.broadcast %13 : vector<1x256xf32> to vector<32x256xf32>
      %15 = arith.mulf %12, %14 : vector<32x256xf32>
      %c0_14 = arith.constant 0 : index
      %c0_15 = arith.constant 0 : index
      %16 = vector.load %arg6[%c0_14, %c0_15] : memref<1x256xf32, #tpu.memory_space<vmem>>, vector<1x256xf32>
      %17 = vector.broadcast %16 : vector<1x256xf32> to vector<32x256xf32>
      %18 = arith.addf %15, %17 : vector<32x256xf32>
      %19 = arith.truncf %18 : vector<32x256xf32> to vector<32x256xbf16>
      %c0_16 = arith.constant 0 : index
      %c0_17 = arith.constant 0 : index
      %20 = vector.load %arg7[%c0_16, %c0_17] : memref<32x256xbf16, #tpu.memory_space<vmem>>, vector<32x256xbf16>
      tpu.vector_store %arg7[%c0_16, %c0_17], %19 {strides = array<i32>} : memref<32x256xbf16, #tpu.memory_space<vmem>>, vector<32x256xbf16>,
    } else {
    }
    return
  }
  func.func @transform_0(%arg0: i32, %arg1: i32, %arg2: i32) -> (i32, i32) {
    %c0_i32 = arith.constant 0 : i32
    return %arg0, %arg2 : i32, i32
  }
  func.func @transform_1(%arg0: i32, %arg1: i32, %arg2: i32) -> (i32, i32) {
    %c0_i32 = arith.constant 0 : i32
    return %arg2, %arg1 : i32, i32
  }
  func.func @transform_2(%arg0: i32, %arg1: i32, %arg2: i32) -> (i32, i32) {
    %c0_i32 = arith.constant 0 : i32
    %c0_i32_0 = arith.constant 0 : i32
    return %c0_i32, %arg1 : i32, i32
  }
  func.func @transform_3(%arg0: i32, %arg1: i32, %arg2: i32) -> (i32, i32) {
    %c0_i32 = arith.constant 0 : i32
    %c0_i32_0 = arith.constant 0 : i32
    return %c0_i32, %arg1 : i32, i32
  }
  func.func @transform_4(%arg0: i32, %arg1: i32, %arg2: i32) -> (i32, i32) {
    %c0_i32 = arith.constant 0 : i32
    return %arg0, %arg1 : i32, i32
  }
}

module attributes {stable_mosaic.version = 11 : i64} {
  func.func @_gemm_epilogue_kernel(%arg0: i32, %arg1: i32, %arg2: i32, %arg3: memref<32x128xbf16, #tpu.memory_space<vmem>>, %arg4: memref<128x256xbf16, #tpu.memory_space<vmem>>, %arg5: memref<1x256xf32, #tpu.memory_space<vmem>>, %arg6: memref<1x256xf32, #tpu.memory_space<vmem>>, %arg7: memref<32x256xbf16, #tpu.memory_space<vmem>>, %arg8: memref<32x256xbf16, #tpu.memory_space<vmem>>, %arg9: memref<32x256xf32, #tpu.memory_space<vmem>>) attributes {dimension_semantics = [#tpu.dimension_semantics<parallel>, #tpu.dimension_semantics<parallel>, #tpu.dimension_semantics<arbitrary>], iteration_bounds = array<i64: 1, 1, 1>, scalar_prefetch = 0 : i64, scratch_operands = 1 : i64, tpu.core_type = #tpu.core_type<tc>, window_params = [{transform_indices = @transform_0, window_bounds = array<i64: 32, 128>}, {transform_indices = @transform_1, window_bounds = array<i64: 128, 256>}, {transform_indices = @transform_2, window_bounds = array<i64: 1, 256>}, {transform_indices = @transform_3, window_bounds = array<i64: 1, 256>}, {transform_indices = @transform_4, window_bounds = array<i64: 32, 256>}, {transform_indices = @transform_5, window_bounds = array<i64: 32, 256>}]} {
    %c0_i32 = arith.constant 0 : i32
    %0 = arith.cmpi eq, %arg2, %c0_i32 : i32
    %1 = arith.extui %0 : i1 to i32
    %c0_i32_0 = arith.constant 0 : i32
    %2 = arith.cmpi ne, %1, %c0_i32_0 : i32
    scf.if %2 {
      %cst_10 = arith.constant 0.000000e+00 : f32
      %12 = vector.broadcast %cst_10 : f32 to vector<32x256xf32>
      %c0_11 = arith.constant 0 : index
      %c0_12 = arith.constant 0 : index
      %13 = vector.load %arg9[%c0_11, %c0_12] : memref<32x256xf32, #tpu.memory_space<vmem>>, vector<32x256xf32>
      tpu.vector_store %arg9[%c0_11, %c0_12], %12 {strides = array<i32>} : memref<32x256xf32, #tpu.memory_space<vmem>>, vector<32x256xf32>,
    } else {
    }
    %c0 = arith.constant 0 : index
    %c0_1 = arith.constant 0 : index
    %3 = vector.load %arg9[%c0, %c0_1] : memref<32x256xf32, #tpu.memory_space<vmem>>, vector<32x256xf32>
    %c0_2 = arith.constant 0 : index
    %c0_3 = arith.constant 0 : index
    %4 = vector.load %arg3[%c0_2, %c0_3] : memref<32x128xbf16, #tpu.memory_space<vmem>>, vector<32x128xbf16>
    %c0_4 = arith.constant 0 : index
    %c0_5 = arith.constant 0 : index
    %5 = vector.load %arg4[%c0_4, %c0_5] : memref<128x256xbf16, #tpu.memory_space<vmem>>, vector<128x256xbf16>
    %cst = arith.constant dense<0.000000e+00> : vector<32x256xf32>
    %6 = tpu.matmul %4, %5, %cst {dimension_numbers = #tpu.dot_dimension_numbers<[1], [0], [0], [1], [0, 0, 1, 1], [], []>} : vector<32x128xbf16>, vector<128x256xbf16>, vector<32x256xf32> -> vector<32x256xf32>
    %7 = arith.addf %3, %6 : vector<32x256xf32>
    %c0_6 = arith.constant 0 : index
    %c0_7 = arith.constant 0 : index
    %8 = vector.load %arg9[%c0_6, %c0_7] : memref<32x256xf32, #tpu.memory_space<vmem>>, vector<32x256xf32>
    tpu.vector_store %arg9[%c0_6, %c0_7], %7 {strides = array<i32>} : memref<32x256xf32, #tpu.memory_space<vmem>>, vector<32x256xf32>,
    %c0_i32_8 = arith.constant 0 : i32
    %9 = arith.cmpi eq, %arg2, %c0_i32_8 : i32
    %10 = arith.extui %9 : i1 to i32
    %c0_i32_9 = arith.constant 0 : i32
    %11 = arith.cmpi ne, %10, %c0_i32_9 : i32
    scf.if %11 {
      %c0_10 = arith.constant 0 : index
      %c0_11 = arith.constant 0 : index
      %12 = vector.load %arg9[%c0_10, %c0_11] : memref<32x256xf32, #tpu.memory_space<vmem>>, vector<32x256xf32>
      %c0_12 = arith.constant 0 : index
      %c0_13 = arith.constant 0 : index
      %13 = vector.load %arg5[%c0_12, %c0_13] : memref<1x256xf32, #tpu.memory_space<vmem>>, vector<1x256xf32>
      %14 = vector.broadcast %13 : vector<1x256xf32> to vector<32x256xf32>
      %15 = arith.mulf %12, %14 : vector<32x256xf32>
      %c0_14 = arith.constant 0 : index
      %c0_15 = arith.constant 0 : index
      %16 = vector.load %arg6[%c0_14, %c0_15] : memref<1x256xf32, #tpu.memory_space<vmem>>, vector<1x256xf32>
      %17 = vector.broadcast %16 : vector<1x256xf32> to vector<32x256xf32>
      %18 = arith.addf %15, %17 : vector<32x256xf32>
      %c0_16 = arith.constant 0 : index
      %c0_17 = arith.constant 0 : index
      %19 = vector.load %arg7[%c0_16, %c0_17] : memref<32x256xbf16, #tpu.memory_space<vmem>>, vector<32x256xbf16>
      %20 = arith.extf %19 : vector<32x256xbf16> to vector<32x256xf32>
      %21 = arith.addf %18, %20 : vector<32x256xf32>
      %cst_18 = arith.constant 0.000000e+00 : f32
      %22 = vector.broadcast %cst_18 : f32 to vector<32x256xf32>
      %23 = arith.maximumf %21, %22 : vector<32x256xf32>
      %24 = arith.truncf %23 : vector<32x256xf32> to vector<32x256xbf16>
      %c0_19 = arith.constant 0 : index
      %c0_20 = arith.constant 0 : index
      %25 = vector.load %arg8[%c0_19, %c0_20] : memref<32x256xbf16, #tpu.memory_space<vmem>>, vector<32x256xbf16>
      tpu.vector_store %arg8[%c0_19, %c0_20], %24 {strides = array<i32>} : memref<32x256xbf16, #tpu.memory_space<vmem>>, vector<32x256xbf16>,
    } else {
    }
    return
  }
  func.func @transform_0(%arg0: i32, %arg1: i32, %arg2: i32) -> (i32, i32) {
    %c0_i32 = arith.constant 0 : i32
    return %arg0, %arg2 : i32, i32
  }
  func.func @transform_1(%arg0: i32, %arg1: i32, %arg2: i32) -> (i32, i32) {
    %c0_i32 = arith.constant 0 : i32
    return %arg2, %arg1 : i32, i32
  }
  func.func @transform_2(%arg0: i32, %arg1: i32, %arg2: i32) -> (i32, i32) {
    %c0_i32 = arith.constant 0 : i32
    %c0_i32_0 = arith.constant 0 : i32
    return %c0_i32, %arg1 : i32, i32
  }
  func.func @transform_3(%arg0: i32, %arg1: i32, %arg2: i32) -> (i32, i32) {
    %c0_i32 = arith.constant 0 : i32
    %c0_i32_0 = arith.constant 0 : i32
    return %c0_i32, %arg1 : i32, i32
  }
  func.func @transform_4(%arg0: i32, %arg1: i32, %arg2: i32) -> (i32, i32) {
    %c0_i32 = arith.constant 0 : i32
    return %arg0, %arg1 : i32, i32
  }
  func.func @transform_5(%arg0: i32, %arg1: i32, %arg2: i32) -> (i32, i32) {
    %c0_i32 = arith.constant 0 : i32
    return %arg0, %arg1 : i32, i32
  }
}

module attributes {stable_mosaic.version = 11 : i64} {
  func.func @_gemm_epilogue_kernel(%arg0: i32, %arg1: i32, %arg2: i32, %arg3: memref<8x256xbf16, #tpu.memory_space<vmem>>, %arg4: memref<256x512xbf16, #tpu.memory_space<vmem>>, %arg5: memref<1x512xf32, #tpu.memory_space<vmem>>, %arg6: memref<1x512xf32, #tpu.memory_space<vmem>>, %arg7: memref<8x512xbf16, #tpu.memory_space<vmem>>, %arg8: memref<8x512xf32, #tpu.memory_space<vmem>>) attributes {dimension_semantics = [#tpu.dimension_semantics<parallel>, #tpu.dimension_semantics<parallel>, #tpu.dimension_semantics<arbitrary>], iteration_bounds = array<i64: 1, 1, 1>, scalar_prefetch = 0 : i64, scratch_operands = 1 : i64, tpu.core_type = #tpu.core_type<tc>, window_params = [{transform_indices = @transform_0, window_bounds = array<i64: 8, 256>}, {transform_indices = @transform_1, window_bounds = array<i64: 256, 512>}, {transform_indices = @transform_2, window_bounds = array<i64: 1, 512>}, {transform_indices = @transform_3, window_bounds = array<i64: 1, 512>}, {transform_indices = @transform_4, window_bounds = array<i64: 8, 512>}]} {
    %c0_i32 = arith.constant 0 : i32
    %0 = arith.cmpi eq, %arg2, %c0_i32 : i32
    %1 = arith.extui %0 : i1 to i32
    %c0_i32_0 = arith.constant 0 : i32
    %2 = arith.cmpi ne, %1, %c0_i32_0 : i32
    scf.if %2 {
      %cst_10 = arith.constant 0.000000e+00 : f32
      %12 = vector.broadcast %cst_10 : f32 to vector<8x512xf32>
      %c0_11 = arith.constant 0 : index
      %c0_12 = arith.constant 0 : index
      %13 = vector.load %arg8[%c0_11, %c0_12] : memref<8x512xf32, #tpu.memory_space<vmem>>, vector<8x512xf32>
      tpu.vector_store %arg8[%c0_11, %c0_12], %12 {strides = array<i32>} : memref<8x512xf32, #tpu.memory_space<vmem>>, vector<8x512xf32>,
    } else {
    }
    %c0 = arith.constant 0 : index
    %c0_1 = arith.constant 0 : index
    %3 = vector.load %arg8[%c0, %c0_1] : memref<8x512xf32, #tpu.memory_space<vmem>>, vector<8x512xf32>
    %c0_2 = arith.constant 0 : index
    %c0_3 = arith.constant 0 : index
    %4 = vector.load %arg3[%c0_2, %c0_3] : memref<8x256xbf16, #tpu.memory_space<vmem>>, vector<8x256xbf16>
    %c0_4 = arith.constant 0 : index
    %c0_5 = arith.constant 0 : index
    %5 = vector.load %arg4[%c0_4, %c0_5] : memref<256x512xbf16, #tpu.memory_space<vmem>>, vector<256x512xbf16>
    %cst = arith.constant dense<0.000000e+00> : vector<8x512xf32>
    %6 = tpu.matmul %4, %5, %cst {dimension_numbers = #tpu.dot_dimension_numbers<[1], [0], [0], [1], [0, 0, 1, 1], [], []>} : vector<8x256xbf16>, vector<256x512xbf16>, vector<8x512xf32> -> vector<8x512xf32>
    %7 = arith.addf %3, %6 : vector<8x512xf32>
    %c0_6 = arith.constant 0 : index
    %c0_7 = arith.constant 0 : index
    %8 = vector.load %arg8[%c0_6, %c0_7] : memref<8x512xf32, #tpu.memory_space<vmem>>, vector<8x512xf32>
    tpu.vector_store %arg8[%c0_6, %c0_7], %7 {strides = array<i32>} : memref<8x512xf32, #tpu.memory_space<vmem>>, vector<8x512xf32>,
    %c0_i32_8 = arith.constant 0 : i32
    %9 = arith.cmpi eq, %arg2, %c0_i32_8 : i32
    %10 = arith.extui %9 : i1 to i32
    %c0_i32_9 = arith.constant 0 : i32
    %11 = arith.cmpi ne, %10, %c0_i32_9 : i32
    scf.if %11 {
      %c0_10 = arith.constant 0 : index
      %c0_11 = arith.constant 0 : index
      %12 = vector.load %arg8[%c0_10, %c0_11] : memref<8x512xf32, #tpu.memory_space<vmem>>, vector<8x512xf32>
      %c0_12 = arith.constant 0 : index
      %c0_13 = arith.constant 0 : index
      %13 = vector.load %arg5[%c0_12, %c0_13] : memref<1x512xf32, #tpu.memory_space<vmem>>, vector<1x512xf32>
      %14 = vector.broadcast %13 : vector<1x512xf32> to vector<8x512xf32>
      %15 = arith.mulf %12, %14 : vector<8x512xf32>
      %c0_14 = arith.constant 0 : index
      %c0_15 = arith.constant 0 : index
      %16 = vector.load %arg6[%c0_14, %c0_15] : memref<1x512xf32, #tpu.memory_space<vmem>>, vector<1x512xf32>
      %17 = vector.broadcast %16 : vector<1x512xf32> to vector<8x512xf32>
      %18 = arith.addf %15, %17 : vector<8x512xf32>
      %19 = arith.truncf %18 : vector<8x512xf32> to vector<8x512xbf16>
      %c0_16 = arith.constant 0 : index
      %c0_17 = arith.constant 0 : index
      %20 = vector.load %arg7[%c0_16, %c0_17] : memref<8x512xbf16, #tpu.memory_space<vmem>>, vector<8x512xbf16>
      tpu.vector_store %arg7[%c0_16, %c0_17], %19 {strides = array<i32>} : memref<8x512xbf16, #tpu.memory_space<vmem>>, vector<8x512xbf16>,
    } else {
    }
    return
  }
  func.func @transform_0(%arg0: i32, %arg1: i32, %arg2: i32) -> (i32, i32) {
    %c0_i32 = arith.constant 0 : i32
    return %arg0, %arg2 : i32, i32
  }
  func.func @transform_1(%arg0: i32, %arg1: i32, %arg2: i32) -> (i32, i32) {
    %c0_i32 = arith.constant 0 : i32
    return %arg2, %arg1 : i32, i32
  }
  func.func @transform_2(%arg0: i32, %arg1: i32, %arg2: i32) -> (i32, i32) {
    %c0_i32 = arith.constant 0 : i32
    %c0_i32_0 = arith.constant 0 : i32
    return %c0_i32, %arg1 : i32, i32
  }
  func.func @transform_3(%arg0: i32, %arg1: i32, %arg2: i32) -> (i32, i32) {
    %c0_i32 = arith.constant 0 : i32
    %c0_i32_0 = arith.constant 0 : i32
    return %c0_i32, %arg1 : i32, i32
  }
  func.func @transform_4(%arg0: i32, %arg1: i32, %arg2: i32) -> (i32, i32) {
    %c0_i32 = arith.constant 0 : i32
    return %arg0, %arg1 : i32, i32
  }
}

module attributes {stable_mosaic.version = 11 : i64} {
  func.func @_gemm_epilogue_kernel(%arg0: i32, %arg1: i32, %arg2: i32, %arg3: memref<32x256xbf16, #tpu.memory_space<vmem>>, %arg4: memref<256x128xbf16, #tpu.memory_space<vmem>>, %arg5: memref<1x128xf32, #tpu.memory_space<vmem>>, %arg6: memref<1x128xf32, #tpu.memory_space<vmem>>, %arg7: memref<32x128xbf16, #tpu.memory_space<vmem>>, %arg8: memref<32x128xf32, #tpu.memory_space<vmem>>) attributes {dimension_semantics = [#tpu.dimension_semantics<parallel>, #tpu.dimension_semantics<parallel>, #tpu.dimension_semantics<arbitrary>], iteration_bounds = array<i64: 1, 1, 1>, scalar_prefetch = 0 : i64, scratch_operands = 1 : i64, tpu.core_type = #tpu.core_type<tc>, window_params = [{transform_indices = @transform_0, window_bounds = array<i64: 32, 256>}, {transform_indices = @transform_1, window_bounds = array<i64: 256, 128>}, {transform_indices = @transform_2, window_bounds = array<i64: 1, 128>}, {transform_indices = @transform_3, window_bounds = array<i64: 1, 128>}, {transform_indices = @transform_4, window_bounds = array<i64: 32, 128>}]} {
    %c0_i32 = arith.constant 0 : i32
    %0 = arith.cmpi eq, %arg2, %c0_i32 : i32
    %1 = arith.extui %0 : i1 to i32
    %c0_i32_0 = arith.constant 0 : i32
    %2 = arith.cmpi ne, %1, %c0_i32_0 : i32
    scf.if %2 {
      %cst_10 = arith.constant 0.000000e+00 : f32
      %12 = vector.broadcast %cst_10 : f32 to vector<32x128xf32>
      %c0_11 = arith.constant 0 : index
      %c0_12 = arith.constant 0 : index
      %13 = vector.load %arg8[%c0_11, %c0_12] : memref<32x128xf32, #tpu.memory_space<vmem>>, vector<32x128xf32>
      tpu.vector_store %arg8[%c0_11, %c0_12], %12 {strides = array<i32>} : memref<32x128xf32, #tpu.memory_space<vmem>>, vector<32x128xf32>,
    } else {
    }
    %c0 = arith.constant 0 : index
    %c0_1 = arith.constant 0 : index
    %3 = vector.load %arg8[%c0, %c0_1] : memref<32x128xf32, #tpu.memory_space<vmem>>, vector<32x128xf32>
    %c0_2 = arith.constant 0 : index
    %c0_3 = arith.constant 0 : index
    %4 = vector.load %arg3[%c0_2, %c0_3] : memref<32x256xbf16, #tpu.memory_space<vmem>>, vector<32x256xbf16>
    %c0_4 = arith.constant 0 : index
    %c0_5 = arith.constant 0 : index
    %5 = vector.load %arg4[%c0_4, %c0_5] : memref<256x128xbf16, #tpu.memory_space<vmem>>, vector<256x128xbf16>
    %cst = arith.constant dense<0.000000e+00> : vector<32x128xf32>
    %6 = tpu.matmul %4, %5, %cst {dimension_numbers = #tpu.dot_dimension_numbers<[1], [0], [0], [1], [0, 0, 1, 1], [], []>} : vector<32x256xbf16>, vector<256x128xbf16>, vector<32x128xf32> -> vector<32x128xf32>
    %7 = arith.addf %3, %6 : vector<32x128xf32>
    %c0_6 = arith.constant 0 : index
    %c0_7 = arith.constant 0 : index
    %8 = vector.load %arg8[%c0_6, %c0_7] : memref<32x128xf32, #tpu.memory_space<vmem>>, vector<32x128xf32>
    tpu.vector_store %arg8[%c0_6, %c0_7], %7 {strides = array<i32>} : memref<32x128xf32, #tpu.memory_space<vmem>>, vector<32x128xf32>,
    %c0_i32_8 = arith.constant 0 : i32
    %9 = arith.cmpi eq, %arg2, %c0_i32_8 : i32
    %10 = arith.extui %9 : i1 to i32
    %c0_i32_9 = arith.constant 0 : i32
    %11 = arith.cmpi ne, %10, %c0_i32_9 : i32
    scf.if %11 {
      %c0_10 = arith.constant 0 : index
      %c0_11 = arith.constant 0 : index
      %12 = vector.load %arg8[%c0_10, %c0_11] : memref<32x128xf32, #tpu.memory_space<vmem>>, vector<32x128xf32>
      %c0_12 = arith.constant 0 : index
      %c0_13 = arith.constant 0 : index
      %13 = vector.load %arg5[%c0_12, %c0_13] : memref<1x128xf32, #tpu.memory_space<vmem>>, vector<1x128xf32>
      %14 = vector.broadcast %13 : vector<1x128xf32> to vector<32x128xf32>
      %15 = arith.mulf %12, %14 : vector<32x128xf32>
      %c0_14 = arith.constant 0 : index
      %c0_15 = arith.constant 0 : index
      %16 = vector.load %arg6[%c0_14, %c0_15] : memref<1x128xf32, #tpu.memory_space<vmem>>, vector<1x128xf32>
      %17 = vector.broadcast %16 : vector<1x128xf32> to vector<32x128xf32>
      %18 = arith.addf %15, %17 : vector<32x128xf32>
      %cst_16 = arith.constant 0.000000e+00 : f32
      %19 = vector.broadcast %cst_16 : f32 to vector<32x128xf32>
      %20 = arith.maximumf %18, %19 : vector<32x128xf32>
      %21 = arith.truncf %20 : vector<32x128xf32> to vector<32x128xbf16>
      %c0_17 = arith.constant 0 : index
      %c0_18 = arith.constant 0 : index
      %22 = vector.load %arg7[%c0_17, %c0_18] : memref<32x128xbf16, #tpu.memory_space<vmem>>, vector<32x128xbf16>
      tpu.vector_store %arg7[%c0_17, %c0_18], %21 {strides = array<i32>} : memref<32x128xbf16, #tpu.memory_space<vmem>>, vector<32x128xbf16>,
    } else {
    }
    return
  }
  func.func @transform_0(%arg0: i32, %arg1: i32, %arg2: i32) -> (i32, i32) {
    %c0_i32 = arith.constant 0 : i32
    return %arg0, %arg2 : i32, i32
  }
  func.func @transform_1(%arg0: i32, %arg1: i32, %arg2: i32) -> (i32, i32) {
    %c0_i32 = arith.constant 0 : i32
    return %arg2, %arg1 : i32, i32
  }
  func.func @transform_2(%arg0: i32, %arg1: i32, %arg2: i32) -> (i32, i32) {
    %c0_i32 = arith.constant 0 : i32
    %c0_i32_0 = arith.constant 0 : i32
    return %c0_i32, %arg1 : i32, i32
  }
  func.func @transform_3(%arg0: i32, %arg1: i32, %arg2: i32) -> (i32, i32) {
    %c0_i32 = arith.constant 0 : i32
    %c0_i32_0 = arith.constant 0 : i32
    return %c0_i32, %arg1 : i32, i32
  }
  func.func @transform_4(%arg0: i32, %arg1: i32, %arg2: i32) -> (i32, i32) {
    %c0_i32 = arith.constant 0 : i32
    return %arg0, %arg1 : i32, i32
  }
}

module attributes {stable_mosaic.version = 11 : i64} {
  func.func @_gemm_epilogue_kernel(%arg0: i32, %arg1: i32, %arg2: i32, %arg3: memref<8x384xbf16, #tpu.memory_space<vmem>>, %arg4: memref<384x128xbf16, #tpu.memory_space<vmem>>, %arg5: memref<1x128xf32, #tpu.memory_space<vmem>>, %arg6: memref<1x128xf32, #tpu.memory_space<vmem>>, %arg7: memref<8x128xbf16, #tpu.memory_space<vmem>>, %arg8: memref<8x128xf32, #tpu.memory_space<vmem>>) attributes {dimension_semantics = [#tpu.dimension_semantics<parallel>, #tpu.dimension_semantics<parallel>, #tpu.dimension_semantics<arbitrary>], iteration_bounds = array<i64: 1, 1, 3>, scalar_prefetch = 0 : i64, scratch_operands = 1 : i64, tpu.core_type = #tpu.core_type<tc>, window_params = [{transform_indices = @transform_0, window_bounds = array<i64: 8, 384>}, {transform_indices = @transform_1, window_bounds = array<i64: 384, 128>}, {transform_indices = @transform_2, window_bounds = array<i64: 1, 128>}, {transform_indices = @transform_3, window_bounds = array<i64: 1, 128>}, {transform_indices = @transform_4, window_bounds = array<i64: 8, 128>}]} {
    %c0_i32 = arith.constant 0 : i32
    %0 = arith.cmpi eq, %arg2, %c0_i32 : i32
    %1 = arith.extui %0 : i1 to i32
    %c0_i32_0 = arith.constant 0 : i32
    %2 = arith.cmpi ne, %1, %c0_i32_0 : i32
    scf.if %2 {
      %cst_9 = arith.constant 0.000000e+00 : f32
      %12 = vector.broadcast %cst_9 : f32 to vector<8x128xf32>
      %c0_10 = arith.constant 0 : index
      %c0_11 = arith.constant 0 : index
      %13 = vector.load %arg8[%c0_10, %c0_11] : memref<8x128xf32, #tpu.memory_space<vmem>>, vector<8x128xf32>
      tpu.vector_store %arg8[%c0_10, %c0_11], %12 {strides = array<i32>} : memref<8x128xf32, #tpu.memory_space<vmem>>, vector<8x128xf32>,
    } else {
    }
    %c0 = arith.constant 0 : index
    %c0_1 = arith.constant 0 : index
    %3 = vector.load %arg8[%c0, %c0_1] : memref<8x128xf32, #tpu.memory_space<vmem>>, vector<8x128xf32>
    %c0_2 = arith.constant 0 : index
    %c0_3 = arith.constant 0 : index
    %4 = vector.load %arg3[%c0_2, %c0_3] : memref<8x384xbf16, #tpu.memory_space<vmem>>, vector<8x384xbf16>
    %c0_4 = arith.constant 0 : index
    %c0_5 = arith.constant 0 : index
    %5 = vector.load %arg4[%c0_4, %c0_5] : memref<384x128xbf16, #tpu.memory_space<vmem>>, vector<384x128xbf16>
    %cst = arith.constant dense<0.000000e+00> : vector<8x128xf32>
    %6 = tpu.matmul %4, %5, %cst {dimension_numbers = #tpu.dot_dimension_numbers<[1], [0], [0], [1], [0, 0, 1, 1], [], []>} : vector<8x384xbf16>, vector<384x128xbf16>, vector<8x128xf32> -> vector<8x128xf32>
    %7 = arith.addf %3, %6 : vector<8x128xf32>
    %c0_6 = arith.constant 0 : index
    %c0_7 = arith.constant 0 : index
    %8 = vector.load %arg8[%c0_6, %c0_7] : memref<8x128xf32, #tpu.memory_space<vmem>>, vector<8x128xf32>
    tpu.vector_store %arg8[%c0_6, %c0_7], %7 {strides = array<i32>} : memref<8x128xf32, #tpu.memory_space<vmem>>, vector<8x128xf32>,
    %c2_i32 = arith.constant 2 : i32
    %9 = arith.cmpi eq, %arg2, %c2_i32 : i32
    %10 = arith.extui %9 : i1 to i32
    %c0_i32_8 = arith.constant 0 : i32
    %11 = arith.cmpi ne, %10, %c0_i32_8 : i32
    scf.if %11 {
      %c0_9 = arith.constant 0 : index
      %c0_10 = arith.constant 0 : index
      %12 = vector.load %arg8[%c0_9, %c0_10] : memref<8x128xf32, #tpu.memory_space<vmem>>, vector<8x128xf32>
      %c0_11 = arith.constant 0 : index
      %c0_12 = arith.constant 0 : index
      %13 = vector.load %arg5[%c0_11, %c0_12] : memref<1x128xf32, #tpu.memory_space<vmem>>, vector<1x128xf32>
      %14 = vector.broadcast %13 : vector<1x128xf32> to vector<8x128xf32>
      %15 = arith.mulf %12, %14 : vector<8x128xf32>
      %c0_13 = arith.constant 0 : index
      %c0_14 = arith.constant 0 : index
      %16 = vector.load %arg6[%c0_13, %c0_14] : memref<1x128xf32, #tpu.memory_space<vmem>>, vector<1x128xf32>
      %17 = vector.broadcast %16 : vector<1x128xf32> to vector<8x128xf32>
      %18 = arith.addf %15, %17 : vector<8x128xf32>
      %cst_15 = arith.constant 0.000000e+00 : f32
      %19 = vector.broadcast %cst_15 : f32 to vector<8x128xf32>
      %20 = arith.maximumf %18, %19 : vector<8x128xf32>
      %21 = arith.truncf %20 : vector<8x128xf32> to vector<8x128xbf16>
      %c0_16 = arith.constant 0 : index
      %c0_17 = arith.constant 0 : index
      %22 = vector.load %arg7[%c0_16, %c0_17] : memref<8x128xbf16, #tpu.memory_space<vmem>>, vector<8x128xbf16>
      tpu.vector_store %arg7[%c0_16, %c0_17], %21 {strides = array<i32>} : memref<8x128xbf16, #tpu.memory_space<vmem>>, vector<8x128xbf16>,
    } else {
    }
    return
  }
  func.func @transform_0(%arg0: i32, %arg1: i32, %arg2: i32) -> (i32, i32) {
    %c0_i32 = arith.constant 0 : i32
    return %arg0, %arg2 : i32, i32
  }
  func.func @transform_1(%arg0: i32, %arg1: i32, %arg2: i32) -> (i32, i32) {
    %c0_i32 = arith.constant 0 : i32
    return %arg2, %arg1 : i32, i32
  }
  func.func @transform_2(%arg0: i32, %arg1: i32, %arg2: i32) -> (i32, i32) {
    %c0_i32 = arith.constant 0 : i32
    %c0_i32_0 = arith.constant 0 : i32
    return %c0_i32, %arg1 : i32, i32
  }
  func.func @transform_3(%arg0: i32, %arg1: i32, %arg2: i32) -> (i32, i32) {
    %c0_i32 = arith.constant 0 : i32
    %c0_i32_0 = arith.constant 0 : i32
    return %c0_i32, %arg1 : i32, i32
  }
  func.func @transform_4(%arg0: i32, %arg1: i32, %arg2: i32) -> (i32, i32) {
    %c0_i32 = arith.constant 0 : i32
    return %arg0, %arg1 : i32, i32
  }
}

module attributes {stable_mosaic.version = 11 : i64} {
  func.func @_gemm_epilogue_kernel(%arg0: i32, %arg1: i32, %arg2: i32, %arg3: memref<8x128xbf16, #tpu.memory_space<vmem>>, %arg4: memref<128x512xbf16, #tpu.memory_space<vmem>>, %arg5: memref<1x512xf32, #tpu.memory_space<vmem>>, %arg6: memref<1x512xf32, #tpu.memory_space<vmem>>, %arg7: memref<8x512xbf16, #tpu.memory_space<vmem>>, %arg8: memref<8x512xbf16, #tpu.memory_space<vmem>>, %arg9: memref<8x512xf32, #tpu.memory_space<vmem>>) attributes {dimension_semantics = [#tpu.dimension_semantics<parallel>, #tpu.dimension_semantics<parallel>, #tpu.dimension_semantics<arbitrary>], iteration_bounds = array<i64: 1, 1, 1>, scalar_prefetch = 0 : i64, scratch_operands = 1 : i64, tpu.core_type = #tpu.core_type<tc>, window_params = [{transform_indices = @transform_0, window_bounds = array<i64: 8, 128>}, {transform_indices = @transform_1, window_bounds = array<i64: 128, 512>}, {transform_indices = @transform_2, window_bounds = array<i64: 1, 512>}, {transform_indices = @transform_3, window_bounds = array<i64: 1, 512>}, {transform_indices = @transform_4, window_bounds = array<i64: 8, 512>}, {transform_indices = @transform_5, window_bounds = array<i64: 8, 512>}]} {
    %c0_i32 = arith.constant 0 : i32
    %0 = arith.cmpi eq, %arg2, %c0_i32 : i32
    %1 = arith.extui %0 : i1 to i32
    %c0_i32_0 = arith.constant 0 : i32
    %2 = arith.cmpi ne, %1, %c0_i32_0 : i32
    scf.if %2 {
      %cst_10 = arith.constant 0.000000e+00 : f32
      %12 = vector.broadcast %cst_10 : f32 to vector<8x512xf32>
      %c0_11 = arith.constant 0 : index
      %c0_12 = arith.constant 0 : index
      %13 = vector.load %arg9[%c0_11, %c0_12] : memref<8x512xf32, #tpu.memory_space<vmem>>, vector<8x512xf32>
      tpu.vector_store %arg9[%c0_11, %c0_12], %12 {strides = array<i32>} : memref<8x512xf32, #tpu.memory_space<vmem>>, vector<8x512xf32>,
    } else {
    }
    %c0 = arith.constant 0 : index
    %c0_1 = arith.constant 0 : index
    %3 = vector.load %arg9[%c0, %c0_1] : memref<8x512xf32, #tpu.memory_space<vmem>>, vector<8x512xf32>
    %c0_2 = arith.constant 0 : index
    %c0_3 = arith.constant 0 : index
    %4 = vector.load %arg3[%c0_2, %c0_3] : memref<8x128xbf16, #tpu.memory_space<vmem>>, vector<8x128xbf16>
    %c0_4 = arith.constant 0 : index
    %c0_5 = arith.constant 0 : index
    %5 = vector.load %arg4[%c0_4, %c0_5] : memref<128x512xbf16, #tpu.memory_space<vmem>>, vector<128x512xbf16>
    %cst = arith.constant dense<0.000000e+00> : vector<8x512xf32>
    %6 = tpu.matmul %4, %5, %cst {dimension_numbers = #tpu.dot_dimension_numbers<[1], [0], [0], [1], [0, 0, 1, 1], [], []>} : vector<8x128xbf16>, vector<128x512xbf16>, vector<8x512xf32> -> vector<8x512xf32>
    %7 = arith.addf %3, %6 : vector<8x512xf32>
    %c0_6 = arith.constant 0 : index
    %c0_7 = arith.constant 0 : index
    %8 = vector.load %arg9[%c0_6, %c0_7] : memref<8x512xf32, #tpu.memory_space<vmem>>, vector<8x512xf32>
    tpu.vector_store %arg9[%c0_6, %c0_7], %7 {strides = array<i32>} : memref<8x512xf32, #tpu.memory_space<vmem>>, vector<8x512xf32>,
    %c0_i32_8 = arith.constant 0 : i32
    %9 = arith.cmpi eq, %arg2, %c0_i32_8 : i32
    %10 = arith.extui %9 : i1 to i32
    %c0_i32_9 = arith.constant 0 : i32
    %11 = arith.cmpi ne, %10, %c0_i32_9 : i32
    scf.if %11 {
      %c0_10 = arith.constant 0 : index
      %c0_11 = arith.constant 0 : index
      %12 = vector.load %arg9[%c0_10, %c0_11] : memref<8x512xf32, #tpu.memory_space<vmem>>, vector<8x512xf32>
      %c0_12 = arith.constant 0 : index
      %c0_13 = arith.constant 0 : index
      %13 = vector.load %arg5[%c0_12, %c0_13] : memref<1x512xf32, #tpu.memory_space<vmem>>, vector<1x512xf32>
      %14 = vector.broadcast %13 : vector<1x512xf32> to vector<8x512xf32>
      %15 = arith.mulf %12, %14 : vector<8x512xf32>
      %c0_14 = arith.constant 0 : index
      %c0_15 = arith.constant 0 : index
      %16 = vector.load %arg6[%c0_14, %c0_15] : memref<1x512xf32, #tpu.memory_space<vmem>>, vector<1x512xf32>
      %17 = vector.broadcast %16 : vector<1x512xf32> to vector<8x512xf32>
      %18 = arith.addf %15, %17 : vector<8x512xf32>
      %c0_16 = arith.constant 0 : index
      %c0_17 = arith.constant 0 : index
      %19 = vector.load %arg7[%c0_16, %c0_17] : memref<8x512xbf16, #tpu.memory_space<vmem>>, vector<8x512xbf16>
      %20 = arith.extf %19 : vector<8x512xbf16> to vector<8x512xf32>
      %21 = arith.addf %18, %20 : vector<8x512xf32>
      %cst_18 = arith.constant 0.000000e+00 : f32
      %22 = vector.broadcast %cst_18 : f32 to vector<8x512xf32>
      %23 = arith.maximumf %21, %22 : vector<8x512xf32>
      %24 = arith.truncf %23 : vector<8x512xf32> to vector<8x512xbf16>
      %c0_19 = arith.constant 0 : index
      %c0_20 = arith.constant 0 : index
      %25 = vector.load %arg8[%c0_19, %c0_20] : memref<8x512xbf16, #tpu.memory_space<vmem>>, vector<8x512xbf16>
      tpu.vector_store %arg8[%c0_19, %c0_20], %24 {strides = array<i32>} : memref<8x512xbf16, #tpu.memory_space<vmem>>, vector<8x512xbf16>,
    } else {
    }
    return
  }
  func.func @transform_0(%arg0: i32, %arg1: i32, %arg2: i32) -> (i32, i32) {
    %c0_i32 = arith.constant 0 : i32
    return %arg0, %arg2 : i32, i32
  }
  func.func @transform_1(%arg0: i32, %arg1: i32, %arg2: i32) -> (i32, i32) {
    %c0_i32 = arith.constant 0 : i32
    return %arg2, %arg1 : i32, i32
  }
  func.func @transform_2(%arg0: i32, %arg1: i32, %arg2: i32) -> (i32, i32) {
    %c0_i32 = arith.constant 0 : i32
    %c0_i32_0 = arith.constant 0 : i32
    return %c0_i32, %arg1 : i32, i32
  }
  func.func @transform_3(%arg0: i32, %arg1: i32, %arg2: i32) -> (i32, i32) {
    %c0_i32 = arith.constant 0 : i32
    %c0_i32_0 = arith.constant 0 : i32
    return %c0_i32, %arg1 : i32, i32
  }
  func.func @transform_4(%arg0: i32, %arg1: i32, %arg2: i32) -> (i32, i32) {
    %c0_i32 = arith.constant 0 : i32
    return %arg0, %arg1 : i32, i32
  }
  func.func @transform_5(%arg0: i32, %arg1: i32, %arg2: i32) -> (i32, i32) {
    %c0_i32 = arith.constant 0 : i32
    return %arg0, %arg1 : i32, i32
  }
}

module attributes {stable_mosaic.version = 11 : i64} {
  func.func @_gap_kernel(%arg0: i32, %arg1: i32, %arg2: memref<2x8x512xbf16, #tpu.memory_space<vmem>>, %arg3: memref<2x512xf32, #tpu.memory_space<vmem>>) attributes {dimension_semantics = [#tpu.dimension_semantics<parallel>, #tpu.dimension_semantics<arbitrary>], iteration_bounds = array<i64: 1, 1>, scalar_prefetch = 0 : i64, scratch_operands = 0 : i64, tpu.core_type = #tpu.core_type<tc>, window_params = [{transform_indices = @transform_0, window_bounds = array<i64: 2, 8, 512>}, {transform_indices = @transform_1, window_bounds = array<i64: 2, 512>}]} {
    %c0_i32 = arith.constant 0 : i32
    %0 = arith.cmpi eq, %arg1, %c0_i32 : i32
    %1 = arith.extui %0 : i1 to i32
    %c0_i32_0 = arith.constant 0 : i32
    %2 = arith.cmpi ne, %1, %c0_i32_0 : i32
    scf.if %2 {
      %cst_9 = arith.constant 0.000000e+00 : f32
      %12 = vector.broadcast %cst_9 : f32 to vector<2x512xf32>
      %c0_10 = arith.constant 0 : index
      %c0_11 = arith.constant 0 : index
      %13 = vector.load %arg3[%c0_10, %c0_11] : memref<2x512xf32, #tpu.memory_space<vmem>>, vector<2x512xf32>
      tpu.vector_store %arg3[%c0_10, %c0_11], %12 {strides = array<i32>} : memref<2x512xf32, #tpu.memory_space<vmem>>, vector<2x512xf32>,
    } else {
    }
    %c0 = arith.constant 0 : index
    %c0_1 = arith.constant 0 : index
    %3 = vector.load %arg3[%c0, %c0_1] : memref<2x512xf32, #tpu.memory_space<vmem>>, vector<2x512xf32>
    %c0_2 = arith.constant 0 : index
    %c0_3 = arith.constant 0 : index
    %c0_4 = arith.constant 0 : index
    %4 = vector.load %arg2[%c0_2, %c0_3, %c0_4] : memref<2x8x512xbf16, #tpu.memory_space<vmem>>, vector<2x8x512xbf16>
    %5 = arith.extf %4 : vector<2x8x512xbf16> to vector<2x8x512xf32>
    %cst = arith.constant dense<0.000000e+00> : vector<2x512xf32>
    %6 = vector.multi_reduction <add>, %5, %cst [1] : vector<2x8x512xf32> to vector<2x512xf32>
    %7 = arith.addf %3, %6 : vector<2x512xf32>
    %c0_5 = arith.constant 0 : index
    %c0_6 = arith.constant 0 : index
    %8 = vector.load %arg3[%c0_5, %c0_6] : memref<2x512xf32, #tpu.memory_space<vmem>>, vector<2x512xf32>
    tpu.vector_store %arg3[%c0_5, %c0_6], %7 {strides = array<i32>} : memref<2x512xf32, #tpu.memory_space<vmem>>, vector<2x512xf32>,
    %c0_i32_7 = arith.constant 0 : i32
    %9 = arith.cmpi eq, %arg1, %c0_i32_7 : i32
    %10 = arith.extui %9 : i1 to i32
    %c0_i32_8 = arith.constant 0 : i32
    %11 = arith.cmpi ne, %10, %c0_i32_8 : i32
    scf.if %11 {
      %c0_9 = arith.constant 0 : index
      %c0_10 = arith.constant 0 : index
      %12 = vector.load %arg3[%c0_9, %c0_10] : memref<2x512xf32, #tpu.memory_space<vmem>>, vector<2x512xf32>
      %cst_11 = arith.constant 2.500000e-01 : f32
      %13 = vector.broadcast %cst_11 : f32 to vector<2x512xf32>
      %14 = arith.mulf %12, %13 : vector<2x512xf32>
      %c0_12 = arith.constant 0 : index
      %c0_13 = arith.constant 0 : index
      %15 = vector.load %arg3[%c0_12, %c0_13] : memref<2x512xf32, #tpu.memory_space<vmem>>, vector<2x512xf32>
      tpu.vector_store %arg3[%c0_12, %c0_13], %14 {strides = array<i32>} : memref<2x512xf32, #tpu.memory_space<vmem>>, vector<2x512xf32>,
    } else {
    }
    return
  }
  func.func @transform_0(%arg0: i32, %arg1: i32) -> (i32, i32, i32) {
    %c0_i32 = arith.constant 0 : i32
    %c0_i32_0 = arith.constant 0 : i32
    return %c0_i32, %arg1, %arg0 : i32, i32, i32
  }
  func.func @transform_1(%arg0: i32, %arg1: i32) -> (i32, i32) {
    %c0_i32 = arith.constant 0 : i32
    %c0_i32_0 = arith.constant 0 : i32
    return %c0_i32, %arg0 : i32, i32
  }
}

module attributes {stable_mosaic.version = 11 : i64} {
  func.func @_gemm_epilogue_kernel(%arg0: i32, %arg1: i32, %arg2: i32, %arg3: memref<8x512xbf16, #tpu.memory_space<vmem>>, %arg4: memref<512x128xbf16, #tpu.memory_space<vmem>>, %arg5: memref<1x128xf32, #tpu.memory_space<vmem>>, %arg6: memref<1x128xf32, #tpu.memory_space<vmem>>, %arg7: memref<8x128xf32, #tpu.memory_space<vmem>>, %arg8: memref<8x128xf32, #tpu.memory_space<vmem>>) attributes {dimension_semantics = [#tpu.dimension_semantics<parallel>, #tpu.dimension_semantics<parallel>, #tpu.dimension_semantics<arbitrary>], iteration_bounds = array<i64: 1, 1, 1>, scalar_prefetch = 0 : i64, scratch_operands = 1 : i64, tpu.core_type = #tpu.core_type<tc>, window_params = [{transform_indices = @transform_0, window_bounds = array<i64: 8, 512>}, {transform_indices = @transform_1, window_bounds = array<i64: 512, 128>}, {transform_indices = @transform_2, window_bounds = array<i64: 1, 128>}, {transform_indices = @transform_3, window_bounds = array<i64: 1, 128>}, {transform_indices = @transform_4, window_bounds = array<i64: 8, 128>}]} {
    %c0_i32 = arith.constant 0 : i32
    %0 = arith.cmpi eq, %arg2, %c0_i32 : i32
    %1 = arith.extui %0 : i1 to i32
    %c0_i32_0 = arith.constant 0 : i32
    %2 = arith.cmpi ne, %1, %c0_i32_0 : i32
    scf.if %2 {
      %cst_10 = arith.constant 0.000000e+00 : f32
      %12 = vector.broadcast %cst_10 : f32 to vector<8x128xf32>
      %c0_11 = arith.constant 0 : index
      %c0_12 = arith.constant 0 : index
      %13 = vector.load %arg8[%c0_11, %c0_12] : memref<8x128xf32, #tpu.memory_space<vmem>>, vector<8x128xf32>
      tpu.vector_store %arg8[%c0_11, %c0_12], %12 {strides = array<i32>} : memref<8x128xf32, #tpu.memory_space<vmem>>, vector<8x128xf32>,
    } else {
    }
    %c0 = arith.constant 0 : index
    %c0_1 = arith.constant 0 : index
    %3 = vector.load %arg8[%c0, %c0_1] : memref<8x128xf32, #tpu.memory_space<vmem>>, vector<8x128xf32>
    %c0_2 = arith.constant 0 : index
    %c0_3 = arith.constant 0 : index
    %4 = vector.load %arg3[%c0_2, %c0_3] : memref<8x512xbf16, #tpu.memory_space<vmem>>, vector<8x512xbf16>
    %c0_4 = arith.constant 0 : index
    %c0_5 = arith.constant 0 : index
    %5 = vector.load %arg4[%c0_4, %c0_5] : memref<512x128xbf16, #tpu.memory_space<vmem>>, vector<512x128xbf16>
    %cst = arith.constant dense<0.000000e+00> : vector<8x128xf32>
    %6 = tpu.matmul %4, %5, %cst {dimension_numbers = #tpu.dot_dimension_numbers<[1], [0], [0], [1], [0, 0, 1, 1], [], []>} : vector<8x512xbf16>, vector<512x128xbf16>, vector<8x128xf32> -> vector<8x128xf32>
    %7 = arith.addf %3, %6 : vector<8x128xf32>
    %c0_6 = arith.constant 0 : index
    %c0_7 = arith.constant 0 : index
    %8 = vector.load %arg8[%c0_6, %c0_7] : memref<8x128xf32, #tpu.memory_space<vmem>>, vector<8x128xf32>
    tpu.vector_store %arg8[%c0_6, %c0_7], %7 {strides = array<i32>} : memref<8x128xf32, #tpu.memory_space<vmem>>, vector<8x128xf32>,
    %c0_i32_8 = arith.constant 0 : i32
    %9 = arith.cmpi eq, %arg2, %c0_i32_8 : i32
    %10 = arith.extui %9 : i1 to i32
    %c0_i32_9 = arith.constant 0 : i32
    %11 = arith.cmpi ne, %10, %c0_i32_9 : i32
    scf.if %11 {
      %c0_10 = arith.constant 0 : index
      %c0_11 = arith.constant 0 : index
      %12 = vector.load %arg8[%c0_10, %c0_11] : memref<8x128xf32, #tpu.memory_space<vmem>>, vector<8x128xf32>
      %c0_12 = arith.constant 0 : index
      %c0_13 = arith.constant 0 : index
      %13 = vector.load %arg5[%c0_12, %c0_13] : memref<1x128xf32, #tpu.memory_space<vmem>>, vector<1x128xf32>
      %14 = vector.broadcast %13 : vector<1x128xf32> to vector<8x128xf32>
      %15 = arith.mulf %12, %14 : vector<8x128xf32>
      %c0_14 = arith.constant 0 : index
      %c0_15 = arith.constant 0 : index
      %16 = vector.load %arg6[%c0_14, %c0_15] : memref<1x128xf32, #tpu.memory_space<vmem>>, vector<1x128xf32>
      %17 = vector.broadcast %16 : vector<1x128xf32> to vector<8x128xf32>
      %18 = arith.addf %15, %17 : vector<8x128xf32>
      %c0_16 = arith.constant 0 : index
      %c0_17 = arith.constant 0 : index
      %19 = vector.load %arg7[%c0_16, %c0_17] : memref<8x128xf32, #tpu.memory_space<vmem>>, vector<8x128xf32>
      tpu.vector_store %arg7[%c0_16, %c0_17], %18 {strides = array<i32>} : memref<8x128xf32, #tpu.memory_space<vmem>>, vector<8x128xf32>,
    } else {
    }
    return
  }
  func.func @transform_0(%arg0: i32, %arg1: i32, %arg2: i32) -> (i32, i32) {
    %c0_i32 = arith.constant 0 : i32
    return %arg0, %arg2 : i32, i32
  }
  func.func @transform_1(%arg0: i32, %arg1: i32, %arg2: i32) -> (i32, i32) {
    %c0_i32 = arith.constant 0 : i32
    return %arg2, %arg1 : i32, i32
  }
  func.func @transform_2(%arg0: i32, %arg1: i32, %arg2: i32) -> (i32, i32) {
    %c0_i32 = arith.constant 0 : i32
    %c0_i32_0 = arith.constant 0 : i32
    return %c0_i32, %arg1 : i32, i32
  }
  func.func @transform_3(%arg0: i32, %arg1: i32, %arg2: i32) -> (i32, i32) {
    %c0_i32 = arith.constant 0 : i32
    %c0_i32_0 = arith.constant 0 : i32
    return %c0_i32, %arg1 : i32, i32
  }
  func.func @transform_4(%arg0: i32, %arg1: i32, %arg2: i32) -> (i32, i32) {
    %c0_i32 = arith.constant 0 : i32
    return %arg0, %arg1 : i32, i32
  }
}

</mosaic_0001>

<bundles_post_ra>
// kernel: _lambda_.19
= control target key start
LH: loop header
LB: loop body
LE: loop exit
PB: predicated region body
PF: predicated region fallthrough
CT: control target
= control target key end

     0   :  { %s2725_s15 = smov 0   ;;  %s2727_s16 = smov 0   ;;  %s3080_s0 = inlined_call_operand.vmem [shape: bf16[2048,256], index: 0, kind: input, shape index: {}]   ;;  %s3081_s1 = inlined_call_operand.vmem [shape: bf16[256,128], index: 1, kind: input, shape index: {}]   ;;  %s3082_s2 = inlined_call_operand.vmem [shape: f32[1,128], index: 2, kind: input, shape index: {}]   ;;  %s3083_s3 = inlined_call_operand.vmem [shape: f32[1,128], index: 3, kind: input, shape index: {}]   ;;  %s3084_s4 = inlined_call_operand.vmem [shape: bf16[2048,128], index: 4, kind: output, shape index: {}]  }
   0x1   :  { %s2729_s17 = smov 0  }
   0x2 LB: > { %s33_s18 = sadd.s32 1, %s2693_s16  ;;  %p2096_p0 = scmp.ge.s32.totalorder %s2697_s17, 1  ;;  %s2697_s17 = sphi %s2729_s17, %s14_s17   ;;  %s2693_s16 = sphi %s2727_s16, %s3086_s16   ;;  %s2689_s15 = sphi %s2725_s15, %s3085_s15  }
   0x3   : > { %p35_p1 = scmp.ge.s32.totalorder %s33_s18, 4  ;;  %p224_p2 = scmp.lt.s32.totalorder %s2697_s17, 5 }
   0x5   : > { %s3088_s18 = smov (%p35_p1, %s33_s18), 0  ;;  %p225_p3 = pnand %p2096_p0, %p224_p2 }
   0x6   : > { %v2563_v0 = vld [vmem:[%s3081_s1] sm:$0xff] (!%p225_p3)   ;;  %v2699_v1 = vmov (!%p225_p3), 0   ;;  %s2097_s21 = sshll.u32 (!%p225_p3), %s2689_s15, 6  ;;  %v2564_v2 = vld [vmem:[%s3081_s1 + $0x8] sm:$0xff] (!%p225_p3)   ;;  %v2565_v3 = vld [vmem:[%s3081_s1 + $0x10] sm:$0xff] (!%p225_p3)  }
   0x7   : > { %228 = sbr.rel (%p225_p3) target bundleno = 415 (0x19f), region = 36  ;;  %953 = vmatprep.subr.bf16.mxu0 (!%p225_p3), %v2699_v1  ;;  %2506 = vmatprep.subr.bf16.mxu1 (!%p225_p3), %v2699_v1  ;;  %p274_p4 = scmp.lt.s32.totalorder (!%p225_p3), %s2097_s21, 255  ;;  %v2566_v4 = vld [vmem:[%s3081_s1 + $0x18] sm:$0xff] (!%p225_p3)   ;;  %v2567_v5 = vld [vmem:[%s3081_s1 + $0x20] sm:$0xff] (!%p225_p3)   ;;  %v2568_v7 = vld [vmem:[%s3081_s1 + $0x28] sm:$0xff] (!%p225_p3)  }
   0x8   : > { %954 = vmatpush1.bf16.msra.mxu0 (!%p225_p3), %v2563_v0  ;;  %2522 = vmatpush1.bf16.msra.mxu1 (!%p225_p3), %v2563_v0  ;;  %v2569_v9 = vld [vmem:[%s3081_s1 + $0x30] sm:$0xff] (!%p225_p3)   ;;  %v2570_v10 = vld [vmem:[%s3081_s1 + $0x38] sm:$0xff] (!%p225_p3)   ;;  %v2571_v11 = vld [vmem:[%s3081_s1 + $0x40] sm:$0xff] (!%p225_p3)  }
   0x9   : > { %955 = vmatprep.subr.bf16.mxu0 (!%p225_p3), %v2699_v1  ;;  %2507 = vmatprep.subr.bf16.mxu1 (!%p225_p3), %v2699_v1  ;;  %v2572_v12 = vld [vmem:[%s3081_s1 + $0x48] sm:$0xff] (!%p225_p3)   ;;  %v2573_v13 = vld [vmem:[%s3081_s1 + $0x50] sm:$0xff] (!%p225_p3)   ;;  %v2574_v14 = vld [vmem:[%s3081_s1 + $0x58] sm:$0xff] (!%p225_p3)  }
   0xa   : > { %v2575_v15 = vld [vmem:[%s3081_s1 + $0x60] sm:$0xff] (!%p225_p3)   ;;  %v2576_v16 = vld [vmem:[%s3081_s1 + $0x68] sm:$0xff] (!%p225_p3)   ;;  %v2577_v17 = vld [vmem:[%s3081_s1 + $0x70] sm:$0xff] (!%p225_p3)  }
   0xb   : > { %v2578_v18 = vld [vmem:[%s3081_s1 + $0x78] sm:$0xff] (!%p225_p3)  }
   0xc   : > { %956 = vmatpush1.bf16.msra.mxu0 (!%p225_p3), %v2564_v2  ;;  %2523 = vmatpush1.bf16.msra.mxu1 (!%p225_p3), %v2564_v2 }
   0xd   : > { %957 = vmatprep.subr.bf16.mxu0 (!%p225_p3), %v2699_v1  ;;  %2508 = vmatprep.subr.bf16.mxu1 (!%p225_p3), %v2699_v1 }
   0xe   : > { %s3090_s21 = smov (!%p274_p4, %s2097_s21), 255 }
   0xf   : > { %s2250_s28 = sshll.u32 %s3090_s21, 3 }
  0x10   : > { %958 = vmatpush1.bf16.msra.mxu0 %v2565_v3  ;;  %2524 = vmatpush1.bf16.msra.mxu1 %v2565_v3  ;;  %s2772_s7 = scalar_lea.vmem %s3080_s0, %s2250_s28 }
  0x11   : > { %959 = vmatprep.subr.bf16.mxu0 %v2699_v1  ;;  %2509 = vmatprep.subr.bf16.mxu1 %v2699_v1  ;;  %v2581_v6 = vld [vmem:[%s2772_s7 + $0x4] ss:$8 sps:$4 sm:$0xff]   ;;  %v2579_v19 = vld [vmem:[%s2772_s7] ss:$8 sps:$4 sm:$0xff]   ;;  %v2585_v21 = vld [vmem:[%s2772_s7 + $0x14] ss:$8 sps:$4 sm:$0xff]  }
  0x12   : > { %v2584_v8 = vld [vmem:[%s2772_s7 + $0x104] ss:$8 sps:$4 sm:$0xff]   ;;  %985 = vmatprep.mubr.bf16.mxu0 %v2581_v6  ;;  %v2582_v20 = vld [vmem:[%s2772_s7 + $0x100] ss:$8 sps:$4 sm:$0xff]   ;;  %v2587_v22 = vld [vmem:[%s2772_s7 + $0x114] ss:$8 sps:$4 sm:$0xff]  }
  0x13   : > { %1113 = vmatprep.mubr.bf16.mxu1 %v2584_v8  ;;  %v2589_v23 = vld [vmem:[%s2772_s7 + $0x10] ss:$8 sps:$4 sm:$0xff]   ;;  %v2591_v25 = vld [vmem:[%s2772_s7 + $0x24] ss:$8 sps:$4 sm:$0xff]   ;;  %v2595_v27 = vld [vmem:[%s2772_s7 + $0x20] ss:$8 sps:$4 sm:$0xff]  }
  0x14   : > { %960 = vmatpush1.bf16.msra.mxu0 %v2566_v4  ;;  %2525 = vmatpush1.bf16.msra.mxu1 %v2566_v4  ;;  %v2590_v24 = vld [vmem:[%s2772_s7 + $0x110] ss:$8 sps:$4 sm:$0xff]   ;;  %v2593_v26 = vld [vmem:[%s2772_s7 + $0x124] ss:$8 sps:$4 sm:$0xff]   ;;  %v2596_v28 = vld [vmem:[%s2772_s7 + $0x120] ss:$8 sps:$4 sm:$0xff]  }
  0x15   : > { %961 = vmatprep.subr.bf16.mxu0 %v2699_v1  ;;  %2510 = vmatprep.subr.bf16.mxu1 %v2699_v1  ;;  %v2597_v29 = vld [vmem:[%s2772_s7 + $0x34] ss:$8 sps:$4 sm:$0xff]   ;;  %v2601_v31 = vld [vmem:[%s2772_s7 + $0x30] ss:$8 sps:$4 sm:$0xff]   ;;  %v2603_v33 = vld [vmem:[%s2772_s7 + $0x44] ss:$8 sps:$4 sm:$0xff]  }
  0x16   : > { %v2599_v30 = vld [vmem:[%s2772_s7 + $0x134] ss:$8 sps:$4 sm:$0xff]   ;;  %v2602_v32 = vld [vmem:[%s2772_s7 + $0x130] ss:$8 sps:$4 sm:$0xff]   ;;  %v2605_v34 = vld [vmem:[%s2772_s7 + $0x144] ss:$8 sps:$4 sm:$0xff]  }
  0x17   : > { %v2607_v35 = vld [vmem:[%s2772_s7 + $0x40] ss:$8 sps:$4 sm:$0xff]   ;;  %v2609_v37 = vld [vmem:[%s2772_s7 + $0x54] ss:$8 sps:$4 sm:$0xff]   ;;  %v2613_v39 = vld [vmem:[%s2772_s7 + $0x50] ss:$8 sps:$4 sm:$0xff]  }
  0x18   : > { %962 = vmatpush1.bf16.msra.mxu0 %v2567_v5  ;;  %2526 = vmatpush1.bf16.msra.mxu1 %v2567_v5  ;;  %v2608_v36 = vld [vmem:[%s2772_s7 + $0x140] ss:$8 sps:$4 sm:$0xff]   ;;  %v2611_v38 = vld [vmem:[%s2772_s7 + $0x154] ss:$8 sps:$4 sm:$0xff]   ;;  %v2614_v40 = vld [vmem:[%s2772_s7 + $0x150] ss:$8 sps:$4 sm:$0xff]  }
  0x19   : > { %963 = vmatprep.subr.bf16.mxu0 %v2699_v1  ;;  %2511 = vmatprep.subr.bf16.mxu1 %v2699_v1  ;;  %v2615_v41 = vld [vmem:[%s2772_s7 + $0x64] ss:$8 sps:$4 sm:$0xff]   ;;  %v2619_v43 = vld [vmem:[%s2772_s7 + $0x60] ss:$8 sps:$4 sm:$0xff]   ;;  %v2621_v45 = vld [vmem:[%s2772_s7 + $0x74] ss:$8 sps:$4 sm:$0xff]  }
  0x1a   : > { %v2617_v42 = vld [vmem:[%s2772_s7 + $0x164] ss:$8 sps:$4 sm:$0xff]   ;;  %v2620_v44 = vld [vmem:[%s2772_s7 + $0x160] ss:$8 sps:$4 sm:$0xff]   ;;  %v2623_v46 = vld [vmem:[%s2772_s7 + $0x174] ss:$8 sps:$4 sm:$0xff]  }
  0x1b   : > { %v2625_v47 = vld [vmem:[%s2772_s7 + $0x70] ss:$8 sps:$4 sm:$0xff]   ;;  %v2627_v49 = vld [vmem:[%s2772_s7 + $0x84] ss:$8 sps:$4 sm:$0xff]   ;;  %v2631_v51 = vld [vmem:[%s2772_s7 + $0x80] ss:$8 sps:$4 sm:$0xff]  }
  0x1c   : > { %964 = vmatpush1.bf16.msra.mxu0 %v2568_v7  ;;  %2527 = vmatpush1.bf16.msra.mxu1 %v2568_v7  ;;  %v2626_v48 = vld [vmem:[%s2772_s7 + $0x170] ss:$8 sps:$4 sm:$0xff]   ;;  %v2629_v50 = vld [vmem:[%s2772_s7 + $0x184] ss:$8 sps:$4 sm:$0xff]   ;;  %v2632_v52 = vld [vmem:[%s2772_s7 + $0x180] ss:$8 sps:$4 sm:$0xff]  }
  0x1d   : > { %965 = vmatprep.subr.bf16.mxu0 %v2699_v1  ;;  %2512 = vmatprep.subr.bf16.mxu1 %v2699_v1  ;;  %v2633_v53 = vld [vmem:[%s2772_s7 + $0x94] ss:$8 sps:$4 sm:$0xff]   ;;  %v2637_v55 = vld [vmem:[%s2772_s7 + $0x90] ss:$8 sps:$4 sm:$0xff]   ;;  %v2639_v57 = vld [vmem:[%s2772_s7 + $0xa4] ss:$8 sps:$4 sm:$0xff]  }
  0x1e   : > { %v2635_v54 = vld [vmem:[%s2772_s7 + $0x194] ss:$8 sps:$4 sm:$0xff]   ;;  %v2638_v56 = vld [vmem:[%s2772_s7 + $0x190] ss:$8 sps:$4 sm:$0xff]   ;;  %v2641_v58 = vld [vmem:[%s2772_s7 + $0x1a4] ss:$8 sps:$4 sm:$0xff]  }
  0x1f   : > { %v2643_v59 = vld [vmem:[%s2772_s7 + $0xa0] ss:$8 sps:$4 sm:$0xff]   ;;  %v2645_v61 = vld [vmem:[%s2772_s7 + $0xb4] ss:$8 sps:$4 sm:$0xff]   ;;  %v2649_v63 = vld [vmem:[%s2772_s7 + $0xb0] ss:$8 sps:$4 sm:$0xff]  }
  0x20   : > { %966 = vmatpush1.bf16.msra.mxu0 %v2569_v9  ;;  %2528 = vmatpush1.bf16.msra.mxu1 %v2569_v9  ;;  %v2644_v60 = vld [vmem:[%s2772_s7 + $0x1a0] ss:$8 sps:$4 sm:$0xff]   ;;  %v2647_v62 = vld [vmem:[%s2772_s7 + $0x1b4] ss:$8 sps:$4 sm:$0xff]   ;;  %v2650_v0 = vld [vmem:[%s2772_s7 + $0x1b0] ss:$8 sps:$4 sm:$0xff]  }
  0x21   : > { %967 = vmatprep.subr.bf16.mxu0 %v2699_v1  ;;  %2513 = vmatprep.subr.bf16.mxu1 %v2699_v1  ;;  %v2653_v2 = vld [vmem:[%s2772_s7 + $0x1c4] ss:$8 sps:$4 sm:$0xff]   ;;  %v2655_v3 = vld [vmem:[%s2772_s7 + $0xc0] ss:$8 sps:$4 sm:$0xff]   ;;  %v2657_v5 = vld [vmem:[%s2772_s7 + $0xd4] ss:$8 sps:$4 sm:$0xff]  }
  0x22   : > { %v2656_v4 = vld [vmem:[%s2772_s7 + $0x1c0] ss:$8 sps:$4 sm:$0xff]   ;;  %v2659_v6 = vld [vmem:[%s2772_s7 + $0x1d4] ss:$8 sps:$4 sm:$0xff]   ;;  %v2661_v7 = vld [vmem:[%s2772_s7 + $0xd0] ss:$8 sps:$4 sm:$0xff]  }
  0x23   : > { %v2662_v8 = vld [vmem:[%s2772_s7 + $0x1d0] ss:$8 sps:$4 sm:$0xff]   ;;  %v2663_v9 = vld [vmem:[%s2772_s7 + $0xe4] ss:$8 sps:$4 sm:$0xff]  }
  0x24   : > { %968 = vmatpush1.bf16.msra.mxu0 %v2570_v10  ;;  %2529 = vmatpush1.bf16.msra.mxu1 %v2570_v10  ;;  %v2665_v10 = vld [vmem:[%s2772_s7 + $0x1e4] ss:$8 sps:$4 sm:$0xff]  }
  0x25   : > { %969 = vmatprep.subr.bf16.mxu0 %v2699_v1  ;;  %2514 = vmatprep.subr.bf16.mxu1 %v2699_v1 }
  0x28   : > { %970 = vmatpush1.bf16.msra.mxu0 %v2571_v11  ;;  %2530 = vmatpush1.bf16.msra.mxu1 %v2571_v11  ;;  %v2667_v11 = vld [vmem:[%s2772_s7 + $0xe0] ss:$8 sps:$4 sm:$0xff]  }
  0x29   : > { %971 = vmatprep.subr.bf16.mxu0 %v2699_v1  ;;  %2515 = vmatprep.subr.bf16.mxu1 %v2699_v1 }
  0x2c   : > { %972 = vmatpush1.bf16.msra.mxu0 %v2572_v12  ;;  %2531 = vmatpush1.bf16.msra.mxu1 %v2572_v12  ;;  %v2668_v12 = vld [vmem:[%s2772_s7 + $0x1e0] ss:$8 sps:$4 sm:$0xff]  }
  0x2d   : > { %973 = vmatprep.subr.bf16.mxu0 %v2699_v1  ;;  %2516 = vmatprep.subr.bf16.mxu1 %v2699_v1 }
  0x30   : > { %974 = vmatpush1.bf16.msra.mxu0 %v2573_v13  ;;  %2532 = vmatpush1.bf16.msra.mxu1 %v2573_v13  ;;  %v2669_v13 = vld [vmem:[%s2772_s7 + $0xf4] ss:$8 sps:$4 sm:$0xff]  }
  0x31   : > { %975 = vmatprep.subr.bf16.mxu0 %v2699_v1  ;;  %2517 = vmatprep.subr.bf16.mxu1 %v2699_v1 }
  0x34   : > { %976 = vmatpush1.bf16.msra.mxu0 %v2574_v14  ;;  %2533 = vmatpush1.bf16.msra.mxu1 %v2574_v14  ;;  %v2671_v14 = vld [vmem:[%s2772_s7 + $0x1f4] ss:$8 sps:$4 sm:$0xff]  }
  0x35   : > { %977 = vmatprep.subr.bf16.mxu0 %v2699_v1  ;;  %2518 = vmatprep.subr.bf16.mxu1 %v2699_v1 }
  0x38   : > { %978 = vmatpush1.bf16.msra.mxu0 %v2575_v15  ;;  %2534 = vmatpush1.bf16.msra.mxu1 %v2575_v15  ;;  %v2673_v15 = vld [vmem:[%s2772_s7 + $0xf0] ss:$8 sps:$4 sm:$0xff]  }
  0x39   : > { %979 = vmatprep.subr.bf16.mxu0 %v2699_v1  ;;  %2519 = vmatprep.subr.bf16.mxu1 %v2699_v1 }
  0x3c   : > { %980 = vmatpush1.bf16.msra.mxu0 %v2576_v16  ;;  %2535 = vmatpush1.bf16.msra.mxu1 %v2576_v16  ;;  %v2674_v16 = vld [vmem:[%s2772_s7 + $0x1f0] ss:$8 sps:$4 sm:$0xff]  }
  0x3d   : > { %981 = vmatprep.subr.bf16.mxu0 %v2699_v1  ;;  %2520 = vmatprep.subr.bf16.mxu1 %v2699_v1 }
  0x40   : > { %982 = vmatpush1.bf16.msra.mxu0 %v2577_v17  ;;  %2536 = vmatpush1.bf16.msra.mxu1 %v2577_v17  ;;  %v2898_v17 = vld [vmem:[%s3082_s2] ss:$0 sm:$0xff] }
  0x41   : > { %983 = vmatprep.subr.bf16.mxu0 %v2699_v1  ;;  %2521 = vmatprep.subr.bf16.mxu1 %v2699_v1  ;;  %v2651_v1 = vld [vmem:[%s2772_s7 + $0xc4] ss:$8 sps:$4 sm:$0xff]   ;;  %s2101_s7 = sshll.u32 %s3090_s21, 2 }
  0x42   : > { %s2917_s15 = scalar_lea.vmem %s3084_s4, %s2101_s7 }
  0x44   : > { %984 = vmatpush1.bf16.msra.mxu0 %v2578_v18  ;;  %2537 = vmatpush1.bf16.msra.mxu1 %v2578_v18 }
  0x47   : > { %986 = vmatmul.mubr.bf16.vlgmr.msra.gmra.mrb[0].mxu0 %v2579_v19  ;;  %1114 = vmatmul.mubr.bf16.vlgmr.msra.gmra.mrb[0].mxu1 %v2582_v20  ;;  %v2903_v19 = vld [vmem:[%s3083_s3] ss:$0 sm:$0xff] }
  0x48   : > { %993 = vmatprep.mubr.bf16.mxu0 %v2585_v21  ;;  %1121 = vmatprep.mubr.bf16.mxu1 %v2587_v22 }
  0x4f   : > { %994 = vmatmul.mubr.bf16.gmra.mrb[4].mxu0 %v2589_v23  ;;  %1122 = vmatmul.mubr.bf16.gmra.mrb[4].mxu1 %v2590_v24 }
  0x50   : > { %1001 = vmatprep.mubr.bf16.mxu0 %v2591_v25  ;;  %1129 = vmatprep.mubr.bf16.mxu1 %v2593_v26 }
  0x57   : > { %1002 = vmatmul.mubr.bf16.gmra.mrb[8].mxu0 %v2595_v27  ;;  %1130 = vmatmul.mubr.bf16.gmra.mrb[8].mxu1 %v2596_v28 }
  0x58   : > { %1009 = vmatprep.mubr.bf16.mxu0 %v2597_v29  ;;  %1137 = vmatprep.mubr.bf16.mxu1 %v2599_v30 }
  0x5f   : > { %1010 = vmatmul.mubr.bf16.gmra.mrb[12].mxu0 %v2601_v31  ;;  %1138 = vmatmul.mubr.bf16.gmra.mrb[12].mxu1 %v2602_v32 }
  0x60   : > { %1017 = vmatprep.mubr.bf16.mxu0 %v2603_v33  ;;  %1145 = vmatprep.mubr.bf16.mxu1 %v2605_v34 }
  0x67   : > { %1018 = vmatmul.mubr.bf16.gmra.mrb[16].mxu0 %v2607_v35  ;;  %1146 = vmatmul.mubr.bf16.gmra.mrb[16].mxu1 %v2608_v36 }
  0x68   : > { %1025 = vmatprep.mubr.bf16.mxu0 %v2609_v37  ;;  %1153 = vmatprep.mubr.bf16.mxu1 %v2611_v38 }
  0x6f   : > { %1026 = vmatmul.mubr.bf16.gmra.mrb[20].mxu0 %v2613_v39  ;;  %1154 = vmatmul.mubr.bf16.gmra.mrb[20].mxu1 %v2614_v40 }
  0x70   : > { %1033 = vmatprep.mubr.bf16.mxu0 %v2615_v41  ;;  %1161 = vmatprep.mubr.bf16.mxu1 %v2617_v42 }
  0x77   : > { %1034 = vmatmul.mubr.bf16.gmra.mrb[24].mxu0 %v2619_v43  ;;  %1162 = vmatmul.mubr.bf16.gmra.mrb[24].mxu1 %v2620_v44 }
  0x78   : > { %1041 = vmatprep.mubr.bf16.mxu0 %v2621_v45  ;;  %1169 = vmatprep.mubr.bf16.mxu1 %v2623_v46 }
  0x7f   : > { %1042 = vmatmul.mubr.bf16.gmra.mrb[28].mxu0 %v2625_v47  ;;  %1170 = vmatmul.mubr.bf16.gmra.mrb[28].mxu1 %v2626_v48 }
  0x80   : > { %1049 = vmatprep.mubr.bf16.mxu0 %v2627_v49  ;;  %1177 = vmatprep.mubr.bf16.mxu1 %v2629_v50 }
  0x87   : > { %1050 = vmatmul.mubr.bf16.gmra.mrb[32].mxu0 %v2631_v51  ;;  %1178 = vmatmul.mubr.bf16.gmra.mrb[32].mxu1 %v2632_v52 }
  0x88   : > { %1057 = vmatprep.mubr.bf16.mxu0 %v2633_v53  ;;  %1185 = vmatprep.mubr.bf16.mxu1 %v2635_v54 }
  0x8f   : > { %1058 = vmatmul.mubr.bf16.gmra.mrb[36].mxu0 %v2637_v55  ;;  %1186 = vmatmul.mubr.bf16.gmra.mrb[36].mxu1 %v2638_v56 }
  0x90   : > { %1065 = vmatprep.mubr.bf16.mxu0 %v2639_v57  ;;  %1193 = vmatprep.mubr.bf16.mxu1 %v2641_v58 }
  0x97   : > { %1066 = vmatmul.mubr.bf16.gmra.mrb[40].mxu0 %v2643_v59  ;;  %1194 = vmatmul.mubr.bf16.gmra.mrb[40].mxu1 %v2644_v60 }
  0x98   : > { %1073 = vmatprep.mubr.bf16.mxu0 %v2645_v61  ;;  %1201 = vmatprep.mubr.bf16.mxu1 %v2647_v62 }
  0x9f   : > { %1074 = vmatmul.mubr.bf16.gmra.mrb[44].mxu0 %v2649_v63  ;;  %1202 = vmatmul.mubr.bf16.gmra.mrb[44].mxu1 %v2650_v0 }
  0xa0   : > { %1081 = vmatprep.mubr.bf16.mxu0 %v2651_v1  ;;  %1209 = vmatprep.mubr.bf16.mxu1 %v2653_v2 }
  0xa7   : > { %1082 = vmatmul.mubr.bf16.gmra.mrb[48].mxu0 %v2655_v3  ;;  %1210 = vmatmul.mubr.bf16.gmra.mrb[48].mxu1 %v2656_v4 }
  0xa8   : > { %1089 = vmatprep.mubr.bf16.mxu0 %v2657_v5  ;;  %1217 = vmatprep.mubr.bf16.mxu1 %v2659_v6 }
  0xaf   : > { %1090 = vmatmul.mubr.bf16.gmra.mrb[52].mxu0 %v2661_v7  ;;  %1218 = vmatmul.mubr.bf16.gmra.mrb[52].mxu1 %v2662_v8 }
  0xb0   : > { %1097 = vmatprep.mubr.bf16.mxu0 %v2663_v9  ;;  %1225 = vmatprep.mubr.bf16.mxu1 %v2665_v10 }
  0xb7   : > { %1098 = vmatmul.mubr.bf16.gmra.mrb[56].mxu0 %v2667_v11  ;;  %1226 = vmatmul.mubr.bf16.gmra.mrb[56].mxu1 %v2668_v12 }
  0xb8   : > { %1105 = vmatprep.mubr.bf16.mxu0 %v2669_v13  ;;  %1233 = vmatprep.mubr.bf16.mxu1 %v2671_v14 }
  0xbf   : > { %1106 = vmatmul.mubr.bf16.gmra.mrb[60].mxu0 %v2673_v15  ;;  %1234 = vmatmul.mubr.bf16.gmra.mrb[60].mxu1 %v2674_v16 }
 0x11a   : > { %v987_v18 = vpop.f32.mrb[0].mxu0  ;;  %v1115_v20 = vpop.f32.mrb[0].mxu1 }
 0x11b   : > { %v1444_v21 = vmul.f32 %v2898_v17, %v987_v18  ;;  %v1476_v22 = vmul.f32 %v2898_v17, %v1115_v20  ;;  %v989_v23 = vpop.f32.mrb[1].mxu0  ;;  %v1117_v24 = vpop.f32.mrb[1].mxu1 }
 0x11c   : > { %v990_v25 = vpop.f32.mrb[2].mxu0  ;;  %v1118_v26 = vpop.f32.mrb[2].mxu1 }
 0x11d   : > { %v1515_v27 = vadd.f32 %v2903_v19, %v1444_v21  ;;  %v1547_v28 = vadd.f32 %v2903_v19, %v1476_v22  ;;  %v1445_v29 = vmul.f32 %v2898_v17, %v990_v25  ;;  %v1477_v30 = vmul.f32 %v2898_v17, %v1118_v26  ;;  %v992_v31 = vpop.f32.mrb[3].mxu0  ;;  %v1120_v32 = vpop.f32.mrb[3].mxu1 }
 0x11f   : > { %v1516_v33 = vadd.f32 %v2903_v19, %v1445_v29  ;;  %v1548_v34 = vadd.f32 %v2903_v19, %v1477_v30  ;;  %v1579_v35 = vmax.f32 %v1515_v27, 0.0  ;;  %v1611_v36 = vmax.f32 %v1547_v28, 0.0 }
 0x121   : > { %v1580_v37 = vmax.f32 %v1516_v33, 0.0  ;;  %v1612_v38 = vmax.f32 %v1548_v34, 0.0 }
 0x122   : > { %v995_v39 = vpop.f32.mrb[4].mxu0  ;;  %v1123_v40 = vpop.f32.mrb[4].mxu1 }
 0x123   : > { %v2318_v41 = vpack.c.bf16 %v1580_v37, %v1579_v35  ;;  %v2398_v42 = vpack.c.bf16 %v1612_v38, %v1611_v36  ;;  %v1446_v43 = vmul.f32 %v2898_v17, %v995_v39  ;;  %v1478_v44 = vmul.f32 %v2898_v17, %v1123_v40  ;;  %v997_v45 = vpop.f32.mrb[5].mxu0  ;;  %v1125_v46 = vpop.f32.mrb[5].mxu1 }
 0x124   : > { %v998_v47 = vpop.f32.mrb[6].mxu0  ;;  %v1126_v48 = vpop.f32.mrb[6].mxu1 }
 0x125   : > { %2319 = vst [vmem:[%s2917_s15] sm:$0xff] %v2318_v41   ;;  %2490 = vst [vmem:[%s2917_s15 + $0x80] sm:$0xff] %v2398_v42   ;;  %v1517_v49 = vadd.f32 %v2903_v19, %v1446_v43  ;;  %v1549_v50 = vadd.f32 %v2903_v19, %v1478_v44  ;;  %v1447_v51 = vmul.f32 %v2898_v17, %v998_v47  ;;  %v1000_v53 = vpop.f32.mrb[7].mxu0  ;;  %v1128_v54 = vpop.f32.mrb[7].mxu1 }
 0x126   : > { %v1479_v52 = vmul.f32 %v2898_v17, %v1126_v48 }
 0x127   : > { %v1518_v55 = vadd.f32 %v2903_v19, %v1447_v51  ;;  %v1581_v57 = vmax.f32 %v1517_v49, 0.0  ;;  %v1613_v58 = vmax.f32 %v1549_v50, 0.0 }
 0x128   : > { %v1550_v56 = vadd.f32 %v2903_v19, %v1479_v52 }
 0x129   : > { %v1582_v59 = vmax.f32 %v1518_v55, 0.0 }
 0x12a   : > { %v1614_v60 = vmax.f32 %v1550_v56, 0.0  ;;  %v1003_v61 = vpop.f32.mrb[8].mxu0  ;;  %v1131_v62 = vpop.f32.mrb[8].mxu1 }
 0x12b   : > { %v2323_v63 = vpack.c.bf16 %v1582_v59, %v1581_v57  ;;  %v1448_v1 = vmul.f32 %v2898_v17, %v1003_v61  ;;  %v1480_v2 = vmul.f32 %v2898_v17, %v1131_v62  ;;  %v1005_v3 = vpop.f32.mrb[9].mxu0  ;;  %v1133_v4 = vpop.f32.mrb[9].mxu1 }
 0x12c   : > { %v2403_v0 = vpack.c.bf16 %v1614_v60, %v1613_v58  ;;  %v1006_v5 = vpop.f32.mrb[10].mxu0  ;;  %v1134_v6 = vpop.f32.mrb[10].mxu1 }
 0x12d   : > { %2475 = vst [vmem:[%s2917_s15 + $0x8] sm:$0xff] %v2323_v63   ;;  %v1519_v7 = vadd.f32 %v2903_v19, %v1448_v1  ;;  %v1551_v8 = vadd.f32 %v2903_v19, %v1480_v2  ;;  %v1449_v9 = vmul.f32 %v2898_v17, %v1006_v5  ;;  %v1481_v10 = vmul.f32 %v2898_v17, %v1134_v6  ;;  %v1008_v11 = vpop.f32.mrb[11].mxu0  ;;  %v1136_v12 = vpop.f32.mrb[11].mxu1 }
 0x12e   : > { %2491 = vst [vmem:[%s2917_s15 + $0x88] sm:$0xff] %v2403_v0  }
 0x12f   : > { %v1520_v13 = vadd.f32 %v2903_v19, %v1449_v9  ;;  %v1552_v14 = vadd.f32 %v2903_v19, %v1481_v10  ;;  %v1583_v15 = vmax.f32 %v1519_v7, 0.0  ;;  %v1615_v16 = vmax.f32 %v1551_v8, 0.0 }
 0x131   : > { %v1584_v18 = vmax.f32 %v1520_v13, 0.0  ;;  %v1616_v20 = vmax.f32 %v1552_v14, 0.0 }
 0x132   : > { %v1011_v21 = vpop.f32.mrb[12].mxu0  ;;  %v1139_v22 = vpop.f32.mrb[12].mxu1 }
 0x133   : > { %v2328_v23 = vpack.c.bf16 %v1584_v18, %v1583_v15  ;;  %v2408_v24 = vpack.c.bf16 %v1616_v20, %v1615_v16  ;;  %v1450_v25 = vmul.f32 %v2898_v17, %v1011_v21  ;;  %v1482_v26 = vmul.f32 %v2898_v17, %v1139_v22  ;;  %v1013_v27 = vpop.f32.mrb[13].mxu0  ;;  %v1141_v28 = vpop.f32.mrb[13].mxu1 }
 0x134   : > { %v1014_v29 = vpop.f32.mrb[14].mxu0  ;;  %v1142_v30 = vpop.f32.mrb[14].mxu1 }
 0x135   : > { %2476 = vst [vmem:[%s2917_s15 + $0x10] sm:$0xff] %v2328_v23   ;;  %2492 = vst [vmem:[%s2917_s15 + $0x90] sm:$0xff] %v2408_v24   ;;  %v1521_v31 = vadd.f32 %v2903_v19, %v1450_v25  ;;  %v1553_v32 = vadd.f32 %v2903_v19, %v1482_v26  ;;  %v1451_v33 = vmul.f32 %v2898_v17, %v1014_v29  ;;  %v1016_v35 = vpop.f32.mrb[15].mxu0  ;;  %v1144_v36 = vpop.f32.mrb[15].mxu1 }
 0x136   : > { %v1483_v34 = vmul.f32 %v2898_v17, %v1142_v30 }
 0x137   : > { %v1522_v37 = vadd.f32 %v2903_v19, %v1451_v33  ;;  %v1585_v39 = vmax.f32 %v1521_v31, 0.0  ;;  %v1617_v40 = vmax.f32 %v1553_v32, 0.0 }
 0x138   : > { %v1554_v38 = vadd.f32 %v2903_v19, %v1483_v34 }
 0x139   : > { %v1586_v41 = vmax.f32 %v1522_v37, 0.0 }
 0x13a   : > { %v1618_v42 = vmax.f32 %v1554_v38, 0.0  ;;  %v1019_v43 = vpop.f32.mrb[16].mxu0  ;;  %v1147_v44 = vpop.f32.mrb[16].mxu1 }
 0x13b   : > { %v2333_v45 = vpack.c.bf16 %v1586_v41, %v1585_v39  ;;  %v1452_v47 = vmul.f32 %v2898_v17, %v1019_v43  ;;  %v1484_v48 = vmul.f32 %v2898_v17, %v1147_v44  ;;  %v1021_v49 = vpop.f32.mrb[17].mxu0  ;;  %v1149_v50 = vpop.f32.mrb[17].mxu1 }
 0x13c   : > { %v2413_v46 = vpack.c.bf16 %v1618_v42, %v1617_v40  ;;  %v1022_v51 = vpop.f32.mrb[18].mxu0  ;;  %v1150_v52 = vpop.f32.mrb[18].mxu1 }
 0x13d   : > { %2477 = vst [vmem:[%s2917_s15 + $0x18] sm:$0xff] %v2333_v45   ;;  %v1523_v53 = vadd.f32 %v2903_v19, %v1452_v47  ;;  %v1555_v54 = vadd.f32 %v2903_v19, %v1484_v48  ;;  %v1453_v55 = vmul.f32 %v2898_v17, %v1022_v51  ;;  %v1485_v56 = vmul.f32 %v2898_v17, %v1150_v52  ;;  %v1024_v57 = vpop.f32.mrb[19].mxu0  ;;  %v1152_v58 = vpop.f32.mrb[19].mxu1 }
 0x13e   : > { %2493 = vst [vmem:[%s2917_s15 + $0x98] sm:$0xff] %v2413_v46  }
 0x13f   : > { %v1524_v59 = vadd.f32 %v2903_v19, %v1453_v55  ;;  %v1556_v60 = vadd.f32 %v2903_v19, %v1485_v56  ;;  %v1587_v61 = vmax.f32 %v1523_v53, 0.0  ;;  %v1619_v62 = vmax.f32 %v1555_v54, 0.0 }
 0x141   : > { %v1588_v63 = vmax.f32 %v1524_v59, 0.0  ;;  %v1620_v0 = vmax.f32 %v1556_v60, 0.0 }
 0x142   : > { %v1027_v1 = vpop.f32.mrb[20].mxu0  ;;  %v1155_v2 = vpop.f32.mrb[20].mxu1 }
 0x143   : > { %v2338_v3 = vpack.c.bf16 %v1588_v63, %v1587_v61  ;;  %v2418_v4 = vpack.c.bf16 %v1620_v0, %v1619_v62  ;;  %v1454_v5 = vmul.f32 %v2898_v17, %v1027_v1  ;;  %v1486_v6 = vmul.f32 %v2898_v17, %v1155_v2  ;;  %v1029_v7 = vpop.f32.mrb[21].mxu0  ;;  %v1157_v8 = vpop.f32.mrb[21].mxu1 }
 0x144   : > { %v1030_v9 = vpop.f32.mrb[22].mxu0  ;;  %v1158_v10 = vpop.f32.mrb[22].mxu1 }
 0x145   : > { %2478 = vst [vmem:[%s2917_s15 + $0x20] sm:$0xff] %v2338_v3   ;;  %2494 = vst [vmem:[%s2917_s15 + $0xa0] sm:$0xff] %v2418_v4   ;;  %v1525_v11 = vadd.f32 %v2903_v19, %v1454_v5  ;;  %v1557_v12 = vadd.f32 %v2903_v19, %v1486_v6  ;;  %v1455_v13 = vmul.f32 %v2898_v17, %v1030_v9  ;;  %v1032_v15 = vpop.f32.mrb[23].mxu0  ;;  %v1160_v16 = vpop.f32.mrb[23].mxu1 }
 0x146   : > { %v1487_v14 = vmul.f32 %v2898_v17, %v1158_v10 }
 0x147   : > { %v1526_v18 = vadd.f32 %v2903_v19, %v1455_v13  ;;  %v1589_v21 = vmax.f32 %v1525_v11, 0.0  ;;  %v1621_v22 = vmax.f32 %v1557_v12, 0.0 }
 0x148   : > { %v1558_v20 = vadd.f32 %v2903_v19, %v1487_v14 }
 0x149   : > { %v1590_v23 = vmax.f32 %v1526_v18, 0.0 }
 0x14a   : > { %v1622_v24 = vmax.f32 %v1558_v20, 0.0  ;;  %v1035_v25 = vpop.f32.mrb[24].mxu0  ;;  %v1163_v26 = vpop.f32.mrb[24].mxu1 }
 0x14b   : > { %v2343_v27 = vpack.c.bf16 %v1590_v23, %v1589_v21  ;;  %v1456_v29 = vmul.f32 %v2898_v17, %v1035_v25  ;;  %v1488_v30 = vmul.f32 %v2898_v17, %v1163_v26  ;;  %v1037_v31 = vpop.f32.mrb[25].mxu0  ;;  %v1165_v32 = vpop.f32.mrb[25].mxu1 }
 0x14c   : > { %v2423_v28 = vpack.c.bf16 %v1622_v24, %v1621_v22  ;;  %v1038_v33 = vpop.f32.mrb[26].mxu0  ;;  %v1166_v34 = vpop.f32.mrb[26].mxu1 }
 0x14d   : > { %2479 = vst [vmem:[%s2917_s15 + $0x28] sm:$0xff] %v2343_v27   ;;  %v1527_v35 = vadd.f32 %v2903_v19, %v1456_v29  ;;  %v1559_v36 = vadd.f32 %v2903_v19, %v1488_v30  ;;  %v1457_v37 = vmul.f32 %v2898_v17, %v1038_v33  ;;  %v1489_v38 = vmul.f32 %v2898_v17, %v1166_v34  ;;  %v1040_v39 = vpop.f32.mrb[27].mxu0  ;;  %v1168_v40 = vpop.f32.mrb[27].mxu1 }
 0x14e   : > { %2495 = vst [vmem:[%s2917_s15 + $0xa8] sm:$0xff] %v2423_v28  }
 0x14f   : > { %v1528_v41 = vadd.f32 %v2903_v19, %v1457_v37  ;;  %v1560_v42 = vadd.f32 %v2903_v19, %v1489_v38  ;;  %v1591_v43 = vmax.f32 %v1527_v35, 0.0  ;;  %v1623_v44 = vmax.f32 %v1559_v36, 0.0 }
 0x151   : > { %v1592_v45 = vmax.f32 %v1528_v41, 0.0  ;;  %v1624_v46 = vmax.f32 %v1560_v42, 0.0 }
 0x152   : > { %v1043_v47 = vpop.f32.mrb[28].mxu0  ;;  %v1171_v48 = vpop.f32.mrb[28].mxu1 }
 0x153   : > { %v2348_v49 = vpack.c.bf16 %v1592_v45, %v1591_v43  ;;  %v2428_v50 = vpack.c.bf16 %v1624_v46, %v1623_v44  ;;  %v1458_v51 = vmul.f32 %v2898_v17, %v1043_v47  ;;  %v1490_v52 = vmul.f32 %v2898_v17, %v1171_v48  ;;  %v1045_v53 = vpop.f32.mrb[29].mxu0  ;;  %v1173_v54 = vpop.f32.mrb[29].mxu1 }
 0x154   : > { %v1046_v55 = vpop.f32.mrb[30].mxu0  ;;  %v1174_v56 = vpop.f32.mrb[30].mxu1 }
 0x155   : > { %2480 = vst [vmem:[%s2917_s15 + $0x30] sm:$0xff] %v2348_v49   ;;  %2496 = vst [vmem:[%s2917_s15 + $0xb0] sm:$0xff] %v2428_v50   ;;  %v1529_v57 = vadd.f32 %v2903_v19, %v1458_v51  ;;  %v1561_v58 = vadd.f32 %v2903_v19, %v1490_v52  ;;  %v1459_v59 = vmul.f32 %v2898_v17, %v1046_v55  ;;  %v1048_v61 = vpop.f32.mrb[31].mxu0  ;;  %v1176_v62 = vpop.f32.mrb[31].mxu1 }
 0x156   : > { %v1491_v60 = vmul.f32 %v2898_v17, %v1174_v56 }
 0x157   : > { %v1530_v63 = vadd.f32 %v2903_v19, %v1459_v59  ;;  %v1593_v1 = vmax.f32 %v1529_v57, 0.0  ;;  %v1625_v2 = vmax.f32 %v1561_v58, 0.0 }
 0x158   : > { %v1562_v0 = vadd.f32 %v2903_v19, %v1491_v60 }
 0x159   : > { %v1594_v3 = vmax.f32 %v1530_v63, 0.0 }
 0x15a   : > { %v1626_v4 = vmax.f32 %v1562_v0, 0.0  ;;  %v1051_v5 = vpop.f32.mrb[32].mxu0  ;;  %v1179_v6 = vpop.f32.mrb[32].mxu1 }
 0x15b   : > { %v2353_v7 = vpack.c.bf16 %v1594_v3, %v1593_v1  ;;  %v1460_v9 = vmul.f32 %v2898_v17, %v1051_v5  ;;  %v1492_v10 = vmul.f32 %v2898_v17, %v1179_v6  ;;  %v1053_v11 = vpop.f32.mrb[33].mxu0  ;;  %v1181_v12 = vpop.f32.mrb[33].mxu1 }
 0x15c   : > { %v2433_v8 = vpack.c.bf16 %v1626_v4, %v1625_v2  ;;  %v1054_v13 = vpop.f32.mrb[34].mxu0  ;;  %v1182_v14 = vpop.f32.mrb[34].mxu1 }
 0x15d   : > { %2481 = vst [vmem:[%s2917_s15 + $0x38] sm:$0xff] %v2353_v7   ;;  %v1531_v15 = vadd.f32 %v2903_v19, %v1460_v9  ;;  %v1563_v16 = vadd.f32 %v2903_v19, %v1492_v10  ;;  %v1461_v18 = vmul.f32 %v2898_v17, %v1054_v13  ;;  %v1493_v20 = vmul.f32 %v2898_v17, %v1182_v14  ;;  %v1056_v21 = vpop.f32.mrb[35].mxu0  ;;  %v1184_v22 = vpop.f32.mrb[35].mxu1 }
 0x15e   : > { %2497 = vst [vmem:[%s2917_s15 + $0xb8] sm:$0xff] %v2433_v8  }
 0x15f   : > { %v1532_v23 = vadd.f32 %v2903_v19, %v1461_v18  ;;  %v1564_v24 = vadd.f32 %v2903_v19, %v1493_v20  ;;  %v1595_v25 = vmax.f32 %v1531_v15, 0.0  ;;  %v1627_v26 = vmax.f32 %v1563_v16, 0.0 }
 0x161   : > { %v1596_v27 = vmax.f32 %v1532_v23, 0.0  ;;  %v1628_v28 = vmax.f32 %v1564_v24, 0.0 }
 0x162   : > { %v1059_v29 = vpop.f32.mrb[36].mxu0  ;;  %v1187_v30 = vpop.f32.mrb[36].mxu1 }
 0x163   : > { %v2358_v31 = vpack.c.bf16 %v1596_v27, %v1595_v25  ;;  %v2438_v32 = vpack.c.bf16 %v1628_v28, %v1627_v26  ;;  %v1462_v33 = vmul.f32 %v2898_v17, %v1059_v29  ;;  %v1494_v34 = vmul.f32 %v2898_v17, %v1187_v30  ;;  %v1061_v35 = vpop.f32.mrb[37].mxu0  ;;  %v1189_v36 = vpop.f32.mrb[37].mxu1 }
 0x164   : > { %v1062_v37 = vpop.f32.mrb[38].mxu0  ;;  %v1190_v38 = vpop.f32.mrb[38].mxu1 }
 0x165   : > { %2482 = vst [vmem:[%s2917_s15 + $0x40] sm:$0xff] %v2358_v31   ;;  %2498 = vst [vmem:[%s2917_s15 + $0xc0] sm:$0xff] %v2438_v32   ;;  %v1533_v39 = vadd.f32 %v2903_v19, %v1462_v33  ;;  %v1565_v40 = vadd.f32 %v2903_v19, %v1494_v34  ;;  %v1463_v41 = vmul.f32 %v2898_v17, %v1062_v37  ;;  %v1064_v43 = vpop.f32.mrb[39].mxu0  ;;  %v1192_v44 = vpop.f32.mrb[39].mxu1 }
 0x166   : > { %v1495_v42 = vmul.f32 %v2898_v17, %v1190_v38 }
 0x167   : > { %v1534_v45 = vadd.f32 %v2903_v19, %v1463_v41  ;;  %v1597_v47 = vmax.f32 %v1533_v39, 0.0  ;;  %v1629_v48 = vmax.f32 %v1565_v40, 0.0 }
 0x168   : > { %v1566_v46 = vadd.f32 %v2903_v19, %v1495_v42 }
 0x169   : > { %v1598_v49 = vmax.f32 %v1534_v45, 0.0 }
 0x16a   : > { %v1630_v50 = vmax.f32 %v1566_v46, 0.0  ;;  %v1067_v51 = vpop.f32.mrb[40].mxu0  ;;  %v1195_v52 = vpop.f32.mrb[40].mxu1 }
 0x16b   : > { %v2363_v53 = vpack.c.bf16 %v1598_v49, %v1597_v47  ;;  %v1464_v55 = vmul.f32 %v2898_v17, %v1067_v51  ;;  %v1496_v56 = vmul.f32 %v2898_v17, %v1195_v52  ;;  %v1069_v57 = vpop.f32.mrb[41].mxu0  ;;  %v1197_v58 = vpop.f32.mrb[41].mxu1 }
 0x16c   : > { %v2443_v54 = vpack.c.bf16 %v1630_v50, %v1629_v48  ;;  %v1070_v59 = vpop.f32.mrb[42].mxu0  ;;  %v1198_v60 = vpop.f32.mrb[42].mxu1 }
 0x16d   : > { %2483 = vst [vmem:[%s2917_s15 + $0x48] sm:$0xff] %v2363_v53   ;;  %v1535_v61 = vadd.f32 %v2903_v19, %v1464_v55  ;;  %v1567_v62 = vadd.f32 %v2903_v19, %v1496_v56  ;;  %v1465_v63 = vmul.f32 %v2898_v17, %v1070_v59  ;;  %v1497_v0 = vmul.f32 %v2898_v17, %v1198_v60  ;;  %v1072_v1 = vpop.f32.mrb[43].mxu0  ;;  %v1200_v2 = vpop.f32.mrb[43].mxu1 }
 0x16e   : > { %2499 = vst [vmem:[%s2917_s15 + $0xc8] sm:$0xff] %v2443_v54  }
 0x16f   : > { %v1536_v3 = vadd.f32 %v2903_v19, %v1465_v63  ;;  %v1568_v4 = vadd.f32 %v2903_v19, %v1497_v0  ;;  %v1599_v5 = vmax.f32 %v1535_v61, 0.0  ;;  %v1631_v6 = vmax.f32 %v1567_v62, 0.0 }
 0x171   : > { %v1600_v7 = vmax.f32 %v1536_v3, 0.0  ;;  %v1632_v8 = vmax.f32 %v1568_v4, 0.0 }
 0x172   : > { %v1075_v9 = vpop.f32.mrb[44].mxu0  ;;  %v1203_v10 = vpop.f32.mrb[44].mxu1 }
 0x173   : > { %v2368_v11 = vpack.c.bf16 %v1600_v7, %v1599_v5  ;;  %v2448_v12 = vpack.c.bf16 %v1632_v8, %v1631_v6  ;;  %v1466_v13 = vmul.f32 %v2898_v17, %v1075_v9  ;;  %v1498_v14 = vmul.f32 %v2898_v17, %v1203_v10  ;;  %v1077_v15 = vpop.f32.mrb[45].mxu0  ;;  %v1205_v16 = vpop.f32.mrb[45].mxu1 }
 0x174   : > { %v1078_v18 = vpop.f32.mrb[46].mxu0  ;;  %v1206_v20 = vpop.f32.mrb[46].mxu1 }
 0x175   : > { %2484 = vst [vmem:[%s2917_s15 + $0x50] sm:$0xff] %v2368_v11   ;;  %2500 = vst [vmem:[%s2917_s15 + $0xd0] sm:$0xff] %v2448_v12   ;;  %v1537_v21 = vadd.f32 %v2903_v19, %v1466_v13  ;;  %v1569_v22 = vadd.f32 %v2903_v19, %v1498_v14  ;;  %v1467_v23 = vmul.f32 %v2898_v17, %v1078_v18  ;;  %v1080_v25 = vpop.f32.mrb[47].mxu0  ;;  %v1208_v26 = vpop.f32.mrb[47].mxu1 }
 0x176   : > { %v1499_v24 = vmul.f32 %v2898_v17, %v1206_v20 }
 0x177   : > { %v1538_v27 = vadd.f32 %v2903_v19, %v1467_v23  ;;  %v1601_v29 = vmax.f32 %v1537_v21, 0.0  ;;  %v1633_v30 = vmax.f32 %v1569_v22, 0.0 }
 0x178   : > { %v1570_v28 = vadd.f32 %v2903_v19, %v1499_v24 }
 0x179   : > { %v1602_v31 = vmax.f32 %v1538_v27, 0.0 }
 0x17a   : > { %v1634_v32 = vmax.f32 %v1570_v28, 0.0  ;;  %v1083_v33 = vpop.f32.mrb[48].mxu0  ;;  %v1211_v34 = vpop.f32.mrb[48].mxu1 }
 0x17b   : > { %v2373_v35 = vpack.c.bf16 %v1602_v31, %v1601_v29  ;;  %v1468_v37 = vmul.f32 %v2898_v17, %v1083_v33  ;;  %v1500_v38 = vmul.f32 %v2898_v17, %v1211_v34  ;;  %v1085_v39 = vpop.f32.mrb[49].mxu0  ;;  %v1213_v40 = vpop.f32.mrb[49].mxu1 }
 0x17c   : > { %v2453_v36 = vpack.c.bf16 %v1634_v32, %v1633_v30  ;;  %v1086_v41 = vpop.f32.mrb[50].mxu0  ;;  %v1214_v42 = vpop.f32.mrb[50].mxu1 }
 0x17d   : > { %2485 = vst [vmem:[%s2917_s15 + $0x58] sm:$0xff] %v2373_v35   ;;  %v1539_v43 = vadd.f32 %v2903_v19, %v1468_v37  ;;  %v1571_v44 = vadd.f32 %v2903_v19, %v1500_v38  ;;  %v1469_v45 = vmul.f32 %v2898_v17, %v1086_v41  ;;  %v1501_v46 = vmul.f32 %v2898_v17, %v1214_v42  ;;  %v1088_v47 = vpop.f32.mrb[51].mxu0  ;;  %v1216_v48 = vpop.f32.mrb[51].mxu1 }
 0x17e   : > { %2501 = vst [vmem:[%s2917_s15 + $0xd8] sm:$0xff] %v2453_v36  }
 0x17f   : > { %v1540_v49 = vadd.f32 %v2903_v19, %v1469_v45  ;;  %v1572_v50 = vadd.f32 %v2903_v19, %v1501_v46  ;;  %v1603_v51 = vmax.f32 %v1539_v43, 0.0  ;;  %v1635_v52 = vmax.f32 %v1571_v44, 0.0 }
 0x181   : > { %v1604_v53 = vmax.f32 %v1540_v49, 0.0  ;;  %v1636_v54 = vmax.f32 %v1572_v50, 0.0 }
 0x182   : > { %v1091_v55 = vpop.f32.mrb[52].mxu0  ;;  %v1219_v56 = vpop.f32.mrb[52].mxu1 }
 0x183   : > { %v2378_v57 = vpack.c.bf16 %v1604_v53, %v1603_v51  ;;  %v2458_v58 = vpack.c.bf16 %v1636_v54, %v1635_v52  ;;  %v1470_v59 = vmul.f32 %v2898_v17, %v1091_v55  ;;  %v1502_v60 = vmul.f32 %v2898_v17, %v1219_v56  ;;  %v1093_v61 = vpop.f32.mrb[53].mxu0  ;;  %v1221_v62 = vpop.f32.mrb[53].mxu1 }
 0x184   : > { %v1094_v63 = vpop.f32.mrb[54].mxu0  ;;  %v1222_v0 = vpop.f32.mrb[54].mxu1 }
 0x185   : > { %2486 = vst [vmem:[%s2917_s15 + $0x60] sm:$0xff] %v2378_v57   ;;  %2502 = vst [vmem:[%s2917_s15 + $0xe0] sm:$0xff] %v2458_v58   ;;  %v1541_v1 = vadd.f32 %v2903_v19, %v1470_v59  ;;  %v1573_v2 = vadd.f32 %v2903_v19, %v1502_v60  ;;  %v1471_v3 = vmul.f32 %v2898_v17, %v1094_v63  ;;  %v1096_v5 = vpop.f32.mrb[55].mxu0  ;;  %v1224_v6 = vpop.f32.mrb[55].mxu1 }
 0x186   : > { %v1503_v4 = vmul.f32 %v2898_v17, %v1222_v0 }
 0x187   : > { %v1542_v7 = vadd.f32 %v2903_v19, %v1471_v3  ;;  %v1605_v9 = vmax.f32 %v1541_v1, 0.0  ;;  %v1637_v10 = vmax.f32 %v1573_v2, 0.0 }
 0x188   : > { %v1574_v8 = vadd.f32 %v2903_v19, %v1503_v4 }
 0x189   : > { %v1606_v11 = vmax.f32 %v1542_v7, 0.0 }
 0x18a   : > { %v1638_v12 = vmax.f32 %v1574_v8, 0.0  ;;  %v1099_v13 = vpop.f32.mrb[56].mxu0  ;;  %v1227_v14 = vpop.f32.mrb[56].mxu1 }
 0x18b   : > { %v2383_v15 = vpack.c.bf16 %v1606_v11, %v1605_v9  ;;  %v1472_v18 = vmul.f32 %v2898_v17, %v1099_v13  ;;  %v1504_v20 = vmul.f32 %v2898_v17, %v1227_v14  ;;  %v1101_v21 = vpop.f32.mrb[57].mxu0  ;;  %v1229_v22 = vpop.f32.mrb[57].mxu1 }
 0x18c   : > { %v2463_v16 = vpack.c.bf16 %v1638_v12, %v1637_v10  ;;  %v1102_v23 = vpop.f32.mrb[58].mxu0  ;;  %v1230_v24 = vpop.f32.mrb[58].mxu1 }
 0x18d   : > { %2487 = vst [vmem:[%s2917_s15 + $0x68] sm:$0xff] %v2383_v15   ;;  %v1543_v25 = vadd.f32 %v2903_v19, %v1472_v18  ;;  %v1575_v26 = vadd.f32 %v2903_v19, %v1504_v20  ;;  %v1473_v27 = vmul.f32 %v2898_v17, %v1102_v23  ;;  %v1505_v28 = vmul.f32 %v2898_v17, %v1230_v24  ;;  %v1104_v29 = vpop.f32.mrb[59].mxu0  ;;  %v1232_v30 = vpop.f32.mrb[59].mxu1 }
 0x18e   : > { %2503 = vst [vmem:[%s2917_s15 + $0xe8] sm:$0xff] %v2463_v16  }
 0x18f   : > { %v1544_v31 = vadd.f32 %v2903_v19, %v1473_v27  ;;  %v1576_v32 = vadd.f32 %v2903_v19, %v1505_v28  ;;  %v1607_v33 = vmax.f32 %v1543_v25, 0.0  ;;  %v1639_v34 = vmax.f32 %v1575_v26, 0.0 }
 0x191   : > { %v1608_v35 = vmax.f32 %v1544_v31, 0.0  ;;  %v1640_v36 = vmax.f32 %v1576_v32, 0.0 }
 0x192   : > { %v1107_v37 = vpop.f32.mrb[60].mxu0  ;;  %v1235_v38 = vpop.f32.mrb[60].mxu1 }
 0x193   : > { %v2388_v39 = vpack.c.bf16 %v1608_v35, %v1607_v33  ;;  %v2468_v40 = vpack.c.bf16 %v1640_v36, %v1639_v34  ;;  %v1474_v41 = vmul.f32 %v2898_v17, %v1107_v37  ;;  %v1506_v42 = vmul.f32 %v2898_v17, %v1235_v38  ;;  %v1109_v43 = vpop.f32.mrb[61].mxu0  ;;  %v1237_v44 = vpop.f32.mrb[61].mxu1 }
 0x194   : > { %v1110_v45 = vpop.f32.mrb[62].mxu0  ;;  %v1238_v46 = vpop.f32.mrb[62].mxu1 }
 0x195   : > { %2488 = vst [vmem:[%s2917_s15 + $0x70] sm:$0xff] %v2388_v39   ;;  %2504 = vst [vmem:[%s2917_s15 + $0xf0] sm:$0xff] %v2468_v40   ;;  %v1545_v47 = vadd.f32 %v2903_v19, %v1474_v41  ;;  %v1577_v48 = vadd.f32 %v2903_v19, %v1506_v42  ;;  %v1475_v49 = vmul.f32 %v2898_v17, %v1110_v45  ;;  %v1112_v51 = vpop.f32.mrb[63].mxu0  ;;  %v1240_v52 = vpop.f32.mrb[63].mxu1 }
 0x196   : > { %v1507_v50 = vmul.f32 %v2898_v17, %v1238_v46 }
 0x197   : > { %v1546_v53 = vadd.f32 %v2903_v19, %v1475_v49  ;;  %v1609_v55 = vmax.f32 %v1545_v47, 0.0  ;;  %v1641_v56 = vmax.f32 %v1577_v48, 0.0 }
 0x198   : > { %v1578_v54 = vadd.f32 %v2903_v19, %v1507_v50 }
 0x199   : > { %v1610_v57 = vmax.f32 %v1546_v53, 0.0 }
 0x19a   : > { %v1642_v58 = vmax.f32 %v1578_v54, 0.0 }
 0x19b   : > { %v2393_v59 = vpack.c.bf16 %v1610_v57, %v1609_v55 }
 0x19c   : > { %v2473_v60 = vpack.c.bf16 %v1642_v58, %v1641_v56 }
 0x19d   : > { %2489 = vst [vmem:[%s2917_s15 + $0x78] sm:$0xff] %v2393_v59  }
 0x19e   : > { %2505 = vst [vmem:[%s2917_s15 + $0xf8] sm:$0xff] %v2473_v60  }
 0x19f PF: > { %s14_s17 = sadd.s32 1, %s2697_s17   ;;  %s3085_s15 = smov %s2693_s16 }
 0x1a0   : > { %p11_p5 = scmp.ge.s32.totalorder %s14_s17, 6   ;;  %s3086_s16 = smov %s3088_s18 }
 0x1a2   :  { %13 = sbr.rel (!%p11_p5) target bundleno = 2 (0x2), region = 83 }

// kernel: _lambda_.21
= control target key start
LH: loop header
LB: loop body
LE: loop exit
PB: predicated region body
PF: predicated region fallthrough
CT: control target
= control target key end

     0   :  { %s2400_s1 = inlined_call_operand.vmem [shape: bf16[128,128], index: 1, kind: input, shape index: {}]   ;;  %s2401_s0 = inlined_call_operand.vmem [shape: bf16[512,128], index: 0, kind: input, shape index: {}]   ;;  %s2402_s2 = inlined_call_operand.vmem [shape: f32[1,128], index: 2, kind: input, shape index: {}]   ;;  %s2403_s3 = inlined_call_operand.vmem [shape: f32[1,128], index: 3, kind: input, shape index: {}]   ;;  %s2404_s4 = inlined_call_operand.vmem [shape: bf16[512,128], index: 4, kind: output, shape index: {}]  }
   0x1   :  { %v1981_v0 = vld [vmem:[%s2400_s1] sm:$0xff]   ;;  %v1982_v1 = vld [vmem:[%s2400_s1 + $0x8] sm:$0xff]   ;;  %v1983_v2 = vld [vmem:[%s2400_s1 + $0x10] sm:$0xff]  }
   0x2   :  { %1885 = vmatprep.subr.bf16.mxu0 %v1981_v0  ;;  %1965 = vmatprep.subr.bf16.mxu1 %v1981_v0  ;;  %v1984_v3 = vld [vmem:[%s2400_s1 + $0x18] sm:$0xff]   ;;  %v1989_v4 = vld [vmem:[%s2401_s0] sm:$0xff]   ;;  %v1986_v7 = vld [vmem:[%s2400_s1 + $0x28] sm:$0xff]  }
   0x3   :  { %1886 = vmatpush3.bf16.msra.mxu0 %v1981_v0  ;;  %1973 = vmatpush3.bf16.msra.mxu1 %v1981_v0  ;;  %v1990_v5 = vld [vmem:[%s2401_s0 + $0x80] sm:$0xff]   ;;  %v1987_v8 = vld [vmem:[%s2400_s1 + $0x30] sm:$0xff]   ;;  %v1988_v9 = vld [vmem:[%s2400_s1 + $0x38] sm:$0xff]  }
   0x4   :  { %1887 = vmatprep.subr.bf16.mxu0 %v1982_v1  ;;  %1966 = vmatprep.subr.bf16.mxu1 %v1982_v1  ;;  %v1985_v6 = vld [vmem:[%s2400_s1 + $0x20] sm:$0xff]   ;;  %v1991_v10 = vld [vmem:[%s2401_s0 + $0x8] sm:$0xff]   ;;  %v1993_v12 = vld [vmem:[%s2401_s0 + $0x10] sm:$0xff]  }
   0x5   :  { %1901 = vmatprep.mubr.bf16.mxu0 %v1989_v4  ;;  %1933 = vmatprep.mubr.bf16.mxu1 %v1990_v5  ;;  %v1992_v11 = vld [vmem:[%s2401_s0 + $0x88] sm:$0xff]   ;;  %v1994_v13 = vld [vmem:[%s2401_s0 + $0x90] sm:$0xff]   ;;  %v1995_v14 = vld [vmem:[%s2401_s0 + $0x18] sm:$0xff]  }
   0x6   :  { %v1996_v15 = vld [vmem:[%s2401_s0 + $0x98] sm:$0xff]   ;;  %v1997_v16 = vld [vmem:[%s2401_s0 + $0x20] sm:$0xff]   ;;  %v1999_v18 = vld [vmem:[%s2401_s0 + $0x28] sm:$0xff]  }
   0x7   :  { %1888 = vmatpush3.bf16.msra.mxu0 %v1982_v1  ;;  %1974 = vmatpush3.bf16.msra.mxu1 %v1982_v1  ;;  %v1998_v17 = vld [vmem:[%s2401_s0 + $0xa0] sm:$0xff]   ;;  %v2000_v19 = vld [vmem:[%s2401_s0 + $0xa8] sm:$0xff]   ;;  %v2001_v20 = vld [vmem:[%s2401_s0 + $0x30] sm:$0xff]  }
   0x8   :  { %1889 = vmatprep.subr.bf16.mxu0 %v1983_v2  ;;  %1967 = vmatprep.subr.bf16.mxu1 %v1983_v2  ;;  %v2002_v21 = vld [vmem:[%s2401_s0 + $0xb0] sm:$0xff]   ;;  %v2003_v22 = vld [vmem:[%s2401_s0 + $0x38] sm:$0xff]   ;;  %v2005_v24 = vld [vmem:[%s2401_s0 + $0x40] sm:$0xff]  }
   0x9   :  { %v2004_v23 = vld [vmem:[%s2401_s0 + $0xb8] sm:$0xff]   ;;  %v2006_v25 = vld [vmem:[%s2401_s0 + $0xc0] sm:$0xff]   ;;  %v2007_v26 = vld [vmem:[%s2401_s0 + $0x48] sm:$0xff]  }
   0xa   :  { %v2008_v27 = vld [vmem:[%s2401_s0 + $0xc8] sm:$0xff]   ;;  %v2009_v28 = vld [vmem:[%s2401_s0 + $0x50] sm:$0xff]   ;;  %v2011_v30 = vld [vmem:[%s2401_s0 + $0x58] sm:$0xff]  }
   0xb   :  { %1890 = vmatpush3.bf16.msra.mxu0 %v1983_v2  ;;  %1975 = vmatpush3.bf16.msra.mxu1 %v1983_v2  ;;  %v2010_v29 = vld [vmem:[%s2401_s0 + $0xd0] sm:$0xff]   ;;  %v2012_v31 = vld [vmem:[%s2401_s0 + $0xd8] sm:$0xff]   ;;  %v2013_v32 = vld [vmem:[%s2401_s0 + $0x60] sm:$0xff]  }
   0xc   :  { %1891 = vmatprep.subr.bf16.mxu0 %v1984_v3  ;;  %1968 = vmatprep.subr.bf16.mxu1 %v1984_v3  ;;  %v2014_v33 = vld [vmem:[%s2401_s0 + $0xe0] sm:$0xff]   ;;  %v2015_v34 = vld [vmem:[%s2401_s0 + $0x68] sm:$0xff]   ;;  %v2017_v36 = vld [vmem:[%s2401_s0 + $0x70] sm:$0xff]  }
   0xd   :  { %v2016_v35 = vld [vmem:[%s2401_s0 + $0xe8] sm:$0xff]   ;;  %v2018_v37 = vld [vmem:[%s2401_s0 + $0xf0] sm:$0xff]   ;;  %v2019_v38 = vld [vmem:[%s2401_s0 + $0x78] sm:$0xff]  }
   0xe   :  { %v2020_v39 = vld [vmem:[%s2401_s0 + $0xf8] sm:$0xff]   ;;  %v2169_v40 = vld [vmem:[%s2402_s2] ss:$0 sm:$0xff] }
   0xf   :  { %1892 = vmatpush3.bf16.msra.mxu0 %v1984_v3  ;;  %1976 = vmatpush3.bf16.msra.mxu1 %v1984_v3  ;;  %v2174_v42 = vld [vmem:[%s2403_s3] ss:$0 sm:$0xff] }
  0x10   :  { %1893 = vmatprep.subr.bf16.mxu0 %v1985_v6  ;;  %1969 = vmatprep.subr.bf16.mxu1 %v1985_v6 }
  0x13   :  { %1894 = vmatpush3.bf16.msra.mxu0 %v1985_v6  ;;  %1977 = vmatpush3.bf16.msra.mxu1 %v1985_v6 }
  0x14   :  { %1895 = vmatprep.subr.bf16.mxu0 %v1986_v7  ;;  %1970 = vmatprep.subr.bf16.mxu1 %v1986_v7 }
  0x17   :  { %1896 = vmatpush3.bf16.msra.mxu0 %v1986_v7  ;;  %1978 = vmatpush3.bf16.msra.mxu1 %v1986_v7 }
  0x18   :  { %1897 = vmatprep.subr.bf16.mxu0 %v1987_v8  ;;  %1971 = vmatprep.subr.bf16.mxu1 %v1987_v8 }
  0x1b   :  { %1898 = vmatpush3.bf16.msra.mxu0 %v1987_v8  ;;  %1979 = vmatpush3.bf16.msra.mxu1 %v1987_v8 }
  0x1c   :  { %1899 = vmatprep.subr.bf16.mxu0 %v1988_v9  ;;  %1972 = vmatprep.subr.bf16.mxu1 %v1988_v9 }
  0x1f   :  { %1900 = vmatpush3.bf16.msra.mxu0 %v1988_v9  ;;  %1980 = vmatpush3.bf16.msra.mxu1 %v1988_v9 }
  0x22   :  { %1902 = vmatmul.mubr.bf16.vlgmr.msra.gmra.mrb[0].mxu0 %v1991_v10  ;;  %1934 = vmatmul.mubr.bf16.vlgmr.msra.gmra.mrb[0].mxu1 %v1992_v11 }
  0x23   :  { %1905 = vmatprep.mubr.bf16.mxu0 %v1993_v12  ;;  %1937 = vmatprep.mubr.bf16.mxu1 %v1994_v13 }
  0x2a   :  { %1906 = vmatmul.mubr.bf16.gmra.mrb[4].mxu0 %v1995_v14  ;;  %1938 = vmatmul.mubr.bf16.gmra.mrb[4].mxu1 %v1996_v15 }
  0x2b   :  { %1909 = vmatprep.mubr.bf16.mxu0 %v1997_v16  ;;  %1941 = vmatprep.mubr.bf16.mxu1 %v1998_v17 }
  0x32   :  { %1910 = vmatmul.mubr.bf16.gmra.mrb[8].mxu0 %v1999_v18  ;;  %1942 = vmatmul.mubr.bf16.gmra.mrb[8].mxu1 %v2000_v19 }
  0x33   :  { %1913 = vmatprep.mubr.bf16.mxu0 %v2001_v20  ;;  %1945 = vmatprep.mubr.bf16.mxu1 %v2002_v21 }
  0x3a   :  { %1914 = vmatmul.mubr.bf16.gmra.mrb[12].mxu0 %v2003_v22  ;;  %1946 = vmatmul.mubr.bf16.gmra.mrb[12].mxu1 %v2004_v23 }
  0x3b   :  { %1917 = vmatprep.mubr.bf16.mxu0 %v2005_v24  ;;  %1949 = vmatprep.mubr.bf16.mxu1 %v2006_v25 }
  0x42   :  { %1918 = vmatmul.mubr.bf16.gmra.mrb[16].mxu0 %v2007_v26  ;;  %1950 = vmatmul.mubr.bf16.gmra.mrb[16].mxu1 %v2008_v27 }
  0x43   :  { %1921 = vmatprep.mubr.bf16.mxu0 %v2009_v28  ;;  %1953 = vmatprep.mubr.bf16.mxu1 %v2010_v29 }
  0x4a   :  { %1922 = vmatmul.mubr.bf16.gmra.mrb[20].mxu0 %v2011_v30  ;;  %1954 = vmatmul.mubr.bf16.gmra.mrb[20].mxu1 %v2012_v31 }
  0x4b   :  { %1925 = vmatprep.mubr.bf16.mxu0 %v2013_v32  ;;  %1957 = vmatprep.mubr.bf16.mxu1 %v2014_v33 }
  0x52   :  { %1926 = vmatmul.mubr.bf16.gmra.mrb[24].mxu0 %v2015_v34  ;;  %1958 = vmatmul.mubr.bf16.gmra.mrb[24].mxu1 %v2016_v35 }
  0x53   :  { %1929 = vmatprep.mubr.bf16.mxu0 %v2017_v36  ;;  %1961 = vmatprep.mubr.bf16.mxu1 %v2018_v37 }
  0x5a   :  { %1930 = vmatmul.mubr.bf16.gmra.mrb[28].mxu0 %v2019_v38  ;;  %1962 = vmatmul.mubr.bf16.gmra.mrb[28].mxu1 %v2020_v39 }
  0xf5   :  { %v1903_v41 = vpop.f32.mrb[0].mxu0  ;;  %v1935_v43 = vpop.f32.mrb[0].mxu1 }
  0xf6   :  { %v963_v44 = vmul.f32 %v1903_v41, %v2169_v40  ;;  %v995_v45 = vmul.f32 %v1935_v43, %v2169_v40  ;;  %v504_v46 = vpop.f32.mrb[1].mxu0  ;;  %v632_v47 = vpop.f32.mrb[1].mxu1 }
  0xf7   :  { %v961_v48 = vmul.f32 %v2169_v40, %v504_v46  ;;  %v993_v49 = vmul.f32 %v2169_v40, %v632_v47  ;;  %v1904_v50 = vpop.f32.mrb[2].mxu0  ;;  %v1936_v51 = vpop.f32.mrb[2].mxu1 }
  0xf8   :  { %v1034_v52 = vadd.f32 %v2174_v42, %v963_v44  ;;  %v1066_v53 = vadd.f32 %v2174_v42, %v995_v45  ;;  %v964_v54 = vmul.f32 %v1904_v50, %v2169_v40  ;;  %v996_v55 = vmul.f32 %v1936_v51, %v2169_v40  ;;  %v507_v56 = vpop.f32.mrb[3].mxu0  ;;  %v635_v57 = vpop.f32.mrb[3].mxu1 }
  0xf9   :  { %v1032_v58 = vadd.f32 %v2174_v42, %v961_v48  ;;  %v1064_v59 = vadd.f32 %v2174_v42, %v993_v49  ;;  %v962_v60 = vmul.f32 %v2169_v40, %v507_v56  ;;  %v994_v61 = vmul.f32 %v2169_v40, %v635_v57 }
  0xfa   :  { %v1035_v62 = vadd.f32 %v2174_v42, %v964_v54  ;;  %v1067_v63 = vadd.f32 %v2174_v42, %v996_v55  ;;  %v1098_v2 = vmax.f32 %v1034_v52, 0.0  ;;  %v1130_v3 = vmax.f32 %v1066_v53, 0.0 }
  0xfb   :  { %v1033_v0 = vadd.f32 %v2174_v42, %v962_v60  ;;  %v1065_v1 = vadd.f32 %v2174_v42, %v994_v61  ;;  %v1096_v6 = vmax.f32 %v1032_v58, 0.0  ;;  %v1128_v7 = vmax.f32 %v1064_v59, 0.0 }
  0xfc   :  { %v1099_v4 = vmax.f32 %v1035_v62, 0.0  ;;  %v1131_v5 = vmax.f32 %v1067_v63, 0.0 }
  0xfd   :  { %v1097_v8 = vmax.f32 %v1033_v0, 0.0  ;;  %v1129_v9 = vmax.f32 %v1065_v1, 0.0  ;;  %v1907_v10 = vpop.f32.mrb[4].mxu0  ;;  %v1939_v11 = vpop.f32.mrb[4].mxu1 }
  0xfe   :  { %v1662_v12 = vpack.c.bf16 %v1099_v4, %v1098_v2  ;;  %v1742_v13 = vpack.c.bf16 %v1131_v5, %v1130_v3  ;;  %v967_v14 = vmul.f32 %v1907_v10, %v2169_v40  ;;  %v999_v15 = vmul.f32 %v1939_v11, %v2169_v40  ;;  %v520_v16 = vpop.f32.mrb[5].mxu0  ;;  %v648_v17 = vpop.f32.mrb[5].mxu1 }
  0xff   :  { %v1657_v18 = vpack.c.bf16 %v1097_v8, %v1096_v6  ;;  %v1737_v19 = vpack.c.bf16 %v1129_v9, %v1128_v7  ;;  %v965_v20 = vmul.f32 %v2169_v40, %v520_v16  ;;  %v997_v21 = vmul.f32 %v2169_v40, %v648_v17  ;;  %v1908_v22 = vpop.f32.mrb[6].mxu0  ;;  %v1940_v23 = vpop.f32.mrb[6].mxu1 }
 0x100   :  { %1814 = vst [vmem:[%s2404_s4 + $0x8] sm:$0xff] %v1662_v12   ;;  %1830 = vst [vmem:[%s2404_s4 + $0x88] sm:$0xff] %v1742_v13   ;;  %v1038_v24 = vadd.f32 %v2174_v42, %v967_v14  ;;  %v1070_v25 = vadd.f32 %v2174_v42, %v999_v15  ;;  %v968_v26 = vmul.f32 %v1908_v22, %v2169_v40  ;;  %v523_v28 = vpop.f32.mrb[7].mxu0  ;;  %v651_v29 = vpop.f32.mrb[7].mxu1 }
 0x101   :  { %v1000_v27 = vmul.f32 %v1940_v23, %v2169_v40  ;;  %1658 = vst [vmem:[%s2404_s4] sm:$0xff] %v1657_v18   ;;  %1829 = vst [vmem:[%s2404_s4 + $0x80] sm:$0xff] %v1737_v19   ;;  %v1036_v30 = vadd.f32 %v2174_v42, %v965_v20  ;;  %v1068_v31 = vadd.f32 %v2174_v42, %v997_v21 }
 0x102   :  { %v966_v32 = vmul.f32 %v2169_v40, %v523_v28  ;;  %v998_v33 = vmul.f32 %v2169_v40, %v651_v29  ;;  %v1039_v34 = vadd.f32 %v2174_v42, %v968_v26  ;;  %v1102_v38 = vmax.f32 %v1038_v24, 0.0 }
 0x103   :  { %v1071_v35 = vadd.f32 %v2174_v42, %v1000_v27  ;;  %v1134_v39 = vmax.f32 %v1070_v25, 0.0  ;;  %v1100_v44 = vmax.f32 %v1036_v30, 0.0  ;;  %v1132_v45 = vmax.f32 %v1068_v31, 0.0 }
 0x104   :  { %v1037_v36 = vadd.f32 %v2174_v42, %v966_v32  ;;  %v1069_v37 = vadd.f32 %v2174_v42, %v998_v33  ;;  %v1103_v41 = vmax.f32 %v1039_v34, 0.0 }
 0x105   :  { %v1135_v43 = vmax.f32 %v1071_v35, 0.0  ;;  %v1911_v48 = vpop.f32.mrb[8].mxu0  ;;  %v1943_v49 = vpop.f32.mrb[8].mxu1 }
 0x106   :  { %v1101_v46 = vmax.f32 %v1037_v36, 0.0  ;;  %v1133_v47 = vmax.f32 %v1069_v37, 0.0  ;;  %v1672_v50 = vpack.c.bf16 %v1103_v41, %v1102_v38  ;;  %v971_v52 = vmul.f32 %v1911_v48, %v2169_v40  ;;  %v536_v54 = vpop.f32.mrb[9].mxu0  ;;  %v664_v55 = vpop.f32.mrb[9].mxu1 }
 0x107   :  { %v1752_v51 = vpack.c.bf16 %v1135_v43, %v1134_v39  ;;  %v1003_v53 = vmul.f32 %v1943_v49, %v2169_v40  ;;  %v969_v58 = vmul.f32 %v2169_v40, %v536_v54  ;;  %v1001_v59 = vmul.f32 %v2169_v40, %v664_v55  ;;  %v1912_v60 = vpop.f32.mrb[10].mxu0  ;;  %v1944_v61 = vpop.f32.mrb[10].mxu1 }
 0x108   :  { %v1667_v56 = vpack.c.bf16 %v1101_v46, %v1100_v44  ;;  %v1747_v57 = vpack.c.bf16 %v1133_v47, %v1132_v45  ;;  %1816 = vst [vmem:[%s2404_s4 + $0x18] sm:$0xff] %v1672_v50   ;;  %v1042_v62 = vadd.f32 %v2174_v42, %v971_v52  ;;  %v972_v0 = vmul.f32 %v1912_v60, %v2169_v40  ;;  %v539_v2 = vpop.f32.mrb[11].mxu0  ;;  %v667_v3 = vpop.f32.mrb[11].mxu1 }
 0x109   :  { %1832 = vst [vmem:[%s2404_s4 + $0x98] sm:$0xff] %v1752_v51   ;;  %v1074_v63 = vadd.f32 %v2174_v42, %v1003_v53  ;;  %v1004_v1 = vmul.f32 %v1944_v61, %v2169_v40  ;;  %v1040_v4 = vadd.f32 %v2174_v42, %v969_v58  ;;  %v1072_v5 = vadd.f32 %v2174_v42, %v1001_v59 }
 0x10a   :  { %1815 = vst [vmem:[%s2404_s4 + $0x10] sm:$0xff] %v1667_v56   ;;  %1831 = vst [vmem:[%s2404_s4 + $0x90] sm:$0xff] %v1747_v57   ;;  %v970_v6 = vmul.f32 %v2169_v40, %v539_v2  ;;  %v1002_v7 = vmul.f32 %v2169_v40, %v667_v3  ;;  %v1043_v8 = vadd.f32 %v2174_v42, %v972_v0  ;;  %v1106_v12 = vmax.f32 %v1042_v62, 0.0 }
 0x10b   :  { %v1075_v9 = vadd.f32 %v2174_v42, %v1004_v1  ;;  %v1138_v13 = vmax.f32 %v1074_v63, 0.0  ;;  %v1104_v16 = vmax.f32 %v1040_v4, 0.0  ;;  %v1136_v17 = vmax.f32 %v1072_v5, 0.0 }
 0x10c   :  { %v1041_v10 = vadd.f32 %v2174_v42, %v970_v6  ;;  %v1073_v11 = vadd.f32 %v2174_v42, %v1002_v7  ;;  %v1107_v14 = vmax.f32 %v1043_v8, 0.0 }
 0x10d   :  { %v1139_v15 = vmax.f32 %v1075_v9, 0.0  ;;  %v1915_v20 = vpop.f32.mrb[12].mxu0  ;;  %v1947_v21 = vpop.f32.mrb[12].mxu1 }
 0x10e   :  { %v1105_v18 = vmax.f32 %v1041_v10, 0.0  ;;  %v1137_v19 = vmax.f32 %v1073_v11, 0.0  ;;  %v1682_v22 = vpack.c.bf16 %v1107_v14, %v1106_v12  ;;  %v975_v24 = vmul.f32 %v1915_v20, %v2169_v40  ;;  %v552_v26 = vpop.f32.mrb[13].mxu0  ;;  %v680_v27 = vpop.f32.mrb[13].mxu1 }
 0x10f   :  { %v1762_v23 = vpack.c.bf16 %v1139_v15, %v1138_v13  ;;  %v1007_v25 = vmul.f32 %v1947_v21, %v2169_v40  ;;  %v973_v30 = vmul.f32 %v2169_v40, %v552_v26  ;;  %v1005_v31 = vmul.f32 %v2169_v40, %v680_v27  ;;  %v1916_v32 = vpop.f32.mrb[14].mxu0  ;;  %v1948_v33 = vpop.f32.mrb[14].mxu1 }
 0x110   :  { %v1677_v28 = vpack.c.bf16 %v1105_v18, %v1104_v16  ;;  %v1757_v29 = vpack.c.bf16 %v1137_v19, %v1136_v17  ;;  %1818 = vst [vmem:[%s2404_s4 + $0x28] sm:$0xff] %v1682_v22   ;;  %v1046_v34 = vadd.f32 %v2174_v42, %v975_v24  ;;  %v976_v36 = vmul.f32 %v1916_v32, %v2169_v40  ;;  %v555_v38 = vpop.f32.mrb[15].mxu0  ;;  %v683_v39 = vpop.f32.mrb[15].mxu1 }
 0x111   :  { %1834 = vst [vmem:[%s2404_s4 + $0xa8] sm:$0xff] %v1762_v23   ;;  %v1078_v35 = vadd.f32 %v2174_v42, %v1007_v25  ;;  %v1008_v37 = vmul.f32 %v1948_v33, %v2169_v40  ;;  %v1044_v41 = vadd.f32 %v2174_v42, %v973_v30  ;;  %v1076_v43 = vadd.f32 %v2174_v42, %v1005_v31 }
 0x112   :  { %1817 = vst [vmem:[%s2404_s4 + $0x20] sm:$0xff] %v1677_v28   ;;  %1833 = vst [vmem:[%s2404_s4 + $0xa0] sm:$0xff] %v1757_v29   ;;  %v974_v44 = vmul.f32 %v2169_v40, %v555_v38  ;;  %v1006_v45 = vmul.f32 %v2169_v40, %v683_v39  ;;  %v1047_v46 = vadd.f32 %v2174_v42, %v976_v36  ;;  %v1110_v50 = vmax.f32 %v1046_v34, 0.0 }
 0x113   :  { %v1079_v47 = vadd.f32 %v2174_v42, %v1008_v37  ;;  %v1142_v51 = vmax.f32 %v1078_v35, 0.0  ;;  %v1108_v54 = vmax.f32 %v1044_v41, 0.0  ;;  %v1140_v55 = vmax.f32 %v1076_v43, 0.0 }
 0x114   :  { %v1045_v48 = vadd.f32 %v2174_v42, %v974_v44  ;;  %v1077_v49 = vadd.f32 %v2174_v42, %v1006_v45  ;;  %v1111_v52 = vmax.f32 %v1047_v46, 0.0 }
 0x115   :  { %v1143_v53 = vmax.f32 %v1079_v47, 0.0  ;;  %v1919_v58 = vpop.f32.mrb[16].mxu0  ;;  %v1951_v59 = vpop.f32.mrb[16].mxu1 }
 0x116   :  { %v1109_v56 = vmax.f32 %v1045_v48, 0.0  ;;  %v1141_v57 = vmax.f32 %v1077_v49, 0.0  ;;  %v1692_v60 = vpack.c.bf16 %v1111_v52, %v1110_v50  ;;  %v979_v62 = vmul.f32 %v1919_v58, %v2169_v40  ;;  %v568_v0 = vpop.f32.mrb[17].mxu0  ;;  %v696_v1 = vpop.f32.mrb[17].mxu1 }
 0x117   :  { %v1772_v61 = vpack.c.bf16 %v1143_v53, %v1142_v51  ;;  %v1011_v63 = vmul.f32 %v1951_v59, %v2169_v40  ;;  %v977_v4 = vmul.f32 %v2169_v40, %v568_v0  ;;  %v1009_v5 = vmul.f32 %v2169_v40, %v696_v1  ;;  %v1920_v6 = vpop.f32.mrb[18].mxu0  ;;  %v1952_v7 = vpop.f32.mrb[18].mxu1 }
 0x118   :  { %v1687_v2 = vpack.c.bf16 %v1109_v56, %v1108_v54  ;;  %v1767_v3 = vpack.c.bf16 %v1141_v57, %v1140_v55  ;;  %1820 = vst [vmem:[%s2404_s4 + $0x38] sm:$0xff] %v1692_v60   ;;  %v1050_v8 = vadd.f32 %v2174_v42, %v979_v62  ;;  %v980_v10 = vmul.f32 %v1920_v6, %v2169_v40  ;;  %v571_v12 = vpop.f32.mrb[19].mxu0  ;;  %v699_v13 = vpop.f32.mrb[19].mxu1 }
 0x119   :  { %1836 = vst [vmem:[%s2404_s4 + $0xb8] sm:$0xff] %v1772_v61   ;;  %v1082_v9 = vadd.f32 %v2174_v42, %v1011_v63  ;;  %v1012_v11 = vmul.f32 %v1952_v7, %v2169_v40  ;;  %v1048_v14 = vadd.f32 %v2174_v42, %v977_v4  ;;  %v1080_v15 = vadd.f32 %v2174_v42, %v1009_v5 }
 0x11a   :  { %1819 = vst [vmem:[%s2404_s4 + $0x30] sm:$0xff] %v1687_v2   ;;  %1835 = vst [vmem:[%s2404_s4 + $0xb0] sm:$0xff] %v1767_v3   ;;  %v978_v16 = vmul.f32 %v2169_v40, %v571_v12  ;;  %v1010_v17 = vmul.f32 %v2169_v40, %v699_v13  ;;  %v1051_v18 = vadd.f32 %v2174_v42, %v980_v10  ;;  %v1114_v22 = vmax.f32 %v1050_v8, 0.0 }
 0x11b   :  { %v1083_v19 = vadd.f32 %v2174_v42, %v1012_v11  ;;  %v1146_v23 = vmax.f32 %v1082_v9, 0.0  ;;  %v1112_v26 = vmax.f32 %v1048_v14, 0.0  ;;  %v1144_v27 = vmax.f32 %v1080_v15, 0.0 }
 0x11c   :  { %v1049_v20 = vadd.f32 %v2174_v42, %v978_v16  ;;  %v1081_v21 = vadd.f32 %v2174_v42, %v1010_v17  ;;  %v1115_v24 = vmax.f32 %v1051_v18, 0.0 }
 0x11d   :  { %v1147_v25 = vmax.f32 %v1083_v19, 0.0  ;;  %v1923_v30 = vpop.f32.mrb[20].mxu0  ;;  %v1955_v31 = vpop.f32.mrb[20].mxu1 }
 0x11e   :  { %v1113_v28 = vmax.f32 %v1049_v20, 0.0  ;;  %v1145_v29 = vmax.f32 %v1081_v21, 0.0  ;;  %v1702_v32 = vpack.c.bf16 %v1115_v24, %v1114_v22  ;;  %v983_v34 = vmul.f32 %v1923_v30, %v2169_v40  ;;  %v584_v36 = vpop.f32.mrb[21].mxu0  ;;  %v712_v37 = vpop.f32.mrb[21].mxu1 }
 0x11f   :  { %v1782_v33 = vpack.c.bf16 %v1147_v25, %v1146_v23  ;;  %v1015_v35 = vmul.f32 %v1955_v31, %v2169_v40  ;;  %v981_v41 = vmul.f32 %v2169_v40, %v584_v36  ;;  %v1013_v43 = vmul.f32 %v2169_v40, %v712_v37  ;;  %v1924_v44 = vpop.f32.mrb[22].mxu0  ;;  %v1956_v45 = vpop.f32.mrb[22].mxu1 }
 0x120   :  { %v1697_v38 = vpack.c.bf16 %v1113_v28, %v1112_v26  ;;  %v1777_v39 = vpack.c.bf16 %v1145_v29, %v1144_v27  ;;  %1822 = vst [vmem:[%s2404_s4 + $0x48] sm:$0xff] %v1702_v32   ;;  %v1054_v46 = vadd.f32 %v2174_v42, %v983_v34  ;;  %v984_v48 = vmul.f32 %v1924_v44, %v2169_v40  ;;  %v587_v50 = vpop.f32.mrb[23].mxu0  ;;  %v715_v51 = vpop.f32.mrb[23].mxu1 }
 0x121   :  { %1838 = vst [vmem:[%s2404_s4 + $0xc8] sm:$0xff] %v1782_v33   ;;  %v1086_v47 = vadd.f32 %v2174_v42, %v1015_v35  ;;  %v1016_v49 = vmul.f32 %v1956_v45, %v2169_v40  ;;  %v1052_v52 = vadd.f32 %v2174_v42, %v981_v41  ;;  %v1084_v53 = vadd.f32 %v2174_v42, %v1013_v43 }
 0x122   :  { %1821 = vst [vmem:[%s2404_s4 + $0x40] sm:$0xff] %v1697_v38   ;;  %1837 = vst [vmem:[%s2404_s4 + $0xc0] sm:$0xff] %v1777_v39   ;;  %v982_v54 = vmul.f32 %v2169_v40, %v587_v50  ;;  %v1014_v55 = vmul.f32 %v2169_v40, %v715_v51  ;;  %v1055_v56 = vadd.f32 %v2174_v42, %v984_v48  ;;  %v1118_v60 = vmax.f32 %v1054_v46, 0.0 }
 0x123   :  { %v1087_v57 = vadd.f32 %v2174_v42, %v1016_v49  ;;  %v1150_v61 = vmax.f32 %v1086_v47, 0.0  ;;  %v1116_v0 = vmax.f32 %v1052_v52, 0.0  ;;  %v1148_v1 = vmax.f32 %v1084_v53, 0.0 }
 0x124   :  { %v1053_v58 = vadd.f32 %v2174_v42, %v982_v54  ;;  %v1085_v59 = vadd.f32 %v2174_v42, %v1014_v55  ;;  %v1119_v62 = vmax.f32 %v1055_v56, 0.0 }
 0x125   :  { %v1151_v63 = vmax.f32 %v1087_v57, 0.0  ;;  %v1927_v4 = vpop.f32.mrb[24].mxu0  ;;  %v1959_v5 = vpop.f32.mrb[24].mxu1 }
 0x126   :  { %v1117_v2 = vmax.f32 %v1053_v58, 0.0  ;;  %v1149_v3 = vmax.f32 %v1085_v59, 0.0  ;;  %v1712_v6 = vpack.c.bf16 %v1119_v62, %v1118_v60  ;;  %v987_v8 = vmul.f32 %v1927_v4, %v2169_v40  ;;  %v600_v10 = vpop.f32.mrb[25].mxu0  ;;  %v728_v11 = vpop.f32.mrb[25].mxu1 }
 0x127   :  { %v1792_v7 = vpack.c.bf16 %v1151_v63, %v1150_v61  ;;  %v1019_v9 = vmul.f32 %v1959_v5, %v2169_v40  ;;  %v985_v14 = vmul.f32 %v2169_v40, %v600_v10  ;;  %v1017_v15 = vmul.f32 %v2169_v40, %v728_v11  ;;  %v1928_v16 = vpop.f32.mrb[26].mxu0  ;;  %v1960_v17 = vpop.f32.mrb[26].mxu1 }
 0x128   :  { %v1707_v12 = vpack.c.bf16 %v1117_v2, %v1116_v0  ;;  %v1787_v13 = vpack.c.bf16 %v1149_v3, %v1148_v1  ;;  %1824 = vst [vmem:[%s2404_s4 + $0x58] sm:$0xff] %v1712_v6   ;;  %v1058_v18 = vadd.f32 %v2174_v42, %v987_v8  ;;  %v988_v20 = vmul.f32 %v1928_v16, %v2169_v40  ;;  %v603_v22 = vpop.f32.mrb[27].mxu0  ;;  %v731_v23 = vpop.f32.mrb[27].mxu1 }
 0x129   :  { %1840 = vst [vmem:[%s2404_s4 + $0xd8] sm:$0xff] %v1792_v7   ;;  %v1090_v19 = vadd.f32 %v2174_v42, %v1019_v9  ;;  %v1020_v21 = vmul.f32 %v1960_v17, %v2169_v40  ;;  %v1056_v24 = vadd.f32 %v2174_v42, %v985_v14  ;;  %v1088_v25 = vadd.f32 %v2174_v42, %v1017_v15 }
 0x12a   :  { %1823 = vst [vmem:[%s2404_s4 + $0x50] sm:$0xff] %v1707_v12   ;;  %1839 = vst [vmem:[%s2404_s4 + $0xd0] sm:$0xff] %v1787_v13   ;;  %v986_v26 = vmul.f32 %v2169_v40, %v603_v22  ;;  %v1018_v27 = vmul.f32 %v2169_v40, %v731_v23  ;;  %v1059_v28 = vadd.f32 %v2174_v42, %v988_v20  ;;  %v1122_v32 = vmax.f32 %v1058_v18, 0.0 }
 0x12b   :  { %v1091_v29 = vadd.f32 %v2174_v42, %v1020_v21  ;;  %v1154_v33 = vmax.f32 %v1090_v19, 0.0  ;;  %v1120_v36 = vmax.f32 %v1056_v24, 0.0  ;;  %v1152_v37 = vmax.f32 %v1088_v25, 0.0 }
 0x12c   :  { %v1057_v30 = vadd.f32 %v2174_v42, %v986_v26  ;;  %v1089_v31 = vadd.f32 %v2174_v42, %v1018_v27  ;;  %v1123_v34 = vmax.f32 %v1059_v28, 0.0 }
 0x12d   :  { %v1155_v35 = vmax.f32 %v1091_v29, 0.0  ;;  %v1931_v41 = vpop.f32.mrb[28].mxu0  ;;  %v1963_v43 = vpop.f32.mrb[28].mxu1 }
 0x12e   :  { %v1121_v38 = vmax.f32 %v1057_v30, 0.0  ;;  %v1153_v39 = vmax.f32 %v1089_v31, 0.0  ;;  %v1722_v44 = vpack.c.bf16 %v1123_v34, %v1122_v32  ;;  %v991_v46 = vmul.f32 %v1931_v41, %v2169_v40  ;;  %v616_v48 = vpop.f32.mrb[29].mxu0  ;;  %v744_v49 = vpop.f32.mrb[29].mxu1 }
 0x12f   :  { %v1802_v45 = vpack.c.bf16 %v1155_v35, %v1154_v33  ;;  %v1023_v47 = vmul.f32 %v1963_v43, %v2169_v40  ;;  %v989_v52 = vmul.f32 %v2169_v40, %v616_v48  ;;  %v1021_v53 = vmul.f32 %v2169_v40, %v744_v49  ;;  %v1932_v54 = vpop.f32.mrb[30].mxu0  ;;  %v1964_v55 = vpop.f32.mrb[30].mxu1 }
 0x130   :  { %v1717_v50 = vpack.c.bf16 %v1121_v38, %v1120_v36  ;;  %v1797_v51 = vpack.c.bf16 %v1153_v39, %v1152_v37  ;;  %1826 = vst [vmem:[%s2404_s4 + $0x68] sm:$0xff] %v1722_v44   ;;  %v1062_v56 = vadd.f32 %v2174_v42, %v991_v46  ;;  %v992_v58 = vmul.f32 %v1932_v54, %v2169_v40  ;;  %v619_v60 = vpop.f32.mrb[31].mxu0  ;;  %v747_v61 = vpop.f32.mrb[31].mxu1 }
 0x131   :  { %1842 = vst [vmem:[%s2404_s4 + $0xe8] sm:$0xff] %v1802_v45   ;;  %v1094_v57 = vadd.f32 %v2174_v42, %v1023_v47  ;;  %v1024_v59 = vmul.f32 %v1964_v55, %v2169_v40  ;;  %v1060_v62 = vadd.f32 %v2174_v42, %v989_v52  ;;  %v1092_v63 = vadd.f32 %v2174_v42, %v1021_v53 }
 0x132   :  { %1825 = vst [vmem:[%s2404_s4 + $0x60] sm:$0xff] %v1717_v50   ;;  %1841 = vst [vmem:[%s2404_s4 + $0xe0] sm:$0xff] %v1797_v51   ;;  %v990_v0 = vmul.f32 %v2169_v40, %v619_v60  ;;  %v1022_v1 = vmul.f32 %v2169_v40, %v747_v61  ;;  %v1063_v2 = vadd.f32 %v2174_v42, %v992_v58  ;;  %v1126_v6 = vmax.f32 %v1062_v56, 0.0 }
 0x133   :  { %v1095_v3 = vadd.f32 %v2174_v42, %v1024_v59  ;;  %v1158_v7 = vmax.f32 %v1094_v57, 0.0  ;;  %v1124_v10 = vmax.f32 %v1060_v62, 0.0  ;;  %v1156_v11 = vmax.f32 %v1092_v63, 0.0 }
 0x134   :  { %v1061_v4 = vadd.f32 %v2174_v42, %v990_v0  ;;  %v1093_v5 = vadd.f32 %v2174_v42, %v1022_v1  ;;  %v1127_v8 = vmax.f32 %v1063_v2, 0.0 }
 0x135   :  { %v1159_v9 = vmax.f32 %v1095_v3, 0.0 }
 0x136   :  { %v1125_v12 = vmax.f32 %v1061_v4, 0.0  ;;  %v1157_v13 = vmax.f32 %v1093_v5, 0.0  ;;  %v1732_v14 = vpack.c.bf16 %v1127_v8, %v1126_v6 }
 0x137   :  { %v1812_v15 = vpack.c.bf16 %v1159_v9, %v1158_v7 }
 0x138   :  { %v1727_v16 = vpack.c.bf16 %v1125_v12, %v1124_v10  ;;  %v1807_v40 = vpack.c.bf16 %v1157_v13, %v1156_v11  ;;  %1828 = vst [vmem:[%s2404_s4 + $0x78] sm:$0xff] %v1732_v14  }
 0x139   :  { %1844 = vst [vmem:[%s2404_s4 + $0xf8] sm:$0xff] %v1812_v15  }
 0x13a   :  { %1827 = vst [vmem:[%s2404_s4 + $0x70] sm:$0xff] %v1727_v16   ;;  %1843 = vst [vmem:[%s2404_s4 + $0xf0] sm:$0xff] %v1807_v40  }

// kernel: _lambda_.22
= control target key start
LH: loop header
LB: loop body
LE: loop exit
PB: predicated region body
PF: predicated region fallthrough
CT: control target
= control target key end

     0   :  { %v2222_v0 = vmov 0   ;;  %s2754_s1 = inlined_call_operand.vmem [shape: bf16[256,128], index: 1, kind: input, shape index: {}]   ;;  %s2755_s0 = inlined_call_operand.vmem [shape: bf16[512,256], index: 0, kind: input, shape index: {}]   ;;  %s2756_s2 = inlined_call_operand.vmem [shape: f32[1,128], index: 2, kind: input, shape index: {}]   ;;  %s2757_s3 = inlined_call_operand.vmem [shape: f32[1,128], index: 3, kind: input, shape index: {}]   ;;  %s2758_s4 = inlined_call_operand.vmem [shape: bf16[512,128], index: 4, kind: output, shape index: {}]  }
   0x1   :  { %662 = vmatprep.subr.bf16.mxu0 %v2222_v0  ;;  %2077 = vmatprep.subr.bf16.mxu1 %v2222_v0  ;;  %v2110_v1 = vld [vmem:[%s2754_s1] sm:$0xff]   ;;  %v2111_v2 = vld [vmem:[%s2754_s1 + $0x8] sm:$0xff]   ;;  %v2112_v3 = vld [vmem:[%s2754_s1 + $0x10] sm:$0xff]  }
   0x2   :  { %663 = vmatpush1.bf16.msra.mxu0 %v2110_v1  ;;  %2093 = vmatpush1.bf16.msra.mxu1 %v2110_v1  ;;  %v2113_v4 = vld [vmem:[%s2754_s1 + $0x18] sm:$0xff]   ;;  %v2114_v5 = vld [vmem:[%s2754_s1 + $0x20] sm:$0xff]   ;;  %v2115_v7 = vld [vmem:[%s2754_s1 + $0x28] sm:$0xff]  }
   0x3   :  { %664 = vmatprep.subr.bf16.mxu0 %v2222_v0  ;;  %2078 = vmatprep.subr.bf16.mxu1 %v2222_v0  ;;  %v2128_v6 = vld [vmem:[%s2755_s0 + $0x4] ss:$8 sps:$4 sm:$0xff]   ;;  %v2116_v9 = vld [vmem:[%s2754_s1 + $0x30] sm:$0xff]   ;;  %v2117_v10 = vld [vmem:[%s2754_s1 + $0x38] sm:$0xff]  }
   0x4   :  { %v2131_v8 = vld [vmem:[%s2755_s0 + $0x104] ss:$8 sps:$4 sm:$0xff]   ;;  %694 = vmatprep.mubr.bf16.mxu0 %v2128_v6  ;;  %v2120_v13 = vld [vmem:[%s2754_s1 + $0x50] sm:$0xff]   ;;  %v2121_v14 = vld [vmem:[%s2754_s1 + $0x58] sm:$0xff]  }
   0x5   :  { %822 = vmatprep.mubr.bf16.mxu1 %v2131_v8  ;;  %v2118_v11 = vld [vmem:[%s2754_s1 + $0x40] sm:$0xff]   ;;  %v2119_v12 = vld [vmem:[%s2754_s1 + $0x48] sm:$0xff]   ;;  %v2124_v17 = vld [vmem:[%s2754_s1 + $0x70] sm:$0xff]  }
   0x6   :  { %665 = vmatpush1.bf16.msra.mxu0 %v2111_v2  ;;  %2094 = vmatpush1.bf16.msra.mxu1 %v2111_v2  ;;  %v2122_v15 = vld [vmem:[%s2754_s1 + $0x60] sm:$0xff]   ;;  %v2123_v16 = vld [vmem:[%s2754_s1 + $0x68] sm:$0xff]   ;;  %v2125_v18 = vld [vmem:[%s2754_s1 + $0x78] sm:$0xff]  }
   0x7   :  { %666 = vmatprep.subr.bf16.mxu0 %v2222_v0  ;;  %2079 = vmatprep.subr.bf16.mxu1 %v2222_v0  ;;  %v2126_v19 = vld [vmem:[%s2755_s0] ss:$8 sps:$4 sm:$0xff]   ;;  %v2132_v21 = vld [vmem:[%s2755_s0 + $0x14] ss:$8 sps:$4 sm:$0xff]   ;;  %v2136_v23 = vld [vmem:[%s2755_s0 + $0x10] ss:$8 sps:$4 sm:$0xff]  }
   0x8   :  { %v2129_v20 = vld [vmem:[%s2755_s0 + $0x100] ss:$8 sps:$4 sm:$0xff]   ;;  %v2134_v22 = vld [vmem:[%s2755_s0 + $0x114] ss:$8 sps:$4 sm:$0xff]   ;;  %v2137_v24 = vld [vmem:[%s2755_s0 + $0x110] ss:$8 sps:$4 sm:$0xff]  }
   0x9   :  { %v2138_v25 = vld [vmem:[%s2755_s0 + $0x24] ss:$8 sps:$4 sm:$0xff]   ;;  %v2142_v27 = vld [vmem:[%s2755_s0 + $0x20] ss:$8 sps:$4 sm:$0xff]   ;;  %v2144_v29 = vld [vmem:[%s2755_s0 + $0x34] ss:$8 sps:$4 sm:$0xff]  }
   0xa   :  { %667 = vmatpush1.bf16.msra.mxu0 %v2112_v3  ;;  %2095 = vmatpush1.bf16.msra.mxu1 %v2112_v3  ;;  %v2140_v26 = vld [vmem:[%s2755_s0 + $0x124] ss:$8 sps:$4 sm:$0xff]   ;;  %v2143_v28 = vld [vmem:[%s2755_s0 + $0x120] ss:$8 sps:$4 sm:$0xff]   ;;  %v2146_v30 = vld [vmem:[%s2755_s0 + $0x134] ss:$8 sps:$4 sm:$0xff]  }
   0xb   :  { %668 = vmatprep.subr.bf16.mxu0 %v2222_v0  ;;  %2080 = vmatprep.subr.bf16.mxu1 %v2222_v0  ;;  %v2148_v31 = vld [vmem:[%s2755_s0 + $0x30] ss:$8 sps:$4 sm:$0xff]   ;;  %v2150_v33 = vld [vmem:[%s2755_s0 + $0x44] ss:$8 sps:$4 sm:$0xff]   ;;  %v2154_v35 = vld [vmem:[%s2755_s0 + $0x40] ss:$8 sps:$4 sm:$0xff]  }
   0xc   :  { %v2149_v32 = vld [vmem:[%s2755_s0 + $0x130] ss:$8 sps:$4 sm:$0xff]   ;;  %v2152_v34 = vld [vmem:[%s2755_s0 + $0x144] ss:$8 sps:$4 sm:$0xff]   ;;  %v2155_v36 = vld [vmem:[%s2755_s0 + $0x140] ss:$8 sps:$4 sm:$0xff]  }
   0xd   :  { %v2156_v37 = vld [vmem:[%s2755_s0 + $0x54] ss:$8 sps:$4 sm:$0xff]   ;;  %v2160_v39 = vld [vmem:[%s2755_s0 + $0x50] ss:$8 sps:$4 sm:$0xff]   ;;  %v2162_v41 = vld [vmem:[%s2755_s0 + $0x64] ss:$8 sps:$4 sm:$0xff]  }
   0xe   :  { %669 = vmatpush1.bf16.msra.mxu0 %v2113_v4  ;;  %2096 = vmatpush1.bf16.msra.mxu1 %v2113_v4  ;;  %v2158_v38 = vld [vmem:[%s2755_s0 + $0x154] ss:$8 sps:$4 sm:$0xff]   ;;  %v2161_v40 = vld [vmem:[%s2755_s0 + $0x150] ss:$8 sps:$4 sm:$0xff]   ;;  %v2164_v42 = vld [vmem:[%s2755_s0 + $0x164] ss:$8 sps:$4 sm:$0xff]  }
   0xf   :  { %670 = vmatprep.subr.bf16.mxu0 %v2222_v0  ;;  %2081 = vmatprep.subr.bf16.mxu1 %v2222_v0  ;;  %v2166_v43 = vld [vmem:[%s2755_s0 + $0x60] ss:$8 sps:$4 sm:$0xff]   ;;  %v2168_v45 = vld [vmem:[%s2755_s0 + $0x74] ss:$8 sps:$4 sm:$0xff]   ;;  %v2172_v47 = vld [vmem:[%s2755_s0 + $0x70] ss:$8 sps:$4 sm:$0xff]  }
  0x10   :  { %v2167_v44 = vld [vmem:[%s2755_s0 + $0x160] ss:$8 sps:$4 sm:$0xff]   ;;  %v2170_v46 = vld [vmem:[%s2755_s0 + $0x174] ss:$8 sps:$4 sm:$0xff]   ;;  %v2173_v48 = vld [vmem:[%s2755_s0 + $0x170] ss:$8 sps:$4 sm:$0xff]  }
  0x11   :  { %v2174_v49 = vld [vmem:[%s2755_s0 + $0x84] ss:$8 sps:$4 sm:$0xff]   ;;  %v2178_v51 = vld [vmem:[%s2755_s0 + $0x80] ss:$8 sps:$4 sm:$0xff]   ;;  %v2180_v53 = vld [vmem:[%s2755_s0 + $0x94] ss:$8 sps:$4 sm:$0xff]  }
  0x12   :  { %671 = vmatpush1.bf16.msra.mxu0 %v2114_v5  ;;  %2097 = vmatpush1.bf16.msra.mxu1 %v2114_v5  ;;  %v2176_v50 = vld [vmem:[%s2755_s0 + $0x184] ss:$8 sps:$4 sm:$0xff]   ;;  %v2179_v52 = vld [vmem:[%s2755_s0 + $0x180] ss:$8 sps:$4 sm:$0xff]   ;;  %v2182_v54 = vld [vmem:[%s2755_s0 + $0x194] ss:$8 sps:$4 sm:$0xff]  }
  0x13   :  { %672 = vmatprep.subr.bf16.mxu0 %v2222_v0  ;;  %2082 = vmatprep.subr.bf16.mxu1 %v2222_v0  ;;  %v2184_v55 = vld [vmem:[%s2755_s0 + $0x90] ss:$8 sps:$4 sm:$0xff]   ;;  %v2186_v57 = vld [vmem:[%s2755_s0 + $0xa4] ss:$8 sps:$4 sm:$0xff]   ;;  %v2190_v59 = vld [vmem:[%s2755_s0 + $0xa0] ss:$8 sps:$4 sm:$0xff]  }
  0x14   :  { %v2185_v56 = vld [vmem:[%s2755_s0 + $0x190] ss:$8 sps:$4 sm:$0xff]   ;;  %v2188_v58 = vld [vmem:[%s2755_s0 + $0x1a4] ss:$8 sps:$4 sm:$0xff]   ;;  %v2191_v60 = vld [vmem:[%s2755_s0 + $0x1a0] ss:$8 sps:$4 sm:$0xff]  }
  0x15   :  { %v2192_v61 = vld [vmem:[%s2755_s0 + $0xb4] ss:$8 sps:$4 sm:$0xff]   ;;  %v2196_v63 = vld [vmem:[%s2755_s0 + $0xb0] ss:$8 sps:$4 sm:$0xff]   ;;  %v2198_v1 = vld [vmem:[%s2755_s0 + $0xc4] ss:$8 sps:$4 sm:$0xff]  }
  0x16   :  { %673 = vmatpush1.bf16.msra.mxu0 %v2115_v7  ;;  %2098 = vmatpush1.bf16.msra.mxu1 %v2115_v7  ;;  %v2194_v62 = vld [vmem:[%s2755_s0 + $0x1b4] ss:$8 sps:$4 sm:$0xff]   ;;  %v2200_v2 = vld [vmem:[%s2755_s0 + $0x1c4] ss:$8 sps:$4 sm:$0xff]   ;;  %v2202_v3 = vld [vmem:[%s2755_s0 + $0xc0] ss:$8 sps:$4 sm:$0xff]  }
  0x17   :  { %674 = vmatprep.subr.bf16.mxu0 %v2222_v0  ;;  %2083 = vmatprep.subr.bf16.mxu1 %v2222_v0  ;;  %v2203_v4 = vld [vmem:[%s2755_s0 + $0x1c0] ss:$8 sps:$4 sm:$0xff]   ;;  %v2204_v5 = vld [vmem:[%s2755_s0 + $0xd4] ss:$8 sps:$4 sm:$0xff]   ;;  %v2208_v7 = vld [vmem:[%s2755_s0 + $0xd0] ss:$8 sps:$4 sm:$0xff]  }
  0x18   :  { %v2206_v6 = vld [vmem:[%s2755_s0 + $0x1d4] ss:$8 sps:$4 sm:$0xff]   ;;  %v2209_v8 = vld [vmem:[%s2755_s0 + $0x1d0] ss:$8 sps:$4 sm:$0xff]  }
  0x1a   :  { %675 = vmatpush1.bf16.msra.mxu0 %v2116_v9  ;;  %2099 = vmatpush1.bf16.msra.mxu1 %v2116_v9  ;;  %v2210_v9 = vld [vmem:[%s2755_s0 + $0xe4] ss:$8 sps:$4 sm:$0xff]  }
  0x1b   :  { %676 = vmatprep.subr.bf16.mxu0 %v2222_v0  ;;  %2084 = vmatprep.subr.bf16.mxu1 %v2222_v0 }
  0x1e   :  { %677 = vmatpush1.bf16.msra.mxu0 %v2117_v10  ;;  %2100 = vmatpush1.bf16.msra.mxu1 %v2117_v10  ;;  %v2212_v10 = vld [vmem:[%s2755_s0 + $0x1e4] ss:$8 sps:$4 sm:$0xff]  }
  0x1f   :  { %678 = vmatprep.subr.bf16.mxu0 %v2222_v0  ;;  %2085 = vmatprep.subr.bf16.mxu1 %v2222_v0 }
  0x22   :  { %679 = vmatpush1.bf16.msra.mxu0 %v2118_v11  ;;  %2101 = vmatpush1.bf16.msra.mxu1 %v2118_v11  ;;  %v2214_v11 = vld [vmem:[%s2755_s0 + $0xe0] ss:$8 sps:$4 sm:$0xff]  }
  0x23   :  { %680 = vmatprep.subr.bf16.mxu0 %v2222_v0  ;;  %2086 = vmatprep.subr.bf16.mxu1 %v2222_v0 }
  0x26   :  { %681 = vmatpush1.bf16.msra.mxu0 %v2119_v12  ;;  %2102 = vmatpush1.bf16.msra.mxu1 %v2119_v12  ;;  %v2215_v12 = vld [vmem:[%s2755_s0 + $0x1e0] ss:$8 sps:$4 sm:$0xff]  }
  0x27   :  { %682 = vmatprep.subr.bf16.mxu0 %v2222_v0  ;;  %2087 = vmatprep.subr.bf16.mxu1 %v2222_v0 }
  0x2a   :  { %683 = vmatpush1.bf16.msra.mxu0 %v2120_v13  ;;  %2103 = vmatpush1.bf16.msra.mxu1 %v2120_v13  ;;  %v2216_v13 = vld [vmem:[%s2755_s0 + $0xf4] ss:$8 sps:$4 sm:$0xff]  }
  0x2b   :  { %684 = vmatprep.subr.bf16.mxu0 %v2222_v0  ;;  %2088 = vmatprep.subr.bf16.mxu1 %v2222_v0 }
  0x2e   :  { %685 = vmatpush1.bf16.msra.mxu0 %v2121_v14  ;;  %2104 = vmatpush1.bf16.msra.mxu1 %v2121_v14  ;;  %v2218_v14 = vld [vmem:[%s2755_s0 + $0x1f4] ss:$8 sps:$4 sm:$0xff]  }
  0x2f   :  { %686 = vmatprep.subr.bf16.mxu0 %v2222_v0  ;;  %2089 = vmatprep.subr.bf16.mxu1 %v2222_v0 }
  0x32   :  { %687 = vmatpush1.bf16.msra.mxu0 %v2122_v15  ;;  %2105 = vmatpush1.bf16.msra.mxu1 %v2122_v15  ;;  %v2220_v15 = vld [vmem:[%s2755_s0 + $0xf0] ss:$8 sps:$4 sm:$0xff]  }
  0x33   :  { %688 = vmatprep.subr.bf16.mxu0 %v2222_v0  ;;  %2090 = vmatprep.subr.bf16.mxu1 %v2222_v0 }
  0x36   :  { %689 = vmatpush1.bf16.msra.mxu0 %v2123_v16  ;;  %2106 = vmatpush1.bf16.msra.mxu1 %v2123_v16  ;;  %v2221_v16 = vld [vmem:[%s2755_s0 + $0x1f0] ss:$8 sps:$4 sm:$0xff]  }
  0x37   :  { %690 = vmatprep.subr.bf16.mxu0 %v2222_v0  ;;  %2091 = vmatprep.subr.bf16.mxu1 %v2222_v0 }
  0x3a   :  { %691 = vmatpush1.bf16.msra.mxu0 %v2124_v17  ;;  %2107 = vmatpush1.bf16.msra.mxu1 %v2124_v17  ;;  %v2523_v17 = vld [vmem:[%s2756_s2] ss:$0 sm:$0xff] }
  0x3b   :  { %692 = vmatprep.subr.bf16.mxu0 %v2222_v0  ;;  %2092 = vmatprep.subr.bf16.mxu1 %v2222_v0  ;;  %v2197_v0 = vld [vmem:[%s2755_s0 + $0x1b0] ss:$8 sps:$4 sm:$0xff]  }
  0x3e   :  { %693 = vmatpush1.bf16.msra.mxu0 %v2125_v18  ;;  %2108 = vmatpush1.bf16.msra.mxu1 %v2125_v18 }
  0x41   :  { %695 = vmatmul.mubr.bf16.vlgmr.msra.gmra.mrb[0].mxu0 %v2126_v19  ;;  %823 = vmatmul.mubr.bf16.vlgmr.msra.gmra.mrb[0].mxu1 %v2129_v20  ;;  %v2528_v19 = vld [vmem:[%s2757_s3] ss:$0 sm:$0xff] }
  0x42   :  { %702 = vmatprep.mubr.bf16.mxu0 %v2132_v21  ;;  %830 = vmatprep.mubr.bf16.mxu1 %v2134_v22 }
  0x49   :  { %703 = vmatmul.mubr.bf16.gmra.mrb[4].mxu0 %v2136_v23  ;;  %831 = vmatmul.mubr.bf16.gmra.mrb[4].mxu1 %v2137_v24 }
  0x4a   :  { %710 = vmatprep.mubr.bf16.mxu0 %v2138_v25  ;;  %838 = vmatprep.mubr.bf16.mxu1 %v2140_v26 }
  0x51   :  { %711 = vmatmul.mubr.bf16.gmra.mrb[8].mxu0 %v2142_v27  ;;  %839 = vmatmul.mubr.bf16.gmra.mrb[8].mxu1 %v2143_v28 }
  0x52   :  { %718 = vmatprep.mubr.bf16.mxu0 %v2144_v29  ;;  %846 = vmatprep.mubr.bf16.mxu1 %v2146_v30 }
  0x59   :  { %719 = vmatmul.mubr.bf16.gmra.mrb[12].mxu0 %v2148_v31  ;;  %847 = vmatmul.mubr.bf16.gmra.mrb[12].mxu1 %v2149_v32 }
  0x5a   :  { %726 = vmatprep.mubr.bf16.mxu0 %v2150_v33  ;;  %854 = vmatprep.mubr.bf16.mxu1 %v2152_v34 }
  0x61   :  { %727 = vmatmul.mubr.bf16.gmra.mrb[16].mxu0 %v2154_v35  ;;  %855 = vmatmul.mubr.bf16.gmra.mrb[16].mxu1 %v2155_v36 }
  0x62   :  { %734 = vmatprep.mubr.bf16.mxu0 %v2156_v37  ;;  %862 = vmatprep.mubr.bf16.mxu1 %v2158_v38 }
  0x69   :  { %735 = vmatmul.mubr.bf16.gmra.mrb[20].mxu0 %v2160_v39  ;;  %863 = vmatmul.mubr.bf16.gmra.mrb[20].mxu1 %v2161_v40 }
  0x6a   :  { %742 = vmatprep.mubr.bf16.mxu0 %v2162_v41  ;;  %870 = vmatprep.mubr.bf16.mxu1 %v2164_v42 }
  0x71   :  { %743 = vmatmul.mubr.bf16.gmra.mrb[24].mxu0 %v2166_v43  ;;  %871 = vmatmul.mubr.bf16.gmra.mrb[24].mxu1 %v2167_v44 }
  0x72   :  { %750 = vmatprep.mubr.bf16.mxu0 %v2168_v45  ;;  %878 = vmatprep.mubr.bf16.mxu1 %v2170_v46 }
  0x79   :  { %751 = vmatmul.mubr.bf16.gmra.mrb[28].mxu0 %v2172_v47  ;;  %879 = vmatmul.mubr.bf16.gmra.mrb[28].mxu1 %v2173_v48 }
  0x7a   :  { %758 = vmatprep.mubr.bf16.mxu0 %v2174_v49  ;;  %886 = vmatprep.mubr.bf16.mxu1 %v2176_v50 }
  0x81   :  { %759 = vmatmul.mubr.bf16.gmra.mrb[32].mxu0 %v2178_v51  ;;  %887 = vmatmul.mubr.bf16.gmra.mrb[32].mxu1 %v2179_v52 }
  0x82   :  { %766 = vmatprep.mubr.bf16.mxu0 %v2180_v53  ;;  %894 = vmatprep.mubr.bf16.mxu1 %v2182_v54 }
  0x89   :  { %767 = vmatmul.mubr.bf16.gmra.mrb[36].mxu0 %v2184_v55  ;;  %895 = vmatmul.mubr.bf16.gmra.mrb[36].mxu1 %v2185_v56 }
  0x8a   :  { %774 = vmatprep.mubr.bf16.mxu0 %v2186_v57  ;;  %902 = vmatprep.mubr.bf16.mxu1 %v2188_v58 }
  0x91   :  { %775 = vmatmul.mubr.bf16.gmra.mrb[40].mxu0 %v2190_v59  ;;  %903 = vmatmul.mubr.bf16.gmra.mrb[40].mxu1 %v2191_v60 }
  0x92   :  { %782 = vmatprep.mubr.bf16.mxu0 %v2192_v61  ;;  %910 = vmatprep.mubr.bf16.mxu1 %v2194_v62 }
  0x99   :  { %783 = vmatmul.mubr.bf16.gmra.mrb[44].mxu0 %v2196_v63  ;;  %911 = vmatmul.mubr.bf16.gmra.mrb[44].mxu1 %v2197_v0 }
  0x9a   :  { %790 = vmatprep.mubr.bf16.mxu0 %v2198_v1  ;;  %918 = vmatprep.mubr.bf16.mxu1 %v2200_v2 }
  0xa1   :  { %791 = vmatmul.mubr.bf16.gmra.mrb[48].mxu0 %v2202_v3  ;;  %919 = vmatmul.mubr.bf16.gmra.mrb[48].mxu1 %v2203_v4 }
  0xa2   :  { %798 = vmatprep.mubr.bf16.mxu0 %v2204_v5  ;;  %926 = vmatprep.mubr.bf16.mxu1 %v2206_v6 }
  0xa9   :  { %799 = vmatmul.mubr.bf16.gmra.mrb[52].mxu0 %v2208_v7  ;;  %927 = vmatmul.mubr.bf16.gmra.mrb[52].mxu1 %v2209_v8 }
  0xaa   :  { %806 = vmatprep.mubr.bf16.mxu0 %v2210_v9  ;;  %934 = vmatprep.mubr.bf16.mxu1 %v2212_v10 }
  0xb1   :  { %807 = vmatmul.mubr.bf16.gmra.mrb[56].mxu0 %v2214_v11  ;;  %935 = vmatmul.mubr.bf16.gmra.mrb[56].mxu1 %v2215_v12 }
  0xb2   :  { %814 = vmatprep.mubr.bf16.mxu0 %v2216_v13  ;;  %942 = vmatprep.mubr.bf16.mxu1 %v2218_v14 }
  0xb9   :  { %815 = vmatmul.mubr.bf16.gmra.mrb[60].mxu0 %v2220_v15  ;;  %943 = vmatmul.mubr.bf16.gmra.mrb[60].mxu1 %v2221_v16 }
 0x114   :  { %v696_v18 = vpop.f32.mrb[0].mxu0  ;;  %v824_v20 = vpop.f32.mrb[0].mxu1 }
 0x115   :  { %v1153_v21 = vmul.f32 %v2523_v17, %v696_v18  ;;  %v1185_v22 = vmul.f32 %v2523_v17, %v824_v20  ;;  %v698_v23 = vpop.f32.mrb[1].mxu0  ;;  %v826_v24 = vpop.f32.mrb[1].mxu1 }
 0x116   :  { %v699_v25 = vpop.f32.mrb[2].mxu0  ;;  %v827_v26 = vpop.f32.mrb[2].mxu1 }
 0x117   :  { %v1224_v27 = vadd.f32 %v2528_v19, %v1153_v21  ;;  %v1256_v28 = vadd.f32 %v2528_v19, %v1185_v22  ;;  %v1154_v29 = vmul.f32 %v2523_v17, %v699_v25  ;;  %v1186_v30 = vmul.f32 %v2523_v17, %v827_v26  ;;  %v701_v31 = vpop.f32.mrb[3].mxu0  ;;  %v829_v32 = vpop.f32.mrb[3].mxu1 }
 0x119   :  { %v1225_v33 = vadd.f32 %v2528_v19, %v1154_v29  ;;  %v1257_v34 = vadd.f32 %v2528_v19, %v1186_v30  ;;  %v1288_v35 = vmax.f32 %v1224_v27, 0.0  ;;  %v1320_v36 = vmax.f32 %v1256_v28, 0.0 }
 0x11b   :  { %v1289_v37 = vmax.f32 %v1225_v33, 0.0  ;;  %v1321_v38 = vmax.f32 %v1257_v34, 0.0 }
 0x11c   :  { %v704_v39 = vpop.f32.mrb[4].mxu0  ;;  %v832_v40 = vpop.f32.mrb[4].mxu1 }
 0x11d   :  { %v1889_v41 = vpack.c.bf16 %v1289_v37, %v1288_v35  ;;  %v1969_v42 = vpack.c.bf16 %v1321_v38, %v1320_v36  ;;  %v1155_v43 = vmul.f32 %v2523_v17, %v704_v39  ;;  %v1187_v44 = vmul.f32 %v2523_v17, %v832_v40  ;;  %v706_v45 = vpop.f32.mrb[5].mxu0  ;;  %v834_v46 = vpop.f32.mrb[5].mxu1 }
 0x11e   :  { %v707_v47 = vpop.f32.mrb[6].mxu0  ;;  %v835_v48 = vpop.f32.mrb[6].mxu1 }
 0x11f   :  { %1890 = vst [vmem:[%s2758_s4] sm:$0xff] %v1889_v41   ;;  %2061 = vst [vmem:[%s2758_s4 + $0x80] sm:$0xff] %v1969_v42   ;;  %v1226_v49 = vadd.f32 %v2528_v19, %v1155_v43  ;;  %v1258_v50 = vadd.f32 %v2528_v19, %v1187_v44  ;;  %v1156_v51 = vmul.f32 %v2523_v17, %v707_v47  ;;  %v709_v53 = vpop.f32.mrb[7].mxu0  ;;  %v837_v54 = vpop.f32.mrb[7].mxu1 }
 0x120   :  { %v1188_v52 = vmul.f32 %v2523_v17, %v835_v48 }
 0x121   :  { %v1227_v55 = vadd.f32 %v2528_v19, %v1156_v51  ;;  %v1290_v57 = vmax.f32 %v1226_v49, 0.0  ;;  %v1322_v58 = vmax.f32 %v1258_v50, 0.0 }
 0x122   :  { %v1259_v56 = vadd.f32 %v2528_v19, %v1188_v52 }
 0x123   :  { %v1291_v59 = vmax.f32 %v1227_v55, 0.0 }
 0x124   :  { %v1323_v60 = vmax.f32 %v1259_v56, 0.0  ;;  %v712_v61 = vpop.f32.mrb[8].mxu0  ;;  %v840_v62 = vpop.f32.mrb[8].mxu1 }
 0x125   :  { %v1894_v63 = vpack.c.bf16 %v1291_v59, %v1290_v57  ;;  %v1157_v1 = vmul.f32 %v2523_v17, %v712_v61  ;;  %v1189_v2 = vmul.f32 %v2523_v17, %v840_v62  ;;  %v714_v3 = vpop.f32.mrb[9].mxu0  ;;  %v842_v4 = vpop.f32.mrb[9].mxu1 }
 0x126   :  { %v1974_v0 = vpack.c.bf16 %v1323_v60, %v1322_v58  ;;  %v715_v5 = vpop.f32.mrb[10].mxu0  ;;  %v843_v6 = vpop.f32.mrb[10].mxu1 }
 0x127   :  { %2046 = vst [vmem:[%s2758_s4 + $0x8] sm:$0xff] %v1894_v63   ;;  %v1228_v7 = vadd.f32 %v2528_v19, %v1157_v1  ;;  %v1260_v8 = vadd.f32 %v2528_v19, %v1189_v2  ;;  %v1158_v9 = vmul.f32 %v2523_v17, %v715_v5  ;;  %v1190_v10 = vmul.f32 %v2523_v17, %v843_v6  ;;  %v717_v11 = vpop.f32.mrb[11].mxu0  ;;  %v845_v12 = vpop.f32.mrb[11].mxu1 }
 0x128   :  { %2062 = vst [vmem:[%s2758_s4 + $0x88] sm:$0xff] %v1974_v0  }
 0x129   :  { %v1229_v13 = vadd.f32 %v2528_v19, %v1158_v9  ;;  %v1261_v14 = vadd.f32 %v2528_v19, %v1190_v10  ;;  %v1292_v15 = vmax.f32 %v1228_v7, 0.0  ;;  %v1324_v16 = vmax.f32 %v1260_v8, 0.0 }
 0x12b   :  { %v1293_v18 = vmax.f32 %v1229_v13, 0.0  ;;  %v1325_v20 = vmax.f32 %v1261_v14, 0.0 }
 0x12c   :  { %v720_v21 = vpop.f32.mrb[12].mxu0  ;;  %v848_v22 = vpop.f32.mrb[12].mxu1 }
 0x12d   :  { %v1899_v23 = vpack.c.bf16 %v1293_v18, %v1292_v15  ;;  %v1979_v24 = vpack.c.bf16 %v1325_v20, %v1324_v16  ;;  %v1159_v25 = vmul.f32 %v2523_v17, %v720_v21  ;;  %v1191_v26 = vmul.f32 %v2523_v17, %v848_v22  ;;  %v722_v27 = vpop.f32.mrb[13].mxu0  ;;  %v850_v28 = vpop.f32.mrb[13].mxu1 }
 0x12e   :  { %v723_v29 = vpop.f32.mrb[14].mxu0  ;;  %v851_v30 = vpop.f32.mrb[14].mxu1 }
 0x12f   :  { %2047 = vst [vmem:[%s2758_s4 + $0x10] sm:$0xff] %v1899_v23   ;;  %2063 = vst [vmem:[%s2758_s4 + $0x90] sm:$0xff] %v1979_v24   ;;  %v1230_v31 = vadd.f32 %v2528_v19, %v1159_v25  ;;  %v1262_v32 = vadd.f32 %v2528_v19, %v1191_v26  ;;  %v1160_v33 = vmul.f32 %v2523_v17, %v723_v29  ;;  %v725_v35 = vpop.f32.mrb[15].mxu0  ;;  %v853_v36 = vpop.f32.mrb[15].mxu1 }
 0x130   :  { %v1192_v34 = vmul.f32 %v2523_v17, %v851_v30 }
 0x131   :  { %v1231_v37 = vadd.f32 %v2528_v19, %v1160_v33  ;;  %v1294_v39 = vmax.f32 %v1230_v31, 0.0  ;;  %v1326_v40 = vmax.f32 %v1262_v32, 0.0 }
 0x132   :  { %v1263_v38 = vadd.f32 %v2528_v19, %v1192_v34 }
 0x133   :  { %v1295_v41 = vmax.f32 %v1231_v37, 0.0 }
 0x134   :  { %v1327_v42 = vmax.f32 %v1263_v38, 0.0  ;;  %v728_v43 = vpop.f32.mrb[16].mxu0  ;;  %v856_v44 = vpop.f32.mrb[16].mxu1 }
 0x135   :  { %v1904_v45 = vpack.c.bf16 %v1295_v41, %v1294_v39  ;;  %v1161_v47 = vmul.f32 %v2523_v17, %v728_v43  ;;  %v1193_v48 = vmul.f32 %v2523_v17, %v856_v44  ;;  %v730_v49 = vpop.f32.mrb[17].mxu0  ;;  %v858_v50 = vpop.f32.mrb[17].mxu1 }
 0x136   :  { %v1984_v46 = vpack.c.bf16 %v1327_v42, %v1326_v40  ;;  %v731_v51 = vpop.f32.mrb[18].mxu0  ;;  %v859_v52 = vpop.f32.mrb[18].mxu1 }
 0x137   :  { %2048 = vst [vmem:[%s2758_s4 + $0x18] sm:$0xff] %v1904_v45   ;;  %v1232_v53 = vadd.f32 %v2528_v19, %v1161_v47  ;;  %v1264_v54 = vadd.f32 %v2528_v19, %v1193_v48  ;;  %v1162_v55 = vmul.f32 %v2523_v17, %v731_v51  ;;  %v1194_v56 = vmul.f32 %v2523_v17, %v859_v52  ;;  %v733_v57 = vpop.f32.mrb[19].mxu0  ;;  %v861_v58 = vpop.f32.mrb[19].mxu1 }
 0x138   :  { %2064 = vst [vmem:[%s2758_s4 + $0x98] sm:$0xff] %v1984_v46  }
 0x139   :  { %v1233_v59 = vadd.f32 %v2528_v19, %v1162_v55  ;;  %v1265_v60 = vadd.f32 %v2528_v19, %v1194_v56  ;;  %v1296_v61 = vmax.f32 %v1232_v53, 0.0  ;;  %v1328_v62 = vmax.f32 %v1264_v54, 0.0 }
 0x13b   :  { %v1297_v63 = vmax.f32 %v1233_v59, 0.0  ;;  %v1329_v0 = vmax.f32 %v1265_v60, 0.0 }
 0x13c   :  { %v736_v1 = vpop.f32.mrb[20].mxu0  ;;  %v864_v2 = vpop.f32.mrb[20].mxu1 }
 0x13d   :  { %v1909_v3 = vpack.c.bf16 %v1297_v63, %v1296_v61  ;;  %v1989_v4 = vpack.c.bf16 %v1329_v0, %v1328_v62  ;;  %v1163_v5 = vmul.f32 %v2523_v17, %v736_v1  ;;  %v1195_v6 = vmul.f32 %v2523_v17, %v864_v2  ;;  %v738_v7 = vpop.f32.mrb[21].mxu0  ;;  %v866_v8 = vpop.f32.mrb[21].mxu1 }
 0x13e   :  { %v739_v9 = vpop.f32.mrb[22].mxu0  ;;  %v867_v10 = vpop.f32.mrb[22].mxu1 }
 0x13f   :  { %2049 = vst [vmem:[%s2758_s4 + $0x20] sm:$0xff] %v1909_v3   ;;  %2065 = vst [vmem:[%s2758_s4 + $0xa0] sm:$0xff] %v1989_v4   ;;  %v1234_v11 = vadd.f32 %v2528_v19, %v1163_v5  ;;  %v1266_v12 = vadd.f32 %v2528_v19, %v1195_v6  ;;  %v1164_v13 = vmul.f32 %v2523_v17, %v739_v9  ;;  %v741_v15 = vpop.f32.mrb[23].mxu0  ;;  %v869_v16 = vpop.f32.mrb[23].mxu1 }
 0x140   :  { %v1196_v14 = vmul.f32 %v2523_v17, %v867_v10 }
 0x141   :  { %v1235_v18 = vadd.f32 %v2528_v19, %v1164_v13  ;;  %v1298_v21 = vmax.f32 %v1234_v11, 0.0  ;;  %v1330_v22 = vmax.f32 %v1266_v12, 0.0 }
 0x142   :  { %v1267_v20 = vadd.f32 %v2528_v19, %v1196_v14 }
 0x143   :  { %v1299_v23 = vmax.f32 %v1235_v18, 0.0 }
 0x144   :  { %v1331_v24 = vmax.f32 %v1267_v20, 0.0  ;;  %v744_v25 = vpop.f32.mrb[24].mxu0  ;;  %v872_v26 = vpop.f32.mrb[24].mxu1 }
 0x145   :  { %v1914_v27 = vpack.c.bf16 %v1299_v23, %v1298_v21  ;;  %v1165_v29 = vmul.f32 %v2523_v17, %v744_v25  ;;  %v1197_v30 = vmul.f32 %v2523_v17, %v872_v26  ;;  %v746_v31 = vpop.f32.mrb[25].mxu0  ;;  %v874_v32 = vpop.f32.mrb[25].mxu1 }
 0x146   :  { %v1994_v28 = vpack.c.bf16 %v1331_v24, %v1330_v22  ;;  %v747_v33 = vpop.f32.mrb[26].mxu0  ;;  %v875_v34 = vpop.f32.mrb[26].mxu1 }
 0x147   :  { %2050 = vst [vmem:[%s2758_s4 + $0x28] sm:$0xff] %v1914_v27   ;;  %v1236_v35 = vadd.f32 %v2528_v19, %v1165_v29  ;;  %v1268_v36 = vadd.f32 %v2528_v19, %v1197_v30  ;;  %v1166_v37 = vmul.f32 %v2523_v17, %v747_v33  ;;  %v1198_v38 = vmul.f32 %v2523_v17, %v875_v34  ;;  %v749_v39 = vpop.f32.mrb[27].mxu0  ;;  %v877_v40 = vpop.f32.mrb[27].mxu1 }
 0x148   :  { %2066 = vst [vmem:[%s2758_s4 + $0xa8] sm:$0xff] %v1994_v28  }
 0x149   :  { %v1237_v41 = vadd.f32 %v2528_v19, %v1166_v37  ;;  %v1269_v42 = vadd.f32 %v2528_v19, %v1198_v38  ;;  %v1300_v43 = vmax.f32 %v1236_v35, 0.0  ;;  %v1332_v44 = vmax.f32 %v1268_v36, 0.0 }
 0x14b   :  { %v1301_v45 = vmax.f32 %v1237_v41, 0.0  ;;  %v1333_v46 = vmax.f32 %v1269_v42, 0.0 }
 0x14c   :  { %v752_v47 = vpop.f32.mrb[28].mxu0  ;;  %v880_v48 = vpop.f32.mrb[28].mxu1 }
 0x14d   :  { %v1919_v49 = vpack.c.bf16 %v1301_v45, %v1300_v43  ;;  %v1999_v50 = vpack.c.bf16 %v1333_v46, %v1332_v44  ;;  %v1167_v51 = vmul.f32 %v2523_v17, %v752_v47  ;;  %v1199_v52 = vmul.f32 %v2523_v17, %v880_v48  ;;  %v754_v53 = vpop.f32.mrb[29].mxu0  ;;  %v882_v54 = vpop.f32.mrb[29].mxu1 }
 0x14e   :  { %v755_v55 = vpop.f32.mrb[30].mxu0  ;;  %v883_v56 = vpop.f32.mrb[30].mxu1 }
 0x14f   :  { %2051 = vst [vmem:[%s2758_s4 + $0x30] sm:$0xff] %v1919_v49   ;;  %2067 = vst [vmem:[%s2758_s4 + $0xb0] sm:$0xff] %v1999_v50   ;;  %v1238_v57 = vadd.f32 %v2528_v19, %v1167_v51  ;;  %v1270_v58 = vadd.f32 %v2528_v19, %v1199_v52  ;;  %v1168_v59 = vmul.f32 %v2523_v17, %v755_v55  ;;  %v757_v61 = vpop.f32.mrb[31].mxu0  ;;  %v885_v62 = vpop.f32.mrb[31].mxu1 }
 0x150   :  { %v1200_v60 = vmul.f32 %v2523_v17, %v883_v56 }
 0x151   :  { %v1239_v63 = vadd.f32 %v2528_v19, %v1168_v59  ;;  %v1302_v1 = vmax.f32 %v1238_v57, 0.0  ;;  %v1334_v2 = vmax.f32 %v1270_v58, 0.0 }
 0x152   :  { %v1271_v0 = vadd.f32 %v2528_v19, %v1200_v60 }
 0x153   :  { %v1303_v3 = vmax.f32 %v1239_v63, 0.0 }
 0x154   :  { %v1335_v4 = vmax.f32 %v1271_v0, 0.0  ;;  %v760_v5 = vpop.f32.mrb[32].mxu0  ;;  %v888_v6 = vpop.f32.mrb[32].mxu1 }
 0x155   :  { %v1924_v7 = vpack.c.bf16 %v1303_v3, %v1302_v1  ;;  %v1169_v9 = vmul.f32 %v2523_v17, %v760_v5  ;;  %v1201_v10 = vmul.f32 %v2523_v17, %v888_v6  ;;  %v762_v11 = vpop.f32.mrb[33].mxu0  ;;  %v890_v12 = vpop.f32.mrb[33].mxu1 }
 0x156   :  { %v2004_v8 = vpack.c.bf16 %v1335_v4, %v1334_v2  ;;  %v763_v13 = vpop.f32.mrb[34].mxu0  ;;  %v891_v14 = vpop.f32.mrb[34].mxu1 }
 0x157   :  { %2052 = vst [vmem:[%s2758_s4 + $0x38] sm:$0xff] %v1924_v7   ;;  %v1240_v15 = vadd.f32 %v2528_v19, %v1169_v9  ;;  %v1272_v16 = vadd.f32 %v2528_v19, %v1201_v10  ;;  %v1170_v18 = vmul.f32 %v2523_v17, %v763_v13  ;;  %v1202_v20 = vmul.f32 %v2523_v17, %v891_v14  ;;  %v765_v21 = vpop.f32.mrb[35].mxu0  ;;  %v893_v22 = vpop.f32.mrb[35].mxu1 }
 0x158   :  { %2068 = vst [vmem:[%s2758_s4 + $0xb8] sm:$0xff] %v2004_v8  }
 0x159   :  { %v1241_v23 = vadd.f32 %v2528_v19, %v1170_v18  ;;  %v1273_v24 = vadd.f32 %v2528_v19, %v1202_v20  ;;  %v1304_v25 = vmax.f32 %v1240_v15, 0.0  ;;  %v1336_v26 = vmax.f32 %v1272_v16, 0.0 }
 0x15b   :  { %v1305_v27 = vmax.f32 %v1241_v23, 0.0  ;;  %v1337_v28 = vmax.f32 %v1273_v24, 0.0 }
 0x15c   :  { %v768_v29 = vpop.f32.mrb[36].mxu0  ;;  %v896_v30 = vpop.f32.mrb[36].mxu1 }
 0x15d   :  { %v1929_v31 = vpack.c.bf16 %v1305_v27, %v1304_v25  ;;  %v2009_v32 = vpack.c.bf16 %v1337_v28, %v1336_v26  ;;  %v1171_v33 = vmul.f32 %v2523_v17, %v768_v29  ;;  %v1203_v34 = vmul.f32 %v2523_v17, %v896_v30  ;;  %v770_v35 = vpop.f32.mrb[37].mxu0  ;;  %v898_v36 = vpop.f32.mrb[37].mxu1 }
 0x15e   :  { %v771_v37 = vpop.f32.mrb[38].mxu0  ;;  %v899_v38 = vpop.f32.mrb[38].mxu1 }
 0x15f   :  { %2053 = vst [vmem:[%s2758_s4 + $0x40] sm:$0xff] %v1929_v31   ;;  %2069 = vst [vmem:[%s2758_s4 + $0xc0] sm:$0xff] %v2009_v32   ;;  %v1242_v39 = vadd.f32 %v2528_v19, %v1171_v33  ;;  %v1274_v40 = vadd.f32 %v2528_v19, %v1203_v34  ;;  %v1172_v41 = vmul.f32 %v2523_v17, %v771_v37  ;;  %v773_v43 = vpop.f32.mrb[39].mxu0  ;;  %v901_v44 = vpop.f32.mrb[39].mxu1 }
 0x160   :  { %v1204_v42 = vmul.f32 %v2523_v17, %v899_v38 }
 0x161   :  { %v1243_v45 = vadd.f32 %v2528_v19, %v1172_v41  ;;  %v1306_v47 = vmax.f32 %v1242_v39, 0.0  ;;  %v1338_v48 = vmax.f32 %v1274_v40, 0.0 }
 0x162   :  { %v1275_v46 = vadd.f32 %v2528_v19, %v1204_v42 }
 0x163   :  { %v1307_v49 = vmax.f32 %v1243_v45, 0.0 }
 0x164   :  { %v1339_v50 = vmax.f32 %v1275_v46, 0.0  ;;  %v776_v51 = vpop.f32.mrb[40].mxu0  ;;  %v904_v52 = vpop.f32.mrb[40].mxu1 }
 0x165   :  { %v1934_v53 = vpack.c.bf16 %v1307_v49, %v1306_v47  ;;  %v1173_v55 = vmul.f32 %v2523_v17, %v776_v51  ;;  %v1205_v56 = vmul.f32 %v2523_v17, %v904_v52  ;;  %v778_v57 = vpop.f32.mrb[41].mxu0  ;;  %v906_v58 = vpop.f32.mrb[41].mxu1 }
 0x166   :  { %v2014_v54 = vpack.c.bf16 %v1339_v50, %v1338_v48  ;;  %v779_v59 = vpop.f32.mrb[42].mxu0  ;;  %v907_v60 = vpop.f32.mrb[42].mxu1 }
 0x167   :  { %2054 = vst [vmem:[%s2758_s4 + $0x48] sm:$0xff] %v1934_v53   ;;  %v1244_v61 = vadd.f32 %v2528_v19, %v1173_v55  ;;  %v1276_v62 = vadd.f32 %v2528_v19, %v1205_v56  ;;  %v1174_v63 = vmul.f32 %v2523_v17, %v779_v59  ;;  %v1206_v0 = vmul.f32 %v2523_v17, %v907_v60  ;;  %v781_v1 = vpop.f32.mrb[43].mxu0  ;;  %v909_v2 = vpop.f32.mrb[43].mxu1 }
 0x168   :  { %2070 = vst [vmem:[%s2758_s4 + $0xc8] sm:$0xff] %v2014_v54  }
 0x169   :  { %v1245_v3 = vadd.f32 %v2528_v19, %v1174_v63  ;;  %v1277_v4 = vadd.f32 %v2528_v19, %v1206_v0  ;;  %v1308_v5 = vmax.f32 %v1244_v61, 0.0  ;;  %v1340_v6 = vmax.f32 %v1276_v62, 0.0 }
 0x16b   :  { %v1309_v7 = vmax.f32 %v1245_v3, 0.0  ;;  %v1341_v8 = vmax.f32 %v1277_v4, 0.0 }
 0x16c   :  { %v784_v9 = vpop.f32.mrb[44].mxu0  ;;  %v912_v10 = vpop.f32.mrb[44].mxu1 }
 0x16d   :  { %v1939_v11 = vpack.c.bf16 %v1309_v7, %v1308_v5  ;;  %v2019_v12 = vpack.c.bf16 %v1341_v8, %v1340_v6  ;;  %v1175_v13 = vmul.f32 %v2523_v17, %v784_v9  ;;  %v1207_v14 = vmul.f32 %v2523_v17, %v912_v10  ;;  %v786_v15 = vpop.f32.mrb[45].mxu0  ;;  %v914_v16 = vpop.f32.mrb[45].mxu1 }
 0x16e   :  { %v787_v18 = vpop.f32.mrb[46].mxu0  ;;  %v915_v20 = vpop.f32.mrb[46].mxu1 }
 0x16f   :  { %2055 = vst [vmem:[%s2758_s4 + $0x50] sm:$0xff] %v1939_v11   ;;  %2071 = vst [vmem:[%s2758_s4 + $0xd0] sm:$0xff] %v2019_v12   ;;  %v1246_v21 = vadd.f32 %v2528_v19, %v1175_v13  ;;  %v1278_v22 = vadd.f32 %v2528_v19, %v1207_v14  ;;  %v1176_v23 = vmul.f32 %v2523_v17, %v787_v18  ;;  %v789_v25 = vpop.f32.mrb[47].mxu0  ;;  %v917_v26 = vpop.f32.mrb[47].mxu1 }
 0x170   :  { %v1208_v24 = vmul.f32 %v2523_v17, %v915_v20 }
 0x171   :  { %v1247_v27 = vadd.f32 %v2528_v19, %v1176_v23  ;;  %v1310_v29 = vmax.f32 %v1246_v21, 0.0  ;;  %v1342_v30 = vmax.f32 %v1278_v22, 0.0 }
 0x172   :  { %v1279_v28 = vadd.f32 %v2528_v19, %v1208_v24 }
 0x173   :  { %v1311_v31 = vmax.f32 %v1247_v27, 0.0 }
 0x174   :  { %v1343_v32 = vmax.f32 %v1279_v28, 0.0  ;;  %v792_v33 = vpop.f32.mrb[48].mxu0  ;;  %v920_v34 = vpop.f32.mrb[48].mxu1 }
 0x175   :  { %v1944_v35 = vpack.c.bf16 %v1311_v31, %v1310_v29  ;;  %v1177_v37 = vmul.f32 %v2523_v17, %v792_v33  ;;  %v1209_v38 = vmul.f32 %v2523_v17, %v920_v34  ;;  %v794_v39 = vpop.f32.mrb[49].mxu0  ;;  %v922_v40 = vpop.f32.mrb[49].mxu1 }
 0x176   :  { %v2024_v36 = vpack.c.bf16 %v1343_v32, %v1342_v30  ;;  %v795_v41 = vpop.f32.mrb[50].mxu0  ;;  %v923_v42 = vpop.f32.mrb[50].mxu1 }
 0x177   :  { %2056 = vst [vmem:[%s2758_s4 + $0x58] sm:$0xff] %v1944_v35   ;;  %v1248_v43 = vadd.f32 %v2528_v19, %v1177_v37  ;;  %v1280_v44 = vadd.f32 %v2528_v19, %v1209_v38  ;;  %v1178_v45 = vmul.f32 %v2523_v17, %v795_v41  ;;  %v1210_v46 = vmul.f32 %v2523_v17, %v923_v42  ;;  %v797_v47 = vpop.f32.mrb[51].mxu0  ;;  %v925_v48 = vpop.f32.mrb[51].mxu1 }
 0x178   :  { %2072 = vst [vmem:[%s2758_s4 + $0xd8] sm:$0xff] %v2024_v36  }
 0x179   :  { %v1249_v49 = vadd.f32 %v2528_v19, %v1178_v45  ;;  %v1281_v50 = vadd.f32 %v2528_v19, %v1210_v46  ;;  %v1312_v51 = vmax.f32 %v1248_v43, 0.0  ;;  %v1344_v52 = vmax.f32 %v1280_v44, 0.0 }
 0x17b   :  { %v1313_v53 = vmax.f32 %v1249_v49, 0.0  ;;  %v1345_v54 = vmax.f32 %v1281_v50, 0.0 }
 0x17c   :  { %v800_v55 = vpop.f32.mrb[52].mxu0  ;;  %v928_v56 = vpop.f32.mrb[52].mxu1 }
 0x17d   :  { %v1949_v57 = vpack.c.bf16 %v1313_v53, %v1312_v51  ;;  %v2029_v58 = vpack.c.bf16 %v1345_v54, %v1344_v52  ;;  %v1179_v59 = vmul.f32 %v2523_v17, %v800_v55  ;;  %v1211_v60 = vmul.f32 %v2523_v17, %v928_v56  ;;  %v802_v61 = vpop.f32.mrb[53].mxu0  ;;  %v930_v62 = vpop.f32.mrb[53].mxu1 }
 0x17e   :  { %v803_v63 = vpop.f32.mrb[54].mxu0  ;;  %v931_v0 = vpop.f32.mrb[54].mxu1 }
 0x17f   :  { %2057 = vst [vmem:[%s2758_s4 + $0x60] sm:$0xff] %v1949_v57   ;;  %2073 = vst [vmem:[%s2758_s4 + $0xe0] sm:$0xff] %v2029_v58   ;;  %v1250_v1 = vadd.f32 %v2528_v19, %v1179_v59  ;;  %v1282_v2 = vadd.f32 %v2528_v19, %v1211_v60  ;;  %v1180_v3 = vmul.f32 %v2523_v17, %v803_v63  ;;  %v805_v5 = vpop.f32.mrb[55].mxu0  ;;  %v933_v6 = vpop.f32.mrb[55].mxu1 }
 0x180   :  { %v1212_v4 = vmul.f32 %v2523_v17, %v931_v0 }
 0x181   :  { %v1251_v7 = vadd.f32 %v2528_v19, %v1180_v3  ;;  %v1314_v9 = vmax.f32 %v1250_v1, 0.0  ;;  %v1346_v10 = vmax.f32 %v1282_v2, 0.0 }
 0x182   :  { %v1283_v8 = vadd.f32 %v2528_v19, %v1212_v4 }
 0x183   :  { %v1315_v11 = vmax.f32 %v1251_v7, 0.0 }
 0x184   :  { %v1347_v12 = vmax.f32 %v1283_v8, 0.0  ;;  %v808_v13 = vpop.f32.mrb[56].mxu0  ;;  %v936_v14 = vpop.f32.mrb[56].mxu1 }
 0x185   :  { %v1954_v15 = vpack.c.bf16 %v1315_v11, %v1314_v9  ;;  %v1181_v18 = vmul.f32 %v2523_v17, %v808_v13  ;;  %v1213_v20 = vmul.f32 %v2523_v17, %v936_v14  ;;  %v810_v21 = vpop.f32.mrb[57].mxu0  ;;  %v938_v22 = vpop.f32.mrb[57].mxu1 }
 0x186   :  { %v2034_v16 = vpack.c.bf16 %v1347_v12, %v1346_v10  ;;  %v811_v23 = vpop.f32.mrb[58].mxu0  ;;  %v939_v24 = vpop.f32.mrb[58].mxu1 }
 0x187   :  { %2058 = vst [vmem:[%s2758_s4 + $0x68] sm:$0xff] %v1954_v15   ;;  %v1252_v25 = vadd.f32 %v2528_v19, %v1181_v18  ;;  %v1284_v26 = vadd.f32 %v2528_v19, %v1213_v20  ;;  %v1182_v27 = vmul.f32 %v2523_v17, %v811_v23  ;;  %v1214_v28 = vmul.f32 %v2523_v17, %v939_v24  ;;  %v813_v29 = vpop.f32.mrb[59].mxu0  ;;  %v941_v30 = vpop.f32.mrb[59].mxu1 }
 0x188   :  { %2074 = vst [vmem:[%s2758_s4 + $0xe8] sm:$0xff] %v2034_v16  }
 0x189   :  { %v1253_v31 = vadd.f32 %v2528_v19, %v1182_v27  ;;  %v1285_v32 = vadd.f32 %v2528_v19, %v1214_v28  ;;  %v1316_v33 = vmax.f32 %v1252_v25, 0.0  ;;  %v1348_v34 = vmax.f32 %v1284_v26, 0.0 }
 0x18b   :  { %v1317_v35 = vmax.f32 %v1253_v31, 0.0  ;;  %v1349_v36 = vmax.f32 %v1285_v32, 0.0 }
 0x18c   :  { %v816_v37 = vpop.f32.mrb[60].mxu0  ;;  %v944_v38 = vpop.f32.mrb[60].mxu1 }
 0x18d   :  { %v1959_v39 = vpack.c.bf16 %v1317_v35, %v1316_v33  ;;  %v2039_v40 = vpack.c.bf16 %v1349_v36, %v1348_v34  ;;  %v1183_v41 = vmul.f32 %v2523_v17, %v816_v37  ;;  %v1215_v42 = vmul.f32 %v2523_v17, %v944_v38  ;;  %v818_v43 = vpop.f32.mrb[61].mxu0  ;;  %v946_v44 = vpop.f32.mrb[61].mxu1 }
 0x18e   :  { %v819_v45 = vpop.f32.mrb[62].mxu0  ;;  %v947_v46 = vpop.f32.mrb[62].mxu1 }
 0x18f   :  { %2059 = vst [vmem:[%s2758_s4 + $0x70] sm:$0xff] %v1959_v39   ;;  %2075 = vst [vmem:[%s2758_s4 + $0xf0] sm:$0xff] %v2039_v40   ;;  %v1254_v47 = vadd.f32 %v2528_v19, %v1183_v41  ;;  %v1286_v48 = vadd.f32 %v2528_v19, %v1215_v42  ;;  %v1184_v49 = vmul.f32 %v2523_v17, %v819_v45  ;;  %v821_v51 = vpop.f32.mrb[63].mxu0  ;;  %v949_v52 = vpop.f32.mrb[63].mxu1 }
 0x190   :  { %v1216_v50 = vmul.f32 %v2523_v17, %v947_v46 }
 0x191   :  { %v1255_v53 = vadd.f32 %v2528_v19, %v1184_v49  ;;  %v1318_v55 = vmax.f32 %v1254_v47, 0.0  ;;  %v1350_v56 = vmax.f32 %v1286_v48, 0.0 }
 0x192   :  { %v1287_v54 = vadd.f32 %v2528_v19, %v1216_v50 }
 0x193   :  { %v1319_v57 = vmax.f32 %v1255_v53, 0.0 }
 0x194   :  { %v1351_v58 = vmax.f32 %v1287_v54, 0.0 }
 0x195   :  { %v1964_v59 = vpack.c.bf16 %v1319_v57, %v1318_v55 }
 0x196   :  { %v2044_v60 = vpack.c.bf16 %v1351_v58, %v1350_v56 }
 0x197   :  { %2060 = vst [vmem:[%s2758_s4 + $0x78] sm:$0xff] %v1964_v59  }
 0x198   :  { %2076 = vst [vmem:[%s2758_s4 + $0xf8] sm:$0xff] %v2044_v60  }

// kernel: _lambda_.20
= control target key start
LH: loop header
LB: loop body
LE: loop exit
PB: predicated region body
PF: predicated region fallthrough
CT: control target
= control target key end

     0   :  { %s2336_s1 = inlined_call_operand.vmem [shape: bf16[128,128], index: 1, kind: input, shape index: {}]   ;;  %s2337_s0 = inlined_call_operand.vmem [shape: bf16[512,128], index: 0, kind: input, shape index: {}]   ;;  %s2338_s2 = inlined_call_operand.vmem [shape: f32[1,128], index: 2, kind: input, shape index: {}]   ;;  %s2339_s3 = inlined_call_operand.vmem [shape: f32[1,128], index: 3, kind: input, shape index: {}]   ;;  %s2340_s4 = inlined_call_operand.vmem [shape: bf16[512,128], index: 4, kind: output, shape index: {}]  }
   0x1   :  { %v1917_v0 = vld [vmem:[%s2336_s1] sm:$0xff]   ;;  %v1918_v1 = vld [vmem:[%s2336_s1 + $0x8] sm:$0xff]   ;;  %v1919_v2 = vld [vmem:[%s2336_s1 + $0x10] sm:$0xff]  }
   0x2   :  { %1821 = vmatprep.subr.bf16.mxu0 %v1917_v0  ;;  %1901 = vmatprep.subr.bf16.mxu1 %v1917_v0  ;;  %v1920_v3 = vld [vmem:[%s2336_s1 + $0x18] sm:$0xff]   ;;  %v1925_v4 = vld [vmem:[%s2337_s0] sm:$0xff]   ;;  %v1922_v7 = vld [vmem:[%s2336_s1 + $0x28] sm:$0xff]  }
   0x3   :  { %1822 = vmatpush3.bf16.msra.mxu0 %v1917_v0  ;;  %1909 = vmatpush3.bf16.msra.mxu1 %v1917_v0  ;;  %v1926_v5 = vld [vmem:[%s2337_s0 + $0x80] sm:$0xff]   ;;  %v1923_v8 = vld [vmem:[%s2336_s1 + $0x30] sm:$0xff]   ;;  %v1924_v9 = vld [vmem:[%s2336_s1 + $0x38] sm:$0xff]  }
   0x4   :  { %1823 = vmatprep.subr.bf16.mxu0 %v1918_v1  ;;  %1902 = vmatprep.subr.bf16.mxu1 %v1918_v1  ;;  %v1921_v6 = vld [vmem:[%s2336_s1 + $0x20] sm:$0xff]   ;;  %v1927_v10 = vld [vmem:[%s2337_s0 + $0x8] sm:$0xff]   ;;  %v1929_v12 = vld [vmem:[%s2337_s0 + $0x10] sm:$0xff]  }
   0x5   :  { %1837 = vmatprep.mubr.bf16.mxu0 %v1925_v4  ;;  %1869 = vmatprep.mubr.bf16.mxu1 %v1926_v5  ;;  %v1928_v11 = vld [vmem:[%s2337_s0 + $0x88] sm:$0xff]   ;;  %v1930_v13 = vld [vmem:[%s2337_s0 + $0x90] sm:$0xff]   ;;  %v1931_v14 = vld [vmem:[%s2337_s0 + $0x18] sm:$0xff]  }
   0x6   :  { %v1932_v15 = vld [vmem:[%s2337_s0 + $0x98] sm:$0xff]   ;;  %v1933_v16 = vld [vmem:[%s2337_s0 + $0x20] sm:$0xff]   ;;  %v1935_v18 = vld [vmem:[%s2337_s0 + $0x28] sm:$0xff]  }
   0x7   :  { %1824 = vmatpush3.bf16.msra.mxu0 %v1918_v1  ;;  %1910 = vmatpush3.bf16.msra.mxu1 %v1918_v1  ;;  %v1934_v17 = vld [vmem:[%s2337_s0 + $0xa0] sm:$0xff]   ;;  %v1936_v19 = vld [vmem:[%s2337_s0 + $0xa8] sm:$0xff]   ;;  %v1937_v20 = vld [vmem:[%s2337_s0 + $0x30] sm:$0xff]  }
   0x8   :  { %1825 = vmatprep.subr.bf16.mxu0 %v1919_v2  ;;  %1903 = vmatprep.subr.bf16.mxu1 %v1919_v2  ;;  %v1938_v21 = vld [vmem:[%s2337_s0 + $0xb0] sm:$0xff]   ;;  %v1939_v22 = vld [vmem:[%s2337_s0 + $0x38] sm:$0xff]   ;;  %v1941_v24 = vld [vmem:[%s2337_s0 + $0x40] sm:$0xff]  }
   0x9   :  { %v1940_v23 = vld [vmem:[%s2337_s0 + $0xb8] sm:$0xff]   ;;  %v1942_v25 = vld [vmem:[%s2337_s0 + $0xc0] sm:$0xff]   ;;  %v1943_v26 = vld [vmem:[%s2337_s0 + $0x48] sm:$0xff]  }
   0xa   :  { %v1944_v27 = vld [vmem:[%s2337_s0 + $0xc8] sm:$0xff]   ;;  %v1945_v28 = vld [vmem:[%s2337_s0 + $0x50] sm:$0xff]   ;;  %v1947_v30 = vld [vmem:[%s2337_s0 + $0x58] sm:$0xff]  }
   0xb   :  { %1826 = vmatpush3.bf16.msra.mxu0 %v1919_v2  ;;  %1911 = vmatpush3.bf16.msra.mxu1 %v1919_v2  ;;  %v1946_v29 = vld [vmem:[%s2337_s0 + $0xd0] sm:$0xff]   ;;  %v1948_v31 = vld [vmem:[%s2337_s0 + $0xd8] sm:$0xff]   ;;  %v1949_v32 = vld [vmem:[%s2337_s0 + $0x60] sm:$0xff]  }
   0xc   :  { %1827 = vmatprep.subr.bf16.mxu0 %v1920_v3  ;;  %1904 = vmatprep.subr.bf16.mxu1 %v1920_v3  ;;  %v1950_v33 = vld [vmem:[%s2337_s0 + $0xe0] sm:$0xff]   ;;  %v1951_v34 = vld [vmem:[%s2337_s0 + $0x68] sm:$0xff]   ;;  %v1953_v36 = vld [vmem:[%s2337_s0 + $0x70] sm:$0xff]  }
   0xd   :  { %v1952_v35 = vld [vmem:[%s2337_s0 + $0xe8] sm:$0xff]   ;;  %v1954_v37 = vld [vmem:[%s2337_s0 + $0xf0] sm:$0xff]   ;;  %v1955_v38 = vld [vmem:[%s2337_s0 + $0x78] sm:$0xff]  }
   0xe   :  { %v1956_v39 = vld [vmem:[%s2337_s0 + $0xf8] sm:$0xff]   ;;  %v2105_v40 = vld [vmem:[%s2338_s2] ss:$0 sm:$0xff] }
   0xf   :  { %1828 = vmatpush3.bf16.msra.mxu0 %v1920_v3  ;;  %1912 = vmatpush3.bf16.msra.mxu1 %v1920_v3  ;;  %v2112_v47 = vld [vmem:[%s2339_s3] ss:$0 sm:$0xff] }
  0x10   :  { %1829 = vmatprep.subr.bf16.mxu0 %v1921_v6  ;;  %1905 = vmatprep.subr.bf16.mxu1 %v1921_v6 }
  0x13   :  { %1830 = vmatpush3.bf16.msra.mxu0 %v1921_v6  ;;  %1913 = vmatpush3.bf16.msra.mxu1 %v1921_v6 }
  0x14   :  { %1831 = vmatprep.subr.bf16.mxu0 %v1922_v7  ;;  %1906 = vmatprep.subr.bf16.mxu1 %v1922_v7 }
  0x17   :  { %1832 = vmatpush3.bf16.msra.mxu0 %v1922_v7  ;;  %1914 = vmatpush3.bf16.msra.mxu1 %v1922_v7 }
  0x18   :  { %1833 = vmatprep.subr.bf16.mxu0 %v1923_v8  ;;  %1907 = vmatprep.subr.bf16.mxu1 %v1923_v8 }
  0x1b   :  { %1834 = vmatpush3.bf16.msra.mxu0 %v1923_v8  ;;  %1915 = vmatpush3.bf16.msra.mxu1 %v1923_v8 }
  0x1c   :  { %1835 = vmatprep.subr.bf16.mxu0 %v1924_v9  ;;  %1908 = vmatprep.subr.bf16.mxu1 %v1924_v9 }
  0x1f   :  { %1836 = vmatpush3.bf16.msra.mxu0 %v1924_v9  ;;  %1916 = vmatpush3.bf16.msra.mxu1 %v1924_v9 }
  0x22   :  { %1838 = vmatmul.mubr.bf16.vlgmr.msra.gmra.mrb[0].mxu0 %v1927_v10  ;;  %1870 = vmatmul.mubr.bf16.vlgmr.msra.gmra.mrb[0].mxu1 %v1928_v11 }
  0x23   :  { %1841 = vmatprep.mubr.bf16.mxu0 %v1929_v12  ;;  %1873 = vmatprep.mubr.bf16.mxu1 %v1930_v13 }
  0x2a   :  { %1842 = vmatmul.mubr.bf16.gmra.mrb[4].mxu0 %v1931_v14  ;;  %1874 = vmatmul.mubr.bf16.gmra.mrb[4].mxu1 %v1932_v15 }
  0x2b   :  { %1845 = vmatprep.mubr.bf16.mxu0 %v1933_v16  ;;  %1877 = vmatprep.mubr.bf16.mxu1 %v1934_v17 }
  0x32   :  { %1846 = vmatmul.mubr.bf16.gmra.mrb[8].mxu0 %v1935_v18  ;;  %1878 = vmatmul.mubr.bf16.gmra.mrb[8].mxu1 %v1936_v19 }
  0x33   :  { %1849 = vmatprep.mubr.bf16.mxu0 %v1937_v20  ;;  %1881 = vmatprep.mubr.bf16.mxu1 %v1938_v21 }
  0x3a   :  { %1850 = vmatmul.mubr.bf16.gmra.mrb[12].mxu0 %v1939_v22  ;;  %1882 = vmatmul.mubr.bf16.gmra.mrb[12].mxu1 %v1940_v23 }
  0x3b   :  { %1853 = vmatprep.mubr.bf16.mxu0 %v1941_v24  ;;  %1885 = vmatprep.mubr.bf16.mxu1 %v1942_v25 }
  0x42   :  { %1854 = vmatmul.mubr.bf16.gmra.mrb[16].mxu0 %v1943_v26  ;;  %1886 = vmatmul.mubr.bf16.gmra.mrb[16].mxu1 %v1944_v27 }
  0x43   :  { %1857 = vmatprep.mubr.bf16.mxu0 %v1945_v28  ;;  %1889 = vmatprep.mubr.bf16.mxu1 %v1946_v29 }
  0x4a   :  { %1858 = vmatmul.mubr.bf16.gmra.mrb[20].mxu0 %v1947_v30  ;;  %1890 = vmatmul.mubr.bf16.gmra.mrb[20].mxu1 %v1948_v31 }
  0x4b   :  { %1861 = vmatprep.mubr.bf16.mxu0 %v1949_v32  ;;  %1893 = vmatprep.mubr.bf16.mxu1 %v1950_v33 }
  0x52   :  { %1862 = vmatmul.mubr.bf16.gmra.mrb[24].mxu0 %v1951_v34  ;;  %1894 = vmatmul.mubr.bf16.gmra.mrb[24].mxu1 %v1952_v35 }
  0x53   :  { %1865 = vmatprep.mubr.bf16.mxu0 %v1953_v36  ;;  %1897 = vmatprep.mubr.bf16.mxu1 %v1954_v37 }
  0x5a   :  { %1866 = vmatmul.mubr.bf16.gmra.mrb[28].mxu0 %v1955_v38  ;;  %1898 = vmatmul.mubr.bf16.gmra.mrb[28].mxu1 %v1956_v39 }
  0xf5   :  { %v1839_v41 = vpop.f32.mrb[0].mxu0  ;;  %v1871_v42 = vpop.f32.mrb[0].mxu1 }
  0xf6   :  { %v963_v43 = vmul.f32 %v1839_v41, %v2105_v40  ;;  %v995_v44 = vmul.f32 %v1871_v42, %v2105_v40  ;;  %v504_v45 = vpop.f32.mrb[1].mxu0  ;;  %v632_v46 = vpop.f32.mrb[1].mxu1 }
  0xf7   :  { %v961_v48 = vmul.f32 %v2105_v40, %v504_v45  ;;  %v993_v49 = vmul.f32 %v2105_v40, %v632_v46  ;;  %v1840_v50 = vpop.f32.mrb[2].mxu0  ;;  %v1872_v51 = vpop.f32.mrb[2].mxu1 }
  0xf8   :  { %v964_v52 = vmul.f32 %v1840_v50, %v2105_v40  ;;  %v996_v53 = vmul.f32 %v1872_v51, %v2105_v40  ;;  %v507_v54 = vpop.f32.mrb[3].mxu0  ;;  %v635_v55 = vpop.f32.mrb[3].mxu1  ;;  %v1034_v58 = vadd.f32 %v2112_v47, %v963_v43  ;;  %v1066_v59 = vadd.f32 %v2112_v47, %v995_v44 }
  0xf9   :  { %v962_v56 = vmul.f32 %v2105_v40, %v507_v54  ;;  %v994_v57 = vmul.f32 %v2105_v40, %v635_v55  ;;  %v1032_v62 = vadd.f32 %v2112_v47, %v961_v48  ;;  %v1064_v63 = vadd.f32 %v2112_v47, %v993_v49 }
  0xfa   :  { %v1035_v60 = vadd.f32 %v2112_v47, %v964_v52  ;;  %v1067_v61 = vadd.f32 %v2112_v47, %v996_v53 }
  0xfb   :  { %v1033_v0 = vadd.f32 %v2112_v47, %v962_v56  ;;  %v1065_v1 = vadd.f32 %v2112_v47, %v994_v57 }
  0xfc   :  { %v1598_v2 = vpack.c.bf16 %v1035_v60, %v1034_v58  ;;  %v1678_v3 = vpack.c.bf16 %v1067_v61, %v1066_v59 }
  0xfd   :  { %v1593_v4 = vpack.c.bf16 %v1033_v0, %v1032_v62  ;;  %v1673_v5 = vpack.c.bf16 %v1065_v1, %v1064_v63  ;;  %v1843_v6 = vpop.f32.mrb[4].mxu0  ;;  %v1875_v7 = vpop.f32.mrb[4].mxu1 }
  0xfe   :  { %1750 = vst [vmem:[%s2340_s4 + $0x8] sm:$0xff] %v1598_v2   ;;  %1766 = vst [vmem:[%s2340_s4 + $0x88] sm:$0xff] %v1678_v3   ;;  %v967_v8 = vmul.f32 %v1843_v6, %v2105_v40  ;;  %v999_v9 = vmul.f32 %v1875_v7, %v2105_v40  ;;  %v520_v10 = vpop.f32.mrb[5].mxu0  ;;  %v648_v11 = vpop.f32.mrb[5].mxu1 }
  0xff   :  { %1594 = vst [vmem:[%s2340_s4] sm:$0xff] %v1593_v4   ;;  %1765 = vst [vmem:[%s2340_s4 + $0x80] sm:$0xff] %v1673_v5   ;;  %v965_v12 = vmul.f32 %v2105_v40, %v520_v10  ;;  %v997_v13 = vmul.f32 %v2105_v40, %v648_v11  ;;  %v1844_v14 = vpop.f32.mrb[6].mxu0  ;;  %v1876_v15 = vpop.f32.mrb[6].mxu1 }
 0x100   :  { %v968_v16 = vmul.f32 %v1844_v14, %v2105_v40  ;;  %v1000_v17 = vmul.f32 %v1876_v15, %v2105_v40  ;;  %v523_v18 = vpop.f32.mrb[7].mxu0  ;;  %v651_v19 = vpop.f32.mrb[7].mxu1  ;;  %v1038_v22 = vadd.f32 %v2112_v47, %v967_v8  ;;  %v1070_v23 = vadd.f32 %v2112_v47, %v999_v9 }
 0x101   :  { %v966_v20 = vmul.f32 %v2105_v40, %v523_v18  ;;  %v998_v21 = vmul.f32 %v2105_v40, %v651_v19  ;;  %v1036_v26 = vadd.f32 %v2112_v47, %v965_v12  ;;  %v1068_v27 = vadd.f32 %v2112_v47, %v997_v13 }
 0x102   :  { %v1039_v24 = vadd.f32 %v2112_v47, %v968_v16  ;;  %v1071_v25 = vadd.f32 %v2112_v47, %v1000_v17 }
 0x103   :  { %v1037_v28 = vadd.f32 %v2112_v47, %v966_v20  ;;  %v1069_v29 = vadd.f32 %v2112_v47, %v998_v21 }
 0x104   :  { %v1608_v30 = vpack.c.bf16 %v1039_v24, %v1038_v22  ;;  %v1688_v31 = vpack.c.bf16 %v1071_v25, %v1070_v23 }
 0x105   :  { %v1603_v32 = vpack.c.bf16 %v1037_v28, %v1036_v26  ;;  %v1683_v33 = vpack.c.bf16 %v1069_v29, %v1068_v27  ;;  %v1847_v34 = vpop.f32.mrb[8].mxu0  ;;  %v1879_v35 = vpop.f32.mrb[8].mxu1 }
 0x106   :  { %1752 = vst [vmem:[%s2340_s4 + $0x18] sm:$0xff] %v1608_v30   ;;  %1768 = vst [vmem:[%s2340_s4 + $0x98] sm:$0xff] %v1688_v31   ;;  %v971_v36 = vmul.f32 %v1847_v34, %v2105_v40  ;;  %v1003_v37 = vmul.f32 %v1879_v35, %v2105_v40  ;;  %v536_v38 = vpop.f32.mrb[9].mxu0  ;;  %v664_v39 = vpop.f32.mrb[9].mxu1 }
 0x107   :  { %1751 = vst [vmem:[%s2340_s4 + $0x10] sm:$0xff] %v1603_v32   ;;  %1767 = vst [vmem:[%s2340_s4 + $0x90] sm:$0xff] %v1683_v33   ;;  %v969_v41 = vmul.f32 %v2105_v40, %v536_v38  ;;  %v1001_v42 = vmul.f32 %v2105_v40, %v664_v39  ;;  %v1848_v43 = vpop.f32.mrb[10].mxu0  ;;  %v1880_v44 = vpop.f32.mrb[10].mxu1 }
 0x108   :  { %v972_v45 = vmul.f32 %v1848_v43, %v2105_v40  ;;  %v1004_v46 = vmul.f32 %v1880_v44, %v2105_v40  ;;  %v539_v48 = vpop.f32.mrb[11].mxu0  ;;  %v667_v49 = vpop.f32.mrb[11].mxu1  ;;  %v1042_v52 = vadd.f32 %v2112_v47, %v971_v36  ;;  %v1074_v53 = vadd.f32 %v2112_v47, %v1003_v37 }
 0x109   :  { %v970_v50 = vmul.f32 %v2105_v40, %v539_v48  ;;  %v1002_v51 = vmul.f32 %v2105_v40, %v667_v49  ;;  %v1040_v56 = vadd.f32 %v2112_v47, %v969_v41  ;;  %v1072_v57 = vadd.f32 %v2112_v47, %v1001_v42 }
 0x10a   :  { %v1043_v54 = vadd.f32 %v2112_v47, %v972_v45  ;;  %v1075_v55 = vadd.f32 %v2112_v47, %v1004_v46 }
 0x10b   :  { %v1041_v58 = vadd.f32 %v2112_v47, %v970_v50  ;;  %v1073_v59 = vadd.f32 %v2112_v47, %v1002_v51 }
 0x10c   :  { %v1618_v60 = vpack.c.bf16 %v1043_v54, %v1042_v52  ;;  %v1698_v61 = vpack.c.bf16 %v1075_v55, %v1074_v53 }
 0x10d   :  { %v1613_v62 = vpack.c.bf16 %v1041_v58, %v1040_v56  ;;  %v1693_v63 = vpack.c.bf16 %v1073_v59, %v1072_v57  ;;  %v1851_v0 = vpop.f32.mrb[12].mxu0  ;;  %v1883_v1 = vpop.f32.mrb[12].mxu1 }
 0x10e   :  { %1754 = vst [vmem:[%s2340_s4 + $0x28] sm:$0xff] %v1618_v60   ;;  %1770 = vst [vmem:[%s2340_s4 + $0xa8] sm:$0xff] %v1698_v61   ;;  %v975_v2 = vmul.f32 %v1851_v0, %v2105_v40  ;;  %v1007_v3 = vmul.f32 %v1883_v1, %v2105_v40  ;;  %v552_v4 = vpop.f32.mrb[13].mxu0  ;;  %v680_v5 = vpop.f32.mrb[13].mxu1 }
 0x10f   :  { %1753 = vst [vmem:[%s2340_s4 + $0x20] sm:$0xff] %v1613_v62   ;;  %1769 = vst [vmem:[%s2340_s4 + $0xa0] sm:$0xff] %v1693_v63   ;;  %v973_v6 = vmul.f32 %v2105_v40, %v552_v4  ;;  %v1005_v7 = vmul.f32 %v2105_v40, %v680_v5  ;;  %v1852_v8 = vpop.f32.mrb[14].mxu0  ;;  %v1884_v9 = vpop.f32.mrb[14].mxu1 }
 0x110   :  { %v976_v10 = vmul.f32 %v1852_v8, %v2105_v40  ;;  %v1008_v11 = vmul.f32 %v1884_v9, %v2105_v40  ;;  %v555_v12 = vpop.f32.mrb[15].mxu0  ;;  %v683_v13 = vpop.f32.mrb[15].mxu1  ;;  %v1046_v16 = vadd.f32 %v2112_v47, %v975_v2  ;;  %v1078_v17 = vadd.f32 %v2112_v47, %v1007_v3 }
 0x111   :  { %v974_v14 = vmul.f32 %v2105_v40, %v555_v12  ;;  %v1006_v15 = vmul.f32 %v2105_v40, %v683_v13  ;;  %v1044_v20 = vadd.f32 %v2112_v47, %v973_v6  ;;  %v1076_v21 = vadd.f32 %v2112_v47, %v1005_v7 }
 0x112   :  { %v1047_v18 = vadd.f32 %v2112_v47, %v976_v10  ;;  %v1079_v19 = vadd.f32 %v2112_v47, %v1008_v11 }
 0x113   :  { %v1045_v22 = vadd.f32 %v2112_v47, %v974_v14  ;;  %v1077_v23 = vadd.f32 %v2112_v47, %v1006_v15 }
 0x114   :  { %v1628_v24 = vpack.c.bf16 %v1047_v18, %v1046_v16  ;;  %v1708_v25 = vpack.c.bf16 %v1079_v19, %v1078_v17 }
 0x115   :  { %v1623_v26 = vpack.c.bf16 %v1045_v22, %v1044_v20  ;;  %v1703_v27 = vpack.c.bf16 %v1077_v23, %v1076_v21  ;;  %v1855_v28 = vpop.f32.mrb[16].mxu0  ;;  %v1887_v29 = vpop.f32.mrb[16].mxu1 }
 0x116   :  { %1756 = vst [vmem:[%s2340_s4 + $0x38] sm:$0xff] %v1628_v24   ;;  %1772 = vst [vmem:[%s2340_s4 + $0xb8] sm:$0xff] %v1708_v25   ;;  %v979_v30 = vmul.f32 %v1855_v28, %v2105_v40  ;;  %v1011_v31 = vmul.f32 %v1887_v29, %v2105_v40  ;;  %v568_v32 = vpop.f32.mrb[17].mxu0  ;;  %v696_v33 = vpop.f32.mrb[17].mxu1 }
 0x117   :  { %1755 = vst [vmem:[%s2340_s4 + $0x30] sm:$0xff] %v1623_v26   ;;  %1771 = vst [vmem:[%s2340_s4 + $0xb0] sm:$0xff] %v1703_v27   ;;  %v977_v34 = vmul.f32 %v2105_v40, %v568_v32  ;;  %v1009_v35 = vmul.f32 %v2105_v40, %v696_v33  ;;  %v1856_v36 = vpop.f32.mrb[18].mxu0  ;;  %v1888_v37 = vpop.f32.mrb[18].mxu1 }
 0x118   :  { %v980_v38 = vmul.f32 %v1856_v36, %v2105_v40  ;;  %v1012_v39 = vmul.f32 %v1888_v37, %v2105_v40  ;;  %v571_v41 = vpop.f32.mrb[19].mxu0  ;;  %v699_v42 = vpop.f32.mrb[19].mxu1  ;;  %v1050_v45 = vadd.f32 %v2112_v47, %v979_v30  ;;  %v1082_v46 = vadd.f32 %v2112_v47, %v1011_v31 }
 0x119   :  { %v978_v43 = vmul.f32 %v2105_v40, %v571_v41  ;;  %v1010_v44 = vmul.f32 %v2105_v40, %v699_v42  ;;  %v1048_v50 = vadd.f32 %v2112_v47, %v977_v34  ;;  %v1080_v51 = vadd.f32 %v2112_v47, %v1009_v35 }
 0x11a   :  { %v1051_v48 = vadd.f32 %v2112_v47, %v980_v38  ;;  %v1083_v49 = vadd.f32 %v2112_v47, %v1012_v39 }
 0x11b   :  { %v1049_v52 = vadd.f32 %v2112_v47, %v978_v43  ;;  %v1081_v53 = vadd.f32 %v2112_v47, %v1010_v44 }
 0x11c   :  { %v1638_v54 = vpack.c.bf16 %v1051_v48, %v1050_v45  ;;  %v1718_v55 = vpack.c.bf16 %v1083_v49, %v1082_v46 }
 0x11d   :  { %v1633_v56 = vpack.c.bf16 %v1049_v52, %v1048_v50  ;;  %v1713_v57 = vpack.c.bf16 %v1081_v53, %v1080_v51  ;;  %v1859_v58 = vpop.f32.mrb[20].mxu0  ;;  %v1891_v59 = vpop.f32.mrb[20].mxu1 }
 0x11e   :  { %1758 = vst [vmem:[%s2340_s4 + $0x48] sm:$0xff] %v1638_v54   ;;  %1774 = vst [vmem:[%s2340_s4 + $0xc8] sm:$0xff] %v1718_v55   ;;  %v983_v60 = vmul.f32 %v1859_v58, %v2105_v40  ;;  %v1015_v61 = vmul.f32 %v1891_v59, %v2105_v40  ;;  %v584_v62 = vpop.f32.mrb[21].mxu0  ;;  %v712_v63 = vpop.f32.mrb[21].mxu1 }
 0x11f   :  { %1757 = vst [vmem:[%s2340_s4 + $0x40] sm:$0xff] %v1633_v56   ;;  %1773 = vst [vmem:[%s2340_s4 + $0xc0] sm:$0xff] %v1713_v57   ;;  %v981_v0 = vmul.f32 %v2105_v40, %v584_v62  ;;  %v1013_v1 = vmul.f32 %v2105_v40, %v712_v63  ;;  %v1860_v2 = vpop.f32.mrb[22].mxu0  ;;  %v1892_v3 = vpop.f32.mrb[22].mxu1 }
 0x120   :  { %v984_v4 = vmul.f32 %v1860_v2, %v2105_v40  ;;  %v1016_v5 = vmul.f32 %v1892_v3, %v2105_v40  ;;  %v587_v6 = vpop.f32.mrb[23].mxu0  ;;  %v715_v7 = vpop.f32.mrb[23].mxu1  ;;  %v1054_v10 = vadd.f32 %v2112_v47, %v983_v60  ;;  %v1086_v11 = vadd.f32 %v2112_v47, %v1015_v61 }
 0x121   :  { %v982_v8 = vmul.f32 %v2105_v40, %v587_v6  ;;  %v1014_v9 = vmul.f32 %v2105_v40, %v715_v7  ;;  %v1052_v14 = vadd.f32 %v2112_v47, %v981_v0  ;;  %v1084_v15 = vadd.f32 %v2112_v47, %v1013_v1 }
 0x122   :  { %v1055_v12 = vadd.f32 %v2112_v47, %v984_v4  ;;  %v1087_v13 = vadd.f32 %v2112_v47, %v1016_v5 }
 0x123   :  { %v1053_v16 = vadd.f32 %v2112_v47, %v982_v8  ;;  %v1085_v17 = vadd.f32 %v2112_v47, %v1014_v9 }
 0x124   :  { %v1648_v18 = vpack.c.bf16 %v1055_v12, %v1054_v10  ;;  %v1728_v19 = vpack.c.bf16 %v1087_v13, %v1086_v11 }
 0x125   :  { %v1643_v20 = vpack.c.bf16 %v1053_v16, %v1052_v14  ;;  %v1723_v21 = vpack.c.bf16 %v1085_v17, %v1084_v15  ;;  %v1863_v22 = vpop.f32.mrb[24].mxu0  ;;  %v1895_v23 = vpop.f32.mrb[24].mxu1 }
 0x126   :  { %1760 = vst [vmem:[%s2340_s4 + $0x58] sm:$0xff] %v1648_v18   ;;  %1776 = vst [vmem:[%s2340_s4 + $0xd8] sm:$0xff] %v1728_v19   ;;  %v987_v24 = vmul.f32 %v1863_v22, %v2105_v40  ;;  %v1019_v25 = vmul.f32 %v1895_v23, %v2105_v40  ;;  %v600_v26 = vpop.f32.mrb[25].mxu0  ;;  %v728_v27 = vpop.f32.mrb[25].mxu1 }
 0x127   :  { %1759 = vst [vmem:[%s2340_s4 + $0x50] sm:$0xff] %v1643_v20   ;;  %1775 = vst [vmem:[%s2340_s4 + $0xd0] sm:$0xff] %v1723_v21   ;;  %v985_v28 = vmul.f32 %v2105_v40, %v600_v26  ;;  %v1017_v29 = vmul.f32 %v2105_v40, %v728_v27  ;;  %v1864_v30 = vpop.f32.mrb[26].mxu0  ;;  %v1896_v31 = vpop.f32.mrb[26].mxu1 }
 0x128   :  { %v988_v32 = vmul.f32 %v1864_v30, %v2105_v40  ;;  %v1020_v33 = vmul.f32 %v1896_v31, %v2105_v40  ;;  %v603_v34 = vpop.f32.mrb[27].mxu0  ;;  %v731_v35 = vpop.f32.mrb[27].mxu1  ;;  %v1058_v38 = vadd.f32 %v2112_v47, %v987_v24  ;;  %v1090_v39 = vadd.f32 %v2112_v47, %v1019_v25 }
 0x129   :  { %v986_v36 = vmul.f32 %v2105_v40, %v603_v34  ;;  %v1018_v37 = vmul.f32 %v2105_v40, %v731_v35  ;;  %v1056_v43 = vadd.f32 %v2112_v47, %v985_v28  ;;  %v1088_v44 = vadd.f32 %v2112_v47, %v1017_v29 }
 0x12a   :  { %v1059_v41 = vadd.f32 %v2112_v47, %v988_v32  ;;  %v1091_v42 = vadd.f32 %v2112_v47, %v1020_v33 }
 0x12b   :  { %v1057_v45 = vadd.f32 %v2112_v47, %v986_v36  ;;  %v1089_v46 = vadd.f32 %v2112_v47, %v1018_v37 }
 0x12c   :  { %v1658_v48 = vpack.c.bf16 %v1059_v41, %v1058_v38  ;;  %v1738_v49 = vpack.c.bf16 %v1091_v42, %v1090_v39 }
 0x12d   :  { %v1653_v50 = vpack.c.bf16 %v1057_v45, %v1056_v43  ;;  %v1733_v51 = vpack.c.bf16 %v1089_v46, %v1088_v44  ;;  %v1867_v52 = vpop.f32.mrb[28].mxu0  ;;  %v1899_v53 = vpop.f32.mrb[28].mxu1 }
 0x12e   :  { %1762 = vst [vmem:[%s2340_s4 + $0x68] sm:$0xff] %v1658_v48   ;;  %1778 = vst [vmem:[%s2340_s4 + $0xe8] sm:$0xff] %v1738_v49   ;;  %v991_v54 = vmul.f32 %v1867_v52, %v2105_v40  ;;  %v1023_v55 = vmul.f32 %v1899_v53, %v2105_v40  ;;  %v616_v56 = vpop.f32.mrb[29].mxu0  ;;  %v744_v57 = vpop.f32.mrb[29].mxu1 }
 0x12f   :  { %1761 = vst [vmem:[%s2340_s4 + $0x60] sm:$0xff] %v1653_v50   ;;  %1777 = vst [vmem:[%s2340_s4 + $0xe0] sm:$0xff] %v1733_v51   ;;  %v989_v58 = vmul.f32 %v2105_v40, %v616_v56  ;;  %v1021_v59 = vmul.f32 %v2105_v40, %v744_v57  ;;  %v1868_v60 = vpop.f32.mrb[30].mxu0  ;;  %v1900_v61 = vpop.f32.mrb[30].mxu1 }
 0x130   :  { %v992_v62 = vmul.f32 %v1868_v60, %v2105_v40  ;;  %v1024_v63 = vmul.f32 %v1900_v61, %v2105_v40  ;;  %v619_v0 = vpop.f32.mrb[31].mxu0  ;;  %v747_v1 = vpop.f32.mrb[31].mxu1  ;;  %v1062_v4 = vadd.f32 %v2112_v47, %v991_v54  ;;  %v1094_v5 = vadd.f32 %v2112_v47, %v1023_v55 }
 0x131   :  { %v990_v2 = vmul.f32 %v2105_v40, %v619_v0  ;;  %v1022_v3 = vmul.f32 %v2105_v40, %v747_v1  ;;  %v1060_v8 = vadd.f32 %v2112_v47, %v989_v58  ;;  %v1092_v9 = vadd.f32 %v2112_v47, %v1021_v59 }
 0x132   :  { %v1063_v6 = vadd.f32 %v2112_v47, %v992_v62  ;;  %v1095_v7 = vadd.f32 %v2112_v47, %v1024_v63 }
 0x133   :  { %v1061_v10 = vadd.f32 %v2112_v47, %v990_v2  ;;  %v1093_v11 = vadd.f32 %v2112_v47, %v1022_v3 }
 0x134   :  { %v1668_v12 = vpack.c.bf16 %v1063_v6, %v1062_v4  ;;  %v1748_v13 = vpack.c.bf16 %v1095_v7, %v1094_v5 }
 0x135   :  { %v1663_v14 = vpack.c.bf16 %v1061_v10, %v1060_v8  ;;  %v1743_v40 = vpack.c.bf16 %v1093_v11, %v1092_v9 }
 0x136   :  { %1764 = vst [vmem:[%s2340_s4 + $0x78] sm:$0xff] %v1668_v12   ;;  %1780 = vst [vmem:[%s2340_s4 + $0xf8] sm:$0xff] %v1748_v13  }
 0x137   :  { %1763 = vst [vmem:[%s2340_s4 + $0x70] sm:$0xff] %v1663_v14   ;;  %1779 = vst [vmem:[%s2340_s4 + $0xf0] sm:$0xff] %v1743_v40  }

// kernel: _lambda_.23
= control target key start
LH: loop header
LB: loop body
LE: loop exit
PB: predicated region body
PF: predicated region fallthrough
CT: control target
= control target key end

     0   :  { %s3103_s1 = inlined_call_operand.vmem [shape: bf16[128,128], index: 1, kind: input, shape index: {}]   ;;  %s3104_s0 = inlined_call_operand.vmem [shape: bf16[512,128], index: 0, kind: input, shape index: {}]   ;;  %s3105_s4 = inlined_call_operand.vmem [shape: bf16[512,128], index: 4, kind: input, shape index: {}]   ;;  %s3106_s2 = inlined_call_operand.vmem [shape: f32[1,128], index: 2, kind: input, shape index: {}]   ;;  %s3107_s3 = inlined_call_operand.vmem [shape: f32[1,128], index: 3, kind: input, shape index: {}]   ;;  %s3108_s5 = inlined_call_operand.vmem [shape: bf16[512,128], index: 5, kind: output, shape index: {}]  }
   0x1   :  { %v2335_v0 = vld [vmem:[%s3103_s1] sm:$0xff]   ;;  %v2336_v1 = vld [vmem:[%s3103_s1 + $0x8] sm:$0xff]   ;;  %v2337_v2 = vld [vmem:[%s3103_s1 + $0x10] sm:$0xff]  }
   0x2   :  { %2239 = vmatprep.subr.bf16.mxu0 %v2335_v0  ;;  %2319 = vmatprep.subr.bf16.mxu1 %v2335_v0  ;;  %v2338_v3 = vld [vmem:[%s3103_s1 + $0x18] sm:$0xff]   ;;  %v2343_v4 = vld [vmem:[%s3104_s0] sm:$0xff]   ;;  %v2340_v7 = vld [vmem:[%s3103_s1 + $0x28] sm:$0xff]  }
   0x3   :  { %2240 = vmatpush3.bf16.msra.mxu0 %v2335_v0  ;;  %2327 = vmatpush3.bf16.msra.mxu1 %v2335_v0  ;;  %v2344_v5 = vld [vmem:[%s3104_s0 + $0x80] sm:$0xff]   ;;  %v2341_v8 = vld [vmem:[%s3103_s1 + $0x30] sm:$0xff]   ;;  %v2342_v9 = vld [vmem:[%s3103_s1 + $0x38] sm:$0xff]  }
   0x4   :  { %2241 = vmatprep.subr.bf16.mxu0 %v2336_v1  ;;  %2320 = vmatprep.subr.bf16.mxu1 %v2336_v1  ;;  %v2339_v6 = vld [vmem:[%s3103_s1 + $0x20] sm:$0xff]   ;;  %v2345_v10 = vld [vmem:[%s3104_s0 + $0x8] sm:$0xff]   ;;  %v2347_v12 = vld [vmem:[%s3104_s0 + $0x10] sm:$0xff]  }
   0x5   :  { %2255 = vmatprep.mubr.bf16.mxu0 %v2343_v4  ;;  %2287 = vmatprep.mubr.bf16.mxu1 %v2344_v5  ;;  %v2346_v11 = vld [vmem:[%s3104_s0 + $0x88] sm:$0xff]   ;;  %v2348_v13 = vld [vmem:[%s3104_s0 + $0x90] sm:$0xff]   ;;  %v2349_v14 = vld [vmem:[%s3104_s0 + $0x18] sm:$0xff]  }
   0x6   :  { %v2350_v15 = vld [vmem:[%s3104_s0 + $0x98] sm:$0xff]   ;;  %v2351_v16 = vld [vmem:[%s3104_s0 + $0x20] sm:$0xff]   ;;  %v2353_v18 = vld [vmem:[%s3104_s0 + $0x28] sm:$0xff]  }
   0x7   :  { %2242 = vmatpush3.bf16.msra.mxu0 %v2336_v1  ;;  %2328 = vmatpush3.bf16.msra.mxu1 %v2336_v1  ;;  %v2352_v17 = vld [vmem:[%s3104_s0 + $0xa0] sm:$0xff]   ;;  %v2354_v19 = vld [vmem:[%s3104_s0 + $0xa8] sm:$0xff]   ;;  %v2355_v20 = vld [vmem:[%s3104_s0 + $0x30] sm:$0xff]  }
   0x8   :  { %2243 = vmatprep.subr.bf16.mxu0 %v2337_v2  ;;  %2321 = vmatprep.subr.bf16.mxu1 %v2337_v2  ;;  %v2356_v21 = vld [vmem:[%s3104_s0 + $0xb0] sm:$0xff]   ;;  %v2357_v22 = vld [vmem:[%s3104_s0 + $0x38] sm:$0xff]   ;;  %v2359_v24 = vld [vmem:[%s3104_s0 + $0x40] sm:$0xff]  }
   0x9   :  { %v2358_v23 = vld [vmem:[%s3104_s0 + $0xb8] sm:$0xff]   ;;  %v2360_v25 = vld [vmem:[%s3104_s0 + $0xc0] sm:$0xff]   ;;  %v2361_v26 = vld [vmem:[%s3104_s0 + $0x48] sm:$0xff]  }
   0xa   :  { %v2362_v27 = vld [vmem:[%s3104_s0 + $0xc8] sm:$0xff]   ;;  %v2363_v28 = vld [vmem:[%s3104_s0 + $0x50] sm:$0xff]   ;;  %v2365_v30 = vld [vmem:[%s3104_s0 + $0x58] sm:$0xff]  }
   0xb   :  { %2244 = vmatpush3.bf16.msra.mxu0 %v2337_v2  ;;  %2329 = vmatpush3.bf16.msra.mxu1 %v2337_v2  ;;  %v2364_v29 = vld [vmem:[%s3104_s0 + $0xd0] sm:$0xff]   ;;  %v2366_v31 = vld [vmem:[%s3104_s0 + $0xd8] sm:$0xff]   ;;  %v2367_v32 = vld [vmem:[%s3104_s0 + $0x60] sm:$0xff]  }
   0xc   :  { %2245 = vmatprep.subr.bf16.mxu0 %v2338_v3  ;;  %2322 = vmatprep.subr.bf16.mxu1 %v2338_v3  ;;  %v2368_v33 = vld [vmem:[%s3104_s0 + $0xe0] sm:$0xff]   ;;  %v2369_v34 = vld [vmem:[%s3104_s0 + $0x68] sm:$0xff]   ;;  %v2371_v36 = vld [vmem:[%s3104_s0 + $0x70] sm:$0xff]  }
   0xd   :  { %v2370_v35 = vld [vmem:[%s3104_s0 + $0xe8] sm:$0xff]   ;;  %v2372_v37 = vld [vmem:[%s3104_s0 + $0xf0] sm:$0xff]   ;;  %v2373_v38 = vld [vmem:[%s3104_s0 + $0x78] sm:$0xff]  }
   0xe   :  { %v2374_v39 = vld [vmem:[%s3104_s0 + $0xf8] sm:$0xff]   ;;  %v2528_v40 = vld [vmem:[%s3105_s4 + $0x8] sm:$0xff]   ;;  %v2538_v42 = vld [vmem:[%s3105_s4] sm:$0xff]  }
   0xf   :  { %2246 = vmatpush3.bf16.msra.mxu0 %v2338_v3  ;;  %2330 = vmatpush3.bf16.msra.mxu1 %v2338_v3  ;;  %v2533_v41 = vld [vmem:[%s3105_s4 + $0x88] sm:$0xff]   ;;  %v2543_v43 = vld [vmem:[%s3105_s4 + $0x80] sm:$0xff]   ;;  %v2548_v44 = vld [vmem:[%s3105_s4 + $0x18] sm:$0xff]   ;;  %v1855_v48 = vunpack.c.l.bf16 %v2528_v40  ;;  %v1851_v50 = vunpack.c.l.bf16 %v2538_v42  ;;  %v1856_v53 = vunpack.c.h.bf16 %v2528_v40  ;;  %v1852_v55 = vunpack.c.h.bf16 %v2538_v42 }
  0x10   :  { %2247 = vmatprep.subr.bf16.mxu0 %v2339_v6  ;;  %2323 = vmatprep.subr.bf16.mxu1 %v2339_v6  ;;  %v2553_v45 = vld [vmem:[%s3105_s4 + $0x98] sm:$0xff]   ;;  %v2558_v46 = vld [vmem:[%s3105_s4 + $0x10] sm:$0xff]   ;;  %v1919_v49 = vunpack.c.l.bf16 %v2533_v41  ;;  %v1915_v51 = vunpack.c.l.bf16 %v2543_v43  ;;  %v2572_v52 = vld [vmem:[%s3105_s4 + $0x28] sm:$0xff]   ;;  %v1920_v54 = vunpack.c.h.bf16 %v2533_v41  ;;  %v1916_v56 = vunpack.c.h.bf16 %v2543_v43 }
  0x11   :  { %v2563_v47 = vld [vmem:[%s3105_s4 + $0x90] sm:$0xff]   ;;  %v2581_v57 = vld [vmem:[%s3105_s4 + $0xa8] sm:$0xff]   ;;  %v2586_v58 = vld [vmem:[%s3105_s4 + $0x20] sm:$0xff]   ;;  %v1863_v60 = vunpack.c.l.bf16 %v2548_v44  ;;  %v1927_v61 = vunpack.c.l.bf16 %v2553_v45  ;;  %v1859_v62 = vunpack.c.l.bf16 %v2558_v46  ;;  %v1864_v1 = vunpack.c.h.bf16 %v2548_v44 }
  0x12   :  { %v2591_v59 = vld [vmem:[%s3105_s4 + $0xa0] sm:$0xff]   ;;  %v1923_v63 = vunpack.c.l.bf16 %v2563_v47  ;;  %v2600_v0 = vld [vmem:[%s3105_s4 + $0x38] sm:$0xff]   ;;  %v1928_v2 = vunpack.c.h.bf16 %v2553_v45  ;;  %v1860_v3 = vunpack.c.h.bf16 %v2558_v46  ;;  %v1924_v4 = vunpack.c.h.bf16 %v2563_v47 }
  0x13   :  { %2248 = vmatpush3.bf16.msra.mxu0 %v2339_v6  ;;  %2331 = vmatpush3.bf16.msra.mxu1 %v2339_v6  ;;  %v2609_v5 = vld [vmem:[%s3105_s4 + $0xb8] sm:$0xff]   ;;  %v2614_v6 = vld [vmem:[%s3105_s4 + $0x30] sm:$0xff]  }
  0x14   :  { %2249 = vmatprep.subr.bf16.mxu0 %v2340_v7  ;;  %2324 = vmatprep.subr.bf16.mxu1 %v2340_v7  ;;  %v2814_v45 = vld [vmem:[%s3105_s4 + $0x78] sm:$0xff]  }
  0x17   :  { %2250 = vmatpush3.bf16.msra.mxu0 %v2340_v7  ;;  %2332 = vmatpush3.bf16.msra.mxu1 %v2340_v7  ;;  %v2619_v7 = vld [vmem:[%s3105_s4 + $0xb0] sm:$0xff]  }
  0x18   :  { %2251 = vmatprep.subr.bf16.mxu0 %v2341_v8  ;;  %2325 = vmatprep.subr.bf16.mxu1 %v2341_v8 }
  0x1b   :  { %2252 = vmatpush3.bf16.msra.mxu0 %v2341_v8  ;;  %2333 = vmatpush3.bf16.msra.mxu1 %v2341_v8 }
  0x1c   :  { %2253 = vmatprep.subr.bf16.mxu0 %v2342_v9  ;;  %2326 = vmatprep.subr.bf16.mxu1 %v2342_v9 }
  0x1f   :  { %2254 = vmatpush3.bf16.msra.mxu0 %v2342_v9  ;;  %2334 = vmatpush3.bf16.msra.mxu1 %v2342_v9 }
  0x22   :  { %2256 = vmatmul.mubr.bf16.vlgmr.msra.gmra.mrb[0].mxu0 %v2345_v10  ;;  %2288 = vmatmul.mubr.bf16.vlgmr.msra.gmra.mrb[0].mxu1 %v2346_v11 }
  0x23   :  { %2259 = vmatprep.mubr.bf16.mxu0 %v2347_v12  ;;  %2291 = vmatprep.mubr.bf16.mxu1 %v2348_v13  ;;  %v2628_v12 = vld [vmem:[%s3105_s4 + $0x48] sm:$0xff]  }
  0x2a   :  { %2260 = vmatmul.mubr.bf16.gmra.mrb[4].mxu0 %v2349_v14  ;;  %2292 = vmatmul.mubr.bf16.gmra.mrb[4].mxu1 %v2350_v15 }
  0x2b   :  { %2263 = vmatprep.mubr.bf16.mxu0 %v2351_v16  ;;  %2295 = vmatprep.mubr.bf16.mxu1 %v2352_v17  ;;  %v2637_v17 = vld [vmem:[%s3105_s4 + $0xc8] sm:$0xff]  }
  0x32   :  { %2264 = vmatmul.mubr.bf16.gmra.mrb[8].mxu0 %v2353_v18  ;;  %2296 = vmatmul.mubr.bf16.gmra.mrb[8].mxu1 %v2354_v19  ;;  %v2642_v18 = vld [vmem:[%s3105_s4 + $0x40] sm:$0xff]  }
  0x33   :  { %2267 = vmatprep.mubr.bf16.mxu0 %v2355_v20  ;;  %2299 = vmatprep.mubr.bf16.mxu1 %v2356_v21  ;;  %v2647_v19 = vld [vmem:[%s3105_s4 + $0xc0] sm:$0xff]  }
  0x34   :  { %v2721_v21 = vld [vmem:[%s3107_s3] ss:$0 sm:$0xff] }
  0x3a   :  { %2268 = vmatmul.mubr.bf16.gmra.mrb[12].mxu0 %v2357_v22  ;;  %2300 = vmatmul.mubr.bf16.gmra.mrb[12].mxu1 %v2358_v23 }
  0x3b   :  { %2271 = vmatprep.mubr.bf16.mxu0 %v2359_v24  ;;  %2303 = vmatprep.mubr.bf16.mxu1 %v2360_v25  ;;  %v2656_v24 = vld [vmem:[%s3105_s4 + $0x58] sm:$0xff]  }
  0x42   :  { %2272 = vmatmul.mubr.bf16.gmra.mrb[16].mxu0 %v2361_v26  ;;  %2304 = vmatmul.mubr.bf16.gmra.mrb[16].mxu1 %v2362_v27 }
  0x43   :  { %2275 = vmatprep.mubr.bf16.mxu0 %v2363_v28  ;;  %2307 = vmatprep.mubr.bf16.mxu1 %v2364_v29  ;;  %v2665_v29 = vld [vmem:[%s3105_s4 + $0xd8] sm:$0xff]  }
  0x4a   :  { %2276 = vmatmul.mubr.bf16.gmra.mrb[20].mxu0 %v2365_v30  ;;  %2308 = vmatmul.mubr.bf16.gmra.mrb[20].mxu1 %v2366_v31  ;;  %v2670_v30 = vld [vmem:[%s3105_s4 + $0x50] sm:$0xff]  }
  0x4b   :  { %2279 = vmatprep.mubr.bf16.mxu0 %v2367_v32  ;;  %2311 = vmatprep.mubr.bf16.mxu1 %v2368_v33  ;;  %v2675_v31 = vld [vmem:[%s3105_s4 + $0xd0] sm:$0xff]   ;;  %v2693_v33 = vld [vmem:[%s3105_s4 + $0xe8] sm:$0xff]  }
  0x52   :  { %2280 = vmatmul.mubr.bf16.gmra.mrb[24].mxu0 %v2369_v34  ;;  %2312 = vmatmul.mubr.bf16.gmra.mrb[24].mxu1 %v2370_v35  ;;  %v2698_v35 = vld [vmem:[%s3105_s4 + $0x60] sm:$0xff]  }
  0x53   :  { %2283 = vmatprep.mubr.bf16.mxu0 %v2371_v36  ;;  %2315 = vmatprep.mubr.bf16.mxu1 %v2372_v37  ;;  %v2684_v36 = vld [vmem:[%s3105_s4 + $0x68] sm:$0xff]   ;;  %v2703_v37 = vld [vmem:[%s3105_s4 + $0xe0] sm:$0xff]  }
  0x5a   :  { %2284 = vmatmul.mubr.bf16.gmra.mrb[28].mxu0 %v2373_v38  ;;  %2316 = vmatmul.mubr.bf16.gmra.mrb[28].mxu1 %v2374_v39  ;;  %v2708_v39 = vld [vmem:[%s3106_s2] ss:$0 sm:$0xff] }
  0xf5   :  { %v2257_v22 = vpop.f32.mrb[0].mxu0  ;;  %v2289_v28 = vpop.f32.mrb[0].mxu1 }
  0xf6   :  { %v966_v26 = vmul.f32 %v2257_v22, %v2708_v39  ;;  %v998_v25 = vmul.f32 %v2289_v28, %v2708_v39  ;;  %v507_v23 = vpop.f32.mrb[1].mxu0  ;;  %v635_v20 = vpop.f32.mrb[1].mxu1 }
  0xf7   :  { %v964_v14 = vmul.f32 %v2708_v39, %v507_v23  ;;  %v996_v38 = vmul.f32 %v2708_v39, %v635_v20  ;;  %v2258_v13 = vpop.f32.mrb[2].mxu0  ;;  %v2290_v34 = vpop.f32.mrb[2].mxu1 }
  0xf8   :  { %v1037_v22 = vadd.f32 %v2721_v21, %v966_v26  ;;  %v1069_v28 = vadd.f32 %v2721_v21, %v998_v25  ;;  %v967_v11 = vmul.f32 %v2258_v13, %v2708_v39  ;;  %v999_v16 = vmul.f32 %v2290_v34, %v2708_v39  ;;  %v510_v10 = vpop.f32.mrb[3].mxu0  ;;  %v638_v15 = vpop.f32.mrb[3].mxu1 }
  0xf9   :  { %v1035_v23 = vadd.f32 %v2721_v21, %v964_v14  ;;  %v1067_v20 = vadd.f32 %v2721_v21, %v996_v38  ;;  %v965_v9 = vmul.f32 %v2708_v39, %v510_v10  ;;  %v997_v32 = vmul.f32 %v2708_v39, %v638_v15 }
  0xfa   :  { %v1229_v27 = vadd.f32 %v1855_v48, %v1037_v22  ;;  %v1261_v25 = vadd.f32 %v1919_v49, %v1069_v28  ;;  %v1038_v13 = vadd.f32 %v2721_v21, %v967_v11  ;;  %v1070_v26 = vadd.f32 %v2721_v21, %v999_v16 }
  0xfb   :  { %v1227_v34 = vadd.f32 %v1851_v50, %v1035_v23  ;;  %v1259_v14 = vadd.f32 %v1915_v51, %v1067_v20  ;;  %v1036_v10 = vadd.f32 %v2721_v21, %v965_v9  ;;  %v1068_v15 = vadd.f32 %v2721_v21, %v997_v32 }
  0xfc   :  { %v1293_v38 = vmax.f32 %v1229_v27, 0.0  ;;  %v1325_v8 = vmax.f32 %v1261_v25, 0.0  ;;  %v1230_v48 = vadd.f32 %v1856_v53, %v1038_v13  ;;  %v1262_v49 = vadd.f32 %v1920_v54, %v1070_v26 }
  0xfd   :  { %v1291_v11 = vmax.f32 %v1227_v34, 0.0  ;;  %v1323_v16 = vmax.f32 %v1259_v14, 0.0  ;;  %v1228_v50 = vadd.f32 %v1852_v55, %v1036_v10  ;;  %v1260_v51 = vadd.f32 %v1916_v56, %v1068_v15  ;;  %v2261_v22 = vpop.f32.mrb[4].mxu0  ;;  %v2293_v9 = vpop.f32.mrb[4].mxu1 }
  0xfe   :  { %v1294_v28 = vmax.f32 %v1230_v48, 0.0  ;;  %v1326_v32 = vmax.f32 %v1262_v49, 0.0  ;;  %v970_v27 = vmul.f32 %v2261_v22, %v2708_v39  ;;  %v1002_v40 = vmul.f32 %v2293_v9, %v2708_v39  ;;  %v523_v53 = vpop.f32.mrb[5].mxu0  ;;  %v651_v23 = vpop.f32.mrb[5].mxu1 }
  0xff   :  { %v1292_v41 = vmax.f32 %v1228_v50, 0.0  ;;  %v1324_v54 = vmax.f32 %v1260_v51, 0.0  ;;  %v968_v20 = vmul.f32 %v2708_v39, %v523_v53  ;;  %v1000_v42 = vmul.f32 %v2708_v39, %v651_v23  ;;  %v2262_v55 = vpop.f32.mrb[6].mxu0  ;;  %v2294_v25 = vpop.f32.mrb[6].mxu1 }
 0x100   :  { %v1985_v43 = vpack.c.bf16 %v1294_v28, %v1293_v38  ;;  %v2065_v56 = vpack.c.bf16 %v1326_v32, %v1325_v8  ;;  %v1041_v13 = vadd.f32 %v2721_v21, %v970_v27  ;;  %v1073_v26 = vadd.f32 %v2721_v21, %v1002_v40  ;;  %v526_v34 = vpop.f32.mrb[7].mxu0  ;;  %v654_v14 = vpop.f32.mrb[7].mxu1 }
 0x101   :  { %v1980_v10 = vpack.c.bf16 %v1292_v41, %v1291_v11  ;;  %v2060_v15 = vpack.c.bf16 %v1324_v54, %v1323_v16  ;;  %v1039_v48 = vadd.f32 %v2721_v21, %v968_v20  ;;  %v1071_v49 = vadd.f32 %v2721_v21, %v1000_v42 }
 0x102   :  { %2168 = vst [vmem:[%s3108_s5 + $0x8] sm:$0xff] %v1985_v43   ;;  %2184 = vst [vmem:[%s3108_s5 + $0x88] sm:$0xff] %v2065_v56   ;;  %v1233_v8 = vadd.f32 %v1863_v60, %v1041_v13  ;;  %v1265_v38 = vadd.f32 %v1927_v61, %v1073_v26  ;;  %v971_v11 = vmul.f32 %v2262_v55, %v2708_v39 }
 0x103   :  { %v1003_v16 = vmul.f32 %v2294_v25, %v2708_v39  ;;  %1981 = vst [vmem:[%s3108_s5] sm:$0xff] %v1980_v10   ;;  %2183 = vst [vmem:[%s3108_s5 + $0x80] sm:$0xff] %v2060_v15   ;;  %v1231_v50 = vadd.f32 %v1859_v62, %v1039_v48  ;;  %v1263_v60 = vadd.f32 %v1923_v63, %v1071_v49  ;;  %v2826_v10 = vld [vmem:[%s3105_s4 + $0x70] sm:$0xff]  }
 0x104   :  { %v969_v61 = vmul.f32 %v2708_v39, %v526_v34  ;;  %v1001_v51 = vmul.f32 %v2708_v39, %v654_v14  ;;  %v1297_v22 = vmax.f32 %v1233_v8, 0.0  ;;  %v1329_v9 = vmax.f32 %v1265_v38, 0.0  ;;  %v2831_v15 = vld [vmem:[%s3105_s4 + $0xf0] sm:$0xff]  }
 0x105   :  { %v1042_v28 = vadd.f32 %v2721_v21, %v971_v11  ;;  %v1074_v32 = vadd.f32 %v2721_v21, %v1003_v16  ;;  %v1295_v27 = vmax.f32 %v1231_v50, 0.0  ;;  %v1327_v40 = vmax.f32 %v1263_v60, 0.0  ;;  %v2265_v62 = vpop.f32.mrb[8].mxu0  ;;  %v2297_v41 = vpop.f32.mrb[8].mxu1 }
 0x106   :  { %v1040_v53 = vadd.f32 %v2721_v21, %v969_v61  ;;  %v1072_v23 = vadd.f32 %v2721_v21, %v1001_v51  ;;  %v974_v20 = vmul.f32 %v2265_v62, %v2708_v39  ;;  %v1006_v42 = vmul.f32 %v2297_v41, %v2708_v39  ;;  %v539_v55 = vpop.f32.mrb[9].mxu0  ;;  %v667_v25 = vpop.f32.mrb[9].mxu1 }
 0x107   :  { %v1234_v63 = vadd.f32 %v1864_v1, %v1042_v28  ;;  %v1266_v54 = vadd.f32 %v1928_v2, %v1074_v32  ;;  %v972_v13 = vmul.f32 %v2708_v39, %v539_v55  ;;  %v1004_v44 = vmul.f32 %v2708_v39, %v667_v25  ;;  %v2266_v1 = vpop.f32.mrb[10].mxu0  ;;  %v2298_v26 = vpop.f32.mrb[10].mxu1  ;;  %v2819_v2 = vld [vmem:[%s3105_s4 + $0xf8] sm:$0xff]  }
 0x108   :  { %v1232_v43 = vadd.f32 %v1860_v3, %v1040_v53  ;;  %v1264_v56 = vadd.f32 %v1924_v4, %v1072_v23  ;;  %v1045_v47 = vadd.f32 %v2721_v21, %v974_v20  ;;  %v1077_v4 = vadd.f32 %v2721_v21, %v1006_v42  ;;  %v542_v34 = vpop.f32.mrb[11].mxu0  ;;  %v670_v14 = vpop.f32.mrb[11].mxu1 }
 0x109   :  { %v1298_v46 = vmax.f32 %v1234_v63, 0.0  ;;  %v1330_v3 = vmax.f32 %v1266_v54, 0.0  ;;  %v1043_v8 = vadd.f32 %v2721_v21, %v972_v13  ;;  %v1075_v38 = vadd.f32 %v2721_v21, %v1004_v44 }
 0x10a   :  { %v1296_v48 = vmax.f32 %v1232_v43, 0.0  ;;  %v1328_v49 = vmax.f32 %v1264_v56, 0.0  ;;  %v1911_v50 = vunpack.c.l.bf16 %v2814_v45  ;;  %v1975_v60 = vunpack.c.l.bf16 %v2819_v2 }
 0x10b   :  { %v1995_v11 = vpack.c.bf16 %v1298_v46, %v1297_v22  ;;  %v2075_v16 = vpack.c.bf16 %v1330_v3, %v1329_v9  ;;  %v1907_v28 = vunpack.c.l.bf16 %v2826_v10  ;;  %v1971_v32 = vunpack.c.l.bf16 %v2831_v15 }
 0x10c   :  { %v1990_v61 = vpack.c.bf16 %v1296_v48, %v1295_v27  ;;  %v2070_v51 = vpack.c.bf16 %v1328_v49, %v1327_v40  ;;  %v3109_v22 = vunpack.c.l.bf16 %v2572_v52  ;;  %v3110_v53 = vunpack.c.l.bf16 %v2581_v57 }
 0x10d   :  { %2170 = vst [vmem:[%s3108_s5 + $0x18] sm:$0xff] %v1995_v11   ;;  %2186 = vst [vmem:[%s3108_s5 + $0x98] sm:$0xff] %v2075_v16   ;;  %v975_v27 = vmul.f32 %v2266_v1, %v2708_v39  ;;  %v1007_v40 = vmul.f32 %v2298_v26, %v2708_v39  ;;  %v3111_v62 = vunpack.c.l.bf16 %v2586_v58  ;;  %v3112_v63 = vunpack.c.l.bf16 %v2591_v59  ;;  %v2269_v55 = vpop.f32.mrb[12].mxu0  ;;  %v2301_v25 = vpop.f32.mrb[12].mxu1 }
 0x10e   :  { %v1237_v9 = vadd.f32 %v3109_v22, %v1045_v47  ;;  %v1269_v23 = vadd.f32 %v3110_v53, %v1077_v4  ;;  %2169 = vst [vmem:[%s3108_s5 + $0x10] sm:$0xff] %v1990_v61   ;;  %2185 = vst [vmem:[%s3108_s5 + $0x90] sm:$0xff] %v2070_v51   ;;  %v973_v20 = vmul.f32 %v2708_v39, %v542_v34  ;;  %v555_v1 = vpop.f32.mrb[13].mxu0  ;;  %v683_v26 = vpop.f32.mrb[13].mxu1  ;;  %v3113_v48 = vunpack.c.h.bf16 %v2572_v52 }
 0x10f   :  { %v1235_v41 = vadd.f32 %v3111_v62, %v1043_v8  ;;  %v1267_v54 = vadd.f32 %v3112_v63, %v1075_v38  ;;  %v1005_v42 = vmul.f32 %v2708_v39, %v670_v14  ;;  %v1046_v43 = vadd.f32 %v2721_v21, %v975_v27  ;;  %v2270_v34 = vpop.f32.mrb[14].mxu0  ;;  %v2302_v14 = vpop.f32.mrb[14].mxu1 }
 0x110   :  { %v1078_v56 = vadd.f32 %v2721_v21, %v1007_v40  ;;  %v978_v13 = vmul.f32 %v2269_v55, %v2708_v39  ;;  %v1010_v44 = vmul.f32 %v2301_v25, %v2708_v39  ;;  %v1044_v46 = vadd.f32 %v2721_v21, %v973_v20  ;;  %v558_v61 = vpop.f32.mrb[15].mxu0  ;;  %v686_v51 = vpop.f32.mrb[15].mxu1 }
 0x111   :  { %v1076_v3 = vadd.f32 %v2721_v21, %v1005_v42  ;;  %v976_v47 = vmul.f32 %v2708_v39, %v555_v1  ;;  %v1008_v4 = vmul.f32 %v2708_v39, %v683_v26  ;;  %v1238_v49 = vadd.f32 %v3113_v48, %v1046_v43 }
 0x112   :  { %v3114_v8 = vunpack.c.h.bf16 %v2581_v57  ;;  %v1049_v11 = vadd.f32 %v2721_v21, %v978_v13  ;;  %v1081_v16 = vadd.f32 %v2721_v21, %v1010_v44  ;;  %v3115_v22 = vunpack.c.h.bf16 %v2586_v58 }
 0x113   :  { %v3116_v27 = vunpack.c.h.bf16 %v2591_v59  ;;  %v1047_v62 = vadd.f32 %v2721_v21, %v976_v47  ;;  %v1079_v52 = vadd.f32 %v2721_v21, %v1008_v4  ;;  %v1301_v63 = vmax.f32 %v1237_v9, 0.0 }
 0x114   :  { %v1270_v38 = vadd.f32 %v3114_v8, %v1078_v56  ;;  %v1236_v53 = vadd.f32 %v3115_v22, %v1044_v46  ;;  %v1333_v20 = vmax.f32 %v1269_v23, 0.0  ;;  %v1302_v57 = vmax.f32 %v1238_v49, 0.0 }
 0x115   :  { %v1268_v40 = vadd.f32 %v3116_v27, %v1076_v3  ;;  %v1299_v55 = vmax.f32 %v1235_v41, 0.0  ;;  %v1331_v25 = vmax.f32 %v1267_v54, 0.0  ;;  %v3117_v58 = vunpack.c.l.bf16 %v2600_v0  ;;  %v2273_v41 = vpop.f32.mrb[16].mxu0  ;;  %v2305_v54 = vpop.f32.mrb[16].mxu1 }
 0x116   :  { %v1334_v42 = vmax.f32 %v1270_v38, 0.0  ;;  %v1300_v43 = vmax.f32 %v1236_v53, 0.0  ;;  %v2005_v13 = vpack.c.bf16 %v1302_v57, %v1301_v63  ;;  %v3118_v59 = vunpack.c.l.bf16 %v2609_v5 }
 0x117   :  { %v1332_v56 = vmax.f32 %v1268_v40, 0.0  ;;  %v1241_v1 = vadd.f32 %v3117_v58, %v1049_v11  ;;  %v3119_v47 = vunpack.c.l.bf16 %v2614_v6  ;;  %v3120_v23 = vunpack.c.l.bf16 %v2619_v7  ;;  %v571_v11 = vpop.f32.mrb[17].mxu0 }
 0x118   :  { %v2085_v44 = vpack.c.bf16 %v1334_v42, %v1333_v20  ;;  %v1273_v26 = vadd.f32 %v3118_v59, %v1081_v16  ;;  %v2000_v46 = vpack.c.bf16 %v1300_v43, %v1299_v55  ;;  %2172 = vst [vmem:[%s3108_s5 + $0x28] sm:$0xff] %v2005_v13   ;;  %v979_v48 = vmul.f32 %v2270_v34, %v2708_v39  ;;  %v699_v16 = vpop.f32.mrb[17].mxu1  ;;  %v2274_v53 = vpop.f32.mrb[18].mxu0 }
 0x119   :  { %v2080_v3 = vpack.c.bf16 %v1332_v56, %v1331_v25  ;;  %v1239_v9 = vadd.f32 %v3119_v47, %v1047_v62  ;;  %v1271_v4 = vadd.f32 %v3120_v23, %v1079_v52  ;;  %v1011_v49 = vmul.f32 %v2302_v14, %v2708_v39  ;;  %v574_v63 = vpop.f32.mrb[19].mxu0 }
 0x11a   :  { %2188 = vst [vmem:[%s3108_s5 + $0xa8] sm:$0xff] %v2085_v44   ;;  %v977_v8 = vmul.f32 %v2708_v39, %v558_v61  ;;  %v1009_v38 = vmul.f32 %v2708_v39, %v686_v51  ;;  %2171 = vst [vmem:[%s3108_s5 + $0x20] sm:$0xff] %v2000_v46   ;;  %v982_v22 = vmul.f32 %v2273_v41, %v2708_v39  ;;  %v2306_v51 = vpop.f32.mrb[18].mxu1  ;;  %v3121_v43 = vunpack.c.h.bf16 %v2600_v0 }
 0x11b   :  { %2187 = vst [vmem:[%s3108_s5 + $0xa0] sm:$0xff] %v2080_v3   ;;  %v1014_v34 = vmul.f32 %v2305_v54, %v2708_v39  ;;  %v980_v14 = vmul.f32 %v2708_v39, %v571_v11  ;;  %v1012_v61 = vmul.f32 %v2708_v39, %v699_v16  ;;  %v1050_v27 = vadd.f32 %v2721_v21, %v979_v48  ;;  %v702_v20 = vpop.f32.mrb[19].mxu1 }
 0x11c   :  { %v1082_v40 = vadd.f32 %v2721_v21, %v1011_v49  ;;  %v1048_v62 = vadd.f32 %v2721_v21, %v977_v8  ;;  %v1080_v52 = vadd.f32 %v2721_v21, %v1009_v38  ;;  %v1053_v57 = vadd.f32 %v2721_v21, %v982_v22 }
 0x11d   :  { %v1085_v42 = vadd.f32 %v2721_v21, %v1014_v34  ;;  %v1051_v55 = vadd.f32 %v2721_v21, %v980_v14  ;;  %v1083_v25 = vadd.f32 %v2721_v21, %v1012_v61  ;;  %v1242_v56 = vadd.f32 %v3121_v43, %v1050_v27 }
 0x11e   :  { %v3122_v13 = vunpack.c.h.bf16 %v2609_v5  ;;  %v3123_v58 = vunpack.c.h.bf16 %v2614_v6  ;;  %v3124_v46 = vunpack.c.h.bf16 %v2619_v7  ;;  %v1305_v47 = vmax.f32 %v1241_v1, 0.0  ;;  %v2277_v1 = vpop.f32.mrb[20].mxu0 }
 0x11f   :  { %v1337_v23 = vmax.f32 %v1273_v26, 0.0  ;;  %v1303_v41 = vmax.f32 %v1239_v9, 0.0  ;;  %v1335_v54 = vmax.f32 %v1271_v4, 0.0  ;;  %v1306_v48 = vmax.f32 %v1242_v56, 0.0  ;;  %v2309_v26 = vpop.f32.mrb[20].mxu1  ;;  %v587_v27 = vpop.f32.mrb[21].mxu0 }
 0x120   :  { %v1274_v44 = vadd.f32 %v3122_v13, %v1082_v40  ;;  %v1240_v59 = vadd.f32 %v3123_v58, %v1048_v62  ;;  %v1272_v3 = vadd.f32 %v3124_v46, %v1080_v52  ;;  %v3125_v0 = vunpack.c.l.bf16 %v2628_v12  ;;  %v715_v40 = vpop.f32.mrb[21].mxu1 }
 0x121   :  { %v3126_v5 = vunpack.c.l.bf16 %v2637_v17  ;;  %v3127_v6 = vunpack.c.l.bf16 %v2642_v18  ;;  %v3128_v7 = vunpack.c.l.bf16 %v2647_v19  ;;  %v2015_v9 = vpack.c.bf16 %v1306_v48, %v1305_v47  ;;  %v2310_v43 = vpop.f32.mrb[22].mxu1 }
 0x122   :  { %v1338_v49 = vmax.f32 %v1274_v44, 0.0  ;;  %v1304_v8 = vmax.f32 %v1240_v59, 0.0  ;;  %v1336_v38 = vmax.f32 %v1272_v3, 0.0  ;;  %v1245_v11 = vadd.f32 %v3125_v0, %v1053_v57  ;;  %v718_v56 = vpop.f32.mrb[23].mxu1 }
 0x123   :  { %v1277_v16 = vadd.f32 %v3126_v5, %v1085_v42  ;;  %v1243_v22 = vadd.f32 %v3127_v6, %v1051_v55  ;;  %v1275_v34 = vadd.f32 %v3128_v7, %v1083_v25  ;;  %v983_v62 = vmul.f32 %v2274_v53, %v2708_v39  ;;  %v2278_v55 = vpop.f32.mrb[22].mxu0  ;;  %2174 = vst [vmem:[%s3108_s5 + $0x38] sm:$0xff] %v2015_v9  }
 0x124   :  { %v2095_v4 = vpack.c.bf16 %v1338_v49, %v1337_v23  ;;  %v2010_v14 = vpack.c.bf16 %v1304_v8, %v1303_v41  ;;  %v2090_v61 = vpack.c.bf16 %v1336_v38, %v1335_v54  ;;  %v1015_v52 = vmul.f32 %v2306_v51, %v2708_v39  ;;  %v590_v25 = vpop.f32.mrb[23].mxu0 }
 0x125   :  { %v981_v57 = vmul.f32 %v2708_v39, %v574_v63  ;;  %v1013_v42 = vmul.f32 %v2708_v39, %v702_v20  ;;  %v986_v53 = vmul.f32 %v2277_v1, %v2708_v39  ;;  %v1018_v51 = vmul.f32 %v2309_v26, %v2708_v39 }
 0x126   :  { %2190 = vst [vmem:[%s3108_s5 + $0xb8] sm:$0xff] %v2095_v4   ;;  %2173 = vst [vmem:[%s3108_s5 + $0x30] sm:$0xff] %v2010_v14   ;;  %v984_v63 = vmul.f32 %v2708_v39, %v587_v27  ;;  %v1016_v20 = vmul.f32 %v2708_v39, %v715_v40  ;;  %v1054_v13 = vadd.f32 %v2721_v21, %v983_v62  ;;  %v3129_v41 = vunpack.c.h.bf16 %v2628_v12  ;;  %v2281_v27 = vpop.f32.mrb[24].mxu0  ;;  %v2313_v12 = vpop.f32.mrb[24].mxu1 }
 0x127   :  { %2189 = vst [vmem:[%s3108_s5 + $0xb0] sm:$0xff] %v2090_v61   ;;  %v1086_v44 = vadd.f32 %v2721_v21, %v1015_v52  ;;  %v1052_v58 = vadd.f32 %v2721_v21, %v981_v57  ;;  %v1084_v59 = vadd.f32 %v2721_v21, %v1013_v42  ;;  %v1057_v46 = vadd.f32 %v2721_v21, %v986_v53 }
 0x128   :  { %v1089_v3 = vadd.f32 %v2721_v21, %v1018_v51  ;;  %v1055_v47 = vadd.f32 %v2721_v21, %v984_v63  ;;  %v1087_v23 = vadd.f32 %v2721_v21, %v1016_v20  ;;  %v1246_v54 = vadd.f32 %v3129_v41, %v1054_v13 }
 0x129   :  { %v3130_v48 = vunpack.c.h.bf16 %v2637_v17  ;;  %v3131_v8 = vunpack.c.h.bf16 %v2642_v18  ;;  %v3132_v0 = vunpack.c.h.bf16 %v2647_v19  ;;  %v1309_v6 = vmax.f32 %v1245_v11, 0.0 }
 0x12a   :  { %v1341_v7 = vmax.f32 %v1277_v16, 0.0  ;;  %v1307_v1 = vmax.f32 %v1243_v22, 0.0  ;;  %v1339_v26 = vmax.f32 %v1275_v34, 0.0  ;;  %v1310_v9 = vmax.f32 %v1246_v54, 0.0  ;;  %v603_v22 = vpop.f32.mrb[25].mxu0  ;;  %v731_v34 = vpop.f32.mrb[25].mxu1 }
 0x12b   :  { %v1278_v49 = vadd.f32 %v3130_v48, %v1086_v44  ;;  %v1244_v38 = vadd.f32 %v3131_v8, %v1052_v58  ;;  %v1276_v5 = vadd.f32 %v3132_v0, %v1084_v59  ;;  %v3133_v40 = vunpack.c.l.bf16 %v2656_v24  ;;  %v2282_v63 = vpop.f32.mrb[26].mxu0  ;;  %v2314_v20 = vpop.f32.mrb[26].mxu1 }
 0x12c   :  { %v3134_v62 = vunpack.c.l.bf16 %v2665_v29  ;;  %v3135_v52 = vunpack.c.l.bf16 %v2670_v30  ;;  %v3136_v11 = vunpack.c.l.bf16 %v2675_v31  ;;  %v2025_v57 = vpack.c.bf16 %v1310_v9, %v1309_v6 }
 0x12d   :  { %v1342_v4 = vmax.f32 %v1278_v49, 0.0  ;;  %v1308_v14 = vmax.f32 %v1244_v38, 0.0  ;;  %v1340_v61 = vmax.f32 %v1276_v5, 0.0  ;;  %v1249_v17 = vadd.f32 %v3133_v40, %v1057_v46  ;;  %v606_v46 = vpop.f32.mrb[27].mxu0 }
 0x12e   :  { %v1281_v18 = vadd.f32 %v3134_v62, %v1089_v3  ;;  %v1247_v19 = vadd.f32 %v3135_v52, %v1055_v47  ;;  %v1279_v16 = vadd.f32 %v3136_v11, %v1087_v23  ;;  %v987_v13 = vmul.f32 %v2278_v55, %v2708_v39  ;;  %v734_v3 = vpop.f32.mrb[27].mxu1  ;;  %2176 = vst [vmem:[%s3108_s5 + $0x48] sm:$0xff] %v2025_v57   ;;  %v2285_v40 = vpop.f32.mrb[28].mxu0 }
 0x12f   :  { %v2105_v42 = vpack.c.bf16 %v1342_v4, %v1341_v7  ;;  %v2020_v53 = vpack.c.bf16 %v1308_v14, %v1307_v1  ;;  %v2100_v51 = vpack.c.bf16 %v1340_v61, %v1339_v26  ;;  %v1019_v44 = vmul.f32 %v2310_v43, %v2708_v39  ;;  %v2317_v62 = vpop.f32.mrb[28].mxu1 }
 0x130   :  { %v985_v58 = vmul.f32 %v2708_v39, %v590_v25  ;;  %v1017_v59 = vmul.f32 %v2708_v39, %v718_v56  ;;  %v990_v55 = vmul.f32 %v2281_v27, %v2708_v39  ;;  %v1022_v43 = vmul.f32 %v2313_v12, %v2708_v39  ;;  %v747_v57 = vpop.f32.mrb[29].mxu1 }
 0x131   :  { %2192 = vst [vmem:[%s3108_s5 + $0xc8] sm:$0xff] %v2105_v42   ;;  %2175 = vst [vmem:[%s3108_s5 + $0x40] sm:$0xff] %v2020_v53   ;;  %v988_v25 = vmul.f32 %v2708_v39, %v603_v22  ;;  %v1020_v56 = vmul.f32 %v2708_v39, %v731_v34  ;;  %v1058_v47 = vadd.f32 %v2721_v21, %v987_v13  ;;  %v3137_v0 = vunpack.c.h.bf16 %v2656_v24  ;;  %v619_v34 = vpop.f32.mrb[29].mxu0 }
 0x132   :  { %2191 = vst [vmem:[%s3108_s5 + $0xc0] sm:$0xff] %v2100_v51   ;;  %v1090_v23 = vadd.f32 %v2721_v21, %v1019_v44  ;;  %v1056_v41 = vadd.f32 %v2721_v21, %v985_v58  ;;  %v1088_v54 = vadd.f32 %v2721_v21, %v1017_v59  ;;  %v1061_v48 = vadd.f32 %v2721_v21, %v990_v55  ;;  %v2318_v51 = vpop.f32.mrb[30].mxu1 }
 0x133   :  { %v1093_v49 = vadd.f32 %v2721_v21, %v1022_v43  ;;  %v1059_v8 = vadd.f32 %v2721_v21, %v988_v25  ;;  %v1091_v38 = vadd.f32 %v2721_v21, %v1020_v56  ;;  %v1250_v5 = vadd.f32 %v3137_v0, %v1058_v47  ;;  %v750_v43 = vpop.f32.mrb[31].mxu1 }
 0x134   :  { %v3138_v6 = vunpack.c.h.bf16 %v2665_v29  ;;  %v3139_v1 = vunpack.c.h.bf16 %v2670_v30  ;;  %v3140_v9 = vunpack.c.h.bf16 %v2675_v31  ;;  %v1313_v14 = vmax.f32 %v1249_v17, 0.0 }
 0x135   :  { %v1345_v61 = vmax.f32 %v1281_v18, 0.0  ;;  %v1311_v27 = vmax.f32 %v1247_v19, 0.0  ;;  %v1343_v12 = vmax.f32 %v1279_v16, 0.0  ;;  %v1314_v52 = vmax.f32 %v1250_v5, 0.0  ;;  %v2286_v16 = vpop.f32.mrb[30].mxu0 }
 0x136   :  { %v1282_v7 = vadd.f32 %v3138_v6, %v1090_v23  ;;  %v1248_v26 = vadd.f32 %v3139_v1, %v1056_v41  ;;  %v1280_v4 = vadd.f32 %v3140_v9, %v1088_v54  ;;  %v3141_v29 = vunpack.c.l.bf16 %v2684_v36  ;;  %v622_v55 = vpop.f32.mrb[31].mxu0 }
 0x137   :  { %v3142_v30 = vunpack.c.l.bf16 %v2693_v33  ;;  %v3143_v31 = vunpack.c.l.bf16 %v2698_v35  ;;  %v3144_v18 = vunpack.c.l.bf16 %v2703_v37  ;;  %v2035_v13 = vpack.c.bf16 %v1314_v52, %v1313_v14 }
 0x138   :  { %v1346_v11 = vmax.f32 %v1282_v7, 0.0  ;;  %v1312_v22 = vmax.f32 %v1248_v26, 0.0  ;;  %v1344_v24 = vmax.f32 %v1280_v4, 0.0  ;;  %v1253_v42 = vadd.f32 %v3141_v29, %v1061_v48 }
 0x139   :  { %v1285_v53 = vadd.f32 %v3142_v30, %v1093_v49  ;;  %v1251_v17 = vadd.f32 %v3143_v31, %v1059_v8  ;;  %v1283_v19 = vadd.f32 %v3144_v18, %v1091_v38  ;;  %v991_v25 = vmul.f32 %v2282_v63, %v2708_v39  ;;  %2178 = vst [vmem:[%s3108_s5 + $0x58] sm:$0xff] %v2035_v13  }
 0x13a   :  { %v2115_v44 = vpack.c.bf16 %v1346_v11, %v1345_v61  ;;  %v2030_v58 = vpack.c.bf16 %v1312_v22, %v1311_v27  ;;  %v2110_v59 = vpack.c.bf16 %v1344_v24, %v1343_v12  ;;  %v1023_v56 = vmul.f32 %v2314_v20, %v2708_v39 }
 0x13b   :  { %v989_v47 = vmul.f32 %v2708_v39, %v606_v46  ;;  %v1021_v23 = vmul.f32 %v2708_v39, %v734_v3  ;;  %v994_v63 = vmul.f32 %v2285_v40, %v2708_v39  ;;  %v1026_v20 = vmul.f32 %v2317_v62, %v2708_v39 }
 0x13c   :  { %2194 = vst [vmem:[%s3108_s5 + $0xd8] sm:$0xff] %v2115_v44   ;;  %2177 = vst [vmem:[%s3108_s5 + $0x50] sm:$0xff] %v2030_v58   ;;  %v992_v46 = vmul.f32 %v2708_v39, %v619_v34  ;;  %v1024_v3 = vmul.f32 %v2708_v39, %v747_v57  ;;  %v1062_v41 = vadd.f32 %v2721_v21, %v991_v25  ;;  %v1317_v8 = vmax.f32 %v1253_v42, 0.0 }
 0x13d   :  { %2193 = vst [vmem:[%s3108_s5 + $0xd0] sm:$0xff] %v2110_v59   ;;  %v1094_v54 = vadd.f32 %v2721_v21, %v1023_v56  ;;  %v1060_v48 = vadd.f32 %v2721_v21, %v989_v47  ;;  %v1092_v49 = vadd.f32 %v2721_v21, %v1021_v23  ;;  %v1349_v38 = vmax.f32 %v1285_v53, 0.0 }
 0x13e   :  { %v1315_v0 = vmax.f32 %v1251_v17, 0.0  ;;  %v1347_v5 = vmax.f32 %v1283_v19, 0.0  ;;  %v3145_v6 = vunpack.c.h.bf16 %v2684_v36  ;;  %v3146_v1 = vunpack.c.h.bf16 %v2693_v33 }
 0x13f   :  { %v3147_v9 = vunpack.c.h.bf16 %v2698_v35  ;;  %v3148_v14 = vunpack.c.h.bf16 %v2703_v37  ;;  %v1065_v27 = vadd.f32 %v2721_v21, %v994_v63  ;;  %v1097_v12 = vadd.f32 %v2721_v21, %v1026_v20 }
 0x140   :  { %v1254_v7 = vadd.f32 %v3145_v6, %v1062_v41  ;;  %v1286_v26 = vadd.f32 %v3146_v1, %v1094_v54  ;;  %v1063_v40 = vadd.f32 %v2721_v21, %v992_v46  ;;  %v1095_v62 = vadd.f32 %v2721_v21, %v1024_v3 }
 0x141   :  { %v1252_v4 = vadd.f32 %v3147_v9, %v1060_v48  ;;  %v1284_v61 = vadd.f32 %v3148_v14, %v1092_v49  ;;  %v1912_v33 = vunpack.c.h.bf16 %v2814_v45  ;;  %v1976_v35 = vunpack.c.h.bf16 %v2819_v2 }
 0x142   :  { %v1318_v52 = vmax.f32 %v1254_v7, 0.0  ;;  %v1350_v36 = vmax.f32 %v1286_v26, 0.0  ;;  %v1908_v24 = vunpack.c.h.bf16 %v2826_v10  ;;  %v1972_v37 = vunpack.c.h.bf16 %v2831_v15 }
 0x143   :  { %v1316_v11 = vmax.f32 %v1252_v4, 0.0  ;;  %v1348_v22 = vmax.f32 %v1284_v61, 0.0  ;;  %v995_v30 = vmul.f32 %v2286_v16, %v2708_v39  ;;  %v1027_v53 = vmul.f32 %v2318_v51, %v2708_v39 }
 0x144   :  { %v2045_v34 = vpack.c.bf16 %v1318_v52, %v1317_v8  ;;  %v2125_v57 = vpack.c.bf16 %v1350_v36, %v1349_v38  ;;  %v993_v31 = vmul.f32 %v2708_v39, %v622_v55  ;;  %v1025_v17 = vmul.f32 %v2708_v39, %v750_v43 }
 0x145   :  { %v2040_v29 = vpack.c.bf16 %v1316_v11, %v1315_v0  ;;  %v2120_v42 = vpack.c.bf16 %v1348_v22, %v1347_v5  ;;  %v1257_v18 = vadd.f32 %v1911_v50, %v1065_v27  ;;  %v1289_v39 = vadd.f32 %v1975_v60, %v1097_v12 }
 0x146   :  { %2180 = vst [vmem:[%s3108_s5 + $0x68] sm:$0xff] %v2045_v34   ;;  %2196 = vst [vmem:[%s3108_s5 + $0xe8] sm:$0xff] %v2125_v57   ;;  %v1255_v19 = vadd.f32 %v1907_v28, %v1063_v40  ;;  %v1287_v16 = vadd.f32 %v1971_v32, %v1095_v62  ;;  %v1066_v51 = vadd.f32 %v2721_v21, %v995_v30 }
 0x147   :  { %2179 = vst [vmem:[%s3108_s5 + $0x60] sm:$0xff] %v2040_v29   ;;  %2195 = vst [vmem:[%s3108_s5 + $0xe0] sm:$0xff] %v2120_v42   ;;  %v1098_v13 = vadd.f32 %v2721_v21, %v1027_v53  ;;  %v1064_v44 = vadd.f32 %v2721_v21, %v993_v31  ;;  %v1096_v58 = vadd.f32 %v2721_v21, %v1025_v17  ;;  %v1321_v2 = vmax.f32 %v1257_v18, 0.0 }
 0x148   :  { %v1258_v59 = vadd.f32 %v1912_v33, %v1066_v51  ;;  %v1353_v60 = vmax.f32 %v1289_v39, 0.0  ;;  %v1319_v43 = vmax.f32 %v1255_v19, 0.0  ;;  %v1351_v10 = vmax.f32 %v1287_v16, 0.0 }
 0x149   :  { %v1290_v45 = vadd.f32 %v1976_v35, %v1098_v13  ;;  %v1256_v50 = vadd.f32 %v1908_v24, %v1064_v44  ;;  %v1288_v55 = vadd.f32 %v1972_v37, %v1096_v58 }
 0x14a   :  { %v1322_v28 = vmax.f32 %v1258_v59, 0.0 }
 0x14b   :  { %v1354_v25 = vmax.f32 %v1290_v45, 0.0  ;;  %v1320_v15 = vmax.f32 %v1256_v50, 0.0  ;;  %v1352_v32 = vmax.f32 %v1288_v55, 0.0 }
 0x14c   :  { %v2055_v56 = vpack.c.bf16 %v1322_v28, %v1321_v2 }
 0x14d   :  { %v2135_v47 = vpack.c.bf16 %v1354_v25, %v1353_v60  ;;  %v2050_v23 = vpack.c.bf16 %v1320_v15, %v1319_v43  ;;  %v2130_v63 = vpack.c.bf16 %v1352_v32, %v1351_v10 }
 0x14e   :  { %2182 = vst [vmem:[%s3108_s5 + $0x78] sm:$0xff] %v2055_v56  }
 0x14f   :  { %2198 = vst [vmem:[%s3108_s5 + $0xf8] sm:$0xff] %v2135_v47   ;;  %2181 = vst [vmem:[%s3108_s5 + $0x70] sm:$0xff] %v2050_v23  }
 0x150   :  { %2197 = vst [vmem:[%s3108_s5 + $0xf0] sm:$0xff] %v2130_v63  }

// kernel: _lambda_.26
= control target key start
LH: loop header
LB: loop body
LE: loop exit
PB: predicated region body
PF: predicated region fallthrough
CT: control target
= control target key end

     0   :  { %s1335_s1 = inlined_call_operand.vmem [shape: bf16[384,128], index: 1, kind: input, shape index: {}]   ;;  %s1336_s0 = inlined_call_operand.vmem [shape: bf16[128,384], index: 0, kind: input, shape index: {}]   ;;  %s1337_s2 = inlined_call_operand.vmem [shape: f32[1,128], index: 2, kind: input, shape index: {}]   ;;  %s1338_s3 = inlined_call_operand.vmem [shape: f32[1,128], index: 3, kind: input, shape index: {}]   ;;  %s1339_s4 = inlined_call_operand.vmem [shape: bf16[128,128], index: 4, kind: output, shape index: {}]  }
   0x1   :  { %v1038_v0 = vld [vmem:[%s1335_s1 + $0x40] sm:$0xff]   ;;  %v1041_v3 = vld [vmem:[%s1335_s1 + $0x48] sm:$0xff]   ;;  %v1044_v6 = vld [vmem:[%s1335_s1 + $0x50] sm:$0xff]  }
   0x2   :  { %v1039_v1 = vld [vmem:[%s1335_s1] sm:$0xff]   ;;  %926 = vmatprep.subr.bf16.mxu0 %v1038_v0  ;;  %v1042_v4 = vld [vmem:[%s1335_s1 + $0x8] sm:$0xff]   ;;  %v1045_v7 = vld [vmem:[%s1335_s1 + $0x10] sm:$0xff]  }
   0x3   :  { %v1040_v2 = vld [vmem:[%s1335_s1 + $0x80] sm:$0xff]   ;;  %927 = vmatpush3.bf16.msra.mxu0 %v1039_v1  ;;  %v1043_v5 = vld [vmem:[%s1335_s1 + $0x88] sm:$0xff]   ;;  %v1046_v8 = vld [vmem:[%s1335_s1 + $0x90] sm:$0xff]  }
   0x4   :  { %1006 = vmatprep.subr.bf16.mxu1 %v1040_v2  ;;  %928 = vmatprep.subr.bf16.mxu0 %v1041_v3  ;;  %v1047_v9 = vld [vmem:[%s1335_s1 + $0x58] sm:$0xff]   ;;  %v1050_v12 = vld [vmem:[%s1335_s1 + $0x60] sm:$0xff]   ;;  %v1053_v15 = vld [vmem:[%s1335_s1 + $0x68] sm:$0xff]  }
   0x5   :  { %1007 = vmatpush3.bf16.msra.mxu1 %v1040_v2  ;;  %v1048_v10 = vld [vmem:[%s1335_s1 + $0x18] sm:$0xff]   ;;  %v1052_v13 = vld [vmem:[%s1335_s1 + $0xa0] sm:$0xff]   ;;  %v1055_v16 = vld [vmem:[%s1335_s1 + $0xa8] sm:$0xff]  }
   0x6   :  { %1008 = vmatprep.subr.bf16.mxu1 %v1043_v5  ;;  %v1049_v11 = vld [vmem:[%s1335_s1 + $0x98] sm:$0xff]   ;;  %v1051_v14 = vld [vmem:[%s1335_s1 + $0x20] sm:$0xff]   ;;  %v1054_v17 = vld [vmem:[%s1335_s1 + $0x28] sm:$0xff]  }
   0x7   :  { %929 = vmatpush3.bf16.msra.mxu0 %v1042_v4  ;;  %v1056_v18 = vld [vmem:[%s1335_s1 + $0x70] sm:$0xff]   ;;  %v1059_v21 = vld [vmem:[%s1335_s1 + $0x78] sm:$0xff]   ;;  %v1062_v26 = vld [vmem:[%s1336_s0] ss:$12 sps:$4 sm:$0xff]  }
   0x8   :  { %930 = vmatprep.subr.bf16.mxu0 %v1044_v6  ;;  %v1057_v19 = vld [vmem:[%s1335_s1 + $0x30] sm:$0xff]   ;;  %v1061_v22 = vld [vmem:[%s1335_s1 + $0xb8] sm:$0xff]   ;;  %v1066_v28 = vld [vmem:[%s1336_s0 + $0x20] ss:$12 sps:$4 sm:$0xff]  }
   0x9   :  { %1009 = vmatpush3.bf16.msra.mxu1 %v1043_v5  ;;  %v1058_v20 = vld [vmem:[%s1335_s1 + $0xb0] sm:$0xff]   ;;  %v1060_v25 = vld [vmem:[%s1335_s1 + $0x38] sm:$0xff]   ;;  %v1082_v36 = vld [vmem:[%s1336_s0 + $0x80] ss:$12 sps:$4 sm:$0xff]  }
   0xa   :  { %1010 = vmatprep.subr.bf16.mxu1 %v1046_v8  ;;  %v1064_v23 = vld [vmem:[%s1336_s0 + $0x4] ss:$12 sps:$4 sm:$0xff]   ;;  %v1065_v24 = vld [vmem:[%s1336_s0 + $0x8] ss:$12 sps:$4 sm:$0xff]   ;;  %v1075_v35 = vld [vmem:[%s1336_s0 + $0x4c] ss:$12 sps:$4 sm:$0xff]  }
   0xb   :  { %931 = vmatpush3.bf16.msra.mxu0 %v1045_v7  ;;  %438 = vmatprep.mubr.bf16.mxu0 %v1064_v23  ;;  %v1067_v27 = vld [vmem:[%s1336_s0 + $0x1c] ss:$12 sps:$4 sm:$0xff]   ;;  %v1073_v29 = vld [vmem:[%s1336_s0 + $0x38] ss:$12 sps:$4 sm:$0xff]   ;;  %v1070_v31 = vld [vmem:[%s1336_s0 + $0x34] ss:$12 sps:$4 sm:$0xff]  }
   0xc   :  { %932 = vmatprep.subr.bf16.mxu0 %v1047_v9  ;;  %1022 = vmatprep.mubr.bf16.mxu1 %v1065_v24  ;;  %v1069_v30 = vld [vmem:[%s1336_s0 + $0x18] ss:$12 sps:$4 sm:$0xff]   ;;  %v1074_v32 = vld [vmem:[%s1336_s0 + $0x50] ss:$12 sps:$4 sm:$0xff]   ;;  %v1081_v33 = vld [vmem:[%s1336_s0 + $0x68] ss:$12 sps:$4 sm:$0xff]  }
   0xd   :  { %1011 = vmatpush3.bf16.msra.mxu1 %v1046_v8  ;;  %v1072_v34 = vld [vmem:[%s1336_s0 + $0x30] ss:$12 sps:$4 sm:$0xff]   ;;  %v1089_v37 = vld [vmem:[%s1336_s0 + $0x98] ss:$12 sps:$4 sm:$0xff]   ;;  %v1077_v38 = vld [vmem:[%s1336_s0 + $0x48] ss:$12 sps:$4 sm:$0xff]  }
   0xe   :  { %1012 = vmatprep.subr.bf16.mxu1 %v1049_v11  ;;  %v1078_v39 = vld [vmem:[%s1336_s0 + $0x64] ss:$12 sps:$4 sm:$0xff]   ;;  %v1080_v41 = vld [vmem:[%s1336_s0 + $0x60] ss:$12 sps:$4 sm:$0xff]   ;;  %v1083_v42 = vld [vmem:[%s1336_s0 + $0x7c] ss:$12 sps:$4 sm:$0xff]  }
   0xf   :  { %933 = vmatpush3.bf16.msra.mxu0 %v1048_v10  ;;  %v1090_v40 = vld [vmem:[%s1336_s0 + $0xb0] ss:$12 sps:$4 sm:$0xff]   ;;  %v1085_v43 = vld [vmem:[%s1336_s0 + $0x78] ss:$12 sps:$4 sm:$0xff]   ;;  %v1086_v44 = vld [vmem:[%s1336_s0 + $0x94] ss:$12 sps:$4 sm:$0xff]  }
  0x10   :  { %934 = vmatprep.subr.bf16.mxu0 %v1050_v12  ;;  %v1088_v45 = vld [vmem:[%s1336_s0 + $0x90] ss:$12 sps:$4 sm:$0xff]   ;;  %v1091_v46 = vld [vmem:[%s1336_s0 + $0xac] ss:$12 sps:$4 sm:$0xff]   ;;  %v1093_v47 = vld [vmem:[%s1336_s0 + $0xa8] ss:$12 sps:$4 sm:$0xff]  }
  0x11   :  { %1013 = vmatpush3.bf16.msra.mxu1 %v1049_v11  ;;  %v1266_v55 = vld [vmem:[%s1337_s2] ss:$0 sm:$0xff] }
  0x12   :  { %1014 = vmatprep.subr.bf16.mxu1 %v1052_v13  ;;  %v1271_v59 = vld [vmem:[%s1338_s3] ss:$0 sm:$0xff] }
  0x13   :  { %935 = vmatpush3.bf16.msra.mxu0 %v1051_v14 }
  0x14   :  { %936 = vmatprep.subr.bf16.mxu0 %v1053_v15 }
  0x15   :  { %1015 = vmatpush3.bf16.msra.mxu1 %v1052_v13 }
  0x16   :  { %1016 = vmatprep.subr.bf16.mxu1 %v1055_v16 }
  0x17   :  { %937 = vmatpush3.bf16.msra.mxu0 %v1054_v17 }
  0x18   :  { %938 = vmatprep.subr.bf16.mxu0 %v1056_v18 }
  0x19   :  { %1017 = vmatpush3.bf16.msra.mxu1 %v1055_v16 }
  0x1a   :  { %1018 = vmatprep.subr.bf16.mxu1 %v1058_v20 }
  0x1b   :  { %939 = vmatpush3.bf16.msra.mxu0 %v1057_v19 }
  0x1c   :  { %940 = vmatprep.subr.bf16.mxu0 %v1059_v21 }
  0x1d   :  { %1019 = vmatpush3.bf16.msra.mxu1 %v1058_v20 }
  0x1e   :  { %1020 = vmatprep.subr.bf16.mxu1 %v1061_v22 }
  0x1f   :  { %941 = vmatpush3.bf16.msra.mxu0 %v1060_v25 }
  0x21   :  { %1021 = vmatpush3.bf16.msra.mxu1 %v1061_v22 }
  0x22   :  { %439 = vmatmul.mubr.bf16.vlgmr.msra.gmra.mrb[0].mxu0 %v1062_v26 }
  0x23   :  { %446 = vmatprep.mubr.bf16.mxu0 %v1067_v27 }
  0x24   :  { %1023 = vmatmul.mubr.bf16.vlgmr.msra.gmra.mrb[0].mxu1 %v1066_v28 }
  0x25   :  { %1026 = vmatprep.mubr.bf16.mxu1 %v1073_v29 }
  0x2a   :  { %447 = vmatmul.mubr.bf16.gmra.mrb[4].mxu0 %v1069_v30 }
  0x2b   :  { %454 = vmatprep.mubr.bf16.mxu0 %v1070_v31 }
  0x2c   :  { %1027 = vmatmul.mubr.bf16.gmra.mrb[4].mxu1 %v1074_v32 }
  0x2d   :  { %1030 = vmatprep.mubr.bf16.mxu1 %v1081_v33 }
  0x32   :  { %455 = vmatmul.mubr.bf16.gmra.mrb[8].mxu0 %v1072_v34 }
  0x33   :  { %462 = vmatprep.mubr.bf16.mxu0 %v1075_v35 }
  0x34   :  { %1031 = vmatmul.mubr.bf16.gmra.mrb[8].mxu1 %v1082_v36 }
  0x35   :  { %1034 = vmatprep.mubr.bf16.mxu1 %v1089_v37 }
  0x3a   :  { %463 = vmatmul.mubr.bf16.gmra.mrb[12].mxu0 %v1077_v38 }
  0x3b   :  { %470 = vmatprep.mubr.bf16.mxu0 %v1078_v39 }
  0x3c   :  { %1035 = vmatmul.mubr.bf16.gmra.mrb[12].mxu1 %v1090_v40 }
  0x42   :  { %471 = vmatmul.mubr.bf16.gmra.mrb[16].mxu0 %v1080_v41 }
  0x43   :  { %478 = vmatprep.mubr.bf16.mxu0 %v1083_v42 }
  0x4a   :  { %479 = vmatmul.mubr.bf16.gmra.mrb[20].mxu0 %v1085_v43 }
  0x4b   :  { %486 = vmatprep.mubr.bf16.mxu0 %v1086_v44 }
  0x52   :  { %487 = vmatmul.mubr.bf16.gmra.mrb[24].mxu0 %v1088_v45 }
  0x53   :  { %494 = vmatprep.mubr.bf16.mxu0 %v1091_v46 }
  0x5a   :  { %495 = vmatmul.mubr.bf16.gmra.mrb[28].mxu0 %v1093_v47 }
  0xf5   :  { %v942_v48 = vpop.f32.mrb[0].mxu0 }
  0xf6   :  { %v943_v49 = vpop.f32.mrb[1].mxu0 }
  0xf7   :  { %v944_v50 = vadd.f32 %v943_v49, %v942_v48  ;;  %v945_v51 = vpop.f32.mrb[2].mxu0  ;;  %v1024_v52 = vpop.f32.mrb[0].mxu1 }
  0xf8   :  { %v946_v53 = vpop.f32.mrb[3].mxu0  ;;  %v537_v54 = vpop.f32.mrb[1].mxu1 }
  0xf9   :  { %v947_v56 = vadd.f32 %v946_v53, %v945_v51  ;;  %v538_v57 = vadd.f32 %v944_v50, %v537_v54  ;;  %v1025_v58 = vpop.f32.mrb[2].mxu1 }
  0xfa   :  { %v540_v60 = vpop.f32.mrb[3].mxu1 }
  0xfb   :  { %v658_v61 = vmul.f32 %v1266_v55, %v538_v57  ;;  %v541_v62 = vadd.f32 %v947_v56, %v540_v60 }
  0xfd   :  { %v681_v63 = vadd.f32 %v1271_v59, %v658_v61  ;;  %v659_v0 = vmul.f32 %v1266_v55, %v541_v62  ;;  %v948_v1 = vpop.f32.mrb[4].mxu0 }
  0xfe   :  { %v949_v2 = vpop.f32.mrb[5].mxu0 }
  0xff   :  { %v682_v3 = vadd.f32 %v1271_v59, %v659_v0  ;;  %v950_v4 = vadd.f32 %v949_v2, %v948_v1  ;;  %v951_v5 = vpop.f32.mrb[6].mxu0  ;;  %v1028_v6 = vpop.f32.mrb[4].mxu1  ;;  %v697_v9 = vmax.f32 %v681_v63, 0.0 }
 0x100   :  { %v952_v7 = vpop.f32.mrb[7].mxu0  ;;  %v553_v8 = vpop.f32.mrb[5].mxu1 }
 0x101   :  { %v698_v10 = vmax.f32 %v682_v3, 0.0  ;;  %v546_v11 = vadd.f32 %v1024_v52, %v950_v4  ;;  %v953_v12 = vadd.f32 %v952_v7, %v951_v5  ;;  %v1029_v13 = vpop.f32.mrb[6].mxu1 }
 0x102   :  { %v556_v14 = vpop.f32.mrb[7].mxu1 }
 0x103   :  { %v882_v15 = vpack.c.bf16 %v698_v10, %v697_v9  ;;  %v660_v16 = vmul.f32 %v1266_v55, %v546_v11  ;;  %v549_v17 = vadd.f32 %v1025_v58, %v953_v12 }
 0x105   :  { %883 = vst [vmem:[%s1339_s4] sm:$0xff] %v882_v15   ;;  %v683_v18 = vadd.f32 %v1271_v59, %v660_v16  ;;  %v661_v19 = vmul.f32 %v1266_v55, %v549_v17  ;;  %v954_v20 = vpop.f32.mrb[8].mxu0 }
 0x106   :  { %v955_v21 = vpop.f32.mrb[9].mxu0 }
 0x107   :  { %v684_v22 = vadd.f32 %v1271_v59, %v661_v19  ;;  %v956_v23 = vadd.f32 %v955_v21, %v954_v20  ;;  %v957_v24 = vpop.f32.mrb[10].mxu0  ;;  %v1032_v25 = vpop.f32.mrb[8].mxu1  ;;  %v699_v28 = vmax.f32 %v683_v18, 0.0 }
 0x108   :  { %v958_v26 = vpop.f32.mrb[11].mxu0  ;;  %v569_v27 = vpop.f32.mrb[9].mxu1 }
 0x109   :  { %v700_v29 = vmax.f32 %v684_v22, 0.0  ;;  %v959_v30 = vadd.f32 %v958_v26, %v957_v24  ;;  %v554_v31 = vadd.f32 %v956_v23, %v553_v8  ;;  %v1033_v32 = vpop.f32.mrb[10].mxu1 }
 0x10a   :  { %v572_v33 = vpop.f32.mrb[11].mxu1 }
 0x10b   :  { %v887_v34 = vpack.c.bf16 %v700_v29, %v699_v28  ;;  %v662_v35 = vmul.f32 %v1266_v55, %v554_v31  ;;  %v557_v36 = vadd.f32 %v959_v30, %v556_v14 }
 0x10d   :  { %919 = vst [vmem:[%s1339_s4 + $0x8] sm:$0xff] %v887_v34   ;;  %v685_v37 = vadd.f32 %v1271_v59, %v662_v35  ;;  %v663_v38 = vmul.f32 %v1266_v55, %v557_v36  ;;  %v960_v39 = vpop.f32.mrb[12].mxu0 }
 0x10e   :  { %v961_v40 = vpop.f32.mrb[13].mxu0 }
 0x10f   :  { %v686_v41 = vadd.f32 %v1271_v59, %v663_v38  ;;  %v962_v42 = vadd.f32 %v961_v40, %v960_v39  ;;  %v963_v43 = vpop.f32.mrb[14].mxu0  ;;  %v1291_v44 = vpop.f32.mrb[12].mxu1  ;;  %v701_v47 = vmax.f32 %v685_v37, 0.0 }
 0x110   :  { %v964_v45 = vpop.f32.mrb[15].mxu0  ;;  %v585_v46 = vpop.f32.mrb[13].mxu1 }
 0x111   :  { %v702_v48 = vmax.f32 %v686_v41, 0.0  ;;  %v562_v49 = vadd.f32 %v1028_v6, %v962_v42  ;;  %v965_v50 = vadd.f32 %v964_v45, %v963_v43  ;;  %v1293_v51 = vpop.f32.mrb[14].mxu1 }
 0x112   :  { %v588_v52 = vpop.f32.mrb[15].mxu1 }
 0x113   :  { %v892_v53 = vpack.c.bf16 %v702_v48, %v701_v47  ;;  %v664_v54 = vmul.f32 %v1266_v55, %v562_v49  ;;  %v565_v56 = vadd.f32 %v1029_v13, %v965_v50 }
 0x115   :  { %920 = vst [vmem:[%s1339_s4 + $0x10] sm:$0xff] %v892_v53   ;;  %v687_v57 = vadd.f32 %v1271_v59, %v664_v54  ;;  %v665_v58 = vmul.f32 %v1266_v55, %v565_v56  ;;  %v966_v60 = vpop.f32.mrb[16].mxu0 }
 0x116   :  { %v967_v61 = vpop.f32.mrb[17].mxu0 }
 0x117   :  { %v688_v62 = vadd.f32 %v1271_v59, %v665_v58  ;;  %v968_v63 = vadd.f32 %v967_v61, %v966_v60  ;;  %v969_v0 = vpop.f32.mrb[18].mxu0  ;;  %v703_v2 = vmax.f32 %v687_v57, 0.0 }
 0x118   :  { %v970_v1 = vpop.f32.mrb[19].mxu0 }
 0x119   :  { %v704_v3 = vmax.f32 %v688_v62, 0.0  ;;  %v971_v4 = vadd.f32 %v970_v1, %v969_v0  ;;  %v570_v5 = vadd.f32 %v968_v63, %v569_v27 }
 0x11b   :  { %v897_v6 = vpack.c.bf16 %v704_v3, %v703_v2  ;;  %v666_v7 = vmul.f32 %v1266_v55, %v570_v5  ;;  %v573_v8 = vadd.f32 %v971_v4, %v572_v33 }
 0x11d   :  { %921 = vst [vmem:[%s1339_s4 + $0x18] sm:$0xff] %v897_v6   ;;  %v689_v9 = vadd.f32 %v1271_v59, %v666_v7  ;;  %v667_v10 = vmul.f32 %v1266_v55, %v573_v8  ;;  %v972_v11 = vpop.f32.mrb[20].mxu0 }
 0x11e   :  { %v973_v12 = vpop.f32.mrb[21].mxu0 }
 0x11f   :  { %v690_v13 = vadd.f32 %v1271_v59, %v667_v10  ;;  %v974_v14 = vadd.f32 %v973_v12, %v972_v11  ;;  %v975_v15 = vpop.f32.mrb[22].mxu0  ;;  %v705_v17 = vmax.f32 %v689_v9, 0.0 }
 0x120   :  { %v976_v16 = vpop.f32.mrb[23].mxu0 }
 0x121   :  { %v706_v18 = vmax.f32 %v690_v13, 0.0  ;;  %v578_v19 = vadd.f32 %v1032_v25, %v974_v14  ;;  %v977_v20 = vadd.f32 %v976_v16, %v975_v15 }
 0x123   :  { %v902_v21 = vpack.c.bf16 %v706_v18, %v705_v17  ;;  %v668_v22 = vmul.f32 %v1266_v55, %v578_v19  ;;  %v581_v23 = vadd.f32 %v1033_v32, %v977_v20 }
 0x125   :  { %922 = vst [vmem:[%s1339_s4 + $0x20] sm:$0xff] %v902_v21   ;;  %v691_v24 = vadd.f32 %v1271_v59, %v668_v22  ;;  %v669_v26 = vmul.f32 %v1266_v55, %v581_v23  ;;  %v978_v27 = vpop.f32.mrb[24].mxu0 }
 0x126   :  { %v979_v28 = vpop.f32.mrb[25].mxu0 }
 0x127   :  { %v692_v29 = vadd.f32 %v1271_v59, %v669_v26  ;;  %v980_v30 = vadd.f32 %v979_v28, %v978_v27  ;;  %v981_v31 = vpop.f32.mrb[26].mxu0  ;;  %v707_v33 = vmax.f32 %v691_v24, 0.0 }
 0x128   :  { %v982_v25 = vpop.f32.mrb[27].mxu0 }
 0x129   :  { %v708_v34 = vmax.f32 %v692_v29, 0.0  ;;  %v983_v35 = vadd.f32 %v982_v25, %v981_v31  ;;  %v586_v36 = vadd.f32 %v980_v30, %v585_v46 }
 0x12b   :  { %v907_v32 = vpack.c.bf16 %v708_v34, %v707_v33  ;;  %v670_v37 = vmul.f32 %v1266_v55, %v586_v36  ;;  %v589_v38 = vadd.f32 %v983_v35, %v588_v52 }
 0x12d   :  { %923 = vst [vmem:[%s1339_s4 + $0x28] sm:$0xff] %v907_v32   ;;  %v693_v39 = vadd.f32 %v1271_v59, %v670_v37  ;;  %v671_v40 = vmul.f32 %v1266_v55, %v589_v38  ;;  %v984_v41 = vpop.f32.mrb[28].mxu0 }
 0x12e   :  { %v985_v42 = vpop.f32.mrb[29].mxu0 }
 0x12f   :  { %v694_v43 = vadd.f32 %v1271_v59, %v671_v40  ;;  %v986_v45 = vadd.f32 %v985_v42, %v984_v41  ;;  %v987_v47 = vpop.f32.mrb[30].mxu0  ;;  %v709_v46 = vmax.f32 %v693_v39, 0.0 }
 0x130   :  { %v988_v48 = vpop.f32.mrb[31].mxu0 }
 0x131   :  { %v710_v49 = vmax.f32 %v694_v43, 0.0  ;;  %v594_v50 = vadd.f32 %v1291_v44, %v986_v45  ;;  %v989_v52 = vadd.f32 %v988_v48, %v987_v47 }
 0x133   :  { %v912_v53 = vpack.c.bf16 %v710_v49, %v709_v46  ;;  %v672_v54 = vmul.f32 %v1266_v55, %v594_v50  ;;  %v597_v56 = vadd.f32 %v1293_v51, %v989_v52 }
 0x135   :  { %924 = vst [vmem:[%s1339_s4 + $0x30] sm:$0xff] %v912_v53   ;;  %v695_v57 = vadd.f32 %v1271_v59, %v672_v54  ;;  %v673_v58 = vmul.f32 %v1266_v55, %v597_v56 }
 0x137   :  { %v696_v60 = vadd.f32 %v1271_v59, %v673_v58  ;;  %v711_v61 = vmax.f32 %v695_v57, 0.0 }
 0x139   :  { %v712_v62 = vmax.f32 %v696_v60, 0.0 }
 0x13b   :  { %v917_v63 = vpack.c.bf16 %v712_v62, %v711_v61 }
 0x13d   :  { %925 = vst [vmem:[%s1339_s4 + $0x38] sm:$0xff] %v917_v63  }

// kernel: _lambda_.24
= control target key start
LH: loop header
LB: loop body
LE: loop exit
PB: predicated region body
PF: predicated region fallthrough
CT: control target
= control target key end

     0   :  { %s740_s1 = inlined_call_operand.vmem [shape: bf16[128,128], index: 1, kind: input, shape index: {}]   ;;  %s741_s0 = inlined_call_operand.vmem [shape: bf16[128,128], index: 0, kind: input, shape index: {}]   ;;  %s742_s2 = inlined_call_operand.vmem [shape: f32[1,128], index: 2, kind: input, shape index: {}]   ;;  %s743_s3 = inlined_call_operand.vmem [shape: f32[1,128], index: 3, kind: input, shape index: {}]   ;;  %s744_s4 = inlined_call_operand.vmem [shape: bf16[128,128], index: 4, kind: output, shape index: {}]  }
   0x1   :  { %v621_v0 = vld [vmem:[%s740_s1] sm:$0xff]   ;;  %v622_v1 = vld [vmem:[%s740_s1 + $0x8] sm:$0xff]   ;;  %v623_v2 = vld [vmem:[%s740_s1 + $0x10] sm:$0xff]  }
   0x2   :  { %573 = vmatprep.subr.bf16.mxu0 %v621_v0  ;;  %605 = vmatprep.subr.bf16.mxu1 %v621_v0  ;;  %v624_v3 = vld [vmem:[%s740_s1 + $0x18] sm:$0xff]   ;;  %v629_v4 = vld [vmem:[%s741_s0] sm:$0xff]   ;;  %v626_v7 = vld [vmem:[%s740_s1 + $0x28] sm:$0xff]  }
   0x3   :  { %574 = vmatpush3.bf16.msra.mxu0 %v621_v0  ;;  %613 = vmatpush3.bf16.msra.mxu1 %v621_v0  ;;  %v630_v5 = vld [vmem:[%s741_s0 + $0x20] sm:$0xff]   ;;  %v627_v8 = vld [vmem:[%s740_s1 + $0x30] sm:$0xff]   ;;  %v628_v9 = vld [vmem:[%s740_s1 + $0x38] sm:$0xff]  }
   0x4   :  { %575 = vmatprep.subr.bf16.mxu0 %v622_v1  ;;  %606 = vmatprep.subr.bf16.mxu1 %v622_v1  ;;  %v625_v6 = vld [vmem:[%s740_s1 + $0x20] sm:$0xff]   ;;  %v631_v10 = vld [vmem:[%s741_s0 + $0x8] sm:$0xff]   ;;  %v633_v12 = vld [vmem:[%s741_s0 + $0x10] sm:$0xff]  }
   0x5   :  { %589 = vmatprep.mubr.bf16.mxu0 %v629_v4  ;;  %597 = vmatprep.mubr.bf16.mxu1 %v630_v5  ;;  %v632_v11 = vld [vmem:[%s741_s0 + $0x28] sm:$0xff]   ;;  %v634_v13 = vld [vmem:[%s741_s0 + $0x30] sm:$0xff]   ;;  %v635_v14 = vld [vmem:[%s741_s0 + $0x18] sm:$0xff]  }
   0x6   :  { %v636_v15 = vld [vmem:[%s741_s0 + $0x38] sm:$0xff]   ;;  %v476_v16 = vld [vmem:[%s742_s2] ss:$0 sm:$0xff] }
   0x7   :  { %576 = vmatpush3.bf16.msra.mxu0 %v622_v1  ;;  %614 = vmatpush3.bf16.msra.mxu1 %v622_v1  ;;  %v477_v23 = vld [vmem:[%s743_s3] ss:$0 sm:$0xff] }
   0x8   :  { %577 = vmatprep.subr.bf16.mxu0 %v623_v2  ;;  %607 = vmatprep.subr.bf16.mxu1 %v623_v2 }
   0xb   :  { %578 = vmatpush3.bf16.msra.mxu0 %v623_v2  ;;  %615 = vmatpush3.bf16.msra.mxu1 %v623_v2 }
   0xc   :  { %579 = vmatprep.subr.bf16.mxu0 %v624_v3  ;;  %608 = vmatprep.subr.bf16.mxu1 %v624_v3 }
   0xf   :  { %580 = vmatpush3.bf16.msra.mxu0 %v624_v3  ;;  %616 = vmatpush3.bf16.msra.mxu1 %v624_v3 }
  0x10   :  { %581 = vmatprep.subr.bf16.mxu0 %v625_v6  ;;  %609 = vmatprep.subr.bf16.mxu1 %v625_v6 }
  0x13   :  { %582 = vmatpush3.bf16.msra.mxu0 %v625_v6  ;;  %617 = vmatpush3.bf16.msra.mxu1 %v625_v6 }
  0x14   :  { %583 = vmatprep.subr.bf16.mxu0 %v626_v7  ;;  %610 = vmatprep.subr.bf16.mxu1 %v626_v7 }
  0x17   :  { %584 = vmatpush3.bf16.msra.mxu0 %v626_v7  ;;  %618 = vmatpush3.bf16.msra.mxu1 %v626_v7 }
  0x18   :  { %585 = vmatprep.subr.bf16.mxu0 %v627_v8  ;;  %611 = vmatprep.subr.bf16.mxu1 %v627_v8 }
  0x1b   :  { %586 = vmatpush3.bf16.msra.mxu0 %v627_v8  ;;  %619 = vmatpush3.bf16.msra.mxu1 %v627_v8 }
  0x1c   :  { %587 = vmatprep.subr.bf16.mxu0 %v628_v9  ;;  %612 = vmatprep.subr.bf16.mxu1 %v628_v9 }
  0x1f   :  { %588 = vmatpush3.bf16.msra.mxu0 %v628_v9  ;;  %620 = vmatpush3.bf16.msra.mxu1 %v628_v9 }
  0x22   :  { %590 = vmatmul.mubr.bf16.vlgmr.msra.gmra.mrb[0].mxu0 %v631_v10  ;;  %598 = vmatmul.mubr.bf16.vlgmr.msra.gmra.mrb[0].mxu1 %v632_v11 }
  0x23   :  { %593 = vmatprep.mubr.bf16.mxu0 %v633_v12  ;;  %601 = vmatprep.mubr.bf16.mxu1 %v634_v13 }
  0x2a   :  { %594 = vmatmul.mubr.bf16.gmra.mrb[4].mxu0 %v635_v14  ;;  %602 = vmatmul.mubr.bf16.gmra.mrb[4].mxu1 %v636_v15 }
  0xf5   :  { %v591_v17 = vpop.f32.mrb[0].mxu0  ;;  %v599_v18 = vpop.f32.mrb[0].mxu1 }
  0xf6   :  { %v339_v19 = vmul.f32 %v591_v17, %v476_v16  ;;  %v347_v20 = vmul.f32 %v599_v18, %v476_v16  ;;  %v216_v21 = vpop.f32.mrb[1].mxu0  ;;  %v248_v22 = vpop.f32.mrb[1].mxu1 }
  0xf7   :  { %v337_v24 = vmul.f32 %v476_v16, %v216_v21  ;;  %v345_v25 = vmul.f32 %v476_v16, %v248_v22  ;;  %v592_v26 = vpop.f32.mrb[2].mxu0  ;;  %v600_v27 = vpop.f32.mrb[2].mxu1 }
  0xf8   :  { %v340_v28 = vmul.f32 %v592_v26, %v476_v16  ;;  %v348_v29 = vmul.f32 %v600_v27, %v476_v16  ;;  %v219_v30 = vpop.f32.mrb[3].mxu0  ;;  %v251_v31 = vpop.f32.mrb[3].mxu1  ;;  %v362_v34 = vadd.f32 %v477_v23, %v339_v19  ;;  %v370_v35 = vadd.f32 %v477_v23, %v347_v20 }
  0xf9   :  { %v338_v32 = vmul.f32 %v476_v16, %v219_v30  ;;  %v346_v33 = vmul.f32 %v476_v16, %v251_v31  ;;  %v360_v38 = vadd.f32 %v477_v23, %v337_v24  ;;  %v368_v39 = vadd.f32 %v477_v23, %v345_v25 }
  0xfa   :  { %v363_v36 = vadd.f32 %v477_v23, %v340_v28  ;;  %v371_v37 = vadd.f32 %v477_v23, %v348_v29 }
  0xfb   :  { %v361_v40 = vadd.f32 %v477_v23, %v338_v32  ;;  %v369_v41 = vadd.f32 %v477_v23, %v346_v33 }
  0xfc   :  { %v518_v42 = vpack.c.bf16 %v363_v36, %v362_v34  ;;  %v538_v43 = vpack.c.bf16 %v371_v37, %v370_v35 }
  0xfd   :  { %v513_v44 = vpack.c.bf16 %v361_v40, %v360_v38  ;;  %v533_v45 = vpack.c.bf16 %v369_v41, %v368_v39  ;;  %v595_v46 = vpop.f32.mrb[4].mxu0  ;;  %v603_v47 = vpop.f32.mrb[4].mxu1 }
  0xfe   :  { %550 = vst [vmem:[%s744_s4 + $0x8] sm:$0xff] %v518_v42   ;;  %554 = vst [vmem:[%s744_s4 + $0x28] sm:$0xff] %v538_v43   ;;  %v343_v48 = vmul.f32 %v595_v46, %v476_v16  ;;  %v351_v49 = vmul.f32 %v603_v47, %v476_v16  ;;  %v232_v50 = vpop.f32.mrb[5].mxu0  ;;  %v264_v51 = vpop.f32.mrb[5].mxu1 }
  0xff   :  { %514 = vst [vmem:[%s744_s4] sm:$0xff] %v513_v44   ;;  %553 = vst [vmem:[%s744_s4 + $0x20] sm:$0xff] %v533_v45   ;;  %v341_v52 = vmul.f32 %v476_v16, %v232_v50  ;;  %v349_v53 = vmul.f32 %v476_v16, %v264_v51  ;;  %v596_v54 = vpop.f32.mrb[6].mxu0  ;;  %v604_v55 = vpop.f32.mrb[6].mxu1 }
 0x100   :  { %v344_v56 = vmul.f32 %v596_v54, %v476_v16  ;;  %v352_v57 = vmul.f32 %v604_v55, %v476_v16  ;;  %v235_v58 = vpop.f32.mrb[7].mxu0  ;;  %v267_v59 = vpop.f32.mrb[7].mxu1  ;;  %v366_v62 = vadd.f32 %v477_v23, %v343_v48  ;;  %v374_v63 = vadd.f32 %v477_v23, %v351_v49 }
 0x101   :  { %v342_v60 = vmul.f32 %v476_v16, %v235_v58  ;;  %v350_v61 = vmul.f32 %v476_v16, %v267_v59  ;;  %v364_v2 = vadd.f32 %v477_v23, %v341_v52  ;;  %v372_v3 = vadd.f32 %v477_v23, %v349_v53 }
 0x102   :  { %v367_v0 = vadd.f32 %v477_v23, %v344_v56  ;;  %v375_v1 = vadd.f32 %v477_v23, %v352_v57 }
 0x103   :  { %v365_v4 = vadd.f32 %v477_v23, %v342_v60  ;;  %v373_v5 = vadd.f32 %v477_v23, %v350_v61 }
 0x104   :  { %v528_v6 = vpack.c.bf16 %v367_v0, %v366_v62  ;;  %v548_v7 = vpack.c.bf16 %v375_v1, %v374_v63 }
 0x105   :  { %v523_v8 = vpack.c.bf16 %v365_v4, %v364_v2  ;;  %v543_v9 = vpack.c.bf16 %v373_v5, %v372_v3 }
 0x106   :  { %552 = vst [vmem:[%s744_s4 + $0x18] sm:$0xff] %v528_v6   ;;  %556 = vst [vmem:[%s744_s4 + $0x38] sm:$0xff] %v548_v7  }
 0x107   :  { %551 = vst [vmem:[%s744_s4 + $0x10] sm:$0xff] %v523_v8   ;;  %555 = vst [vmem:[%s744_s4 + $0x30] sm:$0xff] %v543_v9  }

// kernel: _lambda_.27
= control target key start
LH: loop header
LB: loop body
LE: loop exit
PB: predicated region body
PF: predicated region fallthrough
CT: control target
= control target key end

     0   :  { %s935_s1 = inlined_call_operand.vmem [shape: bf16[128,128], index: 1, kind: input, shape index: {}]   ;;  %s936_s0 = inlined_call_operand.vmem [shape: bf16[128,128], index: 0, kind: input, shape index: {}]   ;;  %s937_s4 = inlined_call_operand.vmem [shape: bf16[128,128], index: 4, kind: input, shape index: {}]   ;;  %s938_s2 = inlined_call_operand.vmem [shape: f32[1,128], index: 2, kind: input, shape index: {}]   ;;  %s939_s3 = inlined_call_operand.vmem [shape: f32[1,128], index: 3, kind: input, shape index: {}]   ;;  %s940_s5 = inlined_call_operand.vmem [shape: bf16[128,128], index: 5, kind: output, shape index: {}]  }
   0x1   :  { %v727_v0 = vld [vmem:[%s935_s1] sm:$0xff]   ;;  %v728_v1 = vld [vmem:[%s935_s1 + $0x8] sm:$0xff]   ;;  %v729_v2 = vld [vmem:[%s935_s1 + $0x10] sm:$0xff]  }
   0x2   :  { %679 = vmatprep.subr.bf16.mxu0 %v727_v0  ;;  %711 = vmatprep.subr.bf16.mxu1 %v727_v0  ;;  %v730_v3 = vld [vmem:[%s935_s1 + $0x18] sm:$0xff]   ;;  %v735_v4 = vld [vmem:[%s936_s0] sm:$0xff]   ;;  %v732_v7 = vld [vmem:[%s935_s1 + $0x28] sm:$0xff]  }
   0x3   :  { %680 = vmatpush3.bf16.msra.mxu0 %v727_v0  ;;  %719 = vmatpush3.bf16.msra.mxu1 %v727_v0  ;;  %v736_v5 = vld [vmem:[%s936_s0 + $0x20] sm:$0xff]   ;;  %v733_v8 = vld [vmem:[%s935_s1 + $0x30] sm:$0xff]   ;;  %v734_v9 = vld [vmem:[%s935_s1 + $0x38] sm:$0xff]  }
   0x4   :  { %681 = vmatprep.subr.bf16.mxu0 %v728_v1  ;;  %712 = vmatprep.subr.bf16.mxu1 %v728_v1  ;;  %v731_v6 = vld [vmem:[%s935_s1 + $0x20] sm:$0xff]   ;;  %v737_v10 = vld [vmem:[%s936_s0 + $0x8] sm:$0xff]   ;;  %v739_v12 = vld [vmem:[%s936_s0 + $0x10] sm:$0xff]  }
   0x5   :  { %695 = vmatprep.mubr.bf16.mxu0 %v735_v4  ;;  %703 = vmatprep.mubr.bf16.mxu1 %v736_v5  ;;  %v738_v11 = vld [vmem:[%s936_s0 + $0x28] sm:$0xff]   ;;  %v740_v13 = vld [vmem:[%s936_s0 + $0x30] sm:$0xff]   ;;  %v741_v14 = vld [vmem:[%s936_s0 + $0x18] sm:$0xff]  }
   0x6   :  { %v742_v15 = vld [vmem:[%s936_s0 + $0x38] sm:$0xff]   ;;  %v649_v16 = vld [vmem:[%s937_s4 + $0x8] sm:$0xff]   ;;  %v578_v18 = vld [vmem:[%s937_s4] sm:$0xff]  }
   0x7   :  { %682 = vmatpush3.bf16.msra.mxu0 %v728_v1  ;;  %720 = vmatpush3.bf16.msra.mxu1 %v728_v1  ;;  %v653_v17 = vld [vmem:[%s937_s4 + $0x28] sm:$0xff]   ;;  %v652_v19 = vld [vmem:[%s937_s4 + $0x20] sm:$0xff]   ;;  %v841_v21 = vld [vmem:[%s937_s4 + $0x18] sm:$0xff]   ;;  %v583_v23 = vunpack.c.l.bf16 %v649_v16  ;;  %v579_v25 = vunpack.c.l.bf16 %v578_v18  ;;  %v584_v32 = vunpack.c.h.bf16 %v649_v16  ;;  %v580_v34 = vunpack.c.h.bf16 %v578_v18 }
   0x8   :  { %683 = vmatprep.subr.bf16.mxu0 %v729_v2  ;;  %713 = vmatprep.subr.bf16.mxu1 %v729_v2  ;;  %v836_v20 = vld [vmem:[%s938_s2] ss:$0 sm:$0xff]  ;;  %v846_v22 = vld [vmem:[%s937_s4 + $0x38] sm:$0xff]   ;;  %v599_v24 = vunpack.c.l.bf16 %v653_v17  ;;  %v595_v26 = vunpack.c.l.bf16 %v652_v19  ;;  %v851_v27 = vld [vmem:[%s937_s4 + $0x10] sm:$0xff]   ;;  %v600_v33 = vunpack.c.h.bf16 %v653_v17  ;;  %v596_v35 = vunpack.c.h.bf16 %v652_v19 }
   0x9   :  { %v856_v28 = vld [vmem:[%s937_s4 + $0x30] sm:$0xff]   ;;  %v861_v30 = vld [vmem:[%s939_s3] ss:$0 sm:$0xff]  ;;  %v591_v40 = vunpack.c.l.bf16 %v841_v21  ;;  %v607_v41 = vunpack.c.l.bf16 %v846_v22  ;;  %v587_v46 = vunpack.c.l.bf16 %v851_v27 }
   0xa   :  { %v603_v47 = vunpack.c.l.bf16 %v856_v28 }
   0xb   :  { %684 = vmatpush3.bf16.msra.mxu0 %v729_v2  ;;  %721 = vmatpush3.bf16.msra.mxu1 %v729_v2 }
   0xc   :  { %685 = vmatprep.subr.bf16.mxu0 %v730_v3  ;;  %714 = vmatprep.subr.bf16.mxu1 %v730_v3 }
   0xf   :  { %686 = vmatpush3.bf16.msra.mxu0 %v730_v3  ;;  %722 = vmatpush3.bf16.msra.mxu1 %v730_v3 }
  0x10   :  { %687 = vmatprep.subr.bf16.mxu0 %v731_v6  ;;  %715 = vmatprep.subr.bf16.mxu1 %v731_v6 }
  0x13   :  { %688 = vmatpush3.bf16.msra.mxu0 %v731_v6  ;;  %723 = vmatpush3.bf16.msra.mxu1 %v731_v6 }
  0x14   :  { %689 = vmatprep.subr.bf16.mxu0 %v732_v7  ;;  %716 = vmatprep.subr.bf16.mxu1 %v732_v7 }
  0x17   :  { %690 = vmatpush3.bf16.msra.mxu0 %v732_v7  ;;  %724 = vmatpush3.bf16.msra.mxu1 %v732_v7 }
  0x18   :  { %691 = vmatprep.subr.bf16.mxu0 %v733_v8  ;;  %717 = vmatprep.subr.bf16.mxu1 %v733_v8 }
  0x1b   :  { %692 = vmatpush3.bf16.msra.mxu0 %v733_v8  ;;  %725 = vmatpush3.bf16.msra.mxu1 %v733_v8 }
  0x1c   :  { %693 = vmatprep.subr.bf16.mxu0 %v734_v9  ;;  %718 = vmatprep.subr.bf16.mxu1 %v734_v9 }
  0x1f   :  { %694 = vmatpush3.bf16.msra.mxu0 %v734_v9  ;;  %726 = vmatpush3.bf16.msra.mxu1 %v734_v9 }
  0x22   :  { %696 = vmatmul.mubr.bf16.vlgmr.msra.gmra.mrb[0].mxu0 %v737_v10  ;;  %704 = vmatmul.mubr.bf16.vlgmr.msra.gmra.mrb[0].mxu1 %v738_v11 }
  0x23   :  { %699 = vmatprep.mubr.bf16.mxu0 %v739_v12  ;;  %707 = vmatprep.mubr.bf16.mxu1 %v740_v13 }
  0x2a   :  { %700 = vmatmul.mubr.bf16.gmra.mrb[4].mxu0 %v741_v14  ;;  %708 = vmatmul.mubr.bf16.gmra.mrb[4].mxu1 %v742_v15 }
  0xf5   :  { %v697_v29 = vpop.f32.mrb[0].mxu0  ;;  %v705_v31 = vpop.f32.mrb[0].mxu1 }
  0xf6   :  { %v342_v36 = vmul.f32 %v697_v29, %v836_v20  ;;  %v350_v37 = vmul.f32 %v705_v31, %v836_v20  ;;  %v219_v38 = vpop.f32.mrb[1].mxu0  ;;  %v251_v39 = vpop.f32.mrb[1].mxu1 }
  0xf7   :  { %v340_v42 = vmul.f32 %v836_v20, %v219_v38  ;;  %v348_v43 = vmul.f32 %v836_v20, %v251_v39  ;;  %v698_v44 = vpop.f32.mrb[2].mxu0  ;;  %v706_v45 = vpop.f32.mrb[2].mxu1 }
  0xf8   :  { %v365_v48 = vadd.f32 %v861_v30, %v342_v36  ;;  %v373_v49 = vadd.f32 %v861_v30, %v350_v37  ;;  %v343_v50 = vmul.f32 %v698_v44, %v836_v20  ;;  %v351_v51 = vmul.f32 %v706_v45, %v836_v20  ;;  %v222_v52 = vpop.f32.mrb[3].mxu0  ;;  %v254_v53 = vpop.f32.mrb[3].mxu1 }
  0xf9   :  { %v363_v54 = vadd.f32 %v861_v30, %v340_v42  ;;  %v371_v55 = vadd.f32 %v861_v30, %v348_v43  ;;  %v341_v56 = vmul.f32 %v836_v20, %v222_v52  ;;  %v349_v57 = vmul.f32 %v836_v20, %v254_v53 }
  0xfa   :  { %v413_v58 = vadd.f32 %v583_v23, %v365_v48  ;;  %v421_v59 = vadd.f32 %v599_v24, %v373_v49  ;;  %v366_v60 = vadd.f32 %v861_v30, %v343_v50  ;;  %v374_v61 = vadd.f32 %v861_v30, %v351_v51 }
  0xfb   :  { %v411_v62 = vadd.f32 %v579_v25, %v363_v54  ;;  %v419_v63 = vadd.f32 %v595_v26, %v371_v55  ;;  %v364_v0 = vadd.f32 %v861_v30, %v341_v56  ;;  %v372_v1 = vadd.f32 %v861_v30, %v349_v57 }
  0xfc   :  { %v429_v2 = vmax.f32 %v413_v58, 0.0  ;;  %v437_v3 = vmax.f32 %v421_v59, 0.0  ;;  %v414_v4 = vadd.f32 %v584_v32, %v366_v60  ;;  %v422_v5 = vadd.f32 %v600_v33, %v374_v61 }
  0xfd   :  { %v427_v6 = vmax.f32 %v411_v62, 0.0  ;;  %v435_v7 = vmax.f32 %v419_v63, 0.0  ;;  %v412_v8 = vadd.f32 %v580_v34, %v364_v0  ;;  %v420_v9 = vadd.f32 %v596_v35, %v372_v1  ;;  %v701_v10 = vpop.f32.mrb[4].mxu0  ;;  %v709_v11 = vpop.f32.mrb[4].mxu1 }
  0xfe   :  { %v430_v12 = vmax.f32 %v414_v4, 0.0  ;;  %v438_v13 = vmax.f32 %v422_v5, 0.0  ;;  %v346_v14 = vmul.f32 %v701_v10, %v836_v20  ;;  %v354_v15 = vmul.f32 %v709_v11, %v836_v20  ;;  %v235_v16 = vpop.f32.mrb[5].mxu0  ;;  %v267_v17 = vpop.f32.mrb[5].mxu1 }
  0xff   :  { %v428_v18 = vmax.f32 %v412_v8, 0.0  ;;  %v436_v19 = vmax.f32 %v420_v9, 0.0  ;;  %v344_v23 = vmul.f32 %v836_v20, %v235_v16  ;;  %v352_v24 = vmul.f32 %v836_v20, %v267_v17  ;;  %v702_v25 = vpop.f32.mrb[6].mxu0  ;;  %v710_v26 = vpop.f32.mrb[6].mxu1 }
 0x100   :  { %v617_v29 = vpack.c.bf16 %v430_v12, %v429_v2  ;;  %v637_v31 = vpack.c.bf16 %v438_v13, %v437_v3  ;;  %v369_v32 = vadd.f32 %v861_v30, %v346_v14  ;;  %v377_v33 = vadd.f32 %v861_v30, %v354_v15  ;;  %v238_v34 = vpop.f32.mrb[7].mxu0  ;;  %v270_v35 = vpop.f32.mrb[7].mxu1 }
 0x101   :  { %v612_v36 = vpack.c.bf16 %v428_v18, %v427_v6  ;;  %v632_v37 = vpack.c.bf16 %v436_v19, %v435_v7  ;;  %v367_v38 = vadd.f32 %v861_v30, %v344_v23  ;;  %v375_v39 = vadd.f32 %v861_v30, %v352_v24 }
 0x102   :  { %656 = vst [vmem:[%s940_s5 + $0x8] sm:$0xff] %v617_v29   ;;  %660 = vst [vmem:[%s940_s5 + $0x28] sm:$0xff] %v637_v31   ;;  %v347_v42 = vmul.f32 %v702_v25, %v836_v20  ;;  %v592_v43 = vunpack.c.h.bf16 %v841_v21  ;;  %v355_v44 = vmul.f32 %v710_v26, %v836_v20  ;;  %v608_v45 = vunpack.c.h.bf16 %v846_v22 }
 0x103   :  { %613 = vst [vmem:[%s940_s5] sm:$0xff] %v612_v36   ;;  %659 = vst [vmem:[%s940_s5 + $0x20] sm:$0xff] %v632_v37   ;;  %v345_v48 = vmul.f32 %v836_v20, %v238_v34  ;;  %v588_v49 = vunpack.c.h.bf16 %v851_v27  ;;  %v353_v50 = vmul.f32 %v836_v20, %v270_v35  ;;  %v604_v51 = vunpack.c.h.bf16 %v856_v28 }
 0x104   :  { %v417_v52 = vadd.f32 %v591_v40, %v369_v32  ;;  %v425_v53 = vadd.f32 %v607_v41, %v377_v33  ;;  %v370_v54 = vadd.f32 %v861_v30, %v347_v42  ;;  %v378_v55 = vadd.f32 %v861_v30, %v355_v44 }
 0x105   :  { %v415_v56 = vadd.f32 %v587_v46, %v367_v38  ;;  %v423_v57 = vadd.f32 %v603_v47, %v375_v39  ;;  %v368_v20 = vadd.f32 %v861_v30, %v345_v48  ;;  %v376_v58 = vadd.f32 %v861_v30, %v353_v50 }
 0x106   :  { %v418_v59 = vadd.f32 %v592_v43, %v370_v54  ;;  %v426_v21 = vadd.f32 %v608_v45, %v378_v55  ;;  %v433_v22 = vmax.f32 %v417_v52, 0.0  ;;  %v441_v41 = vmax.f32 %v425_v53, 0.0 }
 0x107   :  { %v416_v40 = vadd.f32 %v588_v49, %v368_v20  ;;  %v424_v60 = vadd.f32 %v604_v51, %v376_v58  ;;  %v431_v63 = vmax.f32 %v415_v56, 0.0  ;;  %v439_v0 = vmax.f32 %v423_v57, 0.0 }
 0x108   :  { %v434_v61 = vmax.f32 %v418_v59, 0.0  ;;  %v442_v62 = vmax.f32 %v426_v21, 0.0 }
 0x109   :  { %v432_v1 = vmax.f32 %v416_v40, 0.0  ;;  %v440_v27 = vmax.f32 %v424_v60, 0.0 }
 0x10a   :  { %v627_v46 = vpack.c.bf16 %v434_v61, %v433_v22  ;;  %v647_v2 = vpack.c.bf16 %v442_v62, %v441_v41 }
 0x10b   :  { %v622_v28 = vpack.c.bf16 %v432_v1, %v431_v63  ;;  %v642_v47 = vpack.c.bf16 %v440_v27, %v439_v0 }
 0x10c   :  { %658 = vst [vmem:[%s940_s5 + $0x18] sm:$0xff] %v627_v46   ;;  %662 = vst [vmem:[%s940_s5 + $0x38] sm:$0xff] %v647_v2  }
 0x10d   :  { %657 = vst [vmem:[%s940_s5 + $0x10] sm:$0xff] %v622_v28   ;;  %661 = vst [vmem:[%s940_s5 + $0x30] sm:$0xff] %v642_v47  }

// kernel: _lambda_.29
= control target key start
LH: loop header
LB: loop body
LE: loop exit
PB: predicated region body
PF: predicated region fallthrough
CT: control target
= control target key end

     0   :  { %s774_s1 = inlined_call_operand.vmem [shape: bf16[128,128], index: 1, kind: input, shape index: {}]   ;;  %s775_s0 = inlined_call_operand.vmem [shape: bf16[128,128], index: 0, kind: input, shape index: {}]   ;;  %s776_s2 = inlined_call_operand.vmem [shape: f32[1,128], index: 2, kind: input, shape index: {}]   ;;  %s777_s3 = inlined_call_operand.vmem [shape: f32[1,128], index: 3, kind: input, shape index: {}]   ;;  %s778_s4 = inlined_call_operand.vmem [shape: bf16[128,128], index: 4, kind: output, shape index: {}]  }
   0x1   :  { %v637_v0 = vld [vmem:[%s774_s1] sm:$0xff]   ;;  %v638_v1 = vld [vmem:[%s774_s1 + $0x8] sm:$0xff]   ;;  %v639_v2 = vld [vmem:[%s774_s1 + $0x10] sm:$0xff]  }
   0x2   :  { %589 = vmatprep.subr.bf16.mxu0 %v637_v0  ;;  %621 = vmatprep.subr.bf16.mxu1 %v637_v0  ;;  %v640_v3 = vld [vmem:[%s774_s1 + $0x18] sm:$0xff]   ;;  %v645_v4 = vld [vmem:[%s775_s0] sm:$0xff]   ;;  %v642_v7 = vld [vmem:[%s774_s1 + $0x28] sm:$0xff]  }
   0x3   :  { %590 = vmatpush3.bf16.msra.mxu0 %v637_v0  ;;  %629 = vmatpush3.bf16.msra.mxu1 %v637_v0  ;;  %v646_v5 = vld [vmem:[%s775_s0 + $0x20] sm:$0xff]   ;;  %v643_v8 = vld [vmem:[%s774_s1 + $0x30] sm:$0xff]   ;;  %v644_v9 = vld [vmem:[%s774_s1 + $0x38] sm:$0xff]  }
   0x4   :  { %591 = vmatprep.subr.bf16.mxu0 %v638_v1  ;;  %622 = vmatprep.subr.bf16.mxu1 %v638_v1  ;;  %v641_v6 = vld [vmem:[%s774_s1 + $0x20] sm:$0xff]   ;;  %v647_v10 = vld [vmem:[%s775_s0 + $0x8] sm:$0xff]   ;;  %v649_v12 = vld [vmem:[%s775_s0 + $0x10] sm:$0xff]  }
   0x5   :  { %605 = vmatprep.mubr.bf16.mxu0 %v645_v4  ;;  %613 = vmatprep.mubr.bf16.mxu1 %v646_v5  ;;  %v648_v11 = vld [vmem:[%s775_s0 + $0x28] sm:$0xff]   ;;  %v650_v13 = vld [vmem:[%s775_s0 + $0x30] sm:$0xff]   ;;  %v651_v14 = vld [vmem:[%s775_s0 + $0x18] sm:$0xff]  }
   0x6   :  { %v652_v15 = vld [vmem:[%s775_s0 + $0x38] sm:$0xff]   ;;  %v492_v16 = vld [vmem:[%s776_s2] ss:$0 sm:$0xff] }
   0x7   :  { %592 = vmatpush3.bf16.msra.mxu0 %v638_v1  ;;  %630 = vmatpush3.bf16.msra.mxu1 %v638_v1  ;;  %v732_v18 = vld [vmem:[%s777_s3] ss:$0 sm:$0xff] }
   0x8   :  { %593 = vmatprep.subr.bf16.mxu0 %v639_v2  ;;  %623 = vmatprep.subr.bf16.mxu1 %v639_v2 }
   0xb   :  { %594 = vmatpush3.bf16.msra.mxu0 %v639_v2  ;;  %631 = vmatpush3.bf16.msra.mxu1 %v639_v2 }
   0xc   :  { %595 = vmatprep.subr.bf16.mxu0 %v640_v3  ;;  %624 = vmatprep.subr.bf16.mxu1 %v640_v3 }
   0xf   :  { %596 = vmatpush3.bf16.msra.mxu0 %v640_v3  ;;  %632 = vmatpush3.bf16.msra.mxu1 %v640_v3 }
  0x10   :  { %597 = vmatprep.subr.bf16.mxu0 %v641_v6  ;;  %625 = vmatprep.subr.bf16.mxu1 %v641_v6 }
  0x13   :  { %598 = vmatpush3.bf16.msra.mxu0 %v641_v6  ;;  %633 = vmatpush3.bf16.msra.mxu1 %v641_v6 }
  0x14   :  { %599 = vmatprep.subr.bf16.mxu0 %v642_v7  ;;  %626 = vmatprep.subr.bf16.mxu1 %v642_v7 }
  0x17   :  { %600 = vmatpush3.bf16.msra.mxu0 %v642_v7  ;;  %634 = vmatpush3.bf16.msra.mxu1 %v642_v7 }
  0x18   :  { %601 = vmatprep.subr.bf16.mxu0 %v643_v8  ;;  %627 = vmatprep.subr.bf16.mxu1 %v643_v8 }
  0x1b   :  { %602 = vmatpush3.bf16.msra.mxu0 %v643_v8  ;;  %635 = vmatpush3.bf16.msra.mxu1 %v643_v8 }
  0x1c   :  { %603 = vmatprep.subr.bf16.mxu0 %v644_v9  ;;  %628 = vmatprep.subr.bf16.mxu1 %v644_v9 }
  0x1f   :  { %604 = vmatpush3.bf16.msra.mxu0 %v644_v9  ;;  %636 = vmatpush3.bf16.msra.mxu1 %v644_v9 }
  0x22   :  { %606 = vmatmul.mubr.bf16.vlgmr.msra.gmra.mrb[0].mxu0 %v647_v10  ;;  %614 = vmatmul.mubr.bf16.vlgmr.msra.gmra.mrb[0].mxu1 %v648_v11 }
  0x23   :  { %609 = vmatprep.mubr.bf16.mxu0 %v649_v12  ;;  %617 = vmatprep.mubr.bf16.mxu1 %v650_v13 }
  0x2a   :  { %610 = vmatmul.mubr.bf16.gmra.mrb[4].mxu0 %v651_v14  ;;  %618 = vmatmul.mubr.bf16.gmra.mrb[4].mxu1 %v652_v15 }
  0xf5   :  { %v607_v17 = vpop.f32.mrb[0].mxu0  ;;  %v615_v19 = vpop.f32.mrb[0].mxu1 }
  0xf6   :  { %v339_v20 = vmul.f32 %v607_v17, %v492_v16  ;;  %v347_v21 = vmul.f32 %v615_v19, %v492_v16  ;;  %v216_v22 = vpop.f32.mrb[1].mxu0  ;;  %v248_v23 = vpop.f32.mrb[1].mxu1 }
  0xf7   :  { %v337_v24 = vmul.f32 %v492_v16, %v216_v22  ;;  %v345_v25 = vmul.f32 %v492_v16, %v248_v23  ;;  %v608_v26 = vpop.f32.mrb[2].mxu0  ;;  %v616_v27 = vpop.f32.mrb[2].mxu1 }
  0xf8   :  { %v362_v28 = vadd.f32 %v732_v18, %v339_v20  ;;  %v370_v29 = vadd.f32 %v732_v18, %v347_v21  ;;  %v340_v30 = vmul.f32 %v608_v26, %v492_v16  ;;  %v348_v31 = vmul.f32 %v616_v27, %v492_v16  ;;  %v219_v32 = vpop.f32.mrb[3].mxu0  ;;  %v251_v33 = vpop.f32.mrb[3].mxu1 }
  0xf9   :  { %v360_v34 = vadd.f32 %v732_v18, %v337_v24  ;;  %v368_v35 = vadd.f32 %v732_v18, %v345_v25  ;;  %v338_v36 = vmul.f32 %v492_v16, %v219_v32  ;;  %v346_v37 = vmul.f32 %v492_v16, %v251_v33 }
  0xfa   :  { %v363_v38 = vadd.f32 %v732_v18, %v340_v30  ;;  %v371_v39 = vadd.f32 %v732_v18, %v348_v31  ;;  %v378_v42 = vmax.f32 %v362_v28, 0.0  ;;  %v386_v43 = vmax.f32 %v370_v29, 0.0 }
  0xfb   :  { %v361_v40 = vadd.f32 %v732_v18, %v338_v36  ;;  %v369_v41 = vadd.f32 %v732_v18, %v346_v37  ;;  %v376_v46 = vmax.f32 %v360_v34, 0.0  ;;  %v384_v47 = vmax.f32 %v368_v35, 0.0 }
  0xfc   :  { %v379_v44 = vmax.f32 %v363_v38, 0.0  ;;  %v387_v45 = vmax.f32 %v371_v39, 0.0 }
  0xfd   :  { %v377_v48 = vmax.f32 %v361_v40, 0.0  ;;  %v385_v49 = vmax.f32 %v369_v41, 0.0  ;;  %v611_v50 = vpop.f32.mrb[4].mxu0  ;;  %v619_v51 = vpop.f32.mrb[4].mxu1 }
  0xfe   :  { %v534_v52 = vpack.c.bf16 %v379_v44, %v378_v42  ;;  %v554_v53 = vpack.c.bf16 %v387_v45, %v386_v43  ;;  %v343_v54 = vmul.f32 %v611_v50, %v492_v16  ;;  %v351_v55 = vmul.f32 %v619_v51, %v492_v16  ;;  %v232_v56 = vpop.f32.mrb[5].mxu0  ;;  %v264_v57 = vpop.f32.mrb[5].mxu1 }
  0xff   :  { %v529_v58 = vpack.c.bf16 %v377_v48, %v376_v46  ;;  %v549_v59 = vpack.c.bf16 %v385_v49, %v384_v47  ;;  %v341_v60 = vmul.f32 %v492_v16, %v232_v56  ;;  %v349_v61 = vmul.f32 %v492_v16, %v264_v57  ;;  %v612_v62 = vpop.f32.mrb[6].mxu0  ;;  %v620_v63 = vpop.f32.mrb[6].mxu1 }
 0x100   :  { %566 = vst [vmem:[%s778_s4 + $0x8] sm:$0xff] %v534_v52   ;;  %570 = vst [vmem:[%s778_s4 + $0x28] sm:$0xff] %v554_v53   ;;  %v366_v0 = vadd.f32 %v732_v18, %v343_v54  ;;  %v374_v1 = vadd.f32 %v732_v18, %v351_v55  ;;  %v344_v2 = vmul.f32 %v612_v62, %v492_v16  ;;  %v235_v4 = vpop.f32.mrb[7].mxu0  ;;  %v267_v5 = vpop.f32.mrb[7].mxu1 }
 0x101   :  { %v352_v3 = vmul.f32 %v620_v63, %v492_v16  ;;  %530 = vst [vmem:[%s778_s4] sm:$0xff] %v529_v58   ;;  %569 = vst [vmem:[%s778_s4 + $0x20] sm:$0xff] %v549_v59   ;;  %v364_v6 = vadd.f32 %v732_v18, %v341_v60  ;;  %v372_v7 = vadd.f32 %v732_v18, %v349_v61 }
 0x102   :  { %v342_v8 = vmul.f32 %v492_v16, %v235_v4  ;;  %v350_v9 = vmul.f32 %v492_v16, %v267_v5  ;;  %v367_v10 = vadd.f32 %v732_v18, %v344_v2  ;;  %v382_v14 = vmax.f32 %v366_v0, 0.0 }
 0x103   :  { %v375_v11 = vadd.f32 %v732_v18, %v352_v3  ;;  %v390_v15 = vmax.f32 %v374_v1, 0.0  ;;  %v380_v20 = vmax.f32 %v364_v6, 0.0  ;;  %v388_v21 = vmax.f32 %v372_v7, 0.0 }
 0x104   :  { %v365_v12 = vadd.f32 %v732_v18, %v342_v8  ;;  %v373_v13 = vadd.f32 %v732_v18, %v350_v9  ;;  %v383_v17 = vmax.f32 %v367_v10, 0.0 }
 0x105   :  { %v391_v19 = vmax.f32 %v375_v11, 0.0 }
 0x106   :  { %v381_v22 = vmax.f32 %v365_v12, 0.0  ;;  %v389_v23 = vmax.f32 %v373_v13, 0.0  ;;  %v544_v24 = vpack.c.bf16 %v383_v17, %v382_v14 }
 0x107   :  { %v564_v25 = vpack.c.bf16 %v391_v19, %v390_v15 }
 0x108   :  { %v539_v26 = vpack.c.bf16 %v381_v22, %v380_v20  ;;  %v559_v16 = vpack.c.bf16 %v389_v23, %v388_v21  ;;  %568 = vst [vmem:[%s778_s4 + $0x18] sm:$0xff] %v544_v24  }
 0x109   :  { %572 = vst [vmem:[%s778_s4 + $0x38] sm:$0xff] %v564_v25  }
 0x10a   :  { %567 = vst [vmem:[%s778_s4 + $0x10] sm:$0xff] %v539_v26   ;;  %571 = vst [vmem:[%s778_s4 + $0x30] sm:$0xff] %v559_v16  }

// kernel: _lambda_.28
= control target key start
LH: loop header
LB: loop body
LE: loop exit
PB: predicated region body
PF: predicated region fallthrough
CT: control target
= control target key end

     0   :  { %v371_v1 = vmov 0   ;;  %v232_v19 = vlaneseq  ;;  %s469_s1 = inlined_call_operand.vmem [shape: bf16[128,256], index: 1, kind: input, shape index: {}]   ;;  %s470_s0 = inlined_call_operand.vmem [shape: bf16[32,128], index: 0, kind: input, shape index: {}]   ;;  %s471_s2 = inlined_call_operand.vmem [shape: f32[1,256], index: 2, kind: input, shape index: {}]   ;;  %s472_s3 = inlined_call_operand.vmem [shape: f32[1,256], index: 3, kind: input, shape index: {}]   ;;  %s473_s4 = inlined_call_operand.vmem [shape: bf16[32,256], index: 4, kind: output, shape index: {}]  }
   0x1   :  { %v345_v0 = vld [vmem:[%s469_s1 + $0x4] ss:$8 sps:$4 sm:$0xff]   ;;  %182 = vmatprep.mubr.bf16.mxu0 %v371_v1  ;;  %192 = vmatprep.mubr.bf16.mxu1 %v371_v1  ;;  %v347_v2 = vld [vmem:[%s469_s1] ss:$8 sps:$4 sm:$0xff]   ;;  %v348_v3 = vld [vmem:[%s469_s1 + $0x14] ss:$8 sps:$4 sm:$0xff]  }
   0x2   :  { %150 = vmatprep.subr.bf16.mxu0 %v345_v0  ;;  %328 = vmatprep.subr.bf16.mxu1 %v345_v0  ;;  %v350_v4 = vld [vmem:[%s469_s1 + $0x10] ss:$8 sps:$4 sm:$0xff]   ;;  %v351_v5 = vld [vmem:[%s469_s1 + $0x24] ss:$8 sps:$4 sm:$0xff]   ;;  %v353_v6 = vld [vmem:[%s469_s1 + $0x20] ss:$8 sps:$4 sm:$0xff]  }
   0x3   :  { %151 = vmatpush1.bf16.msra.mxu0 %v347_v2  ;;  %336 = vmatpush1.bf16.msra.mxu1 %v347_v2  ;;  %v354_v7 = vld [vmem:[%s469_s1 + $0x34] ss:$8 sps:$4 sm:$0xff]   ;;  %v356_v8 = vld [vmem:[%s469_s1 + $0x30] ss:$8 sps:$4 sm:$0xff]   ;;  %v357_v9 = vld [vmem:[%s469_s1 + $0x44] ss:$8 sps:$4 sm:$0xff]  }
   0x4   :  { %152 = vmatprep.subr.bf16.mxu0 %v348_v3  ;;  %329 = vmatprep.subr.bf16.mxu1 %v348_v3  ;;  %v359_v10 = vld [vmem:[%s469_s1 + $0x40] ss:$8 sps:$4 sm:$0xff]   ;;  %v360_v11 = vld [vmem:[%s469_s1 + $0x54] ss:$8 sps:$4 sm:$0xff]   ;;  %v362_v12 = vld [vmem:[%s469_s1 + $0x50] ss:$8 sps:$4 sm:$0xff]  }
   0x5   :  { %v363_v13 = vld [vmem:[%s469_s1 + $0x64] ss:$8 sps:$4 sm:$0xff]   ;;  %v365_v14 = vld [vmem:[%s469_s1 + $0x60] ss:$8 sps:$4 sm:$0xff]   ;;  %v366_v15 = vld [vmem:[%s469_s1 + $0x74] ss:$8 sps:$4 sm:$0xff]  }
   0x6   :  { %v368_v16 = vld [vmem:[%s469_s1 + $0x70] ss:$8 sps:$4 sm:$0xff]   ;;  %v369_v17 = vld [vmem:[%s470_s0] sm:$0xff]   ;;  %v370_v18 = vld [vmem:[%s470_s0 + $0x8] sm:$0xff]   ;;  %v233_v20 = vshrl.u32 %v232_v19, 7 }
   0x7   :  { %153 = vmatpush1.bf16.msra.mxu0 %v350_v4  ;;  %337 = vmatpush1.bf16.msra.mxu1 %v350_v4  ;;  %v230_v22 = vld [vmem:[%s471_s2] sm:$0x3] }
   0x8   :  { %154 = vmatprep.subr.bf16.mxu0 %v351_v5  ;;  %330 = vmatprep.subr.bf16.mxu1 %v351_v5  ;;  %v234_v21 = vsub.s32 0, %v233_v20  ;;  %v238_v23 = vsub.s32 1, %v233_v20  ;;  %v250_v24 = vld [vmem:[%s472_s3] sm:$0x3] }
   0xa   :  { %v235_v25 = vrot.slane %v230_v22, %v234_v21  ;;  %v239_v26 = vrot.slane %v230_v22, %v238_v23  ;;  %v255_v27 = vrot.slane %v250_v24, %v234_v21  ;;  %v259_v30 = vrot.slane %v250_v24, %v238_v23 }
   0xb   :  { %155 = vmatpush1.bf16.msra.mxu0 %v353_v6  ;;  %338 = vmatpush1.bf16.msra.mxu1 %v353_v6 }
   0xc   :  { %156 = vmatprep.subr.bf16.mxu0 %v354_v7  ;;  %331 = vmatprep.subr.bf16.mxu1 %v354_v7 }
   0xf   :  { %157 = vmatpush1.bf16.msra.mxu0 %v356_v8  ;;  %339 = vmatpush1.bf16.msra.mxu1 %v356_v8 }
  0x10   :  { %158 = vmatprep.subr.bf16.mxu0 %v357_v9  ;;  %332 = vmatprep.subr.bf16.mxu1 %v357_v9 }
  0x13   :  { %159 = vmatpush1.bf16.msra.mxu0 %v359_v10  ;;  %340 = vmatpush1.bf16.msra.mxu1 %v359_v10 }
  0x14   :  { %160 = vmatprep.subr.bf16.mxu0 %v360_v11  ;;  %333 = vmatprep.subr.bf16.mxu1 %v360_v11 }
  0x17   :  { %161 = vmatpush1.bf16.msra.mxu0 %v362_v12  ;;  %341 = vmatpush1.bf16.msra.mxu1 %v362_v12 }
  0x18   :  { %162 = vmatprep.subr.bf16.mxu0 %v363_v13  ;;  %334 = vmatprep.subr.bf16.mxu1 %v363_v13 }
  0x1b   :  { %163 = vmatpush1.bf16.msra.mxu0 %v365_v14  ;;  %342 = vmatpush1.bf16.msra.mxu1 %v365_v14 }
  0x1c   :  { %164 = vmatprep.subr.bf16.mxu0 %v366_v15  ;;  %335 = vmatprep.subr.bf16.mxu1 %v366_v15 }
  0x1f   :  { %165 = vmatpush1.bf16.msra.mxu0 %v368_v16  ;;  %343 = vmatpush1.bf16.msra.mxu1 %v368_v16 }
  0x22   :  { %183 = vmatmul.mubr.bf16.vlgmr.msra.gmra.mrb[0].mxu0 %v369_v17  ;;  %193 = vmatmul.mubr.bf16.vlgmr.msra.gmra.mrb[0].mxu1 %v370_v18 }
  0xf5   :  { %v184_v28 = vpop.f32.mrb[0].mxu0  ;;  %v194_v29 = vpop.f32.mrb[0].mxu1 }
  0xf6   :  { %v242_v31 = vmul.f32 %v235_v25, %v184_v28  ;;  %v246_v32 = vmul.f32 %v235_v25, %v194_v29  ;;  %v186_v33 = vpop.f32.mrb[1].mxu0  ;;  %v196_v34 = vpop.f32.mrb[1].mxu1 }
  0xf7   :  { %v243_v35 = vmul.f32 %v239_v26, %v186_v33  ;;  %v247_v36 = vmul.f32 %v239_v26, %v196_v34  ;;  %v188_v37 = vpop.f32.mrb[2].mxu0  ;;  %v198_v38 = vpop.f32.mrb[2].mxu1 }
  0xf8   :  { %v262_v39 = vadd.f32 %v255_v27, %v242_v31  ;;  %v266_v40 = vadd.f32 %v255_v27, %v246_v32  ;;  %v244_v41 = vmul.f32 %v235_v25, %v188_v37  ;;  %v248_v42 = vmul.f32 %v235_v25, %v198_v38  ;;  %v190_v43 = vpop.f32.mrb[3].mxu0  ;;  %v200_v44 = vpop.f32.mrb[3].mxu1 }
  0xf9   :  { %v263_v45 = vadd.f32 %v259_v30, %v243_v35  ;;  %v267_v46 = vadd.f32 %v259_v30, %v247_v36  ;;  %v245_v47 = vmul.f32 %v239_v26, %v190_v43  ;;  %v249_v48 = vmul.f32 %v239_v26, %v200_v44 }
  0xfa   :  { %v264_v49 = vadd.f32 %v255_v27, %v244_v41  ;;  %v268_v50 = vadd.f32 %v255_v27, %v248_v42 }
  0xfb   :  { %v324_v51 = vpack.c.bf16 %v263_v45, %v262_v39  ;;  %v326_v52 = vpack.c.bf16 %v267_v46, %v266_v40  ;;  %v265_v53 = vadd.f32 %v259_v30, %v245_v47  ;;  %v269_v54 = vadd.f32 %v259_v30, %v249_v48 }
  0xfd   :  { %294 = vst [vmem:[%s473_s4] sm:$0xff] %v324_v51  ;;  %296 = vst [vmem:[%s473_s4 + $0x10] sm:$0xff] %v326_v52  ;;  %v325_v55 = vpack.c.bf16 %v265_v53, %v264_v49  ;;  %v327_v56 = vpack.c.bf16 %v269_v54, %v268_v50 }
  0xff   :  { %295 = vst [vmem:[%s473_s4 + $0x8] sm:$0xff] %v325_v55  ;;  %297 = vst [vmem:[%s473_s4 + $0x18] sm:$0xff] %v327_v56 }

// kernel: _lambda_.30
= control target key start
LH: loop header
LB: loop body
LE: loop exit
PB: predicated region body
PF: predicated region fallthrough
CT: control target
= control target key end

     0   :  { %s1024_s1 = inlined_call_operand.vmem [shape: bf16[640,128], index: 1, kind: input, shape index: {}]   ;;  %s1025_s0 = inlined_call_operand.vmem [shape: bf16[32,640], index: 0, kind: input, shape index: {}]   ;;  %s1026_s2 = inlined_call_operand.vmem [shape: f32[1,128], index: 2, kind: input, shape index: {}]   ;;  %s1027_s3 = inlined_call_operand.vmem [shape: f32[1,128], index: 3, kind: input, shape index: {}]   ;;  %s1028_s4 = inlined_call_operand.vmem [shape: bf16[32,128], index: 4, kind: output, shape index: {}]  }
   0x1   :  { %v783_v0 = vld [vmem:[%s1024_s1 + $0x40] sm:$0xff]   ;;  %v787_v4 = vld [vmem:[%s1024_s1 + $0x48] sm:$0xff]   ;;  %v791_v8 = vld [vmem:[%s1024_s1 + $0x50] sm:$0xff]  }
   0x2   :  { %v784_v1 = vld [vmem:[%s1024_s1 + $0xc0] sm:$0xff]   ;;  %697 = vmatprep.subr.bf16.mxu0 %v783_v0  ;;  %v788_v5 = vld [vmem:[%s1024_s1 + $0xc8] sm:$0xff]   ;;  %v792_v9 = vld [vmem:[%s1024_s1 + $0xd0] sm:$0xff]  }
   0x3   :  { %v785_v2 = vld [vmem:[%s1024_s1] sm:$0xff]   ;;  %725 = vmatprep.subr.bf16.mxu1 %v784_v1  ;;  %v789_v6 = vld [vmem:[%s1024_s1 + $0x8] sm:$0xff]   ;;  %v793_v10 = vld [vmem:[%s1024_s1 + $0x10] sm:$0xff]  }
   0x4   :  { %v786_v3 = vld [vmem:[%s1024_s1 + $0x80] sm:$0xff]   ;;  %698 = vmatpush3.bf16.msra.mxu0 %v785_v2  ;;  %v790_v7 = vld [vmem:[%s1024_s1 + $0x88] sm:$0xff]   ;;  %v794_v11 = vld [vmem:[%s1024_s1 + $0x90] sm:$0xff]  }
   0x5   :  { %726 = vmatpush3.bf16.msra.mxu1 %v786_v3  ;;  %699 = vmatprep.subr.bf16.mxu0 %v787_v4  ;;  %v795_v12 = vld [vmem:[%s1024_s1 + $0x58] sm:$0xff]   ;;  %v799_v16 = vld [vmem:[%s1024_s1 + $0x60] sm:$0xff]   ;;  %v803_v20 = vld [vmem:[%s1024_s1 + $0x68] sm:$0xff]  }
   0x6   :  { %727 = vmatprep.subr.bf16.mxu1 %v788_v5  ;;  %v796_v13 = vld [vmem:[%s1024_s1 + $0xd8] sm:$0xff]   ;;  %v800_v17 = vld [vmem:[%s1024_s1 + $0xe0] sm:$0xff]   ;;  %v804_v21 = vld [vmem:[%s1024_s1 + $0xe8] sm:$0xff]  }
   0x7   :  { %v797_v14 = vld [vmem:[%s1024_s1 + $0x18] sm:$0xff]   ;;  %v801_v18 = vld [vmem:[%s1024_s1 + $0x20] sm:$0xff]   ;;  %v805_v22 = vld [vmem:[%s1024_s1 + $0x28] sm:$0xff]  }
   0x8   :  { %700 = vmatpush3.bf16.msra.mxu0 %v789_v6  ;;  %v798_v15 = vld [vmem:[%s1024_s1 + $0x98] sm:$0xff]   ;;  %v802_v19 = vld [vmem:[%s1024_s1 + $0xa0] sm:$0xff]   ;;  %v806_v23 = vld [vmem:[%s1024_s1 + $0xa8] sm:$0xff]  }
   0x9   :  { %728 = vmatpush3.bf16.msra.mxu1 %v790_v7  ;;  %701 = vmatprep.subr.bf16.mxu0 %v791_v8  ;;  %v807_v24 = vld [vmem:[%s1024_s1 + $0x70] sm:$0xff]   ;;  %v811_v28 = vld [vmem:[%s1024_s1 + $0x78] sm:$0xff]   ;;  %v820_v35 = vld [vmem:[%s1025_s0 + $0xc] ss:$20 sps:$4 sm:$0xff]  }
   0xa   :  { %729 = vmatprep.subr.bf16.mxu1 %v792_v9  ;;  %v808_v25 = vld [vmem:[%s1024_s1 + $0xf0] sm:$0xff]   ;;  %v812_v29 = vld [vmem:[%s1024_s1 + $0xf8] sm:$0xff]   ;;  %v821_v36 = vld [vmem:[%s1024_s1 + $0x100] sm:$0xff]   ;;  %495 = vmatprep.mubr.bf16.mxu1 %v820_v35 }
   0xb   :  { %v809_v26 = vld [vmem:[%s1024_s1 + $0x30] sm:$0xff]   ;;  %v813_v30 = vld [vmem:[%s1024_s1 + $0x38] sm:$0xff]   ;;  %v822_v37 = vld [vmem:[%s1024_s1 + $0x108] sm:$0xff]  }
   0xc   :  { %702 = vmatpush3.bf16.msra.mxu0 %v793_v10  ;;  %v810_v27 = vld [vmem:[%s1024_s1 + $0xb0] sm:$0xff]   ;;  %v814_v31 = vld [vmem:[%s1024_s1 + $0xb8] sm:$0xff]   ;;  %v826_v39 = vld [vmem:[%s1025_s0 + $0x2c] ss:$20 sps:$4 sm:$0xff]  }
   0xd   :  { %730 = vmatpush3.bf16.msra.mxu1 %v794_v11  ;;  %703 = vmatprep.subr.bf16.mxu0 %v795_v12  ;;  %v815_v32 = vld [vmem:[%s1025_s0] ss:$20 sps:$4 sm:$0xff]   ;;  %v817_v33 = vld [vmem:[%s1025_s0 + $0x4] ss:$20 sps:$4 sm:$0xff]   ;;  %v818_v34 = vld [vmem:[%s1025_s0 + $0x8] ss:$20 sps:$4 sm:$0xff]  }
   0xe   :  { %731 = vmatprep.subr.bf16.mxu1 %v796_v13  ;;  %446 = vmatprep.mubr.bf16.mxu0 %v817_v33  ;;  %v823_v38 = vld [vmem:[%s1024_s1 + $0x110] sm:$0xff]   ;;  %v824_v41 = vld [vmem:[%s1024_s1 + $0x118] sm:$0xff]   ;;  %v825_v45 = vld [vmem:[%s1024_s1 + $0x120] sm:$0xff]  }
   0xf   :  { %v828_v40 = vld [vmem:[%s1025_s0 + $0x34] ss:$20 sps:$4 sm:$0xff]   ;;  %v832_v43 = vld [vmem:[%s1025_s0 + $0x30] ss:$20 sps:$4 sm:$0xff]   ;;  %v834_v48 = vld [vmem:[%s1024_s1 + $0x138] sm:$0xff]  }
  0x10   :  { %704 = vmatpush3.bf16.msra.mxu0 %v797_v14  ;;  %v831_v42 = vld [vmem:[%s1025_s0 + $0x28] ss:$20 sps:$4 sm:$0xff]   ;;  %v835_v44 = vld [vmem:[%s1025_s0 + $0x10] ss:$20 sps:$4 sm:$0xff]   ;;  %v836_v49 = vld [vmem:[%s1025_s0 + $0x38] ss:$20 sps:$4 sm:$0xff]  }
  0x11   :  { %732 = vmatpush3.bf16.msra.mxu1 %v798_v15  ;;  %705 = vmatprep.subr.bf16.mxu0 %v799_v16  ;;  %v830_v46 = vld [vmem:[%s1024_s1 + $0x128] sm:$0xff]   ;;  %v833_v47 = vld [vmem:[%s1024_s1 + $0x130] sm:$0xff]   ;;  %v676_v15 = vld [vmem:[%s1026_s2] ss:$0 sm:$0xff] }
  0x12   :  { %733 = vmatprep.subr.bf16.mxu1 %v800_v17 }
  0x14   :  { %706 = vmatpush3.bf16.msra.mxu0 %v801_v18  ;;  %v677_v18 = vld [vmem:[%s1027_s3] ss:$0 sm:$0xff] }
  0x15   :  { %734 = vmatpush3.bf16.msra.mxu1 %v802_v19  ;;  %707 = vmatprep.subr.bf16.mxu0 %v803_v20 }
  0x16   :  { %735 = vmatprep.subr.bf16.mxu1 %v804_v21 }
  0x18   :  { %708 = vmatpush3.bf16.msra.mxu0 %v805_v22 }
  0x19   :  { %736 = vmatpush3.bf16.msra.mxu1 %v806_v23  ;;  %709 = vmatprep.subr.bf16.mxu0 %v807_v24 }
  0x1a   :  { %737 = vmatprep.subr.bf16.mxu1 %v808_v25 }
  0x1c   :  { %710 = vmatpush3.bf16.msra.mxu0 %v809_v26 }
  0x1d   :  { %738 = vmatpush3.bf16.msra.mxu1 %v810_v27  ;;  %711 = vmatprep.subr.bf16.mxu0 %v811_v28 }
  0x1e   :  { %739 = vmatprep.subr.bf16.mxu1 %v812_v29 }
  0x20   :  { %712 = vmatpush3.bf16.msra.mxu0 %v813_v30 }
  0x21   :  { %740 = vmatpush3.bf16.msra.mxu1 %v814_v31  ;;  %763 = vmatprep.subr.bf16.mxu0 %v821_v36 }
  0x23   :  { %447 = vmatmul.mubr.bf16.vlgmr.msra.gmra.mrb[0].mxu0 %v815_v32 }
  0x24   :  { %496 = vmatmul.mubr.bf16.vlgmr.msra.gmra.mrb[0].mxu1 %v818_v34  ;;  %764 = vmatpush3.bf16.msra.mxu0 %v821_v36 }
  0x25   :  { %765 = vmatprep.subr.bf16.mxu0 %v822_v37  ;;  %454 = vmatprep.mubr.bf16.mxu0 %v826_v39 }
  0x26   :  { %503 = vmatprep.mubr.bf16.mxu1 %v828_v40 }
  0x28   :  { %766 = vmatpush3.bf16.msra.mxu0 %v822_v37 }
  0x29   :  { %767 = vmatprep.subr.bf16.mxu0 %v823_v38 }
  0x2b   :  { %455 = vmatmul.mubr.bf16.gmra.mrb[4].mxu0 %v831_v42 }
  0x2c   :  { %504 = vmatmul.mubr.bf16.gmra.mrb[4].mxu1 %v832_v43  ;;  %768 = vmatpush3.bf16.msra.mxu0 %v823_v38 }
  0x2d   :  { %769 = vmatprep.subr.bf16.mxu0 %v824_v41  ;;  %779 = vmatprep.mubr.bf16.mxu0 %v835_v44 }
  0x30   :  { %770 = vmatpush3.bf16.msra.mxu0 %v824_v41 }
  0x31   :  { %771 = vmatprep.subr.bf16.mxu0 %v825_v45 }
  0x34   :  { %772 = vmatpush3.bf16.msra.mxu0 %v825_v45 }
  0x35   :  { %773 = vmatprep.subr.bf16.mxu0 %v830_v46 }
  0x38   :  { %774 = vmatpush3.bf16.msra.mxu0 %v830_v46 }
  0x39   :  { %775 = vmatprep.subr.bf16.mxu0 %v833_v47 }
  0x3c   :  { %776 = vmatpush3.bf16.msra.mxu0 %v833_v47 }
  0x3d   :  { %777 = vmatprep.subr.bf16.mxu0 %v834_v48 }
  0x40   :  { %778 = vmatpush3.bf16.msra.mxu0 %v834_v48 }
  0x43   :  { %780 = vmatmul.mubr.bf16.vlgmr.msra.gmra.mrb[8].mxu0 %v836_v49 }
  0xf6   :  { %v713_v50 = vpop.f32.mrb[0].mxu0 }
  0xf7   :  { %v741_v51 = vpop.f32.mrb[0].mxu1  ;;  %v714_v52 = vpop.f32.mrb[1].mxu0 }
  0xf8   :  { %v715_v53 = vadd.f32 %v714_v52, %v713_v50  ;;  %v742_v54 = vpop.f32.mrb[1].mxu1  ;;  %v716_v55 = vpop.f32.mrb[2].mxu0 }
  0xf9   :  { %v743_v56 = vadd.f32 %v742_v54, %v741_v51  ;;  %v744_v57 = vpop.f32.mrb[2].mxu1  ;;  %v717_v58 = vpop.f32.mrb[3].mxu0 }
  0xfa   :  { %v718_v59 = vadd.f32 %v717_v58, %v716_v55  ;;  %v745_v60 = vpop.f32.mrb[3].mxu1 }
  0xfb   :  { %v746_v61 = vadd.f32 %v745_v60, %v744_v57  ;;  %v498_v62 = vadd.f32 %v743_v56, %v715_v53 }
  0xfd   :  { %v501_v63 = vadd.f32 %v746_v61, %v718_v59 }
  0xfe   :  { %v719_v0 = vpop.f32.mrb[4].mxu0 }
  0xff   :  { %v747_v1 = vpop.f32.mrb[4].mxu1  ;;  %v720_v2 = vpop.f32.mrb[5].mxu0 }
 0x100   :  { %v721_v3 = vadd.f32 %v720_v2, %v719_v0  ;;  %v748_v4 = vpop.f32.mrb[5].mxu1  ;;  %v722_v5 = vpop.f32.mrb[6].mxu0 }
 0x101   :  { %v749_v6 = vadd.f32 %v748_v4, %v747_v1  ;;  %v750_v7 = vpop.f32.mrb[6].mxu1  ;;  %v723_v8 = vpop.f32.mrb[7].mxu0 }
 0x102   :  { %v724_v9 = vadd.f32 %v723_v8, %v722_v5  ;;  %v751_v10 = vpop.f32.mrb[7].mxu1 }
 0x103   :  { %v752_v11 = vadd.f32 %v751_v10, %v750_v7  ;;  %v506_v12 = vadd.f32 %v749_v6, %v721_v3 }
 0x105   :  { %v509_v13 = vadd.f32 %v752_v11, %v724_v9 }
 0x116   :  { %v781_v14 = vpop.f32.mrb[8].mxu0 }
 0x117   :  { %v555_v16 = vadd.f32 %v781_v14, %v506_v12  ;;  %v546_v17 = vpop.f32.mrb[9].mxu0 }
 0x118   :  { %v547_v19 = vadd.f32 %v546_v17, %v498_v62  ;;  %v782_v20 = vpop.f32.mrb[10].mxu0 }
 0x119   :  { %v585_v21 = vmul.f32 %v676_v15, %v555_v16  ;;  %v558_v22 = vadd.f32 %v782_v20, %v509_v13  ;;  %v549_v23 = vpop.f32.mrb[11].mxu0 }
 0x11a   :  { %v583_v24 = vmul.f32 %v676_v15, %v547_v19  ;;  %v550_v25 = vadd.f32 %v549_v23, %v501_v63 }
 0x11b   :  { %v596_v26 = vadd.f32 %v677_v18, %v585_v21  ;;  %v586_v27 = vmul.f32 %v676_v15, %v558_v22 }
 0x11c   :  { %v594_v28 = vadd.f32 %v677_v18, %v583_v24  ;;  %v584_v29 = vmul.f32 %v676_v15, %v550_v25 }
 0x11d   :  { %v597_v30 = vadd.f32 %v677_v18, %v586_v27  ;;  %v600_v32 = vmax.f32 %v596_v26, 0.0 }
 0x11e   :  { %v595_v31 = vadd.f32 %v677_v18, %v584_v29  ;;  %v598_v34 = vmax.f32 %v594_v28, 0.0 }
 0x11f   :  { %v601_v33 = vmax.f32 %v597_v30, 0.0 }
 0x120   :  { %v599_v35 = vmax.f32 %v595_v31, 0.0 }
 0x121   :  { %v694_v36 = vpack.c.bf16 %v601_v33, %v600_v32 }
 0x122   :  { %v689_v37 = vpack.c.bf16 %v599_v35, %v598_v34 }
 0x123   :  { %696 = vst [vmem:[%s1028_s4 + $0x8] sm:$0xff] %v694_v36  }
 0x124   :  { %690 = vst [vmem:[%s1028_s4] sm:$0xff] %v689_v37  }

// kernel: _lambda_.31
= control target key start
LH: loop header
LB: loop body
LE: loop exit
PB: predicated region body
PF: predicated region fallthrough
CT: control target
= control target key end

     0   :  { %v402_v1 = vmov 0   ;;  %v235_v19 = vlaneseq  ;;  %s517_s1 = inlined_call_operand.vmem [shape: bf16[128,256], index: 1, kind: input, shape index: {}]   ;;  %s518_s0 = inlined_call_operand.vmem [shape: bf16[32,128], index: 0, kind: input, shape index: {}]   ;;  %s519_s2 = inlined_call_operand.vmem [shape: f32[1,256], index: 2, kind: input, shape index: {}]   ;;  %s520_s3 = inlined_call_operand.vmem [shape: f32[1,256], index: 3, kind: input, shape index: {}]   ;;  %s521_s4 = inlined_call_operand.vmem [shape: bf16[32,256], index: 4, kind: input, shape index: {}]   ;;  %s522_s5 = inlined_call_operand.vmem [shape: bf16[32,256], index: 5, kind: output, shape index: {}]  }
   0x1   :  { %v376_v0 = vld [vmem:[%s517_s1 + $0x4] ss:$8 sps:$4 sm:$0xff]   ;;  %185 = vmatprep.mubr.bf16.mxu0 %v402_v1  ;;  %195 = vmatprep.mubr.bf16.mxu1 %v402_v1  ;;  %v378_v2 = vld [vmem:[%s517_s1] ss:$8 sps:$4 sm:$0xff]   ;;  %v379_v3 = vld [vmem:[%s517_s1 + $0x14] ss:$8 sps:$4 sm:$0xff]  }
   0x2   :  { %153 = vmatprep.subr.bf16.mxu0 %v376_v0  ;;  %359 = vmatprep.subr.bf16.mxu1 %v376_v0  ;;  %v381_v4 = vld [vmem:[%s517_s1 + $0x10] ss:$8 sps:$4 sm:$0xff]   ;;  %v382_v5 = vld [vmem:[%s517_s1 + $0x24] ss:$8 sps:$4 sm:$0xff]   ;;  %v384_v6 = vld [vmem:[%s517_s1 + $0x20] ss:$8 sps:$4 sm:$0xff]  }
   0x3   :  { %154 = vmatpush1.bf16.msra.mxu0 %v378_v2  ;;  %367 = vmatpush1.bf16.msra.mxu1 %v378_v2  ;;  %v385_v7 = vld [vmem:[%s517_s1 + $0x34] ss:$8 sps:$4 sm:$0xff]   ;;  %v387_v8 = vld [vmem:[%s517_s1 + $0x30] ss:$8 sps:$4 sm:$0xff]   ;;  %v388_v9 = vld [vmem:[%s517_s1 + $0x44] ss:$8 sps:$4 sm:$0xff]  }
   0x4   :  { %155 = vmatprep.subr.bf16.mxu0 %v379_v3  ;;  %360 = vmatprep.subr.bf16.mxu1 %v379_v3  ;;  %v390_v10 = vld [vmem:[%s517_s1 + $0x40] ss:$8 sps:$4 sm:$0xff]   ;;  %v391_v11 = vld [vmem:[%s517_s1 + $0x54] ss:$8 sps:$4 sm:$0xff]   ;;  %v393_v12 = vld [vmem:[%s517_s1 + $0x50] ss:$8 sps:$4 sm:$0xff]  }
   0x5   :  { %v394_v13 = vld [vmem:[%s517_s1 + $0x64] ss:$8 sps:$4 sm:$0xff]   ;;  %v396_v14 = vld [vmem:[%s517_s1 + $0x60] ss:$8 sps:$4 sm:$0xff]   ;;  %v397_v15 = vld [vmem:[%s517_s1 + $0x74] ss:$8 sps:$4 sm:$0xff]  }
   0x6   :  { %v399_v16 = vld [vmem:[%s517_s1 + $0x70] ss:$8 sps:$4 sm:$0xff]   ;;  %v400_v17 = vld [vmem:[%s518_s0] sm:$0xff]   ;;  %v401_v18 = vld [vmem:[%s518_s0 + $0x8] sm:$0xff]   ;;  %v236_v20 = vshrl.u32 %v235_v19, 7 }
   0x7   :  { %156 = vmatpush1.bf16.msra.mxu0 %v381_v4  ;;  %368 = vmatpush1.bf16.msra.mxu1 %v381_v4  ;;  %v233_v22 = vld [vmem:[%s519_s2] sm:$0x3]  ;;  %v275_v27 = vld [vmem:[%s521_s4 + $0x10] sm:$0xff]  ;;  %v274_v29 = vld [vmem:[%s521_s4 + $0x8] sm:$0xff] }
   0x8   :  { %157 = vmatprep.subr.bf16.mxu0 %v382_v5  ;;  %361 = vmatprep.subr.bf16.mxu1 %v382_v5  ;;  %v237_v21 = vsub.s32 0, %v236_v20  ;;  %v241_v23 = vsub.s32 1, %v236_v20  ;;  %v253_v24 = vld [vmem:[%s520_s3] sm:$0x3]  ;;  %v276_v30 = vld [vmem:[%s521_s4 + $0x18] sm:$0xff]  ;;  %v281_v36 = vunpack.c.l.bf16 %v275_v27  ;;  %v282_v38 = vunpack.c.h.bf16 %v275_v27 }
   0x9   :  { %v273_v26 = vld [vmem:[%s521_s4] sm:$0xff]  ;;  %v279_v43 = vunpack.c.l.bf16 %v274_v29  ;;  %v283_v44 = vunpack.c.l.bf16 %v276_v30  ;;  %v280_v49 = vunpack.c.h.bf16 %v274_v29  ;;  %v284_v50 = vunpack.c.h.bf16 %v276_v30 }
   0xa   :  { %v238_v25 = vrot.slane %v233_v22, %v237_v21  ;;  %v242_v28 = vrot.slane %v233_v22, %v241_v23  ;;  %v258_v31 = vrot.slane %v253_v24, %v237_v21  ;;  %v262_v32 = vrot.slane %v253_v24, %v241_v23 }
   0xb   :  { %158 = vmatpush1.bf16.msra.mxu0 %v384_v6  ;;  %369 = vmatpush1.bf16.msra.mxu1 %v384_v6  ;;  %v277_v34 = vunpack.c.l.bf16 %v273_v26  ;;  %v278_v37 = vunpack.c.h.bf16 %v273_v26 }
   0xc   :  { %159 = vmatprep.subr.bf16.mxu0 %v385_v7  ;;  %362 = vmatprep.subr.bf16.mxu1 %v385_v7 }
   0xf   :  { %160 = vmatpush1.bf16.msra.mxu0 %v387_v8  ;;  %370 = vmatpush1.bf16.msra.mxu1 %v387_v8 }
  0x10   :  { %161 = vmatprep.subr.bf16.mxu0 %v388_v9  ;;  %363 = vmatprep.subr.bf16.mxu1 %v388_v9 }
  0x13   :  { %162 = vmatpush1.bf16.msra.mxu0 %v390_v10  ;;  %371 = vmatpush1.bf16.msra.mxu1 %v390_v10 }
  0x14   :  { %163 = vmatprep.subr.bf16.mxu0 %v391_v11  ;;  %364 = vmatprep.subr.bf16.mxu1 %v391_v11 }
  0x17   :  { %164 = vmatpush1.bf16.msra.mxu0 %v393_v12  ;;  %372 = vmatpush1.bf16.msra.mxu1 %v393_v12 }
  0x18   :  { %165 = vmatprep.subr.bf16.mxu0 %v394_v13  ;;  %365 = vmatprep.subr.bf16.mxu1 %v394_v13 }
  0x1b   :  { %166 = vmatpush1.bf16.msra.mxu0 %v396_v14  ;;  %373 = vmatpush1.bf16.msra.mxu1 %v396_v14 }
  0x1c   :  { %167 = vmatprep.subr.bf16.mxu0 %v397_v15  ;;  %366 = vmatprep.subr.bf16.mxu1 %v397_v15 }
  0x1f   :  { %168 = vmatpush1.bf16.msra.mxu0 %v399_v16  ;;  %374 = vmatpush1.bf16.msra.mxu1 %v399_v16 }
  0x22   :  { %186 = vmatmul.mubr.bf16.vlgmr.msra.gmra.mrb[0].mxu0 %v400_v17  ;;  %196 = vmatmul.mubr.bf16.vlgmr.msra.gmra.mrb[0].mxu1 %v401_v18 }
  0xf5   :  { %v187_v33 = vpop.f32.mrb[0].mxu0  ;;  %v197_v35 = vpop.f32.mrb[0].mxu1 }
  0xf6   :  { %v245_v39 = vmul.f32 %v238_v25, %v187_v33  ;;  %v249_v40 = vmul.f32 %v238_v25, %v197_v35  ;;  %v189_v41 = vpop.f32.mrb[1].mxu0  ;;  %v199_v42 = vpop.f32.mrb[1].mxu1 }
  0xf7   :  { %v246_v45 = vmul.f32 %v242_v28, %v189_v41  ;;  %v250_v46 = vmul.f32 %v242_v28, %v199_v42  ;;  %v191_v47 = vpop.f32.mrb[2].mxu0  ;;  %v201_v48 = vpop.f32.mrb[2].mxu1 }
  0xf8   :  { %v265_v51 = vadd.f32 %v258_v31, %v245_v39  ;;  %v269_v52 = vadd.f32 %v258_v31, %v249_v40  ;;  %v247_v53 = vmul.f32 %v238_v25, %v191_v47  ;;  %v251_v54 = vmul.f32 %v238_v25, %v201_v48  ;;  %v193_v55 = vpop.f32.mrb[3].mxu0  ;;  %v203_v56 = vpop.f32.mrb[3].mxu1 }
  0xf9   :  { %v266_v57 = vadd.f32 %v262_v32, %v246_v45  ;;  %v270_v58 = vadd.f32 %v262_v32, %v250_v46  ;;  %v248_v59 = vmul.f32 %v242_v28, %v193_v55  ;;  %v252_v60 = vmul.f32 %v242_v28, %v203_v56 }
  0xfa   :  { %v285_v61 = vadd.f32 %v277_v34, %v265_v51  ;;  %v289_v62 = vadd.f32 %v281_v36, %v269_v52  ;;  %v267_v63 = vadd.f32 %v258_v31, %v247_v53  ;;  %v271_v0 = vadd.f32 %v258_v31, %v251_v54 }
  0xfb   :  { %v286_v1 = vadd.f32 %v278_v37, %v266_v57  ;;  %v290_v2 = vadd.f32 %v282_v38, %v270_v58  ;;  %v268_v3 = vadd.f32 %v262_v32, %v248_v59  ;;  %v272_v4 = vadd.f32 %v262_v32, %v252_v60 }
  0xfc   :  { %v293_v5 = vmax.f32 %v285_v61, 0.0  ;;  %v297_v6 = vmax.f32 %v289_v62, 0.0  ;;  %v287_v7 = vadd.f32 %v279_v43, %v267_v63  ;;  %v291_v8 = vadd.f32 %v283_v44, %v271_v0 }
  0xfd   :  { %v294_v9 = vmax.f32 %v286_v1, 0.0  ;;  %v298_v10 = vmax.f32 %v290_v2, 0.0  ;;  %v288_v11 = vadd.f32 %v280_v49, %v268_v3  ;;  %v292_v12 = vadd.f32 %v284_v50, %v272_v4 }
  0xfe   :  { %v295_v13 = vmax.f32 %v287_v7, 0.0  ;;  %v299_v14 = vmax.f32 %v291_v8, 0.0 }
  0xff   :  { %v355_v15 = vpack.c.bf16 %v294_v9, %v293_v5  ;;  %v357_v16 = vpack.c.bf16 %v298_v10, %v297_v6  ;;  %v296_v17 = vmax.f32 %v288_v11, 0.0  ;;  %v300_v18 = vmax.f32 %v292_v12, 0.0 }
 0x101   :  { %325 = vst [vmem:[%s522_s5] sm:$0xff] %v355_v15  ;;  %327 = vst [vmem:[%s522_s5 + $0x10] sm:$0xff] %v357_v16  ;;  %v356_v19 = vpack.c.bf16 %v296_v17, %v295_v13  ;;  %v358_v20 = vpack.c.bf16 %v300_v18, %v299_v14 }
 0x103   :  { %326 = vst [vmem:[%s522_s5 + $0x8] sm:$0xff] %v356_v19  ;;  %328 = vst [vmem:[%s522_s5 + $0x18] sm:$0xff] %v358_v20 }

// kernel: _lambda_.32
= control target key start
LH: loop header
LB: loop body
LE: loop exit
PB: predicated region body
PF: predicated region fallthrough
CT: control target
= control target key end

     0   :  { %s992_s1 = inlined_call_operand.vmem [shape: bf16[256,512], index: 1, kind: input, shape index: {}]   ;;  %s993_s0 = inlined_call_operand.vmem [shape: bf16[8,256], index: 0, kind: input, shape index: {}]   ;;  %s994_s2 = inlined_call_operand.vmem [shape: f32[1,512], index: 2, kind: input, shape index: {}]   ;;  %s995_s3 = inlined_call_operand.vmem [shape: f32[1,512], index: 3, kind: input, shape index: {}]   ;;  %s996_s4 = inlined_call_operand.vmem [shape: bf16[8,512], index: 4, kind: output, shape index: {}]  }
   0x1   :  { %v662_v0 = vld [vmem:[%s992_s1 + $0x4] ss:$16 sps:$4 sm:$0xff]   ;;  %v664_v1 = vld [vmem:[%s992_s1 + $0xc] ss:$16 sps:$4 sm:$0xff]   ;;  %v666_v2 = vld [vmem:[%s992_s1] ss:$16 sps:$4 sm:$0xff]  }
   0x2   :  { %421 = vmatprep.subr.bf16.mxu0 %v662_v0  ;;  %v667_v3 = vld [vmem:[%s992_s1 + $0x8] ss:$16 sps:$4 sm:$0xff]   ;;  %462 = vmatprep.subr.bf16.mxu1 %v664_v1  ;;  %v668_v4 = vld [vmem:[%s992_s1 + $0x24] ss:$16 sps:$4 sm:$0xff]   ;;  %v670_v5 = vld [vmem:[%s992_s1 + $0x2c] ss:$16 sps:$4 sm:$0xff]  }
   0x3   :  { %422 = vmatpush1.bf16.msra.mxu0 %v666_v2  ;;  %463 = vmatpush1.bf16.msra.mxu1 %v667_v3  ;;  %v672_v6 = vld [vmem:[%s992_s1 + $0x20] ss:$16 sps:$4 sm:$0xff]   ;;  %v673_v7 = vld [vmem:[%s992_s1 + $0x28] ss:$16 sps:$4 sm:$0xff]   ;;  %v674_v8 = vld [vmem:[%s992_s1 + $0x44] ss:$16 sps:$4 sm:$0xff]   ;;  %v520_v3 = vlaneseq }
   0x4   :  { %423 = vmatprep.subr.bf16.mxu0 %v668_v4  ;;  %464 = vmatprep.subr.bf16.mxu1 %v670_v5  ;;  %v676_v9 = vld [vmem:[%s992_s1 + $0x4c] ss:$16 sps:$4 sm:$0xff]   ;;  %v678_v10 = vld [vmem:[%s992_s1 + $0x40] ss:$16 sps:$4 sm:$0xff]   ;;  %v679_v11 = vld [vmem:[%s992_s1 + $0x48] ss:$16 sps:$4 sm:$0xff]  }
   0x5   :  { %v680_v12 = vld [vmem:[%s992_s1 + $0x64] ss:$16 sps:$4 sm:$0xff]   ;;  %v682_v13 = vld [vmem:[%s992_s1 + $0x6c] ss:$16 sps:$4 sm:$0xff]   ;;  %v684_v14 = vld [vmem:[%s992_s1 + $0x60] ss:$16 sps:$4 sm:$0xff]  }
   0x6   :  { %v685_v15 = vld [vmem:[%s992_s1 + $0x68] ss:$16 sps:$4 sm:$0xff]   ;;  %v686_v16 = vld [vmem:[%s992_s1 + $0x84] ss:$16 sps:$4 sm:$0xff]   ;;  %v688_v17 = vld [vmem:[%s992_s1 + $0x8c] ss:$16 sps:$4 sm:$0xff]  }
   0x7   :  { %424 = vmatpush1.bf16.msra.mxu0 %v672_v6  ;;  %465 = vmatpush1.bf16.msra.mxu1 %v673_v7  ;;  %v690_v18 = vld [vmem:[%s992_s1 + $0x80] ss:$16 sps:$4 sm:$0xff]   ;;  %v691_v19 = vld [vmem:[%s992_s1 + $0x88] ss:$16 sps:$4 sm:$0xff]   ;;  %v692_v20 = vld [vmem:[%s992_s1 + $0xa4] ss:$16 sps:$4 sm:$0xff]  }
   0x8   :  { %425 = vmatprep.subr.bf16.mxu0 %v674_v8  ;;  %466 = vmatprep.subr.bf16.mxu1 %v676_v9  ;;  %v694_v21 = vld [vmem:[%s992_s1 + $0xac] ss:$16 sps:$4 sm:$0xff]   ;;  %v696_v22 = vld [vmem:[%s992_s1 + $0xa0] ss:$16 sps:$4 sm:$0xff]   ;;  %v697_v23 = vld [vmem:[%s992_s1 + $0xa8] ss:$16 sps:$4 sm:$0xff]  }
   0x9   :  { %v698_v24 = vld [vmem:[%s992_s1 + $0xc4] ss:$16 sps:$4 sm:$0xff]   ;;  %v700_v25 = vld [vmem:[%s992_s1 + $0xcc] ss:$16 sps:$4 sm:$0xff]   ;;  %v702_v26 = vld [vmem:[%s992_s1 + $0xc0] ss:$16 sps:$4 sm:$0xff]  }
   0xa   :  { %v703_v27 = vld [vmem:[%s992_s1 + $0xc8] ss:$16 sps:$4 sm:$0xff]   ;;  %v704_v28 = vld [vmem:[%s992_s1 + $0xe4] ss:$16 sps:$4 sm:$0xff]   ;;  %v706_v29 = vld [vmem:[%s992_s1 + $0xec] ss:$16 sps:$4 sm:$0xff]  }
   0xb   :  { %426 = vmatpush1.bf16.msra.mxu0 %v678_v10  ;;  %467 = vmatpush1.bf16.msra.mxu1 %v679_v11  ;;  %v708_v30 = vld [vmem:[%s992_s1 + $0xe0] ss:$16 sps:$4 sm:$0xff]   ;;  %v709_v31 = vld [vmem:[%s992_s1 + $0xe8] ss:$16 sps:$4 sm:$0xff]   ;;  %v710_v32 = vld [vmem:[%s992_s1 + $0x104] ss:$16 sps:$4 sm:$0xff]  }
   0xc   :  { %427 = vmatprep.subr.bf16.mxu0 %v680_v12  ;;  %468 = vmatprep.subr.bf16.mxu1 %v682_v13  ;;  %v712_v33 = vld [vmem:[%s992_s1 + $0x10c] ss:$16 sps:$4 sm:$0xff]   ;;  %v714_v34 = vld [vmem:[%s992_s1 + $0x100] ss:$16 sps:$4 sm:$0xff]   ;;  %v715_v35 = vld [vmem:[%s992_s1 + $0x108] ss:$16 sps:$4 sm:$0xff]  }
   0xd   :  { %v716_v36 = vld [vmem:[%s992_s1 + $0x124] ss:$16 sps:$4 sm:$0xff]   ;;  %v718_v37 = vld [vmem:[%s992_s1 + $0x12c] ss:$16 sps:$4 sm:$0xff]   ;;  %v720_v38 = vld [vmem:[%s992_s1 + $0x120] ss:$16 sps:$4 sm:$0xff]  }
   0xe   :  { %v721_v39 = vld [vmem:[%s992_s1 + $0x128] ss:$16 sps:$4 sm:$0xff]   ;;  %v722_v40 = vld [vmem:[%s992_s1 + $0x144] ss:$16 sps:$4 sm:$0xff]   ;;  %v724_v41 = vld [vmem:[%s992_s1 + $0x14c] ss:$16 sps:$4 sm:$0xff]  }
   0xf   :  { %428 = vmatpush1.bf16.msra.mxu0 %v684_v14  ;;  %469 = vmatpush1.bf16.msra.mxu1 %v685_v15  ;;  %v726_v42 = vld [vmem:[%s992_s1 + $0x140] ss:$16 sps:$4 sm:$0xff]   ;;  %v727_v43 = vld [vmem:[%s992_s1 + $0x148] ss:$16 sps:$4 sm:$0xff]   ;;  %v728_v44 = vld [vmem:[%s992_s1 + $0x164] ss:$16 sps:$4 sm:$0xff]  }
  0x10   :  { %429 = vmatprep.subr.bf16.mxu0 %v686_v16  ;;  %470 = vmatprep.subr.bf16.mxu1 %v688_v17  ;;  %v730_v45 = vld [vmem:[%s992_s1 + $0x16c] ss:$16 sps:$4 sm:$0xff]   ;;  %v29_v46 = vld [vmem:[%s993_s0] sm:$0xff]  ;;  %v733_v49 = vld [vmem:[%s992_s1 + $0x168] ss:$16 sps:$4 sm:$0xff]   ;;  %v521_v4 = vshrl.u32 %v520_v3, 7 }
  0x11   :  { %v593_v47 = vcombine.high %v29_v46, %v29_v46  ;;  %v732_v48 = vld [vmem:[%s992_s1 + $0x160] ss:$16 sps:$4 sm:$0xff]   ;;  %v734_v50 = vld [vmem:[%s992_s1 + $0x184] ss:$16 sps:$4 sm:$0xff]   ;;  %v736_v51 = vld [vmem:[%s992_s1 + $0x18c] ss:$16 sps:$4 sm:$0xff]   ;;  %v592_v2 = vcombine.low %v29_v46, %v29_v46 }
  0x12   :  { %v738_v52 = vld [vmem:[%s992_s1 + $0x180] ss:$16 sps:$4 sm:$0xff]   ;;  %v739_v53 = vld [vmem:[%s992_s1 + $0x188] ss:$16 sps:$4 sm:$0xff]   ;;  %v740_v54 = vld [vmem:[%s992_s1 + $0x1a4] ss:$16 sps:$4 sm:$0xff]  }
  0x13   :  { %430 = vmatpush1.bf16.msra.mxu0 %v690_v18  ;;  %471 = vmatpush1.bf16.msra.mxu1 %v691_v19  ;;  %v742_v55 = vld [vmem:[%s992_s1 + $0x1ac] ss:$16 sps:$4 sm:$0xff]   ;;  %v744_v56 = vld [vmem:[%s992_s1 + $0x1a0] ss:$16 sps:$4 sm:$0xff]   ;;  %v745_v57 = vld [vmem:[%s992_s1 + $0x1a8] ss:$16 sps:$4 sm:$0xff]  }
  0x14   :  { %431 = vmatprep.subr.bf16.mxu0 %v692_v20  ;;  %472 = vmatprep.subr.bf16.mxu1 %v694_v21  ;;  %v746_v58 = vld [vmem:[%s992_s1 + $0x1c4] ss:$16 sps:$4 sm:$0xff]   ;;  %v748_v59 = vld [vmem:[%s992_s1 + $0x1cc] ss:$16 sps:$4 sm:$0xff]   ;;  %v750_v60 = vld [vmem:[%s992_s1 + $0x1c0] ss:$16 sps:$4 sm:$0xff]  }
  0x15   :  { %453 = vmatprep.mubr.bf16.mxu0 %v593_v47  ;;  %494 = vmatprep.mubr.bf16.mxu1 %v593_v47  ;;  %v751_v61 = vld [vmem:[%s992_s1 + $0x1c8] ss:$16 sps:$4 sm:$0xff]   ;;  %v752_v62 = vld [vmem:[%s992_s1 + $0x1e4] ss:$16 sps:$4 sm:$0xff]   ;;  %v754_v63 = vld [vmem:[%s992_s1 + $0x1ec] ss:$16 sps:$4 sm:$0xff]  }
  0x16   :  { %v756_v0 = vld [vmem:[%s992_s1 + $0x1e0] ss:$16 sps:$4 sm:$0xff]   ;;  %v757_v1 = vld [vmem:[%s992_s1 + $0x1e8] ss:$16 sps:$4 sm:$0xff]   ;;  %v522_v5 = vsub.s32 0, %v521_v4  ;;  %v530_v6 = vsub.s32 2, %v521_v4 }
  0x17   :  { %432 = vmatpush1.bf16.msra.mxu0 %v696_v22  ;;  %473 = vmatpush1.bf16.msra.mxu1 %v697_v23  ;;  %v518_v7 = vld [vmem:[%s994_s2] sm:$0xf]  ;;  %v526_v8 = vsub.s32 1, %v521_v4  ;;  %v534_v9 = vsub.s32 3, %v521_v4 }
  0x18   :  { %433 = vmatprep.subr.bf16.mxu0 %v698_v24  ;;  %474 = vmatprep.subr.bf16.mxu1 %v700_v25  ;;  %v544_v10 = vld [vmem:[%s995_s3] sm:$0xf]  ;;  %v523_v11 = vrot.slane %v518_v7, %v522_v5  ;;  %v531_v12 = vrot.slane %v518_v7, %v530_v6 }
  0x19   :  { %v527_v13 = vrot.slane %v518_v7, %v526_v8  ;;  %v535_v14 = vrot.slane %v518_v7, %v534_v9  ;;  %v549_v15 = vrot.slane %v544_v10, %v522_v5  ;;  %v557_v16 = vrot.slane %v544_v10, %v530_v6 }
  0x1a   :  { %v553_v19 = vrot.slane %v544_v10, %v526_v8  ;;  %v561_v20 = vrot.slane %v544_v10, %v534_v9 }
  0x1b   :  { %434 = vmatpush1.bf16.msra.mxu0 %v702_v26  ;;  %475 = vmatpush1.bf16.msra.mxu1 %v703_v27 }
  0x1c   :  { %435 = vmatprep.subr.bf16.mxu0 %v704_v28  ;;  %476 = vmatprep.subr.bf16.mxu1 %v706_v29 }
  0x1f   :  { %436 = vmatpush1.bf16.msra.mxu0 %v708_v30  ;;  %477 = vmatpush1.bf16.msra.mxu1 %v709_v31 }
  0x20   :  { %437 = vmatprep.subr.bf16.mxu0 %v710_v32  ;;  %478 = vmatprep.subr.bf16.mxu1 %v712_v33 }
  0x23   :  { %438 = vmatpush1.bf16.msra.mxu0 %v714_v34  ;;  %479 = vmatpush1.bf16.msra.mxu1 %v715_v35 }
  0x24   :  { %439 = vmatprep.subr.bf16.mxu0 %v716_v36  ;;  %480 = vmatprep.subr.bf16.mxu1 %v718_v37 }
  0x27   :  { %440 = vmatpush1.bf16.msra.mxu0 %v720_v38  ;;  %481 = vmatpush1.bf16.msra.mxu1 %v721_v39 }
  0x28   :  { %441 = vmatprep.subr.bf16.mxu0 %v722_v40  ;;  %482 = vmatprep.subr.bf16.mxu1 %v724_v41 }
  0x2b   :  { %442 = vmatpush1.bf16.msra.mxu0 %v726_v42  ;;  %483 = vmatpush1.bf16.msra.mxu1 %v727_v43 }
  0x2c   :  { %443 = vmatprep.subr.bf16.mxu0 %v728_v44  ;;  %484 = vmatprep.subr.bf16.mxu1 %v730_v45 }
  0x2f   :  { %444 = vmatpush1.bf16.msra.mxu0 %v732_v48  ;;  %485 = vmatpush1.bf16.msra.mxu1 %v733_v49 }
  0x30   :  { %445 = vmatprep.subr.bf16.mxu0 %v734_v50  ;;  %486 = vmatprep.subr.bf16.mxu1 %v736_v51 }
  0x33   :  { %446 = vmatpush1.bf16.msra.mxu0 %v738_v52  ;;  %487 = vmatpush1.bf16.msra.mxu1 %v739_v53 }
  0x34   :  { %447 = vmatprep.subr.bf16.mxu0 %v740_v54  ;;  %488 = vmatprep.subr.bf16.mxu1 %v742_v55 }
  0x37   :  { %448 = vmatpush1.bf16.msra.mxu0 %v744_v56  ;;  %489 = vmatpush1.bf16.msra.mxu1 %v745_v57 }
  0x38   :  { %449 = vmatprep.subr.bf16.mxu0 %v746_v58  ;;  %490 = vmatprep.subr.bf16.mxu1 %v748_v59 }
  0x3b   :  { %450 = vmatpush1.bf16.msra.mxu0 %v750_v60  ;;  %491 = vmatpush1.bf16.msra.mxu1 %v751_v61 }
  0x3c   :  { %451 = vmatprep.subr.bf16.mxu0 %v752_v62  ;;  %492 = vmatprep.subr.bf16.mxu1 %v754_v63 }
  0x3f   :  { %452 = vmatpush1.bf16.msra.mxu0 %v756_v0  ;;  %493 = vmatpush1.bf16.msra.mxu1 %v757_v1 }
  0x42   :  { %454 = vmatmul.mubr.bf16.vlgmr.msra.gmra.mrb[0].mxu0 %v592_v2  ;;  %495 = vmatmul.mubr.bf16.vlgmr.msra.gmra.mrb[0].mxu1 %v592_v2 }
 0x115   :  { %v455_v17 = vpop.f32.mrb[0].mxu0  ;;  %v496_v18 = vpop.f32.mrb[0].mxu1 }
 0x116   :  { %v540_v21 = vmul.f32 %v523_v11, %v455_v17  ;;  %v542_v22 = vmul.f32 %v531_v12, %v496_v18  ;;  %v457_v23 = vpop.f32.mrb[1].mxu0  ;;  %v498_v24 = vpop.f32.mrb[1].mxu1 }
 0x117   :  { %v541_v25 = vmul.f32 %v527_v13, %v457_v23  ;;  %v543_v26 = vmul.f32 %v535_v14, %v498_v24  ;;  %v459_v27 = vpop.f32.mrb[2].mxu0  ;;  %v500_v28 = vpop.f32.mrb[2].mxu1 }
 0x118   :  { %v566_v29 = vadd.f32 %v549_v15, %v540_v21  ;;  %v568_v30 = vadd.f32 %v557_v16, %v542_v22  ;;  %v460_v31 = vpop.f32.mrb[3].mxu0  ;;  %v501_v32 = vpop.f32.mrb[3].mxu1 }
 0x119   :  { %v567_v33 = vadd.f32 %v553_v19, %v541_v25  ;;  %v569_v34 = vadd.f32 %v561_v20, %v543_v26 }
 0x11b   :  { %v660_v35 = vpack.c.bf16 %v567_v33, %v566_v29  ;;  %v661_v36 = vpack.c.bf16 %v569_v34, %v568_v30 }
 0x11d   :  { %586 = vst [vmem:[%s996_s4] sm:$0xff] %v660_v35  ;;  %587 = vst [vmem:[%s996_s4 + $0x8] sm:$0xff] %v661_v36 }

// kernel: _lambda_.33
= control target key start
LH: loop header
LB: loop body
LE: loop exit
PB: predicated region body
PF: predicated region fallthrough
CT: control target
= control target key end

     0   :  { %s500_s1 = inlined_call_operand.vmem [shape: bf16[256,128], index: 1, kind: input, shape index: {}]   ;;  %s501_s0 = inlined_call_operand.vmem [shape: bf16[32,256], index: 0, kind: input, shape index: {}]   ;;  %s502_s2 = inlined_call_operand.vmem [shape: f32[1,128], index: 2, kind: input, shape index: {}]   ;;  %s503_s3 = inlined_call_operand.vmem [shape: f32[1,128], index: 3, kind: input, shape index: {}]   ;;  %s504_s4 = inlined_call_operand.vmem [shape: bf16[32,128], index: 4, kind: output, shape index: {}]  }
   0x1   :  { %v381_v0 = vld [vmem:[%s500_s1 + $0x40] sm:$0xff]   ;;  %v383_v2 = vld [vmem:[%s500_s1 + $0x48] sm:$0xff]   ;;  %v385_v4 = vld [vmem:[%s500_s1 + $0x50] sm:$0xff]  }
   0x2   :  { %v382_v1 = vld [vmem:[%s500_s1] sm:$0xff]   ;;  %337 = vmatprep.subr.bf16.mxu0 %v381_v0  ;;  %365 = vmatprep.subr.bf16.mxu1 %v381_v0  ;;  %v384_v3 = vld [vmem:[%s500_s1 + $0x8] sm:$0xff]   ;;  %v386_v5 = vld [vmem:[%s500_s1 + $0x10] sm:$0xff]  }
   0x3   :  { %338 = vmatpush3.bf16.msra.mxu0 %v382_v1  ;;  %373 = vmatpush3.bf16.msra.mxu1 %v382_v1  ;;  %v387_v6 = vld [vmem:[%s500_s1 + $0x58] sm:$0xff]   ;;  %v389_v8 = vld [vmem:[%s500_s1 + $0x60] sm:$0xff]   ;;  %v391_v10 = vld [vmem:[%s500_s1 + $0x68] sm:$0xff]  }
   0x4   :  { %339 = vmatprep.subr.bf16.mxu0 %v383_v2  ;;  %366 = vmatprep.subr.bf16.mxu1 %v383_v2  ;;  %v388_v7 = vld [vmem:[%s500_s1 + $0x18] sm:$0xff]   ;;  %v390_v9 = vld [vmem:[%s500_s1 + $0x20] sm:$0xff]   ;;  %v392_v13 = vld [vmem:[%s500_s1 + $0x28] sm:$0xff]  }
   0x5   :  { %v399_v11 = vld [vmem:[%s501_s0 + $0x4] ss:$8 sps:$4 sm:$0xff]   ;;  %v402_v12 = vld [vmem:[%s501_s0 + $0x14] ss:$8 sps:$4 sm:$0xff]   ;;  %v397_v18 = vld [vmem:[%s501_s0] ss:$8 sps:$4 sm:$0xff]  }
   0x6   :  { %v393_v14 = vld [vmem:[%s500_s1 + $0x70] sm:$0xff]   ;;  %214 = vmatprep.mubr.bf16.mxu0 %v399_v11  ;;  %222 = vmatprep.mubr.bf16.mxu1 %v402_v12  ;;  %v395_v16 = vld [vmem:[%s500_s1 + $0x78] sm:$0xff]   ;;  %v316_v23 = vld [vmem:[%s502_s2] ss:$0 sm:$0xff] }
   0x7   :  { %340 = vmatpush3.bf16.msra.mxu0 %v384_v3  ;;  %374 = vmatpush3.bf16.msra.mxu1 %v384_v3  ;;  %v394_v15 = vld [vmem:[%s500_s1 + $0x30] sm:$0xff]   ;;  %v396_v17 = vld [vmem:[%s500_s1 + $0x38] sm:$0xff]   ;;  %v317_v29 = vld [vmem:[%s503_s3] ss:$0 sm:$0xff] }
   0x8   :  { %341 = vmatprep.subr.bf16.mxu0 %v385_v4  ;;  %367 = vmatprep.subr.bf16.mxu1 %v385_v4  ;;  %v400_v19 = vld [vmem:[%s501_s0 + $0x10] ss:$8 sps:$4 sm:$0xff]  }
   0xb   :  { %342 = vmatpush3.bf16.msra.mxu0 %v386_v5  ;;  %375 = vmatpush3.bf16.msra.mxu1 %v386_v5 }
   0xc   :  { %343 = vmatprep.subr.bf16.mxu0 %v387_v6  ;;  %368 = vmatprep.subr.bf16.mxu1 %v387_v6 }
   0xf   :  { %344 = vmatpush3.bf16.msra.mxu0 %v388_v7  ;;  %376 = vmatpush3.bf16.msra.mxu1 %v388_v7 }
  0x10   :  { %345 = vmatprep.subr.bf16.mxu0 %v389_v8  ;;  %369 = vmatprep.subr.bf16.mxu1 %v389_v8 }
  0x13   :  { %346 = vmatpush3.bf16.msra.mxu0 %v390_v9  ;;  %377 = vmatpush3.bf16.msra.mxu1 %v390_v9 }
  0x14   :  { %347 = vmatprep.subr.bf16.mxu0 %v391_v10  ;;  %370 = vmatprep.subr.bf16.mxu1 %v391_v10 }
  0x17   :  { %348 = vmatpush3.bf16.msra.mxu0 %v392_v13  ;;  %378 = vmatpush3.bf16.msra.mxu1 %v392_v13 }
  0x18   :  { %349 = vmatprep.subr.bf16.mxu0 %v393_v14  ;;  %371 = vmatprep.subr.bf16.mxu1 %v393_v14 }
  0x1b   :  { %350 = vmatpush3.bf16.msra.mxu0 %v394_v15  ;;  %379 = vmatpush3.bf16.msra.mxu1 %v394_v15 }
  0x1c   :  { %351 = vmatprep.subr.bf16.mxu0 %v395_v16  ;;  %372 = vmatprep.subr.bf16.mxu1 %v395_v16 }
  0x1f   :  { %352 = vmatpush3.bf16.msra.mxu0 %v396_v17  ;;  %380 = vmatpush3.bf16.msra.mxu1 %v396_v17 }
  0x22   :  { %215 = vmatmul.mubr.bf16.vlgmr.msra.gmra.mrb[0].mxu0 %v397_v18  ;;  %223 = vmatmul.mubr.bf16.vlgmr.msra.gmra.mrb[0].mxu1 %v400_v19 }
  0xf5   :  { %v353_v20 = vpop.f32.mrb[0].mxu0  ;;  %v359_v21 = vpop.f32.mrb[0].mxu1 }
  0xf6   :  { %v354_v22 = vpop.f32.mrb[1].mxu0  ;;  %v360_v24 = vpop.f32.mrb[1].mxu1 }
  0xf7   :  { %v355_v25 = vadd.f32 %v354_v22, %v353_v20  ;;  %v361_v26 = vadd.f32 %v360_v24, %v359_v21  ;;  %v356_v27 = vpop.f32.mrb[2].mxu0  ;;  %v362_v28 = vpop.f32.mrb[2].mxu1 }
  0xf8   :  { %v357_v30 = vpop.f32.mrb[3].mxu0  ;;  %v363_v31 = vpop.f32.mrb[3].mxu1 }
  0xf9   :  { %v253_v32 = vmul.f32 %v355_v25, %v316_v23  ;;  %v255_v33 = vmul.f32 %v361_v26, %v316_v23  ;;  %v358_v34 = vadd.f32 %v357_v30, %v356_v27  ;;  %v364_v35 = vadd.f32 %v363_v31, %v362_v28 }
  0xfb   :  { %v264_v36 = vadd.f32 %v317_v29, %v253_v32  ;;  %v266_v37 = vadd.f32 %v317_v29, %v255_v33  ;;  %v254_v38 = vmul.f32 %v358_v34, %v316_v23  ;;  %v256_v39 = vmul.f32 %v364_v35, %v316_v23 }
  0xfd   :  { %v265_v40 = vadd.f32 %v317_v29, %v254_v38  ;;  %v267_v41 = vadd.f32 %v317_v29, %v256_v39  ;;  %v268_v42 = vmax.f32 %v264_v36, 0.0  ;;  %v270_v43 = vmax.f32 %v266_v37, 0.0 }
  0xff   :  { %v269_v44 = vmax.f32 %v265_v40, 0.0  ;;  %v271_v45 = vmax.f32 %v267_v41, 0.0 }
 0x101   :  { %v329_v46 = vpack.c.bf16 %v269_v44, %v268_v42  ;;  %v334_v47 = vpack.c.bf16 %v271_v45, %v270_v43 }
 0x103   :  { %330 = vst [vmem:[%s504_s4] sm:$0xff] %v329_v46   ;;  %336 = vst [vmem:[%s504_s4 + $0x8] sm:$0xff] %v334_v47  }

// kernel: _lambda_.35
= control target key start
LH: loop header
LB: loop body
LE: loop exit
PB: predicated region body
PF: predicated region fallthrough
CT: control target
= control target key end

     0   :  { %v496_v1 = vmov 0   ;;  %v325_v34 = vlaneseq  ;;  %s644_s1 = inlined_call_operand.vmem [shape: bf16[128,512], index: 1, kind: input, shape index: {}]   ;;  %s645_s0 = inlined_call_operand.vmem [shape: bf16[8,128], index: 0, kind: input, shape index: {}]   ;;  %s646_s2 = inlined_call_operand.vmem [shape: f32[1,512], index: 2, kind: input, shape index: {}]   ;;  %s647_s3 = inlined_call_operand.vmem [shape: f32[1,512], index: 3, kind: input, shape index: {}]   ;;  %s648_s4 = inlined_call_operand.vmem [shape: bf16[8,512], index: 4, kind: input, shape index: {}]   ;;  %s649_s5 = inlined_call_operand.vmem [shape: bf16[8,512], index: 5, kind: output, shape index: {}]  }
   0x1   :  { %v448_v0 = vld [vmem:[%s644_s1 + $0x4] ss:$16 sps:$4 sm:$0xff]   ;;  %258 = vmatprep.mubr.bf16.mxu0 %v496_v1  ;;  %299 = vmatprep.mubr.bf16.mxu1 %v496_v1  ;;  %v450_v2 = vld [vmem:[%s644_s1 + $0xc] ss:$16 sps:$4 sm:$0xff]   ;;  %v452_v3 = vld [vmem:[%s644_s1] ss:$16 sps:$4 sm:$0xff]  }
   0x2   :  { %226 = vmatprep.subr.bf16.mxu0 %v448_v0  ;;  %v453_v4 = vld [vmem:[%s644_s1 + $0x8] ss:$16 sps:$4 sm:$0xff]   ;;  %267 = vmatprep.subr.bf16.mxu1 %v450_v2  ;;  %v454_v5 = vld [vmem:[%s644_s1 + $0x24] ss:$16 sps:$4 sm:$0xff]   ;;  %v456_v6 = vld [vmem:[%s644_s1 + $0x2c] ss:$16 sps:$4 sm:$0xff]  }
   0x3   :  { %227 = vmatpush1.bf16.msra.mxu0 %v452_v3  ;;  %268 = vmatpush1.bf16.msra.mxu1 %v453_v4  ;;  %v458_v7 = vld [vmem:[%s644_s1 + $0x20] ss:$16 sps:$4 sm:$0xff]   ;;  %v459_v8 = vld [vmem:[%s644_s1 + $0x28] ss:$16 sps:$4 sm:$0xff]   ;;  %v460_v9 = vld [vmem:[%s644_s1 + $0x44] ss:$16 sps:$4 sm:$0xff]  }
   0x4   :  { %228 = vmatprep.subr.bf16.mxu0 %v454_v5  ;;  %269 = vmatprep.subr.bf16.mxu1 %v456_v6  ;;  %v462_v10 = vld [vmem:[%s644_s1 + $0x4c] ss:$16 sps:$4 sm:$0xff]   ;;  %v464_v11 = vld [vmem:[%s644_s1 + $0x40] ss:$16 sps:$4 sm:$0xff]   ;;  %v465_v12 = vld [vmem:[%s644_s1 + $0x48] ss:$16 sps:$4 sm:$0xff]  }
   0x5   :  { %v466_v13 = vld [vmem:[%s644_s1 + $0x64] ss:$16 sps:$4 sm:$0xff]   ;;  %v468_v14 = vld [vmem:[%s644_s1 + $0x6c] ss:$16 sps:$4 sm:$0xff]   ;;  %v470_v15 = vld [vmem:[%s644_s1 + $0x60] ss:$16 sps:$4 sm:$0xff]  }
   0x6   :  { %v471_v16 = vld [vmem:[%s644_s1 + $0x68] ss:$16 sps:$4 sm:$0xff]   ;;  %v472_v17 = vld [vmem:[%s644_s1 + $0x84] ss:$16 sps:$4 sm:$0xff]   ;;  %v474_v18 = vld [vmem:[%s644_s1 + $0x8c] ss:$16 sps:$4 sm:$0xff]  }
   0x7   :  { %229 = vmatpush1.bf16.msra.mxu0 %v458_v7  ;;  %270 = vmatpush1.bf16.msra.mxu1 %v459_v8  ;;  %v476_v19 = vld [vmem:[%s644_s1 + $0x80] ss:$16 sps:$4 sm:$0xff]   ;;  %v477_v20 = vld [vmem:[%s644_s1 + $0x88] ss:$16 sps:$4 sm:$0xff]   ;;  %v478_v21 = vld [vmem:[%s644_s1 + $0xa4] ss:$16 sps:$4 sm:$0xff]  }
   0x8   :  { %230 = vmatprep.subr.bf16.mxu0 %v460_v9  ;;  %271 = vmatprep.subr.bf16.mxu1 %v462_v10  ;;  %v480_v22 = vld [vmem:[%s644_s1 + $0xac] ss:$16 sps:$4 sm:$0xff]   ;;  %v482_v23 = vld [vmem:[%s644_s1 + $0xa0] ss:$16 sps:$4 sm:$0xff]   ;;  %v483_v24 = vld [vmem:[%s644_s1 + $0xa8] ss:$16 sps:$4 sm:$0xff]  }
   0x9   :  { %v484_v25 = vld [vmem:[%s644_s1 + $0xc4] ss:$16 sps:$4 sm:$0xff]   ;;  %v486_v26 = vld [vmem:[%s644_s1 + $0xcc] ss:$16 sps:$4 sm:$0xff]   ;;  %v488_v27 = vld [vmem:[%s644_s1 + $0xc0] ss:$16 sps:$4 sm:$0xff]  }
   0xa   :  { %v489_v28 = vld [vmem:[%s644_s1 + $0xc8] ss:$16 sps:$4 sm:$0xff]   ;;  %v490_v29 = vld [vmem:[%s644_s1 + $0xe4] ss:$16 sps:$4 sm:$0xff]   ;;  %v492_v30 = vld [vmem:[%s644_s1 + $0xec] ss:$16 sps:$4 sm:$0xff]  }
   0xb   :  { %231 = vmatpush1.bf16.msra.mxu0 %v464_v11  ;;  %272 = vmatpush1.bf16.msra.mxu1 %v465_v12  ;;  %v494_v31 = vld [vmem:[%s644_s1 + $0xe0] ss:$16 sps:$4 sm:$0xff]   ;;  %v495_v32 = vld [vmem:[%s644_s1 + $0xe8] ss:$16 sps:$4 sm:$0xff]   ;;  %v326_v35 = vshrl.u32 %v325_v34, 7 }
   0xc   :  { %232 = vmatprep.subr.bf16.mxu0 %v466_v13  ;;  %273 = vmatprep.subr.bf16.mxu1 %v468_v14  ;;  %v33_v33 = vld [vmem:[%s645_s0] sm:$0xf]  ;;  %v376_v45 = vld [vmem:[%s648_s4 + $0x8] sm:$0xff] }
   0xd   :  { %v327_v36 = vsub.s32 0, %v326_v35  ;;  %v335_v37 = vsub.s32 2, %v326_v35  ;;  %v323_v38 = vld [vmem:[%s646_s2] sm:$0xf]  ;;  %v331_v39 = vsub.s32 1, %v326_v35  ;;  %v339_v40 = vsub.s32 3, %v326_v35 }
   0xe   :  { %v349_v41 = vld [vmem:[%s647_s3] sm:$0xf]  ;;  %v379_v57 = vunpack.c.l.bf16 %v376_v45  ;;  %v380_v63 = vunpack.c.h.bf16 %v376_v45 }
   0xf   :  { %233 = vmatpush1.bf16.msra.mxu0 %v470_v15  ;;  %274 = vmatpush1.bf16.msra.mxu1 %v471_v16  ;;  %v328_v42 = vrot.slane %v323_v38, %v327_v36  ;;  %v336_v43 = vrot.slane %v323_v38, %v335_v37  ;;  %v375_v44 = vld [vmem:[%s648_s4] sm:$0xff]  ;;  %v332_v46 = vrot.slane %v323_v38, %v331_v39 }
  0x10   :  { %234 = vmatprep.subr.bf16.mxu0 %v472_v17  ;;  %275 = vmatprep.subr.bf16.mxu1 %v474_v18  ;;  %v340_v47 = vrot.slane %v323_v38, %v339_v40  ;;  %v354_v48 = vrot.slane %v349_v41, %v327_v36  ;;  %v362_v49 = vrot.slane %v349_v41, %v335_v37  ;;  %v377_v55 = vunpack.c.l.bf16 %v375_v44 }
  0x11   :  { %v358_v52 = vrot.slane %v349_v41, %v331_v39  ;;  %v366_v53 = vrot.slane %v349_v41, %v339_v40  ;;  %v378_v61 = vunpack.c.h.bf16 %v375_v44 }
  0x13   :  { %235 = vmatpush1.bf16.msra.mxu0 %v476_v19  ;;  %276 = vmatpush1.bf16.msra.mxu1 %v477_v20 }
  0x14   :  { %236 = vmatprep.subr.bf16.mxu0 %v478_v21  ;;  %277 = vmatprep.subr.bf16.mxu1 %v480_v22 }
  0x17   :  { %237 = vmatpush1.bf16.msra.mxu0 %v482_v23  ;;  %278 = vmatpush1.bf16.msra.mxu1 %v483_v24 }
  0x18   :  { %238 = vmatprep.subr.bf16.mxu0 %v484_v25  ;;  %279 = vmatprep.subr.bf16.mxu1 %v486_v26 }
  0x1b   :  { %239 = vmatpush1.bf16.msra.mxu0 %v488_v27  ;;  %280 = vmatpush1.bf16.msra.mxu1 %v489_v28 }
  0x1c   :  { %240 = vmatprep.subr.bf16.mxu0 %v490_v29  ;;  %281 = vmatprep.subr.bf16.mxu1 %v492_v30 }
  0x1f   :  { %241 = vmatpush1.bf16.msra.mxu0 %v494_v31  ;;  %282 = vmatpush1.bf16.msra.mxu1 %v495_v32 }
  0x22   :  { %259 = vmatmul.mubr.bf16.vlgmr.msra.gmra.mrb[0].mxu0 %v33_v33  ;;  %300 = vmatmul.mubr.bf16.vlgmr.msra.gmra.mrb[0].mxu1 %v33_v33 }
  0xf5   :  { %v260_v50 = vpop.f32.mrb[0].mxu0  ;;  %v301_v51 = vpop.f32.mrb[0].mxu1 }
  0xf6   :  { %v345_v54 = vmul.f32 %v328_v42, %v260_v50  ;;  %v347_v56 = vmul.f32 %v336_v43, %v301_v51  ;;  %v262_v58 = vpop.f32.mrb[1].mxu0  ;;  %v303_v59 = vpop.f32.mrb[1].mxu1 }
  0xf7   :  { %v346_v60 = vmul.f32 %v332_v46, %v262_v58  ;;  %v348_v62 = vmul.f32 %v340_v47, %v303_v59  ;;  %v264_v0 = vpop.f32.mrb[2].mxu0  ;;  %v305_v1 = vpop.f32.mrb[2].mxu1 }
  0xf8   :  { %v371_v2 = vadd.f32 %v354_v48, %v345_v54  ;;  %v373_v3 = vadd.f32 %v362_v49, %v347_v56  ;;  %v265_v4 = vpop.f32.mrb[3].mxu0  ;;  %v306_v5 = vpop.f32.mrb[3].mxu1 }
  0xf9   :  { %v372_v6 = vadd.f32 %v358_v52, %v346_v60  ;;  %v374_v7 = vadd.f32 %v366_v53, %v348_v62 }
  0xfa   :  { %v381_v8 = vadd.f32 %v377_v55, %v371_v2  ;;  %v383_v9 = vadd.f32 %v379_v57, %v373_v3 }
  0xfb   :  { %v382_v10 = vadd.f32 %v378_v61, %v372_v6  ;;  %v384_v11 = vadd.f32 %v380_v63, %v374_v7 }
  0xfc   :  { %v385_v12 = vmax.f32 %v381_v8, 0.0  ;;  %v387_v13 = vmax.f32 %v383_v9, 0.0 }
  0xfd   :  { %v386_v14 = vmax.f32 %v382_v10, 0.0  ;;  %v388_v15 = vmax.f32 %v384_v11, 0.0 }
  0xff   :  { %v445_v16 = vpack.c.bf16 %v386_v14, %v385_v12  ;;  %v446_v17 = vpack.c.bf16 %v388_v15, %v387_v13 }
 0x101   :  { %405 = vst [vmem:[%s649_s5] sm:$0xff] %v445_v16  ;;  %406 = vst [vmem:[%s649_s5 + $0x8] sm:$0xff] %v446_v17 }

// kernel: _lambda_.34
= control target key start
LH: loop header
LB: loop body
LE: loop exit
PB: predicated region body
PF: predicated region fallthrough
CT: control target
= control target key end

     0   :  { %s934_s15 = smov 0   ;;  %s936_s16 = smov 0   ;;  %s1012_s0 = inlined_call_operand.vmem [shape: bf16[8,1152], index: 0, kind: input, shape index: {}]   ;;  %s1013_s1 = inlined_call_operand.vmem [shape: bf16[1152,128], index: 1, kind: input, shape index: {}]   ;;  %s1014_s2 = inlined_call_operand.vmem [shape: f32[1,128], index: 2, kind: input, shape index: {}]   ;;  %s1015_s3 = inlined_call_operand.vmem [shape: f32[1,128], index: 3, kind: input, shape index: {}]   ;;  %s1016_s4 = inlined_call_operand.vmem [shape: bf16[8,128], index: 4, kind: output, shape index: {}]  }
   0x1   :  { %s938_s17 = smov 0  }
   0x2 LB: > { %s26_s18 = sadd.s32 1, %s900_s16  ;;  %p740_p0 = scmp.ge.s32.totalorder %s904_s17, 1  ;;  %s904_s17 = sphi %s938_s17, %s14_s17   ;;  %s900_s16 = sphi %s936_s16, %s1018_s16   ;;  %s896_s15 = sphi %s934_s15, %s1017_s15  }
   0x3   : > { %p27_p1 = scmp.ge.s32.totalorder %s26_s18, 3  ;;  %p222_p2 = scmp.lt.s32.totalorder %s904_s17, 4 }
   0x5   : > { %s1020_s18 = smov (%p27_p1, %s26_s18), 0  ;;  %p223_p3 = pnand %p740_p0, %p222_p2 }
   0x6   : > { %s268_s19 = smul.u32 (!%p223_p3), 3, %s896_s15  ;;  %p743_p6 = scmp.ne.s32.totalorder (!%p223_p3), %s896_s15, 0 }
   0x7   : > { %226 = sbr.rel (%p223_p3) target bundleno = 293 (0x125), region = 36 }
   0x8   : > { %s278_s20 = smul.u32 (!%p223_p3), 48, %s896_s15  ;;  %p271_p4 = scmp.lt.s32.totalorder (!%p223_p3), %s268_s19, 8 }
   0xa   : > { %p279_p5 = scmp.lt.s32.totalorder (!%p223_p3), %s278_s20, 143 }
   0xe   : > { %s1022_s19 = smov (!%p271_p4, %s268_s19), 8  ;;  %s1024_s20 = smov (!%p279_p5, %s278_s20), 143 }
   0xf   : > { %s741_s21 = sshll.u32 %s1022_s19, 2  ;;  %s742_s25 = sshll.u32 %s1024_s20, 2  ;;  %v906_v0 = vmov (!%p743_p6), 0.0  }
  0x10   : > { %s959_s24 = scalar_lea.vmem %s1012_s0, %s741_s21  ;;  %s964_s28 = scalar_lea.vmem %s1013_s1, %s742_s25  ;;  %305 = vst [vmem:[#allocation2] sm:$0xff] (!%p743_p6), %v906_v0 }
  0x11   : > { %304 = sbr.rel (%p743_p6) target bundleno = 24 (0x18), region = 40 }
  0x18 PF: > { %v855_v1 = vld [vmem:[%s964_s28 + $0x40] sm:$0xff]   ;;  %v907_v2 = vmov 0.0   ;;  %vm908_vm0 = vmmov 0   ;;  %v858_v5 = vld [vmem:[%s964_s28 + $0x48] sm:$0xff]   ;;  %v861_v8 = vld [vmem:[%s964_s28 + $0x50] sm:$0xff]   ;;  %p771_p7 = scmp.ne.s32.totalorder %s896_s15, 2 }
  0x19   : > { %808 = vmatprep.subr.bf16.mxu1 %v907_v2  ;;  %v856_v3 = vld [vmem:[%s964_s28] sm:$0xff]   ;;  %777 = vmatprep.subr.bf16.mxu0 %v855_v1  ;;  %v859_v6 = vld [vmem:[%s964_s28 + $0x8] sm:$0xff]   ;;  %v862_v9 = vld [vmem:[%s964_s28 + $0x10] sm:$0xff]  }
  0x1a   : > { %v857_v4 = vld [vmem:[%s964_s28 + $0x80] sm:$0xff]   ;;  %824 = vmatprep.mubr.msk.bf16.mxu1 %vm908_vm0, %v907_v2  ;;  %778 = vmatpush3.bf16.msra.mxu0 %v856_v3  ;;  %v860_v7 = vld [vmem:[%s964_s28 + $0x88] sm:$0xff]   ;;  %v863_v10 = vld [vmem:[%s964_s28 + $0x90] sm:$0xff]  }
  0x1b   : > { %809 = vmatpush3.bf16.msra.mxu1 %v857_v4  ;;  %779 = vmatprep.subr.bf16.mxu0 %v858_v5  ;;  %v864_v11 = vld [vmem:[%s964_s28 + $0x58] sm:$0xff]   ;;  %v867_v14 = vld [vmem:[%s964_s28 + $0x60] sm:$0xff]   ;;  %v870_v17 = vld [vmem:[%s964_s28 + $0x68] sm:$0xff]  }
  0x1c   : > { %810 = vmatprep.subr.bf16.mxu1 %v907_v2  ;;  %v865_v12 = vld [vmem:[%s964_s28 + $0x18] sm:$0xff]   ;;  %v868_v15 = vld [vmem:[%s964_s28 + $0x20] sm:$0xff]   ;;  %v871_v18 = vld [vmem:[%s964_s28 + $0x28] sm:$0xff]  }
  0x1d   : > { %v866_v13 = vld [vmem:[%s964_s28 + $0x98] sm:$0xff]   ;;  %v869_v16 = vld [vmem:[%s964_s28 + $0xa0] sm:$0xff]   ;;  %v872_v19 = vld [vmem:[%s964_s28 + $0xa8] sm:$0xff]  }
  0x1e   : > { %780 = vmatpush3.bf16.msra.mxu0 %v859_v6  ;;  %v873_v20 = vld [vmem:[%s964_s28 + $0x70] sm:$0xff]   ;;  %v876_v23 = vld [vmem:[%s964_s28 + $0x78] sm:$0xff]   ;;  %v307_v24 = vld [vmem:[%s959_s24] sm:$0xff] }
  0x1f   : > { %811 = vmatpush3.bf16.msra.mxu1 %v860_v7  ;;  %781 = vmatprep.subr.bf16.mxu0 %v861_v8  ;;  %v874_v21 = vld [vmem:[%s964_s28 + $0x30] sm:$0xff]   ;;  %v745_v25 = vcombine.high %v307_v24, %v307_v24  ;;  %v877_v26 = vld [vmem:[%s964_s28 + $0x38] sm:$0xff]   ;;  %v744_v28 = vcombine.low %v307_v24, %v307_v24  ;;  %v881_v29 = vld [vmem:[%s959_s24 + $0x8] ss:$0 sps:$4 sm:$0xff]  }
  0x20   : > { %812 = vmatprep.subr.bf16.mxu1 %v907_v2  ;;  %v875_v22 = vld [vmem:[%s964_s28 + $0xb0] sm:$0xff]   ;;  %v878_v27 = vld [vmem:[%s964_s28 + $0xb8] sm:$0xff]   ;;  %v306_v36 = vld [vmem:[#allocation2] sm:$0xff] }
  0x21   : > { %544 = vmatprep.mubr.bf16.mxu0 %v745_v25  ;;  %v772_v43 = vld [vmem:[%s1014_s2] ss:$0 sm:$0xff] (!%p771_p7) }
  0x22   : > { %782 = vmatpush3.bf16.msra.mxu0 %v862_v9  ;;  %v773_v44 = vld [vmem:[%s1015_s3] ss:$0 sm:$0xff] (!%p771_p7) }
  0x23   : > { %813 = vmatpush3.bf16.msra.mxu1 %v863_v10  ;;  %783 = vmatprep.subr.bf16.mxu0 %v864_v11 }
  0x24   : > { %814 = vmatprep.subr.bf16.mxu1 %v907_v2 }
  0x26   : > { %784 = vmatpush3.bf16.msra.mxu0 %v865_v12 }
  0x27   : > { %815 = vmatpush3.bf16.msra.mxu1 %v866_v13  ;;  %785 = vmatprep.subr.bf16.mxu0 %v867_v14 }
  0x28   : > { %816 = vmatprep.subr.bf16.mxu1 %v907_v2 }
  0x2a   : > { %786 = vmatpush3.bf16.msra.mxu0 %v868_v15 }
  0x2b   : > { %817 = vmatpush3.bf16.msra.mxu1 %v869_v16  ;;  %787 = vmatprep.subr.bf16.mxu0 %v870_v17 }
  0x2c   : > { %818 = vmatprep.subr.bf16.mxu1 %v907_v2 }
  0x2e   : > { %788 = vmatpush3.bf16.msra.mxu0 %v871_v18 }
  0x2f   : > { %819 = vmatpush3.bf16.msra.mxu1 %v872_v19  ;;  %789 = vmatprep.subr.bf16.mxu0 %v873_v20 }
  0x30   : > { %820 = vmatprep.subr.bf16.mxu1 %v907_v2 }
  0x32   : > { %790 = vmatpush3.bf16.msra.mxu0 %v874_v21 }
  0x33   : > { %821 = vmatpush3.bf16.msra.mxu1 %v875_v22  ;;  %791 = vmatprep.subr.bf16.mxu0 %v876_v23 }
  0x34   : > { %822 = vmatprep.subr.bf16.mxu1 %v907_v2 }
  0x36   : > { %792 = vmatpush3.bf16.msra.mxu0 %v877_v26 }
  0x37   : > { %823 = vmatpush3.bf16.msra.mxu1 %v878_v27 }
  0x39   : > { %545 = vmatmul.mubr.bf16.vlgmr.msra.gmra.mrb[0].mxu0 %v744_v28 }
  0x3a   : > { %825 = vmatmul.mubr.bf16.vlgmr.msra.gmra.mrb[0].mxu1 %v881_v29 }
 0x10c   : > { %v793_v30 = vpop.f32.mrb[0].mxu0 }
 0x10d   : > { %v586_v31 = vpop.f32.mrb[0].mxu1  ;;  %v794_v32 = vpop.f32.mrb[1].mxu0 }
 0x10e   : > { %v795_v33 = vadd.f32 %v794_v32, %v793_v30  ;;  %v826_v34 = vpop.f32.mrb[1].mxu1  ;;  %v796_v35 = vpop.f32.mrb[2].mxu0  ;;  %597 = sbr.rel (%p771_p7) target bundleno = 293 (0x125), region = 44 }
 0x10f   : > { %v589_v37 = vpop.f32.mrb[2].mxu1  ;;  %v797_v38 = vpop.f32.mrb[3].mxu0 }
 0x110   : > { %v587_v39 = vadd.f32 %v795_v33, %v586_v31  ;;  %v827_v40 = vpop.f32.mrb[3].mxu1 }
 0x112   : > { %v592_v41 = vadd.f32 %v587_v39, %v306_v36 }
 0x114   : > { %593 = vst [vmem:[#allocation2] sm:$0xff] %v592_v41 }
 0x11b   : > { %v598_v42 = vld [vmem:[#allocation2] sm:$0xff] }
 0x11c   : > { %v606_v45 = vmul.f32 %v772_v43, %v598_v42 }
 0x11e   : > { %v614_v46 = vadd.f32 %v773_v44, %v606_v45 }
 0x120   : > { %v615_v47 = vmax.f32 %v614_v46, 0.0 }
 0x122   : > { %v616_v48 = vpack.c.bf16 %v615_v47, %v615_v47 }
 0x124   : > { %617 = vst [vmem:[%s1016_s4] sm:$0xf] %v616_v48 }
 0x125 PF: > { %s14_s17 = sadd.s32 1, %s904_s17   ;;  %s1017_s15 = smov %s900_s16 }
 0x126   : > { %p11_p8 = scmp.ge.s32.totalorder %s14_s17, 5   ;;  %s1018_s16 = smov %s1020_s18 }
 0x128   :  { %13 = sbr.rel (!%p11_p8) target bundleno = 2 (0x2), region = 83 }

// kernel: _lambda_.36
= control target key start
LH: loop header
LB: loop body
LE: loop exit
PB: predicated region body
PF: predicated region fallthrough
CT: control target
= control target key end

     0   :  { %v144_v3 = vmov 1983009808   ;;  %v87_v5 = vlaneseq  ;;  %vm121_vm0 = vcmask 1041409   ;;  %vm123_vm1 = vcmask 1043459   ;;  %s173_s0 = inlined_call_operand.vmem [shape: bf16[2,8,512], index: 0, kind: input, shape index: {}]   ;;  %s174_s1 = inlined_call_operand.vmem [shape: f32[2,512], index: 1, kind: output, shape index: {}]  }
   0x1   :  { %v14_v0 = vld [vmem:[%s173_s0] sm:$0xff]  ;;  %v15_v1 = vld [vmem:[%s173_s0 + $0x8] sm:$0xff]  ;;  %v16_v2 = vld [vmem:[%s173_s0 + $0x10] sm:$0xff]  ;;  %v164_v4 = vunpack.c.l.s4 %v144_v3  ;;  %vm125_vm2 = vcmask 1045509   ;;  %vm127_vm3 = vcmask 1047559  }
   0x2   :  { %v17_v6 = vld [vmem:[%s173_s0 + $0x18] sm:$0xff]  ;;  %v18_v7 = vunpack.c.l.bf16 %v14_v0  ;;  %v19_v8 = vunpack.c.h.bf16 %v14_v0  ;;  %v20_v9 = vunpack.c.l.bf16 %v15_v1  ;;  %v21_v10 = vunpack.c.h.bf16 %v15_v1 }
   0x3   :  { %v22_v11 = vunpack.c.l.bf16 %v16_v2  ;;  %v23_v12 = vunpack.c.h.bf16 %v16_v2  ;;  %v24_v13 = vunpack.c.l.bf16 %v17_v6  ;;  %v25_v14 = vunpack.c.h.bf16 %v17_v6 }
   0x4   :  { %v26_v15 = vrot.slane %v18_v7, 4  ;;  %v32_v16 = vrot.slane %v19_v8, 4  ;;  %v38_v17 = vrot.slane %v20_v9, 4  ;;  %v44_v18 = vrot.slane %v21_v10, 4 }
   0x5   :  { %v50_v19 = vrot.slane %v22_v11, 4  ;;  %v56_v20 = vrot.slane %v23_v12, 4  ;;  %v62_v21 = vrot.slane %v24_v13, 4  ;;  %v68_v22 = vrot.slane %v25_v14, 4 }
   0x6   :  { %v27_v23 = vadd.f32 %v26_v15, %v18_v7  ;;  %v33_v24 = vadd.f32 %v32_v16, %v19_v8  ;;  %v39_v25 = vadd.f32 %v38_v17, %v20_v9  ;;  %v45_v26 = vadd.f32 %v44_v18, %v21_v10 }
   0x7   :  { %v51_v27 = vadd.f32 %v50_v19, %v22_v11  ;;  %v57_v28 = vadd.f32 %v56_v20, %v23_v12  ;;  %v63_v29 = vadd.f32 %v62_v21, %v24_v13  ;;  %v69_v30 = vadd.f32 %v68_v22, %v25_v14 }
   0x8   :  { %v28_v31 = vrot.slane %v27_v23, 2  ;;  %v34_v32 = vrot.slane %v33_v24, 2  ;;  %v40_v33 = vrot.slane %v39_v25, 2  ;;  %v46_v34 = vrot.slane %v45_v26, 2 }
   0x9   :  { %v52_v35 = vrot.slane %v51_v27, 2  ;;  %v58_v36 = vrot.slane %v57_v28, 2  ;;  %v64_v37 = vrot.slane %v63_v29, 2  ;;  %v70_v38 = vrot.slane %v69_v30, 2 }
   0xa   :  { %v29_v39 = vadd.f32 %v28_v31, %v27_v23  ;;  %v35_v40 = vadd.f32 %v34_v32, %v33_v24  ;;  %v41_v41 = vadd.f32 %v40_v33, %v39_v25  ;;  %v47_v42 = vadd.f32 %v46_v34, %v45_v26 }
   0xb   :  { %v53_v43 = vadd.f32 %v52_v35, %v51_v27  ;;  %v59_v44 = vadd.f32 %v58_v36, %v57_v28  ;;  %v65_v45 = vadd.f32 %v64_v37, %v63_v29  ;;  %v71_v46 = vadd.f32 %v70_v38, %v69_v30 }
   0xc   :  { %v30_v47 = vrot.slane %v29_v39, 1  ;;  %v36_v48 = vrot.slane %v35_v40, 1  ;;  %v42_v49 = vrot.slane %v41_v41, 1  ;;  %v48_v50 = vrot.slane %v47_v42, 1 }
   0xd   :  { %v54_v51 = vrot.slane %v53_v43, 1  ;;  %v60_v52 = vrot.slane %v59_v44, 1  ;;  %v66_v53 = vrot.slane %v65_v45, 1  ;;  %v72_v54 = vrot.slane %v71_v46, 1 }
   0xe   :  { %v31_v55 = vadd.f32 %v30_v47, %v29_v39  ;;  %v37_v56 = vadd.f32 %v36_v48, %v35_v40  ;;  %v43_v57 = vadd.f32 %v42_v49, %v41_v41  ;;  %v49_v58 = vadd.f32 %v48_v50, %v47_v42 }
   0xf   :  { %v55_v59 = vadd.f32 %v54_v51, %v53_v43  ;;  %v61_v60 = vadd.f32 %v60_v52, %v59_v44  ;;  %v67_v61 = vadd.f32 %v66_v53, %v65_v45  ;;  %v73_v62 = vadd.f32 %v72_v54, %v71_v46 }
  0x10   :  { %v82_v63 = vcombine.low %v31_v55, %v37_v56  ;;  %v83_v0 = vcombine.low %v43_v57, %v49_v58  ;;  %v86_v1 = vunpack.c.0.s8 %v164_v4  ;;  %v88_v2 = vshrl.u32 %v87_v5, 7 }
  0x11   :  { %v99_v3 = vcombine.low %v55_v59, %v61_v60  ;;  %v100_v6 = vcombine.low %v67_v61, %v73_v62 }
  0x12   :  { %v89_v7 = vsub.s32 %v86_v1, %v88_v2 }
  0x14   :  { %v90_v8 = vrot.slane %v82_v63, %v89_v7  ;;  %v97_v9 = vrot.slane %v83_v0, %v89_v7  ;;  %v107_v10 = vrot.slane %v99_v3, %v89_v7  ;;  %v114_v11 = vrot.slane %v100_v6, %v89_v7 }
  0x16   :  { %v98_v12 = vcombine.low %v90_v8, %v97_v9  ;;  %v115_v13 = vcombine.low %v107_v10, %v114_v11 }
  0x18   :  { %v120_v14 = vrot.slane %v115_v13, 7 }
  0x1a   :  { %v122_v15 = vsel %vm121_vm0, %v120_v14, %v98_v12 }
  0x1b   :  { %v124_v16 = vsel %vm123_vm1, %v120_v14, %v122_v15 }
  0x1c   :  { %v126_v17 = vsel %vm125_vm2, %v120_v14, %v124_v16 }
  0x1d   :  { %v128_v18 = vsel %vm127_vm3, %v120_v14, %v126_v17 }
  0x1e   :  { %v136_v4 = vmul.f32 0.25, %v128_v18 }
  0x20   :  { %137 = vst [vmem:[%s174_s1] sm:$0xff] %v136_v4 }

// kernel: _lambda_.37
= control target key start
LH: loop header
LB: loop body
LE: loop exit
PB: predicated region body
PF: predicated region fallthrough
CT: control target
= control target key end

     0   :  { %s657_s1 = inlined_call_operand.vmem [shape: bf16[512,128], index: 1, kind: input, shape index: {}]   ;;  %s658_s0 = inlined_call_operand.vmem [shape: bf16[8,512], index: 0, kind: input, shape index: {}]   ;;  %s659_s2 = inlined_call_operand.vmem [shape: f32[1,128], index: 2, kind: input, shape index: {}]   ;;  %s660_s3 = inlined_call_operand.vmem [shape: f32[1,128], index: 3, kind: input, shape index: {}]   ;;  %s661_s4 = inlined_call_operand.vmem [shape: f32[8,128], index: 4, kind: output, shape index: {}]  }
   0x1   :  { %v485_v0 = vld [vmem:[%s657_s1 + $0x40] sm:$0xff]   ;;  %v489_v4 = vld [vmem:[%s657_s1 + $0x48] sm:$0xff]   ;;  %v493_v8 = vld [vmem:[%s657_s1 + $0x50] sm:$0xff]  }
   0x2   :  { %v486_v1 = vld [vmem:[%s657_s1 + $0xc0] sm:$0xff]   ;;  %441 = vmatprep.subr.bf16.mxu0 %v485_v0  ;;  %v490_v5 = vld [vmem:[%s657_s1 + $0xc8] sm:$0xff]   ;;  %v494_v9 = vld [vmem:[%s657_s1 + $0xd0] sm:$0xff]  }
   0x3   :  { %v487_v2 = vld [vmem:[%s657_s1] sm:$0xff]   ;;  %463 = vmatprep.subr.bf16.mxu1 %v486_v1  ;;  %v491_v6 = vld [vmem:[%s657_s1 + $0x8] sm:$0xff]   ;;  %v495_v10 = vld [vmem:[%s657_s1 + $0x10] sm:$0xff]  }
   0x4   :  { %v488_v3 = vld [vmem:[%s657_s1 + $0x80] sm:$0xff]   ;;  %442 = vmatpush3.bf16.msra.mxu0 %v487_v2  ;;  %v492_v7 = vld [vmem:[%s657_s1 + $0x88] sm:$0xff]   ;;  %v496_v11 = vld [vmem:[%s657_s1 + $0x90] sm:$0xff]  }
   0x5   :  { %464 = vmatpush3.bf16.msra.mxu1 %v488_v3  ;;  %443 = vmatprep.subr.bf16.mxu0 %v489_v4  ;;  %v497_v12 = vld [vmem:[%s657_s1 + $0x58] sm:$0xff]   ;;  %v501_v16 = vld [vmem:[%s657_s1 + $0x60] sm:$0xff]   ;;  %v505_v20 = vld [vmem:[%s657_s1 + $0x68] sm:$0xff]  }
   0x6   :  { %465 = vmatprep.subr.bf16.mxu1 %v490_v5  ;;  %v498_v13 = vld [vmem:[%s657_s1 + $0xd8] sm:$0xff]   ;;  %v502_v17 = vld [vmem:[%s657_s1 + $0xe0] sm:$0xff]   ;;  %v506_v21 = vld [vmem:[%s657_s1 + $0xe8] sm:$0xff]  }
   0x7   :  { %v499_v14 = vld [vmem:[%s657_s1 + $0x18] sm:$0xff]   ;;  %v503_v18 = vld [vmem:[%s657_s1 + $0x20] sm:$0xff]   ;;  %v507_v22 = vld [vmem:[%s657_s1 + $0x28] sm:$0xff]  }
   0x8   :  { %444 = vmatpush3.bf16.msra.mxu0 %v491_v6  ;;  %v500_v15 = vld [vmem:[%s657_s1 + $0x98] sm:$0xff]   ;;  %v504_v19 = vld [vmem:[%s657_s1 + $0xa0] sm:$0xff]   ;;  %v508_v23 = vld [vmem:[%s657_s1 + $0xa8] sm:$0xff]  }
   0x9   :  { %466 = vmatpush3.bf16.msra.mxu1 %v492_v7  ;;  %445 = vmatprep.subr.bf16.mxu0 %v493_v8  ;;  %v509_v24 = vld [vmem:[%s657_s1 + $0x70] sm:$0xff]   ;;  %v513_v28 = vld [vmem:[%s657_s1 + $0x78] sm:$0xff]   ;;  %v24_v32 = vld [vmem:[%s658_s0] sm:$0xff] }
   0xa   :  { %467 = vmatprep.subr.bf16.mxu1 %v494_v9  ;;  %v510_v25 = vld [vmem:[%s657_s1 + $0xf0] sm:$0xff]   ;;  %v514_v29 = vld [vmem:[%s657_s1 + $0xf8] sm:$0xff]   ;;  %v25_v33 = vld [vmem:[%s658_s0 + $0x8] sm:$0xff]  ;;  %v403_v34 = vcombine.low %v24_v32, %v24_v32  ;;  %v404_v35 = vcombine.high %v24_v32, %v24_v32 }
   0xb   :  { %v511_v26 = vld [vmem:[%s657_s1 + $0x30] sm:$0xff]   ;;  %v515_v30 = vld [vmem:[%s657_s1 + $0x38] sm:$0xff]   ;;  %v405_v36 = vcombine.low %v25_v33, %v25_v33  ;;  %v406_v37 = vcombine.high %v25_v33, %v25_v33  ;;  %v439_v46 = vld [vmem:[%s659_s2] ss:$0 sm:$0xff] }
   0xc   :  { %446 = vmatpush3.bf16.msra.mxu0 %v495_v10  ;;  %v512_v27 = vld [vmem:[%s657_s1 + $0xb0] sm:$0xff]   ;;  %v516_v31 = vld [vmem:[%s657_s1 + $0xb8] sm:$0xff]   ;;  %328 = vmatprep.mubr.bf16.mxu0 %v404_v35  ;;  %v440_v50 = vld [vmem:[%s660_s3] ss:$0 sm:$0xff] }
   0xd   :  { %468 = vmatpush3.bf16.msra.mxu1 %v496_v11  ;;  %447 = vmatprep.subr.bf16.mxu0 %v497_v12 }
   0xe   :  { %469 = vmatprep.subr.bf16.mxu1 %v498_v13  ;;  %368 = vmatprep.mubr.bf16.mxu1 %v406_v37 }
  0x10   :  { %448 = vmatpush3.bf16.msra.mxu0 %v499_v14 }
  0x11   :  { %470 = vmatpush3.bf16.msra.mxu1 %v500_v15  ;;  %449 = vmatprep.subr.bf16.mxu0 %v501_v16 }
  0x12   :  { %471 = vmatprep.subr.bf16.mxu1 %v502_v17 }
  0x14   :  { %450 = vmatpush3.bf16.msra.mxu0 %v503_v18 }
  0x15   :  { %472 = vmatpush3.bf16.msra.mxu1 %v504_v19  ;;  %451 = vmatprep.subr.bf16.mxu0 %v505_v20 }
  0x16   :  { %473 = vmatprep.subr.bf16.mxu1 %v506_v21 }
  0x18   :  { %452 = vmatpush3.bf16.msra.mxu0 %v507_v22 }
  0x19   :  { %474 = vmatpush3.bf16.msra.mxu1 %v508_v23  ;;  %453 = vmatprep.subr.bf16.mxu0 %v509_v24 }
  0x1a   :  { %475 = vmatprep.subr.bf16.mxu1 %v510_v25 }
  0x1c   :  { %454 = vmatpush3.bf16.msra.mxu0 %v511_v26 }
  0x1d   :  { %476 = vmatpush3.bf16.msra.mxu1 %v512_v27  ;;  %455 = vmatprep.subr.bf16.mxu0 %v513_v28 }
  0x1e   :  { %477 = vmatprep.subr.bf16.mxu1 %v514_v29 }
  0x20   :  { %456 = vmatpush3.bf16.msra.mxu0 %v515_v30 }
  0x21   :  { %478 = vmatpush3.bf16.msra.mxu1 %v516_v31 }
  0x23   :  { %329 = vmatmul.mubr.bf16.vlgmr.msra.gmra.mrb[0].mxu0 %v403_v34 }
  0x24   :  { %369 = vmatmul.mubr.bf16.vlgmr.msra.gmra.mrb[0].mxu1 %v405_v36 }
  0xf6   :  { %v457_v38 = vpop.f32.mrb[0].mxu0 }
  0xf7   :  { %v479_v39 = vpop.f32.mrb[0].mxu1  ;;  %v458_v40 = vpop.f32.mrb[1].mxu0 }
  0xf8   :  { %v480_v41 = vpop.f32.mrb[1].mxu1  ;;  %v459_v42 = vadd.f32 %v458_v40, %v457_v38  ;;  %v460_v44 = vpop.f32.mrb[2].mxu0 }
  0xf9   :  { %v481_v43 = vadd.f32 %v480_v41, %v479_v39  ;;  %v482_v45 = vpop.f32.mrb[2].mxu1  ;;  %v461_v47 = vpop.f32.mrb[3].mxu0 }
  0xfa   :  { %v483_v48 = vpop.f32.mrb[3].mxu1 }
  0xfb   :  { %v371_v49 = vadd.f32 %v481_v43, %v459_v42 }
  0xfd   :  { %v389_v51 = vmul.f32 %v439_v46, %v371_v49 }
  0xff   :  { %v397_v52 = vadd.f32 %v440_v50, %v389_v51 }
 0x101   :  { %398 = vst [vmem:[%s661_s4] sm:$0xff] %v397_v52 }

</bundles_post_ra>
